<compile_context>
chip_gen: v6e
topology: v6e:2x2x1
jax: 0.10.0
libtpu: 0.0.40
codegen_flags: <defaults>
</compile_context>

<pallas_src>
import jax
import jax.numpy as jnp
from jax.experimental import pallas as pl
from jax.experimental.pallas import tpu as pltpu


def gcn_kernel(x_ref, dom_ref, domT_ref, mask_ref, w_ref, bias_ref,
               mu_ref, sig_ref, out_ref, support_ref, base_ref):
    k = pl.program_id(1)
    ker = w_ref.shape[0]
    emb = dom_ref.shape[1]

    @pl.when(k == 0)
    def _prologue():
        # Fresh accumulator for this row tile.
        out_ref[...] = jnp.zeros_like(out_ref)

        # support[kk] = x @ W_kk  (small f32 MXU matmuls, stored bf16 for the
        # big bf16 adj @ support matmul).  Recomputed once per row tile.
        x = x_ref[...]
        for kk in range(ker):
            support_ref[kk] = jnp.dot(
                x, w_ref[kk], preferred_element_type=jnp.float32
            ).astype(support_ref.dtype)

        # base[i, j] = ||dom_i - dom_j||^2 over emb coords (emb == 3, unrolled);
        # reused by every k via a rank-1 correction.
        base = None
        for d in range(emb):
            delta = dom_ref[:, d:d + 1] - domT_ref[d:d + 1, :]
            sq = delta * delta
            base = sq if base is None else base + sq
        base_ref[...] = base

    # ||(d_i - d_j) - mu_k||^2 = base[i,j] - 2*ci[i] + 2*cj[j] + ||mu_k||^2
    # with ci = dom_tile @ mu_k (TN,1) and cj = mu_k @ dom^T (1,N).
    m0 = mu_ref[k, 0]
    ci = dom_ref[:, 0:1] * m0
    cj = domT_ref[0:1, :] * m0
    mu_norm2 = m0 * m0
    for d in range(1, emb):
        md = mu_ref[k, d]
        ci = ci + dom_ref[:, d:d + 1] * md
        cj = cj + domT_ref[d:d + 1, :] * md
        mu_norm2 = mu_norm2 + md * md

    row_corr = 2.0 * cj + mu_norm2                      # (1, N)  cheap
    col_corr = 2.0 * ci                                 # (TN, 1) cheap
    dist2 = (base_ref[...] - col_corr) + row_corr       # (TN, N) f32

    # Exponent + exp in f32 (precision-sensitive with sig ~ 6e4); cast only the
    # result to bf16 for the MXU matmul.
    gauss = jnp.exp((sig_ref[0, k] * -0.5) * dist2)     # (TN, N) f32, EUP
    adj = mask_ref[...] * gauss.astype(mask_ref.dtype)  # (TN, N) bf16

    out_ref[...] += jnp.dot(adj, support_ref[k],
                            preferred_element_type=jnp.float32)

    @pl.when(k == pl.num_programs(1) - 1)
    def _finalize():
        out_ref[...] += bias_ref[...]


def _round_up(x, m):
    return (x + m - 1) // m * m


def _pick_row_tile(n):
    # MXU-friendly row tile (256 suits v6e/v7x, 128 suits v5e); capping at 256
    # keeps the (TN, N) mask tile + base scratch modest for large N.
    for t in (256, 128, 64, 32, 16, 8):
        if n % t == 0:
            return t
    return n


def graph_convolution(x, edge_idx, weight, bias, mu, sig):
    """Pallas version of GraphConvolution.forward.

    x: (N, F_in) f32, edge_idx: (2, E) i32, weight: (F_in, F_out, ker) f32,
    bias: (F_out,) f32, mu: (emb, ker) f32, sig: (1, ker) f32 -> (N, F_out) f32
    """
    n, f_in = x.shape
    f_out, ker = weight.shape[1], weight.shape[2]
    emb = mu.shape[0]
    f_pad = _round_up(f_out, 128)     # lane-dense output / support
    tn = _pick_row_tile(n)

    domain = x[:, :emb]
    # TODO(synk): the COO->dense scatter (torch.sparse.FloatTensor) has no clean
    # in-kernel Pallas equivalent; build the dense edge-multiplicity mask with a
    # JAX scatter-add.  Multiplicities are small integers -> exact in bf16,
    # halving the only O(N^2) HBM input.
    mask = jnp.zeros((n, n), jnp.float32).at[edge_idx[0], edge_idx[1]].add(1.0)
    mask = mask.astype(jnp.bfloat16)

    w_k = jnp.transpose(weight, (2, 0, 1))                      # (ker, F_in, F_out)
    w_k = jnp.pad(w_k, ((0, 0), (0, 0), (0, f_pad - f_out)))    # lane-pad F_out
    mu_k = jnp.transpose(mu, (1, 0))                            # (ker, emb)
    bias2d = jnp.pad(bias.reshape(1, f_out), ((0, 0), (0, f_pad - f_out)))

    grid = (n // tn, ker)

    grid_spec = pltpu.PrefetchScalarGridSpec(
        num_scalar_prefetch=0,
        grid=grid,
        in_specs=[
            pl.BlockSpec((n, f_in), lambda i, k: (0, 0)),              # x (full)
            pl.BlockSpec((tn, emb), lambda i, k: (i, 0)),              # domain tile
            pl.BlockSpec((emb, n), lambda i, k: (0, 0)),               # domain^T
            pl.BlockSpec((tn, n), lambda i, k: (i, 0)),                # mask tile (bf16)
            pl.BlockSpec((ker, f_in, f_pad), lambda i, k: (0, 0, 0)),  # all W_k
            pl.BlockSpec((1, f_pad), lambda i, k: (0, 0)),             # bias
            pl.BlockSpec(memory_space=pltpu.MemorySpace.SMEM),         # mu (ker, emb)
            pl.BlockSpec(memory_space=pltpu.MemorySpace.SMEM),         # sig (1, ker)
        ],
        out_specs=pl.BlockSpec((tn, f_pad), lambda i, k: (i, 0)),
        scratch_shapes=[
            pltpu.VMEM((ker, n, f_pad), jnp.bfloat16),   # support_k = x @ W_k
            pltpu.VMEM((tn, n), jnp.float32),            # base pairwise dist^2
        ],
    )

    # Explicit VMEM budget from the chosen tiles (double-buffered ins/outs +
    # resident scratches), clamped to 64 MiB so it also fits v7x.
    ws = (2 * (n * f_in * 4 + tn * emb * 4 + emb * n * 4 + tn * n * 2
               + ker * f_in * f_pad * 4 + f_pad * 4 + tn * f_pad * 4)
          + ker * n * f_pad * 2 + tn * n * 4)
    vmem_limit = int(min(max(2 * ws, 32 * 1024 * 1024), 64 * 1024 * 1024))

    out_padded = pl.pallas_call(
        gcn_kernel,
        out_shape=jax.ShapeDtypeStruct((n, f_pad), jnp.float32),
        grid_spec=grid_spec,
        compiler_params=pltpu.CompilerParams(
            dimension_semantics=("parallel", "arbitrary"),
            vmem_limit_bytes=vmem_limit,
        ),
    )(x, domain, domain.T, mask, w_k, bias2d, mu_k, sig)

    return out_padded[:, :f_out]


def reference(x, edge_idx, weight, bias, mu, sig):
    """Pure-JAX mirror of the PyTorch forward (loop over k, sparse mm via scatter)."""
    n = x.shape[0]
    f_out, ker = weight.shape[1], weight.shape[2]
    domain = x[:, :mu.shape[0]]
    diff = domain[edge_idx[0]] - domain[edge_idx[1]]     # (E, emb)
    out = jnp.zeros((n, f_out), jnp.float32)
    for k in range(ker):
        support = x @ weight[:, :, k]
        value = jnp.exp(sig[0, k] * (-0.5 * jnp.sum((diff - mu[:, k]) ** 2, axis=1)))
        adj = jnp.zeros((n, n), jnp.float32).at[edge_idx[0], edge_idx[1]].add(value)
        out = out + adj @ support
    return out + bias


if __name__ == "__main__":
    N, F_IN, F_OUT, EMB, KER, E = 512, 16, 16, 3, 4, 1024

    key = jax.random.PRNGKey(0)
    kx, ke, kw, kb, km = jax.random.split(key, 5)

    x = jax.random.normal(kx, (N, F_IN), jnp.float32)
    # Keep spatial/domain coordinates small so the Gaussian edge weights
    # (sig = 60140, per reset_parameters) do not all underflow to 0.
    x = x.at[:, :EMB].multiply(0.002)

    edge_idx = jax.random.randint(ke, (2, E), 0, N, dtype=jnp.int32)

    # Deterministic parameter init matching reset_parameters() distributions.
    weight = 0.1 * jax.random.normal(kw, (F_IN, F_OUT, KER), jnp.float32)
    bias = 0.1 * jax.random.normal(kb, (F_OUT,), jnp.float32)
    mu = 0.005 * jax.random.normal(km, (EMB, KER), jnp.float32)
    sig = jnp.full((1, KER), 60140.0, jnp.float32)

    out = jax.block_until_ready(graph_convolution(x, edge_idx, weight, bias, mu, sig))
    ref = reference(x, edge_idx, weight, bias, mu, sig)

    assert out.shape == (N, F_OUT)
    max_err = float(jnp.max(jnp.abs(out - ref)))
    # bf16 operands on the adj @ support matmul -> allow bf16-level tolerance.
    assert jnp.allclose(out, ref, rtol=2e-2, atol=5e-3), max_err
    print("KERNEL_OK")
</pallas_src>

<mosaic_0001>
module attributes {stable_mosaic.version = 11 : i64} {
  func.func @gcn_kernel(%arg0: i32, %arg1: i32, %arg2: memref<512x16xf32, #tpu.memory_space<vmem>>, %arg3: memref<256x3xf32, #tpu.memory_space<vmem>>, %arg4: memref<3x512xf32, #tpu.memory_space<vmem>>, %arg5: memref<256x512xbf16, #tpu.memory_space<vmem>>, %arg6: memref<4x16x128xf32, #tpu.memory_space<vmem>>, %arg7: memref<1x128xf32, #tpu.memory_space<vmem>>, %arg8: memref<4x3xf32, #tpu.memory_space<smem>>, %arg9: memref<1x4xf32, #tpu.memory_space<smem>>, %arg10: memref<256x128xf32, #tpu.memory_space<vmem>>, %arg11: memref<4x512x128xbf16, #tpu.memory_space<vmem>>, %arg12: memref<256x512xf32, #tpu.memory_space<vmem>>) attributes {dimension_semantics = [#tpu.dimension_semantics<parallel>, #tpu.dimension_semantics<arbitrary>], iteration_bounds = array<i64: 2, 4>, scalar_prefetch = 0 : i64, scratch_operands = 2 : i64, tpu.core_type = #tpu.core_type<tc>, window_params = [{pipeline_mode = #tpu.pipeline_mode<synchronous>, transform_indices = @transform_0, window_bounds = array<i64: 512, 16>}, {transform_indices = @transform_1, window_bounds = array<i64: 256, 3>}, {pipeline_mode = #tpu.pipeline_mode<synchronous>, transform_indices = @transform_2, window_bounds = array<i64: 3, 512>}, {transform_indices = @transform_3, window_bounds = array<i64: 256, 512>}, {pipeline_mode = #tpu.pipeline_mode<synchronous>, transform_indices = @transform_4, window_bounds = array<i64: 4, 16, 128>}, {pipeline_mode = #tpu.pipeline_mode<synchronous>, transform_indices = @transform_5, window_bounds = array<i64: 1, 128>}, {transform_indices = @transform_6, window_bounds = array<i64: 4, 3>}, {transform_indices = @transform_7, window_bounds = array<i64: 1, 4>}, {transform_indices = @transform_8, window_bounds = array<i64: 256, 128>}]} {
    %c0_i32 = arith.constant 0 : i32
    %0 = arith.cmpi eq, %arg1, %c0_i32 : i32
    %1 = arith.extui %0 : i1 to i32
    %c0_i32_0 = arith.constant 0 : i32
    %2 = arith.cmpi ne, %1, %c0_i32_0 : i32
    scf.if %2 {
      %cst_28 = arith.constant 0.000000e+00 : f32
      %66 = vector.broadcast %cst_28 : f32 to vector<256x128xf32>
      %c0_29 = arith.constant 0 : index
      %c0_30 = arith.constant 0 : index
      %67 = vector.load %arg10[%c0_29, %c0_30] : memref<256x128xf32, #tpu.memory_space<vmem>>, vector<256x128xf32>
      tpu.vector_store %arg10[%c0_29, %c0_30], %66 {strides = array<i32>} : memref<256x128xf32, #tpu.memory_space<vmem>>, vector<256x128xf32>,
      %c0_31 = arith.constant 0 : index
      %c0_32 = arith.constant 0 : index
      %68 = vector.load %arg2[%c0_31, %c0_32] : memref<512x16xf32, #tpu.memory_space<vmem>>, vector<512x16xf32>
      %c0_33 = arith.constant 0 : index
      %c0_34 = arith.constant 0 : index
      %c0_35 = arith.constant 0 : index
      %69 = vector.load %arg6[%c0_33, %c0_34, %c0_35] : memref<4x16x128xf32, #tpu.memory_space<vmem>>, vector<1x16x128xf32>
      %70 = vector.shape_cast %69 : vector<1x16x128xf32> to vector<16x128xf32>
      %cst_36 = arith.constant dense<0.000000e+00> : vector<512x128xf32>
      %71 = tpu.matmul %68, %70, %cst_36 {dimension_numbers = #tpu.dot_dimension_numbers<[1], [0], [0], [1], [0, 0, 1, 1], [], []>} : vector<512x16xf32>, vector<16x128xf32>, vector<512x128xf32> -> vector<512x128xf32>
      %72 = arith.truncf %71 : vector<512x128xf32> to vector<512x128xbf16>
      %c0_37 = arith.constant 0 : index
      %c0_38 = arith.constant 0 : index
      %c0_39 = arith.constant 0 : index
      %73 = vector.load %arg11[%c0_37, %c0_38, %c0_39] : memref<4x512x128xbf16, #tpu.memory_space<vmem>>, vector<1x512x128xbf16>
      %74 = vector.shape_cast %73 : vector<1x512x128xbf16> to vector<512x128xbf16>
      %75 = vector.shape_cast %72 : vector<512x128xbf16> to vector<1x512x128xbf16>
      tpu.vector_store %arg11[%c0_37, %c0_38, %c0_39], %75 {strides = array<i32>} : memref<4x512x128xbf16, #tpu.memory_space<vmem>>, vector<1x512x128xbf16>,
      %c1_40 = arith.constant 1 : index
      %c0_41 = arith.constant 0 : index
      %c0_42 = arith.constant 0 : index
      %76 = vector.load %arg6[%c1_40, %c0_41, %c0_42] : memref<4x16x128xf32, #tpu.memory_space<vmem>>, vector<1x16x128xf32>
      %77 = vector.shape_cast %76 : vector<1x16x128xf32> to vector<16x128xf32>
      %cst_43 = arith.constant dense<0.000000e+00> : vector<512x128xf32>
      %78 = tpu.matmul %68, %77, %cst_43 {dimension_numbers = #tpu.dot_dimension_numbers<[1], [0], [0], [1], [0, 0, 1, 1], [], []>} : vector<512x16xf32>, vector<16x128xf32>, vector<512x128xf32> -> vector<512x128xf32>
      %79 = arith.truncf %78 : vector<512x128xf32> to vector<512x128xbf16>
      %c1_44 = arith.constant 1 : index
      %c0_45 = arith.constant 0 : index
      %c0_46 = arith.constant 0 : index
      %80 = vector.load %arg11[%c1_44, %c0_45, %c0_46] : memref<4x512x128xbf16, #tpu.memory_space<vmem>>, vector<1x512x128xbf16>
      %81 = vector.shape_cast %80 : vector<1x512x128xbf16> to vector<512x128xbf16>
      %82 = vector.shape_cast %79 : vector<512x128xbf16> to vector<1x512x128xbf16>
      tpu.vector_store %arg11[%c1_44, %c0_45, %c0_46], %82 {strides = array<i32>} : memref<4x512x128xbf16, #tpu.memory_space<vmem>>, vector<1x512x128xbf16>,
      %c2_47 = arith.constant 2 : index
      %c0_48 = arith.constant 0 : index
      %c0_49 = arith.constant 0 : index
      %83 = vector.load %arg6[%c2_47, %c0_48, %c0_49] : memref<4x16x128xf32, #tpu.memory_space<vmem>>, vector<1x16x128xf32>
      %84 = vector.shape_cast %83 : vector<1x16x128xf32> to vector<16x128xf32>
      %cst_50 = arith.constant dense<0.000000e+00> : vector<512x128xf32>
      %85 = tpu.matmul %68, %84, %cst_50 {dimension_numbers = #tpu.dot_dimension_numbers<[1], [0], [0], [1], [0, 0, 1, 1], [], []>} : vector<512x16xf32>, vector<16x128xf32>, vector<512x128xf32> -> vector<512x128xf32>
      %86 = arith.truncf %85 : vector<512x128xf32> to vector<512x128xbf16>
      %c2_51 = arith.constant 2 : index
      %c0_52 = arith.constant 0 : index
      %c0_53 = arith.constant 0 : index
      %87 = vector.load %arg11[%c2_51, %c0_52, %c0_53] : memref<4x512x128xbf16, #tpu.memory_space<vmem>>, vector<1x512x128xbf16>
      %88 = vector.shape_cast %87 : vector<1x512x128xbf16> to vector<512x128xbf16>
      %89 = vector.shape_cast %86 : vector<512x128xbf16> to vector<1x512x128xbf16>
      tpu.vector_store %arg11[%c2_51, %c0_52, %c0_53], %89 {strides = array<i32>} : memref<4x512x128xbf16, #tpu.memory_space<vmem>>, vector<1x512x128xbf16>,
      %c3 = arith.constant 3 : index
      %c0_54 = arith.constant 0 : index
      %c0_55 = arith.constant 0 : index
      %90 = vector.load %arg6[%c3, %c0_54, %c0_55] : memref<4x16x128xf32, #tpu.memory_space<vmem>>, vector<1x16x128xf32>
      %91 = vector.shape_cast %90 : vector<1x16x128xf32> to vector<16x128xf32>
      %cst_56 = arith.constant dense<0.000000e+00> : vector<512x128xf32>
      %92 = tpu.matmul %68, %91, %cst_56 {dimension_numbers = #tpu.dot_dimension_numbers<[1], [0], [0], [1], [0, 0, 1, 1], [], []>} : vector<512x16xf32>, vector<16x128xf32>, vector<512x128xf32> -> vector<512x128xf32>
      %93 = arith.truncf %92 : vector<512x128xf32> to vector<512x128xbf16>
      %c3_57 = arith.constant 3 : index
      %c0_58 = arith.constant 0 : index
      %c0_59 = arith.constant 0 : index
      %94 = vector.load %arg11[%c3_57, %c0_58, %c0_59] : memref<4x512x128xbf16, #tpu.memory_space<vmem>>, vector<1x512x128xbf16>
      %95 = vector.shape_cast %94 : vector<1x512x128xbf16> to vector<512x128xbf16>
      %96 = vector.shape_cast %93 : vector<512x128xbf16> to vector<1x512x128xbf16>
      tpu.vector_store %arg11[%c3_57, %c0_58, %c0_59], %96 {strides = array<i32>} : memref<4x512x128xbf16, #tpu.memory_space<vmem>>, vector<1x512x128xbf16>,
      %c0_60 = arith.constant 0 : index
      %c0_61 = arith.constant 0 : index
      %97 = vector.load %arg3[%c0_60, %c0_61] : memref<256x3xf32, #tpu.memory_space<vmem>>, vector<256x1xf32>
      %c0_62 = arith.constant 0 : index
      %c0_63 = arith.constant 0 : index
      %98 = vector.load %arg4[%c0_62, %c0_63] : memref<3x512xf32, #tpu.memory_space<vmem>>, vector<1x512xf32>
      %99 = vector.broadcast %97 : vector<256x1xf32> to vector<256x512xf32>
      %100 = vector.broadcast %98 : vector<1x512xf32> to vector<256x512xf32>
      %101 = arith.subf %99, %100 : vector<256x512xf32>
      %102 = arith.mulf %101, %101 : vector<256x512xf32>
      %c0_64 = arith.constant 0 : index
      %c1_65 = arith.constant 1 : index
      %103 = vector.load %arg3[%c0_64, %c1_65] : memref<256x3xf32, #tpu.memory_space<vmem>>, vector<256x1xf32>
      %c1_66 = arith.constant 1 : index
      %c0_67 = arith.constant 0 : index
      %104 = vector.load %arg4[%c1_66, %c0_67] : memref<3x512xf32, #tpu.memory_space<vmem>>, vector<1x512xf32>
      %105 = vector.broadcast %103 : vector<256x1xf32> to vector<256x512xf32>
      %106 = vector.broadcast %104 : vector<1x512xf32> to vector<256x512xf32>
      %107 = arith.subf %105, %106 : vector<256x512xf32>
      %108 = arith.mulf %107, %107 : vector<256x512xf32>
      %109 = arith.addf %102, %108 : vector<256x512xf32>
      %c0_68 = arith.constant 0 : index
      %c2_69 = arith.constant 2 : index
      %110 = vector.load %arg3[%c0_68, %c2_69] : memref<256x3xf32, #tpu.memory_space<vmem>>, vector<256x1xf32>
      %c2_70 = arith.constant 2 : index
      %c0_71 = arith.constant 0 : index
      %111 = vector.load %arg4[%c2_70, %c0_71] : memref<3x512xf32, #tpu.memory_space<vmem>>, vector<1x512xf32>
      %112 = vector.broadcast %110 : vector<256x1xf32> to vector<256x512xf32>
      %113 = vector.broadcast %111 : vector<1x512xf32> to vector<256x512xf32>
      %114 = arith.subf %112, %113 : vector<256x512xf32>
      %115 = arith.mulf %114, %114 : vector<256x512xf32>
      %116 = arith.addf %109, %115 : vector<256x512xf32>
      %c0_72 = arith.constant 0 : index
      %c0_73 = arith.constant 0 : index
      %117 = vector.load %arg12[%c0_72, %c0_73] : memref<256x512xf32, #tpu.memory_space<vmem>>, vector<256x512xf32>
      tpu.vector_store %arg12[%c0_72, %c0_73], %116 {strides = array<i32>} : memref<256x512xf32, #tpu.memory_space<vmem>>, vector<256x512xf32>,
    } else {
    }
    %3 = arith.index_cast %arg1 : i32 to index
    %c0 = arith.constant 0 : index
    %4 = memref.load %arg8[%3, %c0] : memref<4x3xf32, #tpu.memory_space<smem>>
    %c0_1 = arith.constant 0 : index
    %c0_2 = arith.constant 0 : index
    %5 = vector.load %arg3[%c0_1, %c0_2] : memref<256x3xf32, #tpu.memory_space<vmem>>, vector<256x1xf32>
    %6 = vector.broadcast %4 : f32 to vector<256x1xf32>
    %7 = arith.mulf %5, %6 : vector<256x1xf32>
    %c0_3 = arith.constant 0 : index
    %c0_4 = arith.constant 0 : index
    %8 = vector.load %arg4[%c0_3, %c0_4] : memref<3x512xf32, #tpu.memory_space<vmem>>, vector<1x512xf32>
    %9 = vector.broadcast %4 : f32 to vector<1x512xf32>
    %10 = arith.mulf %8, %9 : vector<1x512xf32>
    %11 = arith.mulf %4, %4 : f32
    %12 = arith.index_cast %arg1 : i32 to index
    %c1 = arith.constant 1 : index
    %13 = memref.load %arg8[%12, %c1] : memref<4x3xf32, #tpu.memory_space<smem>>
    %c0_5 = arith.constant 0 : index
    %c1_6 = arith.constant 1 : index
    %14 = vector.load %arg3[%c0_5, %c1_6] : memref<256x3xf32, #tpu.memory_space<vmem>>, vector<256x1xf32>
    %15 = vector.broadcast %13 : f32 to vector<256x1xf32>
    %16 = arith.mulf %14, %15 : vector<256x1xf32>
    %17 = arith.addf %7, %16 : vector<256x1xf32>
    %c1_7 = arith.constant 1 : index
    %c0_8 = arith.constant 0 : index
    %18 = vector.load %arg4[%c1_7, %c0_8] : memref<3x512xf32, #tpu.memory_space<vmem>>, vector<1x512xf32>
    %19 = vector.broadcast %13 : f32 to vector<1x512xf32>
    %20 = arith.mulf %18, %19 : vector<1x512xf32>
    %21 = arith.addf %10, %20 : vector<1x512xf32>
    %22 = arith.mulf %13, %13 : f32
    %23 = arith.addf %11, %22 : f32
    %24 = arith.index_cast %arg1 : i32 to index
    %c2 = arith.constant 2 : index
    %25 = memref.load %arg8[%24, %c2] : memref<4x3xf32, #tpu.memory_space<smem>>
    %c0_9 = arith.constant 0 : index
    %c2_10 = arith.constant 2 : index
    %26 = vector.load %arg3[%c0_9, %c2_10] : memref<256x3xf32, #tpu.memory_space<vmem>>, vector<256x1xf32>
    %27 = vector.broadcast %25 : f32 to vector<256x1xf32>
    %28 = arith.mulf %26, %27 : vector<256x1xf32>
    %29 = arith.addf %17, %28 : vector<256x1xf32>
    %c2_11 = arith.constant 2 : index
    %c0_12 = arith.constant 0 : index
    %30 = vector.load %arg4[%c2_11, %c0_12] : memref<3x512xf32, #tpu.memory_space<vmem>>, vector<1x512xf32>
    %31 = vector.broadcast %25 : f32 to vector<1x512xf32>
    %32 = arith.mulf %30, %31 : vector<1x512xf32>
    %33 = arith.addf %21, %32 : vector<1x512xf32>
    %34 = arith.mulf %25, %25 : f32
    %35 = arith.addf %23, %34 : f32
    %cst = arith.constant 2.000000e+00 : f32
    %36 = vector.broadcast %cst : f32 to vector<1x512xf32>
    %37 = arith.mulf %36, %33 : vector<1x512xf32>
    %38 = vector.broadcast %35 : f32 to vector<1x512xf32>
    %39 = arith.addf %37, %38 : vector<1x512xf32>
    %cst_13 = arith.constant 2.000000e+00 : f32
    %40 = vector.broadcast %cst_13 : f32 to vector<256x1xf32>
    %41 = arith.mulf %40, %29 : vector<256x1xf32>
    %c0_14 = arith.constant 0 : index
    %c0_15 = arith.constant 0 : index
    %42 = vector.load %arg12[%c0_14, %c0_15] : memref<256x512xf32, #tpu.memory_space<vmem>>, vector<256x512xf32>
    %43 = vector.broadcast %41 : vector<256x1xf32> to vector<256x512xf32>
    %44 = arith.subf %42, %43 : vector<256x512xf32>
    %45 = vector.broadcast %39 : vector<1x512xf32> to vector<256x512xf32>
    %46 = arith.addf %44, %45 : vector<256x512xf32>
    %c0_16 = arith.constant 0 : index
    %47 = arith.index_cast %arg1 : i32 to index
    %48 = memref.load %arg9[%c0_16, %47] : memref<1x4xf32, #tpu.memory_space<smem>>
    %cst_17 = arith.constant -5.000000e-01 : f32
    %49 = arith.mulf %48, %cst_17 : f32
    %50 = vector.broadcast %49 : f32 to vector<256x512xf32>
    %51 = arith.mulf %50, %46 : vector<256x512xf32>
    %52 = math.exp %51 : vector<256x512xf32>
    %c0_18 = arith.constant 0 : index
    %c0_19 = arith.constant 0 : index
    %53 = vector.load %arg5[%c0_18, %c0_19] : memref<256x512xbf16, #tpu.memory_space<vmem>>, vector<256x512xbf16>
    %54 = arith.truncf %52 : vector<256x512xf32> to vector<256x512xbf16>
    %55 = arith.mulf %53, %54 : vector<256x512xbf16>
    %c0_20 = arith.constant 0 : index
    %c0_21 = arith.constant 0 : index
    %56 = vector.load %arg10[%c0_20, %c0_21] : memref<256x128xf32, #tpu.memory_space<vmem>>, vector<256x128xf32>
    %57 = arith.index_cast %arg1 : i32 to index
    %c0_22 = arith.constant 0 : index
    %c0_23 = arith.constant 0 : index
    %58 = vector.load %arg11[%57, %c0_22, %c0_23] : memref<4x512x128xbf16, #tpu.memory_space<vmem>>, vector<1x512x128xbf16>
    %59 = vector.shape_cast %58 : vector<1x512x128xbf16> to vector<512x128xbf16>
    %cst_24 = arith.constant dense<0.000000e+00> : vector<256x128xf32>
    %60 = tpu.matmul %55, %59, %cst_24 {dimension_numbers = #tpu.dot_dimension_numbers<[1], [0], [0], [1], [0, 0, 1, 1], [], []>} : vector<256x512xbf16>, vector<512x128xbf16>, vector<256x128xf32> -> vector<256x128xf32>
    %61 = arith.addf %56, %60 : vector<256x128xf32>
    %c0_25 = arith.constant 0 : index
    %c0_26 = arith.constant 0 : index
    %62 = vector.load %arg10[%c0_25, %c0_26] : memref<256x128xf32, #tpu.memory_space<vmem>>, vector<256x128xf32>
    tpu.vector_store %arg10[%c0_25, %c0_26], %61 {strides = array<i32>} : memref<256x128xf32, #tpu.memory_space<vmem>>, vector<256x128xf32>,
    %c3_i32 = arith.constant 3 : i32
    %63 = arith.cmpi eq, %arg1, %c3_i32 : i32
    %64 = arith.extui %63 : i1 to i32
    %c0_i32_27 = arith.constant 0 : i32
    %65 = arith.cmpi ne, %64, %c0_i32_27 : i32
    scf.if %65 {
      %c0_28 = arith.constant 0 : index
      %c0_29 = arith.constant 0 : index
      %66 = vector.load %arg10[%c0_28, %c0_29] : memref<256x128xf32, #tpu.memory_space<vmem>>, vector<256x128xf32>
      %c0_30 = arith.constant 0 : index
      %c0_31 = arith.constant 0 : index
      %67 = vector.load %arg7[%c0_30, %c0_31] : memref<1x128xf32, #tpu.memory_space<vmem>>, vector<1x128xf32>
      %68 = vector.broadcast %67 : vector<1x128xf32> to vector<256x128xf32>
      %69 = arith.addf %66, %68 : vector<256x128xf32>
      %c0_32 = arith.constant 0 : index
      %c0_33 = arith.constant 0 : index
      %70 = vector.load %arg10[%c0_32, %c0_33] : memref<256x128xf32, #tpu.memory_space<vmem>>, vector<256x128xf32>
      tpu.vector_store %arg10[%c0_32, %c0_33], %69 {strides = array<i32>} : memref<256x128xf32, #tpu.memory_space<vmem>>, vector<256x128xf32>,
    } else {
    }
    return
  }
  func.func @transform_0(%arg0: i32, %arg1: i32) -> (i32, i32) {
    %c0_i32 = arith.constant 0 : i32
    %c0_i32_0 = arith.constant 0 : i32
    %c0_i32_1 = arith.constant 0 : i32
    return %c0_i32, %c0_i32_0 : i32, i32
  }
  func.func @transform_1(%arg0: i32, %arg1: i32) -> (i32, i32) {
    %c0_i32 = arith.constant 0 : i32
    %c0_i32_0 = arith.constant 0 : i32
    return %arg0, %c0_i32 : i32, i32
  }
  func.func @transform_2(%arg0: i32, %arg1: i32) -> (i32, i32) {
    %c0_i32 = arith.constant 0 : i32
    %c0_i32_0 = arith.constant 0 : i32
    %c0_i32_1 = arith.constant 0 : i32
    return %c0_i32, %c0_i32_0 : i32, i32
  }
  func.func @transform_3(%arg0: i32, %arg1: i32) -> (i32, i32) {
    %c0_i32 = arith.constant 0 : i32
    %c0_i32_0 = arith.constant 0 : i32
    return %arg0, %c0_i32 : i32, i32
  }
  func.func @transform_4(%arg0: i32, %arg1: i32) -> (i32, i32, i32) {
    %c0_i32 = arith.constant 0 : i32
    %c0_i32_0 = arith.constant 0 : i32
    %c0_i32_1 = arith.constant 0 : i32
    %c0_i32_2 = arith.constant 0 : i32
    return %c0_i32, %c0_i32_0, %c0_i32_1 : i32, i32, i32
  }
  func.func @transform_5(%arg0: i32, %arg1: i32) -> (i32, i32) {
    %c0_i32 = arith.constant 0 : i32
    %c0_i32_0 = arith.constant 0 : i32
    %c0_i32_1 = arith.constant 0 : i32
    return %c0_i32, %c0_i32_0 : i32, i32
  }
  func.func @transform_6(%arg0: i32, %arg1: i32) -> (i32, i32) {
    %c0_i32 = arith.constant 0 : i32
    %c0_i32_0 = arith.constant 0 : i32
    %c0_i32_1 = arith.constant 0 : i32
    return %c0_i32, %c0_i32_0 : i32, i32
  }
  func.func @transform_7(%arg0: i32, %arg1: i32) -> (i32, i32) {
    %c0_i32 = arith.constant 0 : i32
    %c0_i32_0 = arith.constant 0 : i32
    %c0_i32_1 = arith.constant 0 : i32
    return %c0_i32, %c0_i32_0 : i32, i32
  }
  func.func @transform_8(%arg0: i32, %arg1: i32) -> (i32, i32) {
    %c0_i32 = arith.constant 0 : i32
    %c0_i32_0 = arith.constant 0 : i32
    return %arg0, %c0_i32 : i32, i32
  }
}

</mosaic_0001>

<bundles_post_ra>
// kernel: tpu_custom_call.1
= control target key start
LH: loop header
LB: loop body
LE: loop exit
PB: predicated region body
PF: predicated region fallthrough
CT: control target
= control target key end

     0   :  { %s15902_s0 = inlined_call_operand.vmem [shape: f32[512,16], index: 0, kind: input, shape index: {}]   ;;  %s15903_s1 = inlined_call_operand.vmem [shape: f32[512,3], index: 1, kind: input, shape index: {}]   ;;  %s15904_s2 = inlined_call_operand.vmem [shape: f32[3,512], index: 2, kind: input, shape index: {}]   ;;  %s15905_s3 = inlined_call_operand.vmem [shape: bf16[512,512], index: 3, kind: input, shape index: {}]   ;;  %s15906_s4 = inlined_call_operand.vmem [shape: f32[4,16,128], index: 4, kind: input, shape index: {}]   ;;  %s15907_s5 = inlined_call_operand.vmem [shape: f32[1,128], index: 5, kind: input, shape index: {}]   ;;  %s15908_s6 = inlined_call_operand.vmem [shape: f32[4,3], index: 6, kind: input, shape index: {}]   ;;  %s15909_s7 = inlined_call_operand.vmem [shape: f32[1,4], index: 7, kind: input, shape index: {}]   ;;  %s15910_s8 = inlined_call_operand.hbm [shape: f32[512,128], index: 8, kind: output, shape index: {}]  }
   0x1   :  { %15940 = sst [smem:[#allocation163_spill]] %s15902_s0 }
   0x2   :  { %15941 = sst [smem:[#allocation164_spill]] %s15908_s6 }
   0x3   :  { %15942 = sst [smem:[#allocation165_spill]] %s15909_s7 }
   0x4   :  { %13 = vsyncpa [#allocation6], 0 }
   0x5   :  { %14 = vsyncpa [#allocation8], 0 }
   0x6   :  { %15 = vsyncpa [#allocation5], 0 }
   0x7   :  { %17 = vsyncpa [#allocation5 + $0x1], 0  ;;  %s11681_s27 = smov 0   ;;  %s11683_s28 = smov 0  }
   0x8   :  { %s11685_s29 = smov 0   ;;  %s11687_s30 = smov 0  }
   0x9   :  { %s11689_s9 = smov 0   ;;  %s11691_s10 = smov 0  }
   0xa   :  { %s11693_s11 = smov 0   ;;  %s11695_s12 = smov 0  }
   0xb LB: > { %s8365_s13 = sadd.s32 4294967295, %s11622_s12   ;;  %s8366_s14 = sadd.s32 4294967294, %s11622_s12   ;;  %s11622_s12 = sphi %s11695_s12, %s23_s12   ;;  %s11618_s11 = sphi %s11693_s11, %s16564_s11   ;;  %s11614_s10 = sphi %s11691_s10, %s16563_s10   ;;  %s11610_s9 = sphi %s11689_s9, %s16562_s9   ;;  %s11606_s30 = sphi %s11687_s30, %s16561_s30   ;;  %s11602_s29 = sphi %s11685_s29, %s16560_s29   ;;  %s11598_s28 = sphi %s11683_s28, %s16559_s28   ;;  %s11594_s27 = sphi %s11681_s27, %s16558_s27  }
   0xc   : > { %s32_s15 = sadd.s32 1, %s11614_s10  ;;  %s35_s16 = sadd.s32 1, %s11618_s11 }
   0xd   : > { %p33_p0 = scmp.ge.s32.totalorder %s32_s15, 4  ;;  %s220_s17 = sadd.s32 1, %s11602_s29 }
   0xe   : > { %p230_p1 = scmp.ne.s32.totalorder %s11602_s29, %s11598_s28  ;;  %p231_p2 = scmp.eq.s32.totalorder %s8365_s13, 7 }
   0xf   : > { %s16566_s15 = smov (%p33_p0, %s32_s15), 0  ;;  %s16568_s16 = smov (!%p33_p0, %s35_s16), %s11618_s11 }
  0x10   : > { %15943 = sst [smem:[#allocation13_spill]] %s16566_s15  ;;  %p11731_p3 = por %p231_p2, %p230_p1 }
  0x11   : > { %p236_p4 = scmp.ne.s32.totalorder %s11598_s28, %s11594_s27  ;;  %p37_p5 = scmp.ge.s32.totalorder %s16568_s16, 2 }
  0x12   : > { %s15944_s18 = scalar_select %p11731_p3, 1, 0 }
  0x13   : > { %p237_p6 = scmp.eq.s32.totalorder %s8366_s14, 7  ;;  %p8367_p7 = scmp.ge.s32.totalorder %s11622_s12, 1 }
  0x14   : > { %p244_p8 = scmp.lt.s32.totalorder %s11622_s12, 9  ;;  %s16570_s16 = smov (%p37_p5, %s16568_s16), 0 }
  0x15   : > { %15945 = sst [smem:[#allocation14_spill]] %s16570_s16  ;;  %p11741_p9 = por %p237_p6, %p236_p4 }
  0x16   : > { %p11745_p10 = pnand %p8367_p7, %p244_p8  ;;  %s217_s21 = ssub.s32 %s11618_s11, %s16570_s16 }
  0x17   : > { %s15946_s19 = scalar_select %p11741_p9, 1, 0 }
  0x18   : > { %s15947_s20 = scalar_select %p11745_p10, 1, 0 }
  0x19   : > { %p218_p11 = scmp.eq.s32.totalorder %s217_s21, 0  ;;  %p11058_p12 = pneg %p11745_p10 }
  0x1a   : > { %p11753_p13 = scmp.eq.s32.totalorder %s8365_s13, 0  ;;  %s15949_s6 = sld [smem:[#allocation164_spill]] }
  0x1b   : > { %s11761_s26 = scalar_select %p218_p11, %s11602_s29, %s220_s17  }
  0x1c   : > { %s15948_s22 = scalar_select %p11753_p13, 1, 0 }
  0x1d   : > { %p11765_p0 = pnand %p11753_p13, %p11058_p12  ;;  %s15951_s7 = sld [smem:[#allocation165_spill]] }
  0x1f   : > { %p11494_p2 = pneg %p11765_p0 }
  0x20   : > { %s269_s25 = sshll.u32 %s15949_s6, 4  ;;  %s270_s25 = int_to_ptr.vmem [resolvable:$true] %s269_s25 }
  0x21   : > { %s11492_s15 = scalar_lea.vmem %s270_s25, 64  ;;  %p11500_p6 = scmp.lt.s32.totalorder %s270_s25, %s270_s25 }
  0x22   : > { %p11493_p1 = scmp.ne.s32.totalorder %s270_s25, %s11492_s15  ;;  %p11501_p7 = scmp.lt.s32.totalorder %s11492_s15, %s11492_s15 }
  0x23   : > { %s280_s13 = sshll.u32 %s15951_s7, 4  ;;  %s281_s13 = int_to_ptr.vmem [resolvable:$true] %s280_s13 }
  0x24   : > { %p11495_p4 = pnand %p11494_p2, %p11493_p1  ;;  %p11502_p8 = por %p11501_p7, %p11500_p6 }
  0x26   : > { %p11496_p5 = pneg %p11495_p4 }
  0x28   : > { %p11503_p11 = pnand %p11502_p8, %p11496_p5 }
  0x2a   : > { %11506 = shalt.err (!%p11503_p11)
}
  0x2b   : > { %s11624_s17 = smov [#allocation4]   ;;  %s11507_s23 = scalar_lea.vmem %s281_s13, 16 }
  0x2c   : > { %11061 = dma.vmem_to_smem (!%p11765_p0), %s270_s25, 64, %s11624_s17, [#allocation6]  }
  0x2d   : > { %p11508_p12 = scmp.ne.s32.totalorder %s281_s13, %s11507_s23  ;;  %p11515_p13 = scmp.lt.s32.totalorder %s281_s13, %s281_s13 }
  0x2e   : > { %p11516_p10 = scmp.lt.s32.totalorder %s11507_s23, %s11507_s23 }
  0x2f   : > { %p11510_p9 = pnand %p11508_p12, %p11494_p2 }
  0x30   : > { %p11517_p1 = por %p11516_p10, %p11515_p13 }
  0x31   : > { %p11511_p3 = pneg %p11510_p9 }
  0x33   : > { %p11518_p4 = pnand %p11517_p1, %p11511_p3 }
  0x35   : > { %11521 = shalt.err (!%p11518_p4)
}
  0x36   : > { %s11625_s16 = smov [#allocation7]   ;;  %p15952_p5 = scmp.ne.s32.totalorder %s15947_s20, 0 }
  0x37   : > { %11064 = dma.vmem_to_smem (!%p11765_p0), %s281_s13, 16, %s11625_s16, [#allocation8]  }
  0x38   : > { %312 = sbr.rel (%p15952_p5) target bundleno = 1379 (0x563), region = 52  ;;  %p15953_p6 = scmp.ne.s32.totalorder (!%p15952_p5), %s15948_s22, 0 }
  0x3d   : > { %11581 = dma.done.wait (%p15953_p6), [#allocation6], 64  }
  0x3e   : > { %11583 = vsyncadd (%p15953_p6), [#allocation6], 4294967232 }
  0x3f   : > { %11585 = dma.done.wait (%p15953_p6), [#allocation8], 16  }
  0x40   : > { %11587 = vsyncadd (%p15953_p6), [#allocation8], 4294967280 }
  0x41   : > { %322 = sfence }
  0x42   : > { %s15916_s15 = sand.u32 1, %s11598_s28   ;;  %s8375_s24 = sshll.u32 %s11610_s9, 5 }
  0x43   : > { %s8374_s20 = sshll.u32 %s15916_s15, 8  ;;  %p358_p3 = scmp.lt.s32.totalorder %s8375_s24, 63 }
  0x44   : > { %s11802_s6 = scalar_lea.vmem [#allocation9], %s8374_s20  ;;  %p8380_p9 = scmp.ne.s32.totalorder %s11606_s30, 0 }
  0x45   : > { %s16572_s24 = smov (!%p358_p3, %s8375_s24), 63 }
  0x46   : > { %s8376_s25 = sshll.u32 %s16572_s24, 3  ;;  %s9073_s14 = sshll.u32 %s16572_s24, 4 }
  0x47   : > { %s11795_s17 = scalar_lea.vmem %s15903_s1, %s8376_s25  ;;  %s11800_s16 = scalar_lea.vmem %s15905_s3, %s9073_s14 }
  0x48   : > { %375 = sbr.rel (%p8380_p9) target bundleno = 604 (0x25c), region = 64 }
  0x4d   : > { %v473_v0 = vld [vmem:[%s15906_s4 + $0x8] sm:$0xff]  ;;  %v8510_v1 = vld [vmem:[%s15906_s4 + $0x18] sm:$0xff]  ;;  %v11812_v2 = vld [vmem:[%s11795_s17 + $0x10] sm:$0xff]  ;;  %v11626_v3 = vmov 0   ;;  %v11627_v4 = vmov 0.0   ;;  %s15954_s0 = sld [smem:[#allocation163_spill]] }
  0x4e   : > { %11150 = vset.pattern.permute.xlu1 %v11626_v3  ;;  %11149 = vset.pattern.permute.xlu0 %v11626_v3  ;;  %376 = vst [vmem:[%s11802_s6] sm:$0xff] %v11627_v4  ;;  %377 = vst [vmem:[%s11802_s6 + $0x8] sm:$0xff] %v11627_v4  ;;  %v11847_v5 = vld [vmem:[%s11795_s17] sm:$0xff]  ;;  %v8509_v7 = vld [vmem:[%s15906_s4 + $0x10] sm:$0xff]  ;;  %vm474_vm0 = vcmask 130048  }
  0x4f   : > { %378 = vst [vmem:[%s11802_s6 + $0x10] sm:$0xff] %v11627_v4  ;;  %379 = vst [vmem:[%s11802_s6 + $0x18] sm:$0xff] %v11627_v4  ;;  %10648 = vmatprep.subr.mxu0 %v473_v0  ;;  %10748 = vmatprep.subr.mxu1 %v8510_v1  ;;  %v472_v6 = vld [vmem:[%s15906_s4] sm:$0xff]  ;;  %v8640_v10 = vld [vmem:[%s15906_s4 + $0x28] sm:$0xff] }
  0x50   : > { %380 = vst [vmem:[%s11802_s6 + $0x20] sm:$0xff] %v11627_v4  ;;  %381 = vst [vmem:[%s11802_s6 + $0x28] sm:$0xff] %v11627_v4  ;;  %3544 = vperm.xlu1 %11150, %v11812_v2   ;;  %3534 = vperm.xlu0 %11149, %v11847_v5   ;;  %v8770_v11 = vld [vmem:[%s15906_s4 + $0x38] sm:$0xff]  ;;  %v11881_v13 = vld [vmem:[%s11795_s17 + $0x8] sm:$0xff] }
  0x51   : > { %382 = vst [vmem:[%s11802_s6 + $0x30] sm:$0xff] %v11627_v4  ;;  %383 = vst [vmem:[%s11802_s6 + $0x38] sm:$0xff] %v11627_v4  ;;  %10649 = vmatpush3.msra.mxu0 %v473_v0  ;;  %10749 = vmatpush3.msra.mxu1 %v8510_v1  ;;  %v11878_v12 = vld [vmem:[%s11795_s17 + $0x18] sm:$0xff]  ;;  %v11900_v16 = vld [vmem:[%s11795_s17 + $0x28] sm:$0xff] }
  0x52   : > { %384 = vst [vmem:[%s11802_s6 + $0x40] sm:$0xff] %v11627_v4  ;;  %385 = vst [vmem:[%s11802_s6 + $0x48] sm:$0xff] %v11627_v4  ;;  %10650 = vmatprep.subr.mxu0 %v472_v6  ;;  %10750 = vmatprep.subr.mxu1 %v8509_v7  ;;  %v11903_v17 = vld [vmem:[%s11795_s17 + $0x20] sm:$0xff]  ;;  %v11930_v20 = vld [vmem:[%s11795_s17 + $0x38] sm:$0xff] }
  0x53   : > { %386 = vst [vmem:[%s11802_s6 + $0x50] sm:$0xff] %v11627_v4  ;;  %387 = vst [vmem:[%s11802_s6 + $0x58] sm:$0xff] %v11627_v4  ;;  %v11860_v8 = vld [vmem:[%s15954_s0] sm:$0xff]  ;;  %v11865_v9 = vld [vmem:[%s15954_s0 + $0x8] sm:$0xff]  ;;  %10651 = vmatpush3.msra.mxu0 %v472_v6  ;;  %10751 = vmatpush3.msra.mxu1 %v8509_v7 }
  0x54   : > { %388 = vst [vmem:[%s11802_s6 + $0x60] sm:$0xff] %v11627_v4  ;;  %389 = vst [vmem:[%s11802_s6 + $0x68] sm:$0xff] %v11627_v4  ;;  %10652 = vmatprep.mubr.msk.f32.mxu0 %vm474_vm0, %v11860_v8  ;;  %10752 = vmatprep.mubr.msk.f32.mxu1 %vm474_vm0, %v11860_v8  ;;  %v11890_v14 = vld [vmem:[%s15954_s0 + $0x10] sm:$0xff]  ;;  %v11897_v15 = vld [vmem:[%s15954_s0 + $0x18] sm:$0xff] }
  0x55   : > { %390 = vst [vmem:[%s11802_s6 + $0x70] sm:$0xff] %v11627_v4  ;;  %391 = vst [vmem:[%s11802_s6 + $0x78] sm:$0xff] %v11627_v4  ;;  %10653 = vmatmul.mubr.msk.f32.vlgmr.msra.gmra.mxu0 %vm474_vm0, %v11865_v9  ;;  %10753 = vmatmul.mubr.msk.f32.vlgmr.msra.gmra.mxu1 %vm474_vm0, %v11865_v9  ;;  %v11912_v18 = vld [vmem:[%s15954_s0 + $0x20] sm:$0xff]  ;;  %v11923_v19 = vld [vmem:[%s15954_s0 + $0x28] sm:$0xff] }
  0x56   : > { %392 = vst [vmem:[%s11802_s6 + $0x80] sm:$0xff] %v11627_v4  ;;  %393 = vst [vmem:[%s11802_s6 + $0x88] sm:$0xff] %v11627_v4  ;;  %10848 = vmatprep.subr.mxu0 %v8640_v10  ;;  %10948 = vmatprep.subr.mxu1 %v8770_v11  ;;  %v11933_v21 = vld [vmem:[%s11795_s17 + $0x30] sm:$0xff]  ;;  %v11949_v23 = vld [vmem:[%s15954_s0 + $0x38] sm:$0xff] }
  0x57   : > { %394 = vst [vmem:[%s11802_s6 + $0x90] sm:$0xff] %v11627_v4  ;;  %395 = vst [vmem:[%s11802_s6 + $0x98] sm:$0xff] %v11627_v4  ;;  %3549 = vperm.xlu1 %11150, %v11878_v12   ;;  %3539 = vperm.xlu0 %11149, %v11881_v13   ;;  %v11938_v22 = vld [vmem:[%s15954_s0 + $0x30] sm:$0xff]  ;;  %v11956_v24 = vld [vmem:[%s11795_s17 + $0x48] sm:$0xff] }
  0x58   : > { %396 = vst [vmem:[%s11802_s6 + $0xa0] sm:$0xff] %v11627_v4  ;;  %397 = vst [vmem:[%s11802_s6 + $0xa8] sm:$0xff] %v11627_v4  ;;  %10849 = vmatpush3.msra.mxu0 %v8640_v10  ;;  %10949 = vmatpush3.msra.mxu1 %v8770_v11  ;;  %v11959_v25 = vld [vmem:[%s11795_s17 + $0x40] sm:$0xff]  ;;  %v11975_v27 = vld [vmem:[%s15954_s0 + $0x48] sm:$0xff] }
  0x59   : > { %398 = vst [vmem:[%s11802_s6 + $0xb0] sm:$0xff] %v11627_v4  ;;  %399 = vst [vmem:[%s11802_s6 + $0xb8] sm:$0xff] %v11627_v4  ;;  %10655 = vmatprep.mubr.msk.f32.mxu0 %vm474_vm0, %v11890_v14  ;;  %10755 = vmatprep.mubr.msk.f32.mxu1 %vm474_vm0, %v11890_v14  ;;  %v11964_v26 = vld [vmem:[%s15954_s0 + $0x40] sm:$0xff]  ;;  %v11982_v28 = vld [vmem:[%s11795_s17 + $0x58] sm:$0xff] }
  0x5a   : > { %400 = vst [vmem:[%s11802_s6 + $0xc0] sm:$0xff] %v11627_v4  ;;  %401 = vst [vmem:[%s11802_s6 + $0xc8] sm:$0xff] %v11627_v4  ;;  %10656 = vmatmul.mubr.msk.f32.gmra.mxu0 %vm474_vm0, %v11897_v15  ;;  %10756 = vmatmul.mubr.msk.f32.gmra.mxu1 %vm474_vm0, %v11897_v15  ;;  %v11985_v29 = vld [vmem:[%s11795_s17 + $0x50] sm:$0xff]  ;;  %v8639_v31 = vld [vmem:[%s15906_s4 + $0x20] sm:$0xff] }
  0x5b   : > { %402 = vst [vmem:[%s11802_s6 + $0xd0] sm:$0xff] %v11627_v4  ;;  %403 = vst [vmem:[%s11802_s6 + $0xd8] sm:$0xff] %v11627_v4  ;;  %3559 = vperm.xlu1 %11150, %v11900_v16   ;;  %3554 = vperm.xlu0 %11149, %v11903_v17   ;;  %v11990_v30 = vld [vmem:[%s15954_s0 + $0x50] sm:$0xff]  ;;  %v12007_v33 = vld [vmem:[%s15954_s0 + $0x58] sm:$0xff] }
  0x5c   : > { %404 = vst [vmem:[%s11802_s6 + $0xe0] sm:$0xff] %v11627_v4  ;;  %405 = vst [vmem:[%s11802_s6 + $0xe8] sm:$0xff] %v11627_v4  ;;  %10658 = vmatprep.mubr.msk.f32.mxu0 %vm474_vm0, %v11912_v18  ;;  %10758 = vmatprep.mubr.msk.f32.mxu1 %vm474_vm0, %v11912_v18  ;;  %v8769_v32 = vld [vmem:[%s15906_s4 + $0x30] sm:$0xff]  ;;  %v12014_v34 = vld [vmem:[%s11795_s17 + $0x68] sm:$0xff] }
  0x5d   : > { %406 = vst [vmem:[%s11802_s6 + $0xf0] sm:$0xff] %v11627_v4  ;;  %407 = vst [vmem:[%s11802_s6 + $0xf8] sm:$0xff] %v11627_v4  ;;  %v12017_v35 = vld [vmem:[%s11795_s17 + $0x60] sm:$0xff]  ;;  %10850 = vmatprep.subr.mxu0 %v8639_v31  ;;  %10950 = vmatprep.subr.mxu1 %v8769_v32  ;;  %v12033_v37 = vld [vmem:[%s15954_s0 + $0x68] sm:$0xff] }
  0x5e   : > { %10659 = vmatmul.mubr.msk.f32.gmra.mxu0 %vm474_vm0, %v11923_v19  ;;  %10759 = vmatmul.mubr.msk.f32.gmra.mxu1 %vm474_vm0, %v11923_v19  ;;  %v12022_v36 = vld [vmem:[%s15954_s0 + $0x60] sm:$0xff]  ;;  %v12040_v38 = vld [vmem:[%s11795_s17 + $0x78] sm:$0xff]  ;;  %v12043_v39 = vld [vmem:[%s11795_s17 + $0x70] sm:$0xff] }
  0x5f   : > { %3569 = vperm.xlu1 %11150, %v11930_v20   ;;  %3564 = vperm.xlu0 %11149, %v11933_v21   ;;  %v12048_v40 = vld [vmem:[%s15954_s0 + $0x70] sm:$0xff]  ;;  %v12059_v41 = vld [vmem:[%s15954_s0 + $0x78] sm:$0xff]  ;;  %v12066_v42 = vld [vmem:[%s11795_s17 + $0x88] sm:$0xff] }
  0x60   : > { %10661 = vmatprep.mubr.msk.f32.mxu0 %vm474_vm0, %v11938_v22  ;;  %10761 = vmatprep.mubr.msk.f32.mxu1 %vm474_vm0, %v11938_v22  ;;  %15955 = vst [vmem:[#allocation15_spill] sm:$0xff] %v12066_v42  ;;  %v12069_v43 = vld [vmem:[%s11795_s17 + $0x80] sm:$0xff]  ;;  %v12085_v45 = vld [vmem:[%s15954_s0 + $0x88] sm:$0xff]  ;;  %v12092_v46 = vld [vmem:[%s11795_s17 + $0x98] sm:$0xff] }
  0x61   : > { %10851 = vmatpush3.msra.mxu0 %v8639_v31  ;;  %10951 = vmatpush3.msra.mxu1 %v8769_v32  ;;  %v12074_v44 = vld [vmem:[%s15954_s0 + $0x80] sm:$0xff]  ;;  %15956 = vst [vmem:[#allocation16_spill] sm:$0xff] %v12092_v46  ;;  %v12095_v47 = vld [vmem:[%s11795_s17 + $0x90] sm:$0xff]  ;;  %v12111_v49 = vld [vmem:[%s15954_s0 + $0x98] sm:$0xff] }
  0x62   : > { %10662 = vmatmul.mubr.msk.f32.gmra.mxu0 %vm474_vm0, %v11949_v23  ;;  %10762 = vmatmul.mubr.msk.f32.gmra.mxu1 %vm474_vm0, %v11949_v23  ;;  %v12100_v48 = vld [vmem:[%s15954_s0 + $0x90] sm:$0xff]  ;;  %15958 = vst [vmem:[#allocation18_spill] sm:$0xff] %v12111_v49  ;;  %v12118_v50 = vld [vmem:[%s11795_s17 + $0xa8] sm:$0xff]  ;;  %v12121_v51 = vld [vmem:[%s11795_s17 + $0xa0] sm:$0xff] }
  0x63   : > { %3579 = vperm.xlu1 %11150, %v11956_v24   ;;  %3574 = vperm.xlu0 %11149, %v11959_v25   ;;  %15957 = vst [vmem:[#allocation17_spill] sm:$0xff] %v12100_v48  ;;  %15959 = vst [vmem:[#allocation19_spill] sm:$0xff] %v12118_v50  ;;  %v12126_v52 = vld [vmem:[%s15954_s0 + $0xa0] sm:$0xff]  ;;  %v12137_v53 = vld [vmem:[%s15954_s0 + $0xa8] sm:$0xff] }
  0x64   : > { %10664 = vmatprep.mubr.msk.f32.mxu0 %vm474_vm0, %v11964_v26  ;;  %10764 = vmatprep.mubr.msk.f32.mxu1 %vm474_vm0, %v11964_v26  ;;  %15960 = vst [vmem:[#allocation20_spill] sm:$0xff] %v12121_v51  ;;  %15961 = vst [vmem:[#allocation21_spill] sm:$0xff] %v12126_v52  ;;  %v12144_v54 = vld [vmem:[%s11795_s17 + $0xb8] sm:$0xff]  ;;  %v12147_v55 = vld [vmem:[%s11795_s17 + $0xb0] sm:$0xff] }
  0x65   : > { %15962 = vst [vmem:[#allocation22_spill] sm:$0xff] %v12137_v53  ;;  %15963 = vst [vmem:[#allocation23_spill] sm:$0xff] %v12147_v55  ;;  %v12152_v56 = vld [vmem:[%s15954_s0 + $0xb0] sm:$0xff]  ;;  %v12163_v57 = vld [vmem:[%s15954_s0 + $0xb8] sm:$0xff] }
  0x66   : > { %10665 = vmatmul.mubr.msk.f32.gmra.mxu0 %vm474_vm0, %v11975_v27  ;;  %10765 = vmatmul.mubr.msk.f32.gmra.mxu1 %vm474_vm0, %v11975_v27  ;;  %15964 = vst [vmem:[#allocation24_spill] sm:$0xff] %v12152_v56  ;;  %15965 = vst [vmem:[#allocation25_spill] sm:$0xff] %v12163_v57  ;;  %v12170_v58 = vld [vmem:[%s11795_s17 + $0xc8] sm:$0xff]  ;;  %v12173_v59 = vld [vmem:[%s11795_s17 + $0xc0] sm:$0xff] }
  0x67   : > { %3589 = vperm.xlu1 %11150, %v11982_v28   ;;  %3584 = vperm.xlu0 %11149, %v11985_v29   ;;  %15966 = vst [vmem:[#allocation26_spill] sm:$0xff] %v12173_v59  ;;  %v432_v60 = vld [vmem:[%s15954_s0 + $0xc0] sm:$0xff]  ;;  %v433_v61 = vld [vmem:[%s15954_s0 + $0xc8] sm:$0xff]  ;;  %v12190_v62 = vld [vmem:[%s11795_s17 + $0xd8] sm:$0xff] }
  0x68   : > { %10667 = vmatprep.mubr.msk.f32.mxu0 %vm474_vm0, %v11990_v30  ;;  %10767 = vmatprep.mubr.msk.f32.mxu1 %vm474_vm0, %v11990_v30  ;;  %v12193_v63 = vld [vmem:[%s11795_s17 + $0xd0] sm:$0xff]  ;;  %v435_v1 = vld [vmem:[%s15954_s0 + $0xd8] sm:$0xff]  ;;  %v12208_v3 = vld [vmem:[%s11795_s17 + $0xe8] sm:$0xff] }
  0x69   : > { %15967 = vst [vmem:[#allocation27_spill] sm:$0xff] %v12193_v63  ;;  %v434_v0 = vld [vmem:[%s15954_s0 + $0xd0] sm:$0xff]  ;;  %v12211_v4 = vld [vmem:[%s11795_s17 + $0xe0] sm:$0xff]  ;;  %v437_v7 = vld [vmem:[%s15954_s0 + $0xe8] sm:$0xff] }
  0x6a   : > { %10668 = vmatmul.mubr.msk.f32.gmra.mxu0 %vm474_vm0, %v12007_v33  ;;  %10768 = vmatmul.mubr.msk.f32.gmra.mxu1 %vm474_vm0, %v12007_v33  ;;  %v436_v6 = vld [vmem:[%s15954_s0 + $0xe0] sm:$0xff]  ;;  %v12226_v10 = vld [vmem:[%s11795_s17 + $0xf8] sm:$0xff]  ;;  %v12229_v11 = vld [vmem:[%s11795_s17 + $0xf0] sm:$0xff] }
  0x6b   : > { %3599 = vperm.xlu1 %11150, %v12014_v34   ;;  %3594 = vperm.xlu0 %11149, %v12017_v35   ;;  %v438_v31 = vld [vmem:[%s15954_s0 + $0xf0] sm:$0xff]  ;;  %v439_v32 = vld [vmem:[%s15954_s0 + $0xf8] sm:$0xff] }
  0x6c   : > { %10670 = vmatprep.mubr.msk.f32.mxu0 %vm474_vm0, %v12022_v36  ;;  %10770 = vmatprep.mubr.msk.f32.mxu1 %vm474_vm0, %v12022_v36 }
  0x6e   : > { %10671 = vmatmul.mubr.msk.f32.gmra.mxu0 %vm474_vm0, %v12033_v37  ;;  %10771 = vmatmul.mubr.msk.f32.gmra.mxu1 %vm474_vm0, %v12033_v37 }
  0x6f   : > { %3609 = vperm.xlu1 %11150, %v12040_v38   ;;  %3604 = vperm.xlu0 %11149, %v12043_v39  }
  0x70   : > { %10673 = vmatprep.mubr.msk.f32.mxu0 %vm474_vm0, %v12048_v40  ;;  %10773 = vmatprep.mubr.msk.f32.mxu1 %vm474_vm0, %v12048_v40 }
  0x72   : > { %10674 = vmatmul.mubr.msk.f32.gmra.mxu0 %vm474_vm0, %v12059_v41  ;;  %10774 = vmatmul.mubr.msk.f32.gmra.mxu1 %vm474_vm0, %v12059_v41 }
  0x73   : > { %3619 = vperm.xlu1 %11150, %v12066_v42   ;;  %3614 = vperm.xlu0 %11149, %v12069_v43  }
  0x74   : > { %10676 = vmatprep.mubr.msk.f32.mxu0 %vm474_vm0, %v12074_v44  ;;  %10776 = vmatprep.mubr.msk.f32.mxu1 %vm474_vm0, %v12074_v44 }
  0x76   : > { %10677 = vmatmul.mubr.msk.f32.gmra.mxu0 %vm474_vm0, %v12085_v45  ;;  %10777 = vmatmul.mubr.msk.f32.gmra.mxu1 %vm474_vm0, %v12085_v45 }
  0x77   : > { %3629 = vperm.xlu1 %11150, %v12092_v46   ;;  %3624 = vperm.xlu0 %11149, %v12095_v47  }
  0x78   : > { %10679 = vmatprep.mubr.msk.f32.mxu0 %vm474_vm0, %v12100_v48  ;;  %10779 = vmatprep.mubr.msk.f32.mxu1 %vm474_vm0, %v12100_v48 }
  0x7a   : > { %10680 = vmatmul.mubr.msk.f32.gmra.mxu0 %vm474_vm0, %v12111_v49  ;;  %10780 = vmatmul.mubr.msk.f32.gmra.mxu1 %vm474_vm0, %v12111_v49 }
  0x7b   : > { %3639 = vperm.xlu1 %11150, %v12118_v50   ;;  %3634 = vperm.xlu0 %11149, %v12121_v51  }
  0x7c   : > { %10682 = vmatprep.mubr.msk.f32.mxu0 %vm474_vm0, %v12126_v52  ;;  %10782 = vmatprep.mubr.msk.f32.mxu1 %vm474_vm0, %v12126_v52 }
  0x7e   : > { %10683 = vmatmul.mubr.msk.f32.gmra.mxu0 %vm474_vm0, %v12137_v53  ;;  %10783 = vmatmul.mubr.msk.f32.gmra.mxu1 %vm474_vm0, %v12137_v53 }
  0x7f   : > { %3649 = vperm.xlu1 %11150, %v12144_v54   ;;  %3644 = vperm.xlu0 %11149, %v12147_v55  }
  0x80   : > { %10685 = vmatprep.mubr.msk.f32.mxu0 %vm474_vm0, %v12152_v56  ;;  %10785 = vmatprep.mubr.msk.f32.mxu1 %vm474_vm0, %v12152_v56 }
  0x82   : > { %10686 = vmatmul.mubr.msk.f32.gmra.mxu0 %vm474_vm0, %v12163_v57  ;;  %10786 = vmatmul.mubr.msk.f32.gmra.mxu1 %vm474_vm0, %v12163_v57 }
  0x83   : > { %3659 = vperm.xlu1 %11150, %v12170_v58   ;;  %3654 = vperm.xlu0 %11149, %v12173_v59  }
  0x84   : > { %10688 = vmatprep.mubr.msk.f32.mxu0 %vm474_vm0, %v432_v60  ;;  %10788 = vmatprep.mubr.msk.f32.mxu1 %vm474_vm0, %v432_v60  ;;  %v440_v60 = vld [vmem:[%s15954_s0 + $0x100] sm:$0xff] }
  0x86   : > { %10689 = vmatmul.mubr.msk.f32.gmra.mxu0 %vm474_vm0, %v433_v61  ;;  %10789 = vmatmul.mubr.msk.f32.gmra.mxu1 %vm474_vm0, %v433_v61  ;;  %v11628_v61 = vmov 1  }
  0x87   : > { %3669 = vperm.xlu1 %11150, %v12190_v62   ;;  %3664 = vperm.xlu0 %11149, %v12193_v63  }
  0x88   : > { %10691 = vmatprep.mubr.msk.f32.mxu0 %vm474_vm0, %v434_v0  ;;  %10791 = vmatprep.mubr.msk.f32.mxu1 %vm474_vm0, %v434_v0  ;;  %v441_v0 = vld [vmem:[%s15954_s0 + $0x108] sm:$0xff] }
  0x8a   : > { %10692 = vmatmul.mubr.msk.f32.gmra.mxu0 %vm474_vm0, %v435_v1  ;;  %10792 = vmatmul.mubr.msk.f32.gmra.mxu1 %vm474_vm0, %v435_v1  ;;  %v442_v1 = vld [vmem:[%s15954_s0 + $0x110] sm:$0xff] }
  0x8b   : > { %3679 = vperm.xlu1 %11150, %v12208_v3   ;;  %3674 = vperm.xlu0 %11149, %v12211_v4  }
  0x8c   : > { %10694 = vmatprep.mubr.msk.f32.mxu0 %vm474_vm0, %v436_v6  ;;  %10794 = vmatprep.mubr.msk.f32.mxu1 %vm474_vm0, %v436_v6  ;;  %v443_v6 = vld [vmem:[%s15954_s0 + $0x118] sm:$0xff] }
  0x8e   : > { %10695 = vmatmul.mubr.msk.f32.gmra.mxu0 %vm474_vm0, %v437_v7  ;;  %10795 = vmatmul.mubr.msk.f32.gmra.mxu1 %vm474_vm0, %v437_v7  ;;  %v444_v7 = vld [vmem:[%s15954_s0 + $0x120] sm:$0xff] }
  0x8f   : > { %3689 = vperm.xlu1 %11150, %v12226_v10   ;;  %3684 = vperm.xlu0 %11149, %v12229_v11  }
  0x90   : > { %10697 = vmatprep.mubr.msk.f32.mxu0 %vm474_vm0, %v438_v31  ;;  %10797 = vmatprep.mubr.msk.f32.mxu1 %vm474_vm0, %v438_v31  ;;  %v445_v31 = vld [vmem:[%s15954_s0 + $0x128] sm:$0xff] }
  0x92   : > { %10698 = vmatmul.mubr.msk.f32.gmra.mxu0 %vm474_vm0, %v439_v32  ;;  %10798 = vmatmul.mubr.msk.f32.gmra.mxu1 %vm474_vm0, %v439_v32  ;;  %v446_v32 = vld [vmem:[%s15954_s0 + $0x130] sm:$0xff] }
  0x93   : > { %11152 = vset.pattern.permute.xlu1 %v11628_v61  ;;  %11151 = vset.pattern.permute.xlu0 %v11628_v61  ;;  %v448_v61 = vld [vmem:[%s15954_s0 + $0x140] sm:$0xff] }
  0x94   : > { %3976 = vperm.xlu1 %11152, %v11881_v13   ;;  %3972 = vperm.xlu0 %11151, %v11847_v5  }
  0x95   : > { %10700 = vmatprep.mubr.msk.f32.mxu0 %vm474_vm0, %v440_v60  ;;  %10800 = vmatprep.mubr.msk.f32.mxu1 %vm474_vm0, %v440_v60  ;;  %v447_v60 = vld [vmem:[%s15954_s0 + $0x138] sm:$0xff] }
  0x96   : > { %10701 = vmatmul.mubr.msk.f32.gmra.mxu0 %vm474_vm0, %v441_v0  ;;  %10801 = vmatmul.mubr.msk.f32.gmra.mxu1 %vm474_vm0, %v441_v0  ;;  %v449_v0 = vld [vmem:[%s15954_s0 + $0x148] sm:$0xff] }
  0x97   : > { %10703 = vmatprep.mubr.msk.f32.mxu0 %vm474_vm0, %v442_v1  ;;  %10803 = vmatprep.mubr.msk.f32.mxu1 %vm474_vm0, %v442_v1  ;;  %v450_v1 = vld [vmem:[%s15954_s0 + $0x150] sm:$0xff] }
  0x98   : > { %3980 = vperm.xlu1 %11152, %v11812_v2   ;;  %3984 = vperm.xlu0 %11151, %v11878_v12  }
  0x9a   : > { %10704 = vmatmul.mubr.msk.f32.gmra.mxu0 %vm474_vm0, %v443_v6  ;;  %10804 = vmatmul.mubr.msk.f32.gmra.mxu1 %vm474_vm0, %v443_v6  ;;  %v451_v6 = vld [vmem:[%s15954_s0 + $0x158] sm:$0xff] }
  0x9b   : > { %10706 = vmatprep.mubr.msk.f32.mxu0 %vm474_vm0, %v444_v7  ;;  %10806 = vmatprep.mubr.msk.f32.mxu1 %vm474_vm0, %v444_v7  ;;  %v452_v7 = vld [vmem:[%s15954_s0 + $0x160] sm:$0xff] }
  0x9c   : > { %3988 = vperm.xlu1 %11152, %v11903_v17   ;;  %3992 = vperm.xlu0 %11151, %v11900_v16  }
  0x9e   : > { %10707 = vmatmul.mubr.msk.f32.gmra.mxu0 %vm474_vm0, %v445_v31  ;;  %10807 = vmatmul.mubr.msk.f32.gmra.mxu1 %vm474_vm0, %v445_v31  ;;  %v453_v31 = vld [vmem:[%s15954_s0 + $0x168] sm:$0xff] }
  0x9f   : > { %10709 = vmatprep.mubr.msk.f32.mxu0 %vm474_vm0, %v446_v32  ;;  %10809 = vmatprep.mubr.msk.f32.mxu1 %vm474_vm0, %v446_v32  ;;  %v454_v32 = vld [vmem:[%s15954_s0 + $0x170] sm:$0xff] }
  0xa0   : > { %3996 = vperm.xlu1 %11152, %v11933_v21   ;;  %4000 = vperm.xlu0 %11151, %v11930_v20  }
  0xa2   : > { %10710 = vmatmul.mubr.msk.f32.gmra.mxu0 %vm474_vm0, %v447_v60  ;;  %10810 = vmatmul.mubr.msk.f32.gmra.mxu1 %vm474_vm0, %v447_v60  ;;  %v455_v60 = vld [vmem:[%s15954_s0 + $0x178] sm:$0xff] }
  0xa3   : > { %10712 = vmatprep.mubr.msk.f32.mxu0 %vm474_vm0, %v448_v61  ;;  %10812 = vmatprep.mubr.msk.f32.mxu1 %vm474_vm0, %v448_v61  ;;  %v456_v61 = vld [vmem:[%s15954_s0 + $0x180] sm:$0xff] }
  0xa4   : > { %4004 = vperm.xlu1 %11152, %v11959_v25   ;;  %4008 = vperm.xlu0 %11151, %v11956_v24  }
  0xa6   : > { %10713 = vmatmul.mubr.msk.f32.gmra.mxu0 %vm474_vm0, %v449_v0  ;;  %10813 = vmatmul.mubr.msk.f32.gmra.mxu1 %vm474_vm0, %v449_v0  ;;  %v457_v0 = vld [vmem:[%s15954_s0 + $0x188] sm:$0xff] }
  0xa7   : > { %10715 = vmatprep.mubr.msk.f32.mxu0 %vm474_vm0, %v450_v1  ;;  %10815 = vmatprep.mubr.msk.f32.mxu1 %vm474_vm0, %v450_v1  ;;  %v458_v1 = vld [vmem:[%s15954_s0 + $0x190] sm:$0xff] }
  0xa8   : > { %4012 = vperm.xlu1 %11152, %v11985_v29   ;;  %4016 = vperm.xlu0 %11151, %v11982_v28  }
  0xaa   : > { %10716 = vmatmul.mubr.msk.f32.gmra.mxu0 %vm474_vm0, %v451_v6  ;;  %10816 = vmatmul.mubr.msk.f32.gmra.mxu1 %vm474_vm0, %v451_v6  ;;  %v459_v6 = vld [vmem:[%s15954_s0 + $0x198] sm:$0xff] }
  0xab   : > { %10718 = vmatprep.mubr.msk.f32.mxu0 %vm474_vm0, %v452_v7  ;;  %10818 = vmatprep.mubr.msk.f32.mxu1 %vm474_vm0, %v452_v7  ;;  %v460_v7 = vld [vmem:[%s15954_s0 + $0x1a0] sm:$0xff] }
  0xac   : > { %4020 = vperm.xlu1 %11152, %v12017_v35   ;;  %4024 = vperm.xlu0 %11151, %v12014_v34  }
  0xae   : > { %10719 = vmatmul.mubr.msk.f32.gmra.mxu0 %vm474_vm0, %v453_v31  ;;  %10819 = vmatmul.mubr.msk.f32.gmra.mxu1 %vm474_vm0, %v453_v31  ;;  %v461_v31 = vld [vmem:[%s15954_s0 + $0x1a8] sm:$0xff] }
  0xaf   : > { %10721 = vmatprep.mubr.msk.f32.mxu0 %vm474_vm0, %v454_v32  ;;  %10821 = vmatprep.mubr.msk.f32.mxu1 %vm474_vm0, %v454_v32  ;;  %v462_v32 = vld [vmem:[%s15954_s0 + $0x1b0] sm:$0xff] }
  0xb0   : > { %4028 = vperm.xlu1 %11152, %v12043_v39   ;;  %4032 = vperm.xlu0 %11151, %v12040_v38  }
  0xb2   : > { %10722 = vmatmul.mubr.msk.f32.gmra.mxu0 %vm474_vm0, %v455_v60  ;;  %10822 = vmatmul.mubr.msk.f32.gmra.mxu1 %vm474_vm0, %v455_v60  ;;  %v3693_v60 = vlaneseq }
  0xb3   : > { %10724 = vmatprep.mubr.msk.f32.mxu0 %vm474_vm0, %v456_v61  ;;  %10824 = vmatprep.mubr.msk.f32.mxu1 %vm474_vm0, %v456_v61  ;;  %v463_v61 = vld [vmem:[%s15954_s0 + $0x1b8] sm:$0xff] }
  0xb4   : > { %4036 = vperm.xlu1 %11152, %v12069_v43   ;;  %4040 = vperm.xlu0 %11151, %v12066_v42  }
  0xb6   : > { %10725 = vmatmul.mubr.msk.f32.gmra.mxu0 %vm474_vm0, %v457_v0  ;;  %10825 = vmatmul.mubr.msk.f32.gmra.mxu1 %vm474_vm0, %v457_v0  ;;  %v464_v0 = vld [vmem:[%s15954_s0 + $0x1c0] sm:$0xff] }
  0xb7   : > { %10727 = vmatprep.mubr.msk.f32.mxu0 %vm474_vm0, %v458_v1  ;;  %10827 = vmatprep.mubr.msk.f32.mxu1 %vm474_vm0, %v458_v1  ;;  %v3694_v1 = vshrl.u32 %v3693_v60, 7 }
  0xb8   : > { %4044 = vperm.xlu1 %11152, %v12095_v47   ;;  %4048 = vperm.xlu0 %11151, %v12092_v46   ;;  %v471_v46 = vld [vmem:[%s15954_s0 + $0x1f8] sm:$0xff] }
  0xb9   : > { %v12409_v60 = vsub.s32 2, %v3694_v1 }
  0xba   : > { %10728 = vmatmul.mubr.msk.f32.gmra.mxu0 %vm474_vm0, %v459_v6  ;;  %10828 = vmatmul.mubr.msk.f32.gmra.mxu1 %vm474_vm0, %v459_v6  ;;  %v465_v6 = vld [vmem:[%s15954_s0 + $0x1c8] sm:$0xff] }
  0xbb   : > { %10730 = vmatprep.mubr.msk.f32.mxu0 %vm474_vm0, %v460_v7  ;;  %10830 = vmatprep.mubr.msk.f32.mxu1 %vm474_vm0, %v460_v7  ;;  %v12402_v7 = vsub.s32 0, %v3694_v1  ;;  %15970 = vst [vmem:[#allocation30_spill] sm:$0xff] %v12409_v60 }
  0xbc   : > { %4052 = vperm.xlu1 %11152, %v12121_v51   ;;  %4056 = vperm.xlu0 %11151, %v12118_v50  }
  0xbd   : > { %15968 = vst [vmem:[#allocation28_spill] sm:$0xff] %v12402_v7 }
  0xbe   : > { %10731 = vmatmul.mubr.msk.f32.gmra.mxu0 %vm474_vm0, %v461_v31  ;;  %10831 = vmatmul.mubr.msk.f32.gmra.mxu1 %vm474_vm0, %v461_v31  ;;  %v3531_v31 = vld [vmem:[%s15904_s2] ss:$4 sm:$0xf] }
  0xbf   : > { %10733 = vmatprep.mubr.msk.f32.mxu0 %vm474_vm0, %v462_v32  ;;  %10833 = vmatprep.mubr.msk.f32.mxu1 %vm474_vm0, %v462_v32  ;;  %v12407_v32 = vsub.s32 1, %v3694_v1 }
  0xc0   : > { %4060 = vperm.xlu1 %11152, %v12147_v55   ;;  %4064 = vperm.xlu0 %11151, %v12144_v54   ;;  %v466_v54 = vld [vmem:[%s15954_s0 + $0x1d0] sm:$0xff] }
  0xc1   : > { %15969 = vst [vmem:[#allocation29_spill] sm:$0xff] %v12407_v32 }
  0xc2   : > { %10734 = vmatmul.mubr.msk.f32.gmra.mxu0 %vm474_vm0, %v463_v61  ;;  %10834 = vmatmul.mubr.msk.f32.gmra.mxu1 %vm474_vm0, %v463_v61  ;;  %v12411_v61 = vsub.s32 3, %v3694_v1  ;;  %v12426_v1 = vrot.slane %v3531_v31, %v12402_v7 }
  0xc3   : > { %10736 = vmatprep.mubr.msk.f32.mxu0 %vm474_vm0, %v464_v0  ;;  %10836 = vmatprep.mubr.msk.f32.mxu1 %vm474_vm0, %v464_v0  ;;  %v468_v0 = vld [vmem:[%s15954_s0 + $0x1e0] sm:$0xff] }
  0xc4   : > { %4068 = vperm.xlu1 %11152, %v12173_v59   ;;  %4072 = vperm.xlu0 %11151, %v12170_v58   ;;  %15971 = vst [vmem:[#allocation31_spill] sm:$0xff] %v12411_v61  ;;  %v467_v58 = vld [vmem:[%s15954_s0 + $0x1d8] sm:$0xff]  ;;  %v12435_v57 = vrot.slane %v3531_v31, %v12411_v61 }
  0xc6   : > { %10737 = vmatmul.mubr.msk.f32.gmra.mxu0 %vm474_vm0, %v465_v6  ;;  %10837 = vmatmul.mubr.msk.f32.gmra.mxu1 %vm474_vm0, %v465_v6  ;;  %v12429_v6 = vrot.slane %v3531_v31, %v12407_v32 }
  0xc7   : > { %10739 = vmatprep.mubr.msk.f32.mxu0 %vm474_vm0, %v466_v54  ;;  %10839 = vmatprep.mubr.msk.f32.mxu1 %vm474_vm0, %v466_v54  ;;  %v12432_v54 = vrot.slane %v3531_v31, %v12409_v60 }
  0xc8   : > { %4076 = vperm.xlu1 %11152, %v12193_v63   ;;  %4080 = vperm.xlu0 %11151, %v12190_v62   ;;  %v469_v62 = vld [vmem:[%s15954_s0 + $0x1e8] sm:$0xff] }
  0xca   : > { %10740 = vmatmul.mubr.msk.f32.gmra.mxu0 %vm474_vm0, %v467_v58  ;;  %10840 = vmatmul.mubr.msk.f32.gmra.mxu1 %vm474_vm0, %v467_v58  ;;  %v470_v58 = vld [vmem:[%s15954_s0 + $0x1f0] sm:$0xff] }
  0xcb   : > { %10742 = vmatprep.mubr.msk.f32.mxu0 %vm474_vm0, %v468_v0  ;;  %10842 = vmatprep.mubr.msk.f32.mxu1 %vm474_vm0, %v468_v0  ;;  %v3545_v63 = vpop.permute.xlu1 %3544  ;;  %v3535_v56 = vpop.permute.xlu0 %3534  ;;  %v8899_v0 = vld [vmem:[%s15904_s2 + $0x1] ss:$4 sm:$0xf] }
  0xcc   : > { %4084 = vperm.xlu1 %11152, %v12211_v4   ;;  %4088 = vperm.xlu0 %11151, %v12208_v3   ;;  %v3721_v31 = vsub.f32 %v3545_v63, %v12426_v1  ;;  %v3722_v59 = vsub.f32 %v3545_v63, %v12429_v6  ;;  %v3723_v50 = vsub.f32 %v3545_v63, %v12432_v54 }
  0xcd   : > { %v3724_v53 = vsub.f32 %v3545_v63, %v12435_v57  ;;  %v3713_v4 = vsub.f32 %v3535_v56, %v12426_v1  ;;  %v3714_v3 = vsub.f32 %v3535_v56, %v12429_v6  ;;  %v3715_v52 = vsub.f32 %v3535_v56, %v12432_v54 }
  0xce   : > { %10743 = vmatmul.mubr.msk.f32.gmra.mxu0 %vm474_vm0, %v469_v62  ;;  %10843 = vmatmul.mubr.msk.f32.gmra.mxu1 %vm474_vm0, %v469_v62  ;;  %v3716_v55 = vsub.f32 %v3535_v56, %v12435_v57  ;;  %v12467_v63 = vrot.slane %v8899_v0, %v12402_v7  ;;  %v12470_v49 = vrot.slane %v8899_v0, %v12407_v32 }
  0xcf   : > { %10745 = vmatprep.mubr.msk.f32.mxu0 %vm474_vm0, %v470_v58  ;;  %v12472_v48 = vmul.f32 %v3721_v31, %v3721_v31  ;;  %v12477_v56 = vrot.slane %v8899_v0, %v12409_v60  ;;  %v12480_v62 = vrot.slane %v8899_v0, %v12411_v61  ;;  %v12482_v51 = vmul.f32 %v3722_v59, %v3722_v59 }
  0xd0   : > { %4092 = vperm.xlu1 %11152, %v12229_v11   ;;  %4096 = vperm.xlu0 %11151, %v12226_v10   ;;  %v12484_v42 = vmul.f32 %v3723_v50, %v3723_v50  ;;  %v12486_v7 = vmul.f32 %v3724_v53, %v3724_v53  ;;  %v12488_v32 = vmul.f32 %v3713_v4, %v3713_v4 }
  0xd1   : > { %15972 = vst [vmem:[#allocation32_spill] sm:$0xff] %v12472_v48  ;;  %15973 = vst [vmem:[#allocation33_spill] sm:$0xff] %v12482_v51  ;;  %10845 = vmatprep.mubr.msk.f32.mxu1 %vm474_vm0, %v470_v58  ;;  %v12491_v31 = vmul.f32 %v3714_v3, %v3714_v3  ;;  %v12493_v11 = vmul.f32 %v3715_v52, %v3715_v52  ;;  %v12495_v10 = vmul.f32 %v3716_v55, %v3716_v55  ;;  %v11629_v52 = vmov 2  }
  0xd2   : > { %15974 = vst [vmem:[#allocation34_spill] sm:$0xff] %v12484_v42  ;;  %15975 = vst [vmem:[#allocation35_spill] sm:$0xff] %v12486_v7  ;;  %10746 = vmatmul.mubr.msk.f32.gmra.mxu0 %vm474_vm0, %v471_v46  ;;  %10846 = vmatmul.mubr.msk.f32.gmra.mxu1 %vm474_vm0, %v471_v46  ;;  %v3550_v59 = vpop.permute.xlu1 %3549  ;;  %v3540_v0 = vpop.permute.xlu0 %3539 }
  0xd3   : > { %v3725_v50 = vsub.f32 %v3550_v59, %v12426_v1  ;;  %v3726_v53 = vsub.f32 %v3550_v59, %v12429_v6  ;;  %v3727_v4 = vsub.f32 %v3550_v59, %v12432_v54  ;;  %v3728_v58 = vsub.f32 %v3550_v59, %v12435_v57  ;;  %10852 = vmatprep.mubr.msk.f32.mxu0 %vm474_vm0, %v11860_v8 }
  0xd4   : > { %11153 = vset.pattern.permute.xlu1 %v11629_v52  ;;  %11154 = vset.pattern.permute.xlu0 %v11629_v52  ;;  %v3717_v55 = vsub.f32 %v3540_v0, %v12426_v1  ;;  %v3718_v46 = vsub.f32 %v3540_v0, %v12429_v6  ;;  %v3719_v3 = vsub.f32 %v3540_v0, %v12432_v54 }
  0xd5   : > { %v12508_v61 = vmul.f32 %v3725_v50, %v3725_v50  ;;  %v12510_v60 = vmul.f32 %v3726_v53, %v3726_v53  ;;  %v12512_v7 = vmul.f32 %v3727_v4, %v3727_v4  ;;  %v12514_v42 = vmul.f32 %v3728_v58, %v3728_v58  ;;  %4507 = vperm.xlu1 %11153, %v11847_v5  }
  0xd6   : > { %v3720_v59 = vsub.f32 %v3540_v0, %v12435_v57  ;;  %v12518_v51 = vmul.f32 %v3717_v55, %v3717_v55  ;;  %v12520_v52 = vmul.f32 %v3718_v46, %v3718_v46  ;;  %v12522_v48 = vmul.f32 %v3719_v3, %v3719_v3  ;;  %4511 = vperm.xlu0 %11154, %v11881_v13   ;;  %v3560_v50 = vpop.permute.xlu1 %3559 }
  0xd7   : > { %15976 = vst [vmem:[#allocation36_spill] sm:$0xff] %v12508_v61  ;;  %15977 = vst [vmem:[#allocation37_spill] sm:$0xff] %v12512_v7  ;;  %v3555_v61 = vpop.permute.xlu0 %3554  ;;  %10952 = vmatprep.mubr.msk.f32.mxu1 %vm474_vm0, %v11860_v8  ;;  %10853 = vmatmul.mubr.msk.f32.vlgmr.msra.gmra.mxu0 %vm474_vm0, %v11865_v9  ;;  %v3733_v5 = vsub.f32 %v3560_v50, %v12426_v1  ;;  %v3734_v0 = vsub.f32 %v3560_v50, %v12429_v6 }
  0xd8   : > { %15978 = vst [vmem:[#allocation38_spill] sm:$0xff] %v12514_v42  ;;  %v3735_v53 = vsub.f32 %v3560_v50, %v12432_v54  ;;  %v12532_v4 = vmul.f32 %v3720_v59, %v3720_v59  ;;  %10953 = vmatmul.mubr.msk.f32.vlgmr.msra.gmra.mxu1 %vm474_vm0, %v11865_v9  ;;  %v3736_v13 = vsub.f32 %v3560_v50, %v12435_v57 }
  0xd9   : > { %v3729_v58 = vsub.f32 %v3555_v61, %v12426_v1  ;;  %v3730_v8 = vsub.f32 %v3555_v61, %v12429_v6  ;;  %v12539_v55 = vmul.f32 %v3733_v5, %v3733_v5  ;;  %v12541_v46 = vmul.f32 %v3734_v0, %v3734_v0  ;;  %4515 = vperm.xlu1 %11153, %v11812_v2  }
  0xda   : > { %v12543_v3 = vmul.f32 %v3735_v53, %v3735_v53  ;;  %v3731_v42 = vsub.f32 %v3555_v61, %v12432_v54  ;;  %v12547_v59 = vmul.f32 %v3736_v13, %v3736_v13  ;;  %v3732_v9 = vsub.f32 %v3555_v61, %v12435_v57  ;;  %4523 = vperm.xlu0 %11154, %v11903_v17   ;;  %v3570_v5 = vpop.permute.xlu1 %3569 }
  0xdb   : > { %15979 = vst [vmem:[#allocation39_spill] sm:$0xff] %v12539_v55  ;;  %v12550_v7 = vmul.f32 %v3729_v58, %v3729_v58  ;;  %v12552_v50 = vmul.f32 %v3730_v8, %v3730_v8  ;;  %v3565_v55 = vpop.permute.xlu0 %3564  ;;  %10855 = vmatprep.mubr.msk.f32.mxu0 %vm474_vm0, %v11890_v14  ;;  %10955 = vmatprep.mubr.msk.f32.mxu1 %vm474_vm0, %v11890_v14 }
  0xdc   : > { %15980 = vst [vmem:[#allocation40_spill] sm:$0xff] %v12543_v3  ;;  %15981 = vst [vmem:[#allocation41_spill] sm:$0xff] %v12547_v59  ;;  %v12555_v0 = vmul.f32 %v3731_v42, %v3731_v42  ;;  %v3741_v2 = vsub.f32 %v3570_v5, %v12426_v1  ;;  %v3742_v61 = vsub.f32 %v3570_v5, %v12429_v6  ;;  %10856 = vmatmul.mubr.msk.f32.gmra.mxu0 %vm474_vm0, %v11897_v15 }
  0xdd   : > { %v12563_v53 = vmul.f32 %v3732_v9, %v3732_v9  ;;  %10956 = vmatmul.mubr.msk.f32.gmra.mxu1 %vm474_vm0, %v11897_v15  ;;  %v3743_v17 = vsub.f32 %v3570_v5, %v12432_v54  ;;  %v3744_v42 = vsub.f32 %v3570_v5, %v12435_v57  ;;  %v3737_v14 = vsub.f32 %v3565_v55, %v12426_v1 }
  0xde   : > { %v12571_v13 = vmul.f32 %v3741_v2, %v3741_v2  ;;  %v12573_v58 = vmul.f32 %v3742_v61, %v3742_v61  ;;  %v3738_v8 = vsub.f32 %v3565_v55, %v12429_v6  ;;  %4519 = vperm.xlu1 %11153, %v11878_v12   ;;  %v3739_v15 = vsub.f32 %v3565_v55, %v12432_v54  ;;  %v3580_v5 = vpop.permute.xlu1 %3579 }
  0xdf   : > { %v12578_v9 = vmul.f32 %v3743_v17, %v3743_v17  ;;  %v12580_v59 = vmul.f32 %v3744_v42, %v3744_v42  ;;  %v3740_v3 = vsub.f32 %v3565_v55, %v12435_v57  ;;  %4531 = vperm.xlu0 %11154, %v11933_v21   ;;  %v3575_v2 = vpop.permute.xlu0 %3574  ;;  %v12585_v61 = vmul.f32 %v3737_v14, %v3737_v14 }
  0xe0   : > { %15982 = vst [vmem:[#allocation42_spill] sm:$0xff] %v12571_v13  ;;  %15983 = vst [vmem:[#allocation43_spill] sm:$0xff] %v12573_v58  ;;  %v12587_v58 = vmul.f32 %v3738_v8, %v3738_v8  ;;  %10858 = vmatprep.mubr.msk.f32.mxu0 %vm474_vm0, %v11912_v18  ;;  %10958 = vmatprep.mubr.msk.f32.mxu1 %vm474_vm0, %v11912_v18  ;;  %v3749_v12 = vsub.f32 %v3580_v5, %v12426_v1 }
  0xe1   : > { %15984 = vst [vmem:[#allocation44_spill] sm:$0xff] %v12578_v9  ;;  %15985 = vst [vmem:[#allocation45_spill] sm:$0xff] %v12580_v59  ;;  %v12594_v17 = vmul.f32 %v3739_v15, %v3739_v15  ;;  %v12596_v42 = vmul.f32 %v3740_v3, %v3740_v3  ;;  %10859 = vmatmul.mubr.msk.f32.gmra.mxu0 %vm474_vm0, %v11923_v19  ;;  %10959 = vmatmul.mubr.msk.f32.gmra.mxu1 %vm474_vm0, %v11923_v19 }
  0xe2   : > { %v3750_v21 = vsub.f32 %v3580_v5, %v12429_v6  ;;  %v3751_v55 = vsub.f32 %v3580_v5, %v12432_v54  ;;  %v3752_v14 = vsub.f32 %v3580_v5, %v12435_v57  ;;  %v12605_v8 = vmul.f32 %v3749_v12, %v3749_v12  ;;  %4527 = vperm.xlu1 %11153, %v11900_v16   ;;  %v3590_v9 = vpop.permute.xlu1 %3589 }
  0xe3   : > { %15986 = vst [vmem:[#allocation46_spill] sm:$0xff] %v12596_v42  ;;  %v3745_v18 = vsub.f32 %v3575_v2, %v12426_v1  ;;  %v3746_v15 = vsub.f32 %v3575_v2, %v12429_v6  ;;  %v3747_v59 = vsub.f32 %v3575_v2, %v12432_v54  ;;  %v3748_v19 = vsub.f32 %v3575_v2, %v12435_v57  ;;  %v3585_v13 = vpop.permute.xlu0 %3584 }
  0xe4   : > { %15987 = vst [vmem:[#allocation47_spill] sm:$0xff] %v12605_v8  ;;  %v12609_v3 = vmul.f32 %v3750_v21, %v3750_v21  ;;  %4539 = vperm.xlu0 %11154, %v11959_v25   ;;  %v12615_v42 = vmul.f32 %v3751_v55, %v3751_v55  ;;  %v12617_v5 = vmul.f32 %v3752_v14, %v3752_v14 }
  0xe5   : > { %v12619_v12 = vmul.f32 %v3745_v18, %v3745_v18  ;;  %10861 = vmatprep.mubr.msk.f32.mxu0 %vm474_vm0, %v11938_v22  ;;  %10961 = vmatprep.mubr.msk.f32.mxu1 %vm474_vm0, %v11938_v22  ;;  %v12625_v16 = vmul.f32 %v3746_v15, %v3746_v15  ;;  %v12627_v21 = vmul.f32 %v3747_v59, %v3747_v59 }
  0xe6   : > { %15988 = vst [vmem:[#allocation48_spill] sm:$0xff] %v12609_v3  ;;  %15989 = vst [vmem:[#allocation49_spill] sm:$0xff] %v12615_v42  ;;  %v12629_v2 = vmul.f32 %v3748_v19, %v3748_v19  ;;  %10862 = vmatmul.mubr.msk.f32.gmra.mxu0 %vm474_vm0, %v11949_v23  ;;  %10962 = vmatmul.mubr.msk.f32.gmra.mxu1 %vm474_vm0, %v11949_v23  ;;  %v3757_v25 = vsub.f32 %v3590_v9, %v12426_v1  ;;  %v3600_v23 = vpop.permute.xlu1 %3599 }
  0xe7   : > { %15990 = vst [vmem:[#allocation50_spill] sm:$0xff] %v12617_v5  ;;  %v3758_v55 = vsub.f32 %v3590_v9, %v12429_v6  ;;  %v3759_v14 = vsub.f32 %v3590_v9, %v12432_v54  ;;  %v3760_v22 = vsub.f32 %v3590_v9, %v12435_v57  ;;  %4535 = vperm.xlu1 %11153, %v11930_v20   ;;  %v3595_v5 = vpop.permute.xlu0 %3594 }
  0xe8   : > { %15991 = vst [vmem:[#allocation51_spill] sm:$0xff] %v12629_v2  ;;  %v3753_v59 = vsub.f32 %v3585_v13, %v12426_v1  ;;  %v3754_v18 = vsub.f32 %v3585_v13, %v12429_v6  ;;  %v3755_v15 = vsub.f32 %v3585_v13, %v12432_v54  ;;  %v3756_v19 = vsub.f32 %v3585_v13, %v12435_v57 }
  0xe9   : > { %4547 = vperm.xlu0 %11154, %v11985_v29   ;;  %v12645_v42 = vmul.f32 %v3757_v25, %v3757_v25  ;;  %v12647_v3 = vmul.f32 %v3758_v55, %v3758_v55  ;;  %v12649_v8 = vmul.f32 %v3759_v14, %v3759_v14  ;;  %v12651_v9 = vmul.f32 %v3760_v22, %v3760_v22 }
  0xea   : > { %10864 = vmatprep.mubr.msk.f32.mxu0 %vm474_vm0, %v11964_v26  ;;  %v12655_v20 = vmul.f32 %v3753_v59, %v3753_v59  ;;  %v12657_v2 = vmul.f32 %v3754_v18, %v3754_v18  ;;  %v12659_v13 = vmul.f32 %v3755_v15, %v3755_v15  ;;  %v12661_v29 = vmul.f32 %v3756_v19, %v3756_v19  ;;  %v3610_v15 = vpop.permute.xlu1 %3609 }
  0xeb   : > { %15992 = vst [vmem:[#allocation52_spill] sm:$0xff] %v12645_v42  ;;  %15993 = vst [vmem:[#allocation53_spill] sm:$0xff] %v12647_v3  ;;  %10964 = vmatprep.mubr.msk.f32.mxu1 %vm474_vm0, %v11964_v26  ;;  %10865 = vmatmul.mubr.msk.f32.gmra.mxu0 %vm474_vm0, %v11975_v27  ;;  %v3765_v25 = vsub.f32 %v3600_v23, %v12426_v1  ;;  %v3766_v55 = vsub.f32 %v3600_v23, %v12429_v6  ;;  %v3605_v19 = vpop.permute.xlu0 %3604 }
  0xec   : > { %15994 = vst [vmem:[#allocation54_spill] sm:$0xff] %v12649_v8  ;;  %15995 = vst [vmem:[#allocation55_spill] sm:$0xff] %v12651_v9  ;;  %10965 = vmatmul.mubr.msk.f32.gmra.mxu1 %vm474_vm0, %v11975_v27  ;;  %v3767_v14 = vsub.f32 %v3600_v23, %v12432_v54  ;;  %v3768_v22 = vsub.f32 %v3600_v23, %v12435_v57  ;;  %v3761_v59 = vsub.f32 %v3595_v5, %v12426_v1 }
  0xed   : > { %15996 = vst [vmem:[#allocation56_spill] sm:$0xff] %v12659_v13  ;;  %15997 = vst [vmem:[#allocation57_spill] sm:$0xff] %v12661_v29  ;;  %v3762_v18 = vsub.f32 %v3595_v5, %v12429_v6  ;;  %v3763_v26 = vsub.f32 %v3595_v5, %v12432_v54  ;;  %4543 = vperm.xlu1 %11153, %v11956_v24   ;;  %v12677_v9 = vmul.f32 %v3765_v25, %v3765_v25 }
  0xee   : > { %v12679_v27 = vmul.f32 %v3766_v55, %v3766_v55  ;;  %v12681_v8 = vmul.f32 %v3767_v14, %v3767_v14  ;;  %v3764_v3 = vsub.f32 %v3595_v5, %v12435_v57  ;;  %4555 = vperm.xlu0 %11154, %v12017_v35   ;;  %v12685_v23 = vmul.f32 %v3768_v22, %v3768_v22  ;;  %v3620_v22 = vpop.permute.xlu1 %3619 }
  0xef   : > { %v12687_v42 = vmul.f32 %v3761_v59, %v3761_v59  ;;  %v12689_v29 = vmul.f32 %v3762_v18, %v3762_v18  ;;  %v12691_v13 = vmul.f32 %v3763_v26, %v3763_v26  ;;  %10867 = vmatprep.mubr.msk.f32.mxu0 %vm474_vm0, %v11990_v30  ;;  %10967 = vmatprep.mubr.msk.f32.mxu1 %vm474_vm0, %v11990_v30  ;;  %v3615_v30 = vpop.permute.xlu0 %3614 }
  0xf0   : > { %15998 = vst [vmem:[#allocation58_spill] sm:$0xff] %v12679_v27  ;;  %15999 = vst [vmem:[#allocation59_spill] sm:$0xff] %v12681_v8  ;;  %v12695_v24 = vmul.f32 %v3764_v3, %v3764_v3  ;;  %10868 = vmatmul.mubr.msk.f32.gmra.mxu0 %vm474_vm0, %v12007_v33  ;;  %v3773_v35 = vsub.f32 %v3610_v15, %v12426_v1  ;;  %v3774_v5 = vsub.f32 %v3610_v15, %v12429_v6 }
  0xf1   : > { %16000 = vst [vmem:[#allocation60_spill] sm:$0xff] %v12685_v23  ;;  %10968 = vmatmul.mubr.msk.f32.gmra.mxu1 %vm474_vm0, %v12007_v33  ;;  %v3775_v25 = vsub.f32 %v3610_v15, %v12432_v54  ;;  %v3776_v55 = vsub.f32 %v3610_v15, %v12435_v57  ;;  %v3769_v3 = vsub.f32 %v3605_v19, %v12426_v1 }
  0xf2   : > { %v3770_v14 = vsub.f32 %v3605_v19, %v12429_v6  ;;  %v12709_v59 = vmul.f32 %v3773_v35, %v3773_v35  ;;  %v12711_v18 = vmul.f32 %v3774_v5, %v3774_v5  ;;  %v3771_v26 = vsub.f32 %v3605_v19, %v12432_v54  ;;  %4551 = vperm.xlu1 %11153, %v11982_v28  }
  0xf3   : > { %v3772_v23 = vsub.f32 %v3605_v19, %v12435_v57  ;;  %v12716_v33 = vmul.f32 %v3775_v25, %v3775_v25  ;;  %v12718_v8 = vmul.f32 %v3776_v55, %v3776_v55  ;;  %v12720_v15 = vmul.f32 %v3769_v3, %v3769_v3  ;;  %4563 = vperm.xlu0 %11154, %v12043_v39   ;;  %v3630_v25 = vpop.permute.xlu1 %3629  ;;  %v3625_v55 = vpop.permute.xlu0 %3624 }
  0xf4   : > { %16001 = vst [vmem:[#allocation61_spill] sm:$0xff] %v12711_v18  ;;  %v12722_v27 = vmul.f32 %v3770_v14, %v3770_v14  ;;  %v12725_v35 = vmul.f32 %v3771_v26, %v3771_v26  ;;  %10870 = vmatprep.mubr.msk.f32.mxu0 %vm474_vm0, %v12022_v36  ;;  %10970 = vmatprep.mubr.msk.f32.mxu1 %vm474_vm0, %v12022_v36 }
  0xf5   : > { %16002 = vst [vmem:[#allocation62_spill] sm:$0xff] %v12716_v33  ;;  %16003 = vst [vmem:[#allocation63_spill] sm:$0xff] %v12718_v8  ;;  %v12727_v5 = vmul.f32 %v3772_v23, %v3772_v23  ;;  %v3781_v28 = vsub.f32 %v3620_v22, %v12426_v1  ;;  %10871 = vmatmul.mubr.msk.f32.gmra.mxu0 %vm474_vm0, %v12033_v37  ;;  %10971 = vmatmul.mubr.msk.f32.gmra.mxu1 %vm474_vm0, %v12033_v37 }
  0xf6   : > { %v3782_v39 = vsub.f32 %v3620_v22, %v12429_v6  ;;  %v3783_v19 = vsub.f32 %v3620_v22, %v12432_v54  ;;  %v3784_v23 = vsub.f32 %v3620_v22, %v12435_v57  ;;  %v3777_v36 = vsub.f32 %v3615_v30, %v12426_v1  ;;  %4559 = vperm.xlu1 %11153, %v12014_v34  }
  0xf7   : > { %v12741_v3 = vmul.f32 %v3781_v28, %v3781_v28  ;;  %v3778_v14 = vsub.f32 %v3615_v30, %v12429_v6  ;;  %v3779_v26 = vsub.f32 %v3615_v30, %v12432_v54  ;;  %v3780_v22 = vsub.f32 %v3615_v30, %v12435_v57  ;;  %4571 = vperm.xlu0 %11154, %v12069_v43  }
  0xf8   : > { %v12747_v8 = vmul.f32 %v3782_v39, %v3782_v39  ;;  %v12749_v37 = vmul.f32 %v3783_v19, %v3783_v19  ;;  %v12751_v33 = vmul.f32 %v3784_v23, %v3784_v23  ;;  %v12755_v28 = vmul.f32 %v3777_v36, %v3777_v36  ;;  %10873 = vmatprep.mubr.msk.f32.mxu0 %vm474_vm0, %v12048_v40  ;;  %v3640_v39 = vpop.permute.xlu1 %3639  ;;  %v3635_v19 = vpop.permute.xlu0 %3634 }
  0xf9   : > { %16004 = vst [vmem:[#allocation64_spill] sm:$0xff] %v12741_v3  ;;  %v12757_v3 = vmul.f32 %v3778_v14, %v3778_v14  ;;  %v12759_v18 = vmul.f32 %v3779_v26, %v3779_v26  ;;  %10973 = vmatprep.mubr.msk.f32.mxu1 %vm474_vm0, %v12048_v40  ;;  %v12765_v34 = vmul.f32 %v3780_v22, %v3780_v22 }
  0xfa   : > { %16005 = vst [vmem:[#allocation65_spill] sm:$0xff] %v12747_v8  ;;  %16006 = vst [vmem:[#allocation66_spill] sm:$0xff] %v12749_v37  ;;  %10874 = vmatmul.mubr.msk.f32.gmra.mxu0 %vm474_vm0, %v12059_v41  ;;  %10974 = vmatmul.mubr.msk.f32.gmra.mxu1 %vm474_vm0, %v12059_v41  ;;  %v3789_v43 = vsub.f32 %v3630_v25, %v12426_v1  ;;  %v3790_v30 = vsub.f32 %v3630_v25, %v12429_v6 }
  0xfb   : > { %16007 = vst [vmem:[#allocation67_spill] sm:$0xff] %v12751_v33  ;;  %16008 = vst [vmem:[#allocation68_spill] sm:$0xff] %v12765_v34  ;;  %v3791_v23 = vsub.f32 %v3630_v25, %v12432_v54  ;;  %v3792_v36 = vsub.f32 %v3630_v25, %v12435_v57  ;;  %v3785_v40 = vsub.f32 %v3625_v55, %v12426_v1  ;;  %4567 = vperm.xlu1 %11153, %v12040_v38  }
  0xfc   : > { %v3786_v14 = vsub.f32 %v3625_v55, %v12429_v6  ;;  %v12778_v26 = vmul.f32 %v3789_v43, %v3789_v43  ;;  %v12780_v22 = vmul.f32 %v3790_v30, %v3790_v30  ;;  %v3787_v41 = vsub.f32 %v3625_v55, %v12432_v54  ;;  %4579 = vperm.xlu0 %11154, %v12095_v47   ;;  %v3645_v30 = vpop.permute.xlu0 %3644 }
  0xfd   : > { %v3788_v33 = vsub.f32 %v3625_v55, %v12435_v57  ;;  %v12785_v37 = vmul.f32 %v3791_v23, %v3791_v23  ;;  %v12787_v8 = vmul.f32 %v3792_v36, %v3792_v36  ;;  %v12789_v25 = vmul.f32 %v3785_v40, %v3785_v40  ;;  %10876 = vmatprep.mubr.msk.f32.mxu0 %vm474_vm0, %v12074_v44  ;;  %v3650_v55 = vpop.permute.xlu1 %3649 }
  0xfe   : > { %16009 = vst [vmem:[#allocation69_spill] sm:$0xff] %v12778_v26  ;;  %16010 = vst [vmem:[#allocation70_spill] sm:$0xff] %v12780_v22  ;;  %v12791_v34 = vmul.f32 %v3786_v14, %v3786_v14  ;;  %v12795_v38 = vmul.f32 %v3787_v41, %v3787_v41  ;;  %10976 = vmatprep.mubr.msk.f32.mxu1 %vm474_vm0, %v12074_v44  ;;  %10877 = vmatmul.mubr.msk.f32.gmra.mxu0 %vm474_vm0, %v12085_v45 }
  0xff   : > { %16011 = vst [vmem:[#allocation71_spill] sm:$0xff] %v12785_v37  ;;  %16012 = vst [vmem:[#allocation72_spill] sm:$0xff] %v12787_v8  ;;  %v12797_v43 = vmul.f32 %v3788_v33, %v3788_v33  ;;  %v3797_v47 = vsub.f32 %v3640_v39, %v12426_v1  ;;  %10977 = vmatmul.mubr.msk.f32.gmra.mxu1 %vm474_vm0, %v12085_v45  ;;  %v3798_v23 = vsub.f32 %v3640_v39, %v12429_v6  ;;  %v16018_v37 = vld [vmem:[#allocation15_spill] sm:$0xff] }
 0x100   : > { %16013 = vst [vmem:[#allocation73_spill] sm:$0xff] %v12789_v25  ;;  %16014 = vst [vmem:[#allocation74_spill] sm:$0xff] %v12791_v34  ;;  %v3799_v36 = vsub.f32 %v3640_v39, %v12432_v54  ;;  %v3800_v33 = vsub.f32 %v3640_v39, %v12435_v57  ;;  %v3793_v40 = vsub.f32 %v3635_v19, %v12426_v1  ;;  %4575 = vperm.xlu1 %11153, %v16018_v37   ;;  %v16023_v39 = vld [vmem:[#allocation20_spill] sm:$0xff]  ;;  %v16027_v34 = vld [vmem:[#allocation17_spill] sm:$0xff] }
 0x101   : > { %16015 = vst [vmem:[#allocation75_spill] sm:$0xff] %v12795_v38  ;;  %16016 = vst [vmem:[#allocation76_spill] sm:$0xff] %v12797_v43  ;;  %v12810_v14 = vmul.f32 %v3797_v47, %v3797_v47  ;;  %v3794_v44 = vsub.f32 %v3635_v19, %v12429_v6  ;;  %v3795_v41 = vsub.f32 %v3635_v19, %v12432_v54  ;;  %4587 = vperm.xlu0 %11154, %v16023_v39   ;;  %v3660_v37 = vpop.permute.xlu1 %3659  ;;  %v16029_v39 = vld [vmem:[#allocation16_spill] sm:$0xff]  ;;  %v16038_v25 = vld [vmem:[#allocation21_spill] sm:$0xff] }
 0x102   : > { %v3796_v8 = vsub.f32 %v3635_v19, %v12435_v57  ;;  %v12816_v22 = vmul.f32 %v3798_v23, %v3798_v23  ;;  %v12818_v45 = vmul.f32 %v3799_v36, %v3799_v36  ;;  %v12820_v26 = vmul.f32 %v3800_v33, %v3800_v33  ;;  %10879 = vmatprep.mubr.msk.f32.mxu0 %vm474_vm0, %v16027_v34  ;;  %v3655_v19 = vpop.permute.xlu0 %3654  ;;  %v16028_v23 = vld [vmem:[#allocation18_spill] sm:$0xff] }
 0x103   : > { %16017 = vst [vmem:[#allocation77_spill] sm:$0xff] %v12810_v14  ;;  %v12822_v43 = vmul.f32 %v3793_v40, %v3793_v40  ;;  %v12825_v47 = vmul.f32 %v3794_v44, %v3794_v44  ;;  %v12827_v14 = vmul.f32 %v3795_v41, %v3795_v41  ;;  %10979 = vmatprep.mubr.msk.f32.mxu1 %vm474_vm0, %v16027_v34 }
 0x104   : > { %16019 = vst [vmem:[#allocation15_spill] sm:$0xff] %v12816_v22  ;;  %16020 = vst [vmem:[#allocation78_spill] sm:$0xff] %v12818_v45  ;;  %v12829_v38 = vmul.f32 %v3796_v8, %v3796_v8  ;;  %10880 = vmatmul.mubr.msk.f32.gmra.mxu0 %vm474_vm0, %v16028_v23  ;;  %10980 = vmatmul.mubr.msk.f32.gmra.mxu1 %vm474_vm0, %v16028_v23  ;;  %v3805_v36 = vsub.f32 %v3650_v55, %v12426_v1 }
 0x105   : > { %16021 = vst [vmem:[#allocation79_spill] sm:$0xff] %v12820_v26  ;;  %16022 = vst [vmem:[#allocation80_spill] sm:$0xff] %v12822_v43  ;;  %v3806_v33 = vsub.f32 %v3650_v55, %v12429_v6  ;;  %v3807_v8 = vsub.f32 %v3650_v55, %v12432_v54  ;;  %v3808_v40 = vsub.f32 %v3650_v55, %v12435_v57  ;;  %4583 = vperm.xlu1 %11153, %v16029_v39  }
 0x106   : > { %16024 = vst [vmem:[#allocation20_spill] sm:$0xff] %v12825_v47  ;;  %16025 = vst [vmem:[#allocation81_spill] sm:$0xff] %v12827_v14  ;;  %v3801_v44 = vsub.f32 %v3645_v30, %v12426_v1  ;;  %v3802_v34 = vsub.f32 %v3645_v30, %v12429_v6  ;;  %v3803_v41 = vsub.f32 %v3645_v30, %v12432_v54  ;;  %10882 = vmatprep.mubr.msk.f32.mxu0 %vm474_vm0, %v16038_v25 }
 0x107   : > { %16026 = vst [vmem:[#allocation82_spill] sm:$0xff] %v12829_v38  ;;  %v12847_v26 = vmul.f32 %v3805_v36, %v3805_v36  ;;  %v12849_v45 = vmul.f32 %v3806_v33, %v3806_v33  ;;  %v12851_v23 = vmul.f32 %v3807_v8, %v3807_v8  ;;  %v3804_v22 = vsub.f32 %v3645_v30, %v12435_v57  ;;  %v16033_v38 = vld [vmem:[#allocation23_spill] sm:$0xff]  ;;  %v3670_v36 = vpop.permute.xlu1 %3669  ;;  %v3665_v33 = vpop.permute.xlu0 %3664  ;;  %v16040_v30 = vld [vmem:[#allocation22_spill] sm:$0xff] }
 0x108   : > { %4595 = vperm.xlu0 %11154, %v16033_v38   ;;  %v12855_v14 = vmul.f32 %v3808_v40, %v3808_v40  ;;  %v12857_v55 = vmul.f32 %v3801_v44, %v3801_v44  ;;  %v12859_v47 = vmul.f32 %v3802_v34, %v3802_v34  ;;  %v12861_v43 = vmul.f32 %v3803_v41, %v3803_v41 }
 0x109   : > { %16030 = vst [vmem:[#allocation17_spill] sm:$0xff] %v12847_v26  ;;  %16031 = vst [vmem:[#allocation18_spill] sm:$0xff] %v12849_v45  ;;  %v12865_v39 = vmul.f32 %v3804_v22, %v3804_v22  ;;  %10982 = vmatprep.mubr.msk.f32.mxu1 %vm474_vm0, %v16038_v25  ;;  %10883 = vmatmul.mubr.msk.f32.gmra.mxu0 %vm474_vm0, %v16040_v30  ;;  %v3813_v38 = vsub.f32 %v3660_v37, %v12426_v1  ;;  %v16043_v45 = vld [vmem:[#allocation19_spill] sm:$0xff] }
 0x10a   : > { %16032 = vst [vmem:[#allocation16_spill] sm:$0xff] %v12851_v23  ;;  %16034 = vst [vmem:[#allocation23_spill] sm:$0xff] %v12855_v14  ;;  %v3814_v8 = vsub.f32 %v3660_v37, %v12429_v6  ;;  %10983 = vmatmul.mubr.msk.f32.gmra.mxu1 %vm474_vm0, %v16040_v30  ;;  %v3815_v40 = vsub.f32 %v3660_v37, %v12432_v54  ;;  %v3816_v44 = vsub.f32 %v3660_v37, %v12435_v57 }
 0x10b   : > { %16035 = vst [vmem:[#allocation83_spill] sm:$0xff] %v12857_v55  ;;  %16036 = vst [vmem:[#allocation84_spill] sm:$0xff] %v12859_v47  ;;  %v3809_v22 = vsub.f32 %v3655_v19, %v12426_v1  ;;  %v3810_v34 = vsub.f32 %v3655_v19, %v12429_v6  ;;  %v12879_v41 = vmul.f32 %v3813_v38, %v3813_v38  ;;  %4591 = vperm.xlu1 %11153, %v16043_v45  }
 0x10c   : > { %16037 = vst [vmem:[#allocation85_spill] sm:$0xff] %v12861_v43  ;;  %16039 = vst [vmem:[#allocation21_spill] sm:$0xff] %v12865_v39  ;;  %v12881_v25 = vmul.f32 %v3814_v8, %v3814_v8  ;;  %v3811_v14 = vsub.f32 %v3655_v19, %v12432_v54  ;;  %v3812_v23 = vsub.f32 %v3655_v19, %v12435_v57  ;;  %v16048_v43 = vld [vmem:[#allocation26_spill] sm:$0xff]  ;;  %v3680_v19 = vpop.permute.xlu1 %3679 }
 0x10d   : > { %16041 = vst [vmem:[#allocation22_spill] sm:$0xff] %v12879_v41  ;;  %v12886_v26 = vmul.f32 %v3815_v40, %v3815_v40  ;;  %v12888_v30 = vmul.f32 %v3816_v44, %v3816_v44  ;;  %v12890_v39 = vmul.f32 %v3809_v22, %v3809_v22  ;;  %v12892_v37 = vmul.f32 %v3810_v34, %v3810_v34  ;;  %v16052_v40 = vld [vmem:[#allocation25_spill] sm:$0xff]  ;;  %v3675_v44 = vpop.permute.xlu0 %3674 }
 0x10e   : > { %16042 = vst [vmem:[#allocation86_spill] sm:$0xff] %v12881_v25  ;;  %4603 = vperm.xlu0 %11154, %v16048_v43   ;;  %v12895_v38 = vmul.f32 %v3811_v14, %v3811_v14  ;;  %v12897_v8 = vmul.f32 %v3812_v23, %v3812_v23  ;;  %v16051_v25 = vld [vmem:[#allocation24_spill] sm:$0xff]  ;;  %v3821_v45 = vsub.f32 %v3670_v36, %v12426_v1 }
 0x10f   : > { %16044 = vst [vmem:[#allocation19_spill] sm:$0xff] %v12886_v26  ;;  %16045 = vst [vmem:[#allocation87_spill] sm:$0xff] %v12888_v30  ;;  %10885 = vmatprep.mubr.msk.f32.mxu0 %vm474_vm0, %v16051_v25  ;;  %10985 = vmatprep.mubr.msk.f32.mxu1 %vm474_vm0, %v16051_v25  ;;  %v3822_v43 = vsub.f32 %v3670_v36, %v12429_v6  ;;  %v3823_v14 = vsub.f32 %v3670_v36, %v12432_v54  ;;  %v11155_v26 = vld [vmem:[%s11795_s17 + $0xb8] sm:$0xff] }
 0x110   : > { %16046 = vst [vmem:[#allocation88_spill] sm:$0xff] %v12890_v39  ;;  %16047 = vst [vmem:[#allocation89_spill] sm:$0xff] %v12892_v37  ;;  %10886 = vmatmul.mubr.msk.f32.gmra.mxu0 %vm474_vm0, %v16052_v40  ;;  %10986 = vmatmul.mubr.msk.f32.gmra.mxu1 %vm474_vm0, %v16052_v40  ;;  %v3824_v23 = vsub.f32 %v3670_v36, %v12435_v57  ;;  %v12911_v22 = vmul.f32 %v3821_v45, %v3821_v45  ;;  %v16057_v36 = vld [vmem:[#allocation27_spill] sm:$0xff] }
 0x111   : > { %16049 = vst [vmem:[#allocation26_spill] sm:$0xff] %v12895_v38  ;;  %16050 = vst [vmem:[#allocation90_spill] sm:$0xff] %v12897_v8  ;;  %v3817_v34 = vsub.f32 %v3665_v33, %v12426_v1  ;;  %v3818_v25 = vsub.f32 %v3665_v33, %v12429_v6  ;;  %v3819_v30 = vsub.f32 %v3665_v33, %v12432_v54  ;;  %4599 = vperm.xlu1 %11153, %v11155_v26   ;;  %v11156_v26 = vld [vmem:[%s15954_s0 + $0xc0] sm:$0xff] }
 0x112   : > { %16053 = vst [vmem:[#allocation24_spill] sm:$0xff] %v12911_v22  ;;  %v12917_v41 = vmul.f32 %v3822_v43, %v3822_v43  ;;  %v12919_v40 = vmul.f32 %v3823_v14, %v3823_v14  ;;  %v12921_v8 = vmul.f32 %v3824_v23, %v3824_v23  ;;  %v3820_v38 = vsub.f32 %v3665_v33, %v12435_v57  ;;  %v11157_v33 = vld [vmem:[%s15954_s0 + $0xc8] sm:$0xff] }
 0x113   : > { %4611 = vperm.xlu0 %11154, %v16057_v36   ;;  %v12925_v45 = vmul.f32 %v3817_v34, %v3817_v34  ;;  %v12927_v22 = vmul.f32 %v3818_v25, %v3818_v25  ;;  %v12929_v37 = vmul.f32 %v3819_v30, %v3819_v30  ;;  %10888 = vmatprep.mubr.msk.f32.mxu0 %vm474_vm0, %v11156_v26  ;;  %v11158_v36 = vld [vmem:[%s11795_s17 + $0xc8] sm:$0xff] }
 0x114   : > { %16054 = vst [vmem:[#allocation25_spill] sm:$0xff] %v12917_v41  ;;  %16055 = vst [vmem:[#allocation91_spill] sm:$0xff] %v12919_v40  ;;  %10988 = vmatprep.mubr.msk.f32.mxu1 %vm474_vm0, %v11156_v26  ;;  %v12936_v43 = vmul.f32 %v3820_v38, %v3820_v38  ;;  %10889 = vmatmul.mubr.msk.f32.gmra.mxu0 %vm474_vm0, %v11157_v33  ;;  %v3829_v30 = vsub.f32 %v3680_v19, %v12426_v1  ;;  %v3690_v26 = vpop.permute.xlu1 %3689 }
 0x115   : > { %16056 = vst [vmem:[#allocation92_spill] sm:$0xff] %v12921_v8  ;;  %16058 = vst [vmem:[#allocation27_spill] sm:$0xff] %v12925_v45  ;;  %10989 = vmatmul.mubr.msk.f32.gmra.mxu1 %vm474_vm0, %v11157_v33  ;;  %v3830_v14 = vsub.f32 %v3680_v19, %v12429_v6  ;;  %v3831_v23 = vsub.f32 %v3680_v19, %v12432_v54  ;;  %v3832_v34 = vsub.f32 %v3680_v19, %v12435_v57 }
 0x116   : > { %16059 = vst [vmem:[#allocation93_spill] sm:$0xff] %v12927_v22  ;;  %16060 = vst [vmem:[#allocation94_spill] sm:$0xff] %v12929_v37  ;;  %v3825_v38 = vsub.f32 %v3675_v44, %v12426_v1  ;;  %v3826_v25 = vsub.f32 %v3675_v44, %v12429_v6  ;;  %4607 = vperm.xlu1 %11153, %v11158_v36   ;;  %v12950_v8 = vmul.f32 %v3829_v30, %v3829_v30  ;;  %v3685_v37 = vpop.permute.xlu0 %3684  ;;  %v11160_v30 = vld [vmem:[%s15954_s0 + $0xd0] sm:$0xff] }
 0x117   : > { %16061 = vst [vmem:[#allocation95_spill] sm:$0xff] %v12936_v43  ;;  %v12952_v40 = vmul.f32 %v3830_v14, %v3830_v14  ;;  %v3827_v33 = vsub.f32 %v3675_v44, %v12432_v54  ;;  %v3828_v41 = vsub.f32 %v3675_v44, %v12435_v57  ;;  %v11159_v43 = vld [vmem:[%s11795_s17 + $0xe0] sm:$0xff]  ;;  %v12957_v22 = vmul.f32 %v3831_v23, %v3831_v23 }
 0x118   : > { %16062 = vst [vmem:[#allocation96_spill] sm:$0xff] %v12950_v8  ;;  %4619 = vperm.xlu0 %11154, %v11159_v43   ;;  %v12959_v19 = vmul.f32 %v3832_v34, %v3832_v34  ;;  %v12961_v45 = vmul.f32 %v3825_v38, %v3825_v38  ;;  %v12963_v39 = vmul.f32 %v3826_v25, %v3826_v25  ;;  %v11161_v43 = vld [vmem:[%s15954_s0 + $0xd8] sm:$0xff] }
 0x119   : > { %16063 = vst [vmem:[#allocation97_spill] sm:$0xff] %v12952_v40  ;;  %16064 = vst [vmem:[#allocation98_spill] sm:$0xff] %v12957_v22  ;;  %10891 = vmatprep.mubr.msk.f32.mxu0 %vm474_vm0, %v11160_v30  ;;  %v12969_v14 = vmul.f32 %v3827_v33, %v3827_v33  ;;  %v12971_v44 = vmul.f32 %v3828_v41, %v3828_v41  ;;  %10991 = vmatprep.mubr.msk.f32.mxu1 %vm474_vm0, %v11160_v30  ;;  %v11162_v22 = vld [vmem:[%s11795_s17 + $0xd8] sm:$0xff] }
 0x11a   : > { %16065 = vst [vmem:[#allocation99_spill] sm:$0xff] %v12959_v19  ;;  %16066 = vst [vmem:[#allocation100_spill] sm:$0xff] %v12961_v45  ;;  %10892 = vmatmul.mubr.msk.f32.gmra.mxu0 %vm474_vm0, %v11161_v43  ;;  %v3837_v23 = vsub.f32 %v3690_v26, %v12426_v1  ;;  %10992 = vmatmul.mubr.msk.f32.gmra.mxu1 %vm474_vm0, %v11161_v43  ;;  %v3838_v34 = vsub.f32 %v3690_v26, %v12429_v6 }
 0x11b   : > { %16067 = vst [vmem:[#allocation101_spill] sm:$0xff] %v12963_v39  ;;  %16068 = vst [vmem:[#allocation102_spill] sm:$0xff] %v12969_v14  ;;  %v3839_v38 = vsub.f32 %v3690_v26, %v12432_v54  ;;  %v3840_v41 = vsub.f32 %v3690_v26, %v12435_v57  ;;  %v3833_v25 = vsub.f32 %v3685_v37, %v12426_v1  ;;  %4615 = vperm.xlu1 %11153, %v11162_v22   ;;  %v11163_v26 = vld [vmem:[%s11795_s17 + $0xf0] sm:$0xff]  ;;  %v3977_v1 = vpop.permute.xlu1 %3976  ;;  %v11165_v22 = vld [vmem:[%s15954_s0 + $0xe8] sm:$0xff] }
 0x11c   : > { %16069 = vst [vmem:[#allocation103_spill] sm:$0xff] %v12971_v44  ;;  %v12984_v36 = vmul.f32 %v3837_v23, %v3837_v23  ;;  %v3834_v33 = vsub.f32 %v3685_v37, %v12429_v6  ;;  %v3835_v30 = vsub.f32 %v3685_v37, %v12432_v54  ;;  %v3836_v19 = vsub.f32 %v3685_v37, %v12435_v57  ;;  %v11164_v57 = vld [vmem:[%s15954_s0 + $0xe0] sm:$0xff]  ;;  %v3973_v37 = vpop.permute.xlu0 %3972  ;;  %v16094_v39 = vld [vmem:[#allocation36_spill] sm:$0xff] }
 0x11d   : > { %v12990_v40 = vmul.f32 %v3838_v34, %v3838_v34  ;;  %v12992_v43 = vmul.f32 %v3839_v38, %v3839_v38  ;;  %v12994_v8 = vmul.f32 %v3840_v41, %v3840_v41  ;;  %v12996_v44 = vmul.f32 %v3833_v25, %v3833_v25  ;;  %4627 = vperm.xlu0 %11154, %v11163_v26   ;;  %v13018_v41 = vpop.f32.mrf.mxu0  ;;  %v13020_v25 = vpop.f32.mrf.mxu1 }
 0x11e   : > { %16070 = vst [vmem:[#allocation104_spill] sm:$0xff] %v12984_v36  ;;  %v12999_v23 = vmul.f32 %v3834_v33, %v3834_v33  ;;  %v13001_v6 = vmul.f32 %v3835_v30, %v3835_v30  ;;  %v13003_v54 = vmul.f32 %v3836_v19, %v3836_v19  ;;  %10894 = vmatprep.mubr.msk.f32.mxu0 %vm474_vm0, %v11164_v57 }
 0x11f   : > { %16071 = vst [vmem:[#allocation105_spill] sm:$0xff] %v12990_v40  ;;  %16072 = vst [vmem:[#allocation106_spill] sm:$0xff] %v12992_v43  ;;  %10994 = vmatprep.mubr.msk.f32.mxu1 %vm474_vm0, %v11164_v57  ;;  %10895 = vmatmul.mubr.msk.f32.gmra.mxu0 %vm474_vm0, %v11165_v22  ;;  %v4124_v19 = vsub.f32 %v3977_v1, %v12467_v63  ;;  %v4125_v34 = vsub.f32 %v3977_v1, %v12470_v49  ;;  %v13033_v14 = vpop.f32.mrf.mxu0 }
 0x120   : > { %16073 = vst [vmem:[#allocation107_spill] sm:$0xff] %v12994_v8  ;;  %16074 = vst [vmem:[#allocation108_spill] sm:$0xff] %v12996_v44  ;;  %10995 = vmatmul.mubr.msk.f32.gmra.mxu1 %vm474_vm0, %v11165_v22  ;;  %v4126_v38 = vsub.f32 %v3977_v1, %v12477_v56  ;;  %v4127_v33 = vsub.f32 %v3977_v1, %v12480_v62  ;;  %v4120_v30 = vsub.f32 %v3973_v37, %v12467_v63  ;;  %v11166_v8 = vld [vmem:[%s11795_s17 + $0xe8] sm:$0xff] }
 0x121   : > { %16075 = vst [vmem:[#allocation109_spill] sm:$0xff] %v12999_v23  ;;  %16076 = vst [vmem:[#allocation110_spill] sm:$0xff] %v13001_v6  ;;  %v4121_v26 = vsub.f32 %v3973_v37, %v12470_v49  ;;  %v4122_v57 = vsub.f32 %v3973_v37, %v12477_v56  ;;  %4623 = vperm.xlu1 %11153, %v11166_v8   ;;  %v4252_v22 = vmul.f32 %v4124_v19, %v4124_v19  ;;  %v13035_v8 = vpop.f32.mrf.mxu1 }
 0x122   : > { %16077 = vst [vmem:[#allocation111_spill] sm:$0xff] %v13003_v54  ;;  %v4253_v43 = vmul.f32 %v4125_v34, %v4125_v34  ;;  %v4254_v40 = vmul.f32 %v4126_v38, %v4126_v38  ;;  %v4123_v36 = vsub.f32 %v3973_v37, %v12480_v62  ;;  %v11167_v54 = vld [vmem:[%s15954_s0 + $0xf0] sm:$0xff]  ;;  %v4255_v1 = vmul.f32 %v4127_v33, %v4127_v33  ;;  %v11168_v33 = vld [vmem:[%s15954_s0 + $0xf8] sm:$0xff] }
 0x123   : > { %10897 = vmatprep.mubr.msk.f32.mxu0 %vm474_vm0, %v11167_v54  ;;  %v4248_v6 = vmul.f32 %v4120_v30, %v4120_v30  ;;  %v4249_v23 = vmul.f32 %v4121_v26, %v4121_v26  ;;  %v4250_v44 = vmul.f32 %v4122_v57, %v4122_v57  ;;  %10997 = vmatprep.mubr.msk.f32.mxu1 %vm474_vm0, %v11167_v54  ;;  %v3981_v54 = vpop.permute.xlu1 %3980 }
 0x124   : > { %v13038_v19 = vadd.f32 %v4252_v22, %v12518_v51  ;;  %v13041_v37 = vadd.f32 %v4253_v43, %v12520_v52  ;;  %v13044_v34 = vadd.f32 %v4254_v40, %v12522_v48  ;;  %v4251_v38 = vmul.f32 %v4123_v36, %v4123_v36  ;;  %10898 = vmatmul.mubr.msk.f32.gmra.mxu0 %vm474_vm0, %v11168_v33  ;;  %v13063_v40 = vpop.f32.mrf.mxu0  ;;  %v13065_v36 = vpop.f32.mrf.mxu1 }
 0x125   : > { %v13051_v30 = vadd.f32 %v4255_v1, %v12532_v4  ;;  %v13054_v51 = vadd.f32 %v4248_v6, %v12488_v32  ;;  %v13057_v52 = vadd.f32 %v4249_v23, %v12491_v31  ;;  %v13060_v48 = vadd.f32 %v4250_v44, %v12493_v11  ;;  %10998 = vmatmul.mubr.msk.f32.gmra.mxu1 %vm474_vm0, %v11168_v33  ;;  %v3985_v31 = vpop.permute.xlu0 %3984  ;;  %v11169_v23 = vld [vmem:[%s11795_s17 + $0xf8] sm:$0xff] }
 0x126   : > { %16078 = vst [vmem:[#allocation112_spill] sm:$0xff] %v13038_v19  ;;  %16079 = vst [vmem:[#allocation113_spill] sm:$0xff] %v13041_v37  ;;  %v13068_v43 = vadd.f32 %v4251_v38, %v12495_v10  ;;  %v4128_v4 = vsub.f32 %v3981_v54, %v12467_v63  ;;  %v4129_v32 = vsub.f32 %v3981_v54, %v12470_v49  ;;  %4631 = vperm.xlu1 %11153, %v11169_v23   ;;  %v11170_v10 = vld [vmem:[%s15954_s0 + $0x100] sm:$0xff]  ;;  %v13082_v22 = vpop.f32.mrf.mxu0  ;;  %v13084_v1 = vpop.f32.mrf.mxu1  ;;  %v11171_v19 = vld [vmem:[%s15954_s0 + $0x108] sm:$0xff] }
 0x127   : > { %16080 = vst [vmem:[#allocation114_spill] sm:$0xff] %v13044_v34  ;;  %16081 = vst [vmem:[#allocation115_spill] sm:$0xff] %v13051_v30  ;;  %v4130_v6 = vsub.f32 %v3981_v54, %v12477_v56  ;;  %v4131_v11 = vsub.f32 %v3981_v54, %v12480_v62  ;;  %v4132_v44 = vsub.f32 %v3985_v31, %v12467_v63  ;;  %10900 = vmatprep.mubr.msk.f32.mxu0 %vm474_vm0, %v11170_v10 }
 0x128   : > { %16082 = vst [vmem:[#allocation116_spill] sm:$0xff] %v13054_v51  ;;  %16083 = vst [vmem:[#allocation117_spill] sm:$0xff] %v13057_v52  ;;  %v4133_v26 = vsub.f32 %v3985_v31, %v12470_v49  ;;  %v4134_v57 = vsub.f32 %v3985_v31, %v12477_v56  ;;  %v4256_v38 = vmul.f32 %v4128_v4, %v4128_v4  ;;  %11000 = vmatprep.mubr.msk.f32.mxu1 %vm474_vm0, %v11170_v10  ;;  %v13094_v52 = vpop.f32.mrf.mxu1  ;;  %v16086_v4 = vld [vmem:[#allocation32_spill] sm:$0xff]  ;;  %v16092_v10 = vld [vmem:[#allocation35_spill] sm:$0xff] }
 0x129   : > { %16084 = vst [vmem:[#allocation118_spill] sm:$0xff] %v13060_v48  ;;  %16085 = vst [vmem:[#allocation119_spill] sm:$0xff] %v13068_v43  ;;  %v4257_v33 = vmul.f32 %v4129_v32, %v4129_v32  ;;  %v4258_v23 = vmul.f32 %v4130_v6, %v4130_v6  ;;  %v4135_v54 = vsub.f32 %v3985_v31, %v12480_v62  ;;  %10901 = vmatmul.mubr.msk.f32.gmra.mxu0 %vm474_vm0, %v11171_v19  ;;  %v13092_v48 = vpop.f32.mrf.mxu0  ;;  %v16088_v6 = vld [vmem:[#allocation33_spill] sm:$0xff] }
 0x12a   : > { %v4259_v30 = vmul.f32 %v4131_v11, %v4131_v11  ;;  %v4260_v34 = vmul.f32 %v4132_v44, %v4132_v44  ;;  %v4261_v37 = vmul.f32 %v4133_v26, %v4133_v26  ;;  %v4262_v43 = vmul.f32 %v4134_v57, %v4134_v57  ;;  %v16090_v11 = vld [vmem:[#allocation34_spill] sm:$0xff]  ;;  %11001 = vmatmul.mubr.msk.f32.gmra.mxu1 %vm474_vm0, %v11171_v19  ;;  %v3989_v57 = vpop.permute.xlu1 %3988 }
 0x12b   : > { %v13097_v32 = vadd.f32 %v4256_v38, %v16086_v4  ;;  %v13100_v31 = vadd.f32 %v4257_v33, %v16088_v6  ;;  %v13103_v44 = vadd.f32 %v4258_v23, %v16090_v11  ;;  %v4263_v26 = vmul.f32 %v4135_v54, %v4135_v54  ;;  %v16097_v38 = vld [vmem:[#allocation37_spill] sm:$0xff]  ;;  %v13122_v19 = vpop.f32.mrf.mxu0  ;;  %v13124_v23 = vpop.f32.mrf.mxu1 }
 0x12c   : > { %v13107_v51 = vadd.f32 %v4259_v30, %v16092_v10  ;;  %v13110_v45 = vadd.f32 %v4260_v34, %v16094_v39  ;;  %v13113_v47 = vadd.f32 %v4261_v37, %v12510_v60  ;;  %v13116_v4 = vadd.f32 %v4262_v43, %v16097_v38  ;;  %v11172_v33 = vld [vmem:[%s15954_s0 + $0x110] sm:$0xff]  ;;  %v16099_v30 = vld [vmem:[#allocation38_spill] sm:$0xff]  ;;  %v3993_v34 = vpop.permute.xlu0 %3992 }
 0x12d   : > { %16087 = vst [vmem:[#allocation32_spill] sm:$0xff] %v13097_v32  ;;  %16089 = vst [vmem:[#allocation33_spill] sm:$0xff] %v13100_v31  ;;  %10903 = vmatprep.mubr.msk.f32.mxu0 %vm474_vm0, %v11172_v33  ;;  %v13127_v54 = vadd.f32 %v4263_v26, %v16099_v30  ;;  %v4136_v39 = vsub.f32 %v3989_v57, %v12467_v63  ;;  %v4137_v60 = vsub.f32 %v3989_v57, %v12470_v49  ;;  %v11173_v26 = vld [vmem:[%s15954_s0 + $0x118] sm:$0xff]  ;;  %v13141_v38 = vpop.f32.mrf.mxu0  ;;  %v13143_v30 = vpop.f32.mrf.mxu1  ;;  %v11174_v31 = vld [vmem:[%s15954_s0 + $0x120] sm:$0xff] }
 0x12e   : > { %16091 = vst [vmem:[#allocation34_spill] sm:$0xff] %v13103_v44  ;;  %16093 = vst [vmem:[#allocation35_spill] sm:$0xff] %v13107_v51  ;;  %v4138_v37 = vsub.f32 %v3989_v57, %v12477_v56  ;;  %11003 = vmatprep.mubr.msk.f32.mxu1 %vm474_vm0, %v11172_v33  ;;  %v4139_v43 = vsub.f32 %v3989_v57, %v12480_v62  ;;  %v4140_v6 = vsub.f32 %v3993_v34, %v12467_v63 }
 0x12f   : > { %16095 = vst [vmem:[#allocation36_spill] sm:$0xff] %v13110_v45  ;;  %16096 = vst [vmem:[#allocation120_spill] sm:$0xff] %v13113_v47  ;;  %v4141_v11 = vsub.f32 %v3993_v34, %v12470_v49  ;;  %v4142_v10 = vsub.f32 %v3993_v34, %v12477_v56  ;;  %10904 = vmatmul.mubr.msk.f32.gmra.mxu0 %vm474_vm0, %v11173_v26  ;;  %v4265_v33 = vmul.f32 %v4137_v60, %v4137_v60  ;;  %v13151_v32 = vpop.f32.mrf.mxu0  ;;  %v13153_v55 = vpop.f32.mrf.mxu1 }
 0x130   : > { %16098 = vst [vmem:[#allocation37_spill] sm:$0xff] %v13116_v4  ;;  %16100 = vst [vmem:[#allocation38_spill] sm:$0xff] %v13127_v54  ;;  %v4264_v54 = vmul.f32 %v4136_v39, %v4136_v39  ;;  %v4266_v4 = vmul.f32 %v4138_v37, %v4138_v37  ;;  %v4143_v57 = vsub.f32 %v3993_v34, %v12480_v62  ;;  %11004 = vmatmul.mubr.msk.f32.gmra.mxu1 %vm474_vm0, %v11173_v26 }
 0x131   : > { %v4267_v47 = vmul.f32 %v4139_v43, %v4139_v43  ;;  %v4268_v45 = vmul.f32 %v4140_v6, %v4140_v6  ;;  %v4269_v51 = vmul.f32 %v4141_v11, %v4141_v11  ;;  %v4270_v44 = vmul.f32 %v4142_v10, %v4142_v10  ;;  %10906 = vmatprep.mubr.msk.f32.mxu0 %vm474_vm0, %v11174_v31  ;;  %v3997_v43 = vpop.permute.xlu1 %3996  ;;  %v16103_v11 = vld [vmem:[#allocation39_spill] sm:$0xff] }
 0x132   : > { %v13156_v39 = vadd.f32 %v4264_v54, %v12550_v7  ;;  %v13159_v60 = vadd.f32 %v4265_v33, %v12552_v50  ;;  %v13162_v37 = vadd.f32 %v4266_v4, %v12555_v0  ;;  %v4271_v34 = vmul.f32 %v4143_v57, %v4143_v57  ;;  %11006 = vmatprep.mubr.msk.f32.mxu1 %vm474_vm0, %v11174_v31  ;;  %v16106_v7 = vld [vmem:[#allocation40_spill] sm:$0xff]  ;;  %v13181_v0 = vpop.f32.mrf.mxu0  ;;  %v13183_v31 = vpop.f32.mrf.mxu1 }
 0x133   : > { %v13166_v6 = vadd.f32 %v4267_v47, %v12563_v53  ;;  %v13169_v10 = vadd.f32 %v4268_v45, %v16103_v11  ;;  %v13172_v26 = vadd.f32 %v4269_v51, %v12541_v46  ;;  %v13175_v54 = vadd.f32 %v4270_v44, %v16106_v7  ;;  %v11175_v50 = vld [vmem:[%s15954_s0 + $0x128] sm:$0xff]  ;;  %v16108_v53 = vld [vmem:[#allocation41_spill] sm:$0xff]  ;;  %v4001_v44 = vpop.permute.xlu0 %4000 }
 0x134   : > { %16101 = vst [vmem:[#allocation121_spill] sm:$0xff] %v13162_v37  ;;  %10907 = vmatmul.mubr.msk.f32.gmra.mxu0 %vm474_vm0, %v11175_v50  ;;  %v13186_v47 = vadd.f32 %v4271_v34, %v16108_v53  ;;  %v9399_v46 = vpack.c.bf16 %v13018_v41, %v13033_v14  ;;  %v9559_v45 = vpack.c.bf16 %v13020_v25, %v13035_v8  ;;  %v11176_v14 = vld [vmem:[%s15954_s0 + $0x130] sm:$0xff]  ;;  %v13202_v41 = vpop.f32.mrf.mxu0  ;;  %v13204_v25 = vpop.f32.mrf.mxu1 }
 0x135   : > { %16102 = vst [vmem:[#allocation122_spill] sm:$0xff] %v13166_v6  ;;  %16104 = vst [vmem:[#allocation39_spill] sm:$0xff] %v13169_v10  ;;  %v4144_v51 = vsub.f32 %v3997_v43, %v12467_v63  ;;  %11007 = vmatmul.mubr.msk.f32.gmra.mxu1 %vm474_vm0, %v11175_v50  ;;  %v4145_v4 = vsub.f32 %v3997_v43, %v12470_v49  ;;  %v4146_v33 = vsub.f32 %v3997_v43, %v12477_v56  ;;  %v16115_v6 = vld [vmem:[#allocation42_spill] sm:$0xff] }
 0x136   : > { %16105 = vst [vmem:[#allocation123_spill] sm:$0xff] %v13172_v26  ;;  %16107 = vst [vmem:[#allocation40_spill] sm:$0xff] %v13175_v54  ;;  %v4147_v57 = vsub.f32 %v3997_v43, %v12480_v62  ;;  %v4148_v34 = vsub.f32 %v4001_v44, %v12467_v63  ;;  %10909 = vmatprep.mubr.msk.f32.mxu0 %vm474_vm0, %v11176_v14  ;;  %v4149_v11 = vsub.f32 %v4001_v44, %v12470_v49  ;;  %v11177_v26 = vld [vmem:[%s15954_s0 + $0x138] sm:$0xff] }
 0x137   : > { %16109 = vst [vmem:[#allocation41_spill] sm:$0xff] %v13186_v47  ;;  %9400 = vst [vmem:[#allocation2] sm:$0xff] %v9399_v46   ;;  %v4272_v8 = vmul.f32 %v4144_v51, %v4144_v51  ;;  %v4150_v7 = vsub.f32 %v4001_v44, %v12477_v56  ;;  %v4151_v43 = vsub.f32 %v4001_v44, %v12480_v62  ;;  %11009 = vmatprep.mubr.msk.f32.mxu1 %vm474_vm0, %v11176_v14  ;;  %v13214_v46 = vpop.f32.mrf.mxu0 }
 0x138   : > { %9560 = vst [vmem:[#allocation2 + $0x100] sm:$0xff] %v9559_v45   ;;  %v4273_v50 = vmul.f32 %v4145_v4, %v4145_v4  ;;  %v4274_v53 = vmul.f32 %v4146_v33, %v4146_v33  ;;  %v4275_v47 = vmul.f32 %v4147_v57, %v4147_v57  ;;  %v4276_v54 = vmul.f32 %v4148_v34, %v4148_v34  ;;  %v13216_v45 = vpop.f32.mrf.mxu1  ;;  %v16113_v57 = vld [vmem:[#allocation46_spill] sm:$0xff] }
 0x139   : > { %10910 = vmatmul.mubr.msk.f32.gmra.mxu0 %vm474_vm0, %v11177_v26  ;;  %v13219_v51 = vadd.f32 %v4272_v8, %v12585_v61  ;;  %v4277_v44 = vmul.f32 %v4149_v11, %v4149_v11  ;;  %v4278_v10 = vmul.f32 %v4150_v7, %v4150_v7  ;;  %v4279_v14 = vmul.f32 %v4151_v43, %v4151_v43  ;;  %v11178_v61 = vld [vmem:[%s15954_s0 + $0x140] sm:$0xff]  ;;  %v13238_v8 = vpop.f32.mrf.mxu0 }
 0x13a   : > { %11010 = vmatmul.mubr.msk.f32.gmra.mxu1 %vm474_vm0, %v11177_v26  ;;  %v13223_v4 = vadd.f32 %v4273_v50, %v12587_v58  ;;  %v13226_v33 = vadd.f32 %v4274_v53, %v12594_v17  ;;  %v13229_v34 = vadd.f32 %v4275_v47, %v16113_v57  ;;  %v13232_v37 = vadd.f32 %v4276_v54, %v16115_v6  ;;  %v13240_v26 = vpop.f32.mrf.mxu1  ;;  %v16117_v58 = vld [vmem:[#allocation43_spill] sm:$0xff]  ;;  %v16119_v17 = vld [vmem:[#allocation44_spill] sm:$0xff]  ;;  %v16121_v47 = vld [vmem:[#allocation45_spill] sm:$0xff]  ;;  %v4005_v54 = vpop.permute.xlu1 %4004 }
 0x13b   : > { %16110 = vst [vmem:[#allocation124_spill] sm:$0xff] %v13219_v51  ;;  %10912 = vmatprep.mubr.msk.f32.mxu0 %vm474_vm0, %v11178_v61  ;;  %v13243_v11 = vadd.f32 %v4277_v44, %v16117_v58  ;;  %v13246_v7 = vadd.f32 %v4278_v10, %v16119_v17  ;;  %v13249_v43 = vadd.f32 %v4279_v14, %v16121_v47  ;;  %v4009_v50 = vpop.permute.xlu0 %4008  ;;  %v11179_v14 = vld [vmem:[%s15954_s0 + $0x148] sm:$0xff] }
 0x13c   : > { %16111 = vst [vmem:[#allocation125_spill] sm:$0xff] %v13223_v4  ;;  %16112 = vst [vmem:[#allocation126_spill] sm:$0xff] %v13226_v33  ;;  %v9404_v6 = vpack.c.bf16 %v13063_v40, %v13082_v22  ;;  %11012 = vmatprep.mubr.msk.f32.mxu1 %vm474_vm0, %v11178_v61  ;;  %v9564_v53 = vpack.c.bf16 %v13065_v36, %v13084_v1  ;;  %v4152_v57 = vsub.f32 %v4005_v54, %v12467_v63  ;;  %v13263_v40 = vpop.f32.mrf.mxu0  ;;  %v13265_v22 = vpop.f32.mrf.mxu1  ;;  %v16146_v4 = vld [vmem:[#allocation54_spill] sm:$0xff] }
 0x13d   : > { %16114 = vst [vmem:[#allocation46_spill] sm:$0xff] %v13229_v34  ;;  %16116 = vst [vmem:[#allocation42_spill] sm:$0xff] %v13232_v37  ;;  %v4153_v44 = vsub.f32 %v4005_v54, %v12470_v49  ;;  %v4154_v10 = vsub.f32 %v4005_v54, %v12477_v56  ;;  %10913 = vmatmul.mubr.msk.f32.gmra.mxu0 %vm474_vm0, %v11179_v14  ;;  %v4155_v61 = vsub.f32 %v4005_v54, %v12480_v62 }
 0x13e   : > { %16118 = vst [vmem:[#allocation43_spill] sm:$0xff] %v13243_v11  ;;  %16120 = vst [vmem:[#allocation44_spill] sm:$0xff] %v13246_v7  ;;  %v4156_v36 = vsub.f32 %v4009_v50, %v12467_v63  ;;  %v4157_v1 = vsub.f32 %v4009_v50, %v12470_v49  ;;  %v4158_v58 = vsub.f32 %v4009_v50, %v12477_v56  ;;  %11013 = vmatmul.mubr.msk.f32.gmra.mxu1 %vm474_vm0, %v11179_v14  ;;  %v13277_v54 = vpop.f32.mrf.mxu0  ;;  %v13279_v11 = vpop.f32.mrf.mxu1 }
 0x13f   : > { %16122 = vst [vmem:[#allocation45_spill] sm:$0xff] %v13249_v43  ;;  %10036 = vst [vmem:[#allocation2 + $0x8] sm:$0xff] %v9404_v6   ;;  %v4280_v17 = vmul.f32 %v4152_v57, %v4152_v57  ;;  %v4281_v47 = vmul.f32 %v4153_v44, %v4153_v44  ;;  %v4282_v43 = vmul.f32 %v4154_v10, %v4154_v10  ;;  %v11180_v6 = vld [vmem:[%s15954_s0 + $0x150] sm:$0xff]  ;;  %v11181_v10 = vld [vmem:[%s15954_s0 + $0x158] sm:$0xff] }
 0x140   : > { %10067 = vst [vmem:[#allocation2 + $0x108] sm:$0xff] %v9564_v53   ;;  %v4159_v7 = vsub.f32 %v4009_v50, %v12480_v62  ;;  %10915 = vmatprep.mubr.msk.f32.mxu0 %vm474_vm0, %v11180_v6  ;;  %v4283_v37 = vmul.f32 %v4155_v61, %v4155_v61  ;;  %v4284_v34 = vmul.f32 %v4156_v36, %v4156_v36  ;;  %v13295_v61 = vpop.f32.mrf.mxu0  ;;  %v13297_v36 = vpop.f32.mrf.mxu1 }
 0x141   : > { %v4285_v33 = vmul.f32 %v4157_v1, %v4157_v1  ;;  %v4286_v14 = vmul.f32 %v4158_v58, %v4158_v58  ;;  %11015 = vmatprep.mubr.msk.f32.mxu1 %vm474_vm0, %v11180_v6  ;;  %v13283_v53 = vadd.f32 %v4280_v17, %v12619_v12  ;;  %v13286_v50 = vadd.f32 %v4281_v47, %v12625_v16  ;;  %v16126_v1 = vld [vmem:[#allocation51_spill] sm:$0xff]  ;;  %v16130_v17 = vld [vmem:[#allocation48_spill] sm:$0xff]  ;;  %v4013_v47 = vpop.permute.xlu1 %4012  ;;  %v4017_v6 = vpop.permute.xlu0 %4016 }
 0x142   : > { %v13289_v57 = vadd.f32 %v4282_v43, %v12627_v21  ;;  %v4287_v44 = vmul.f32 %v4159_v7, %v4159_v7  ;;  %10916 = vmatmul.mubr.msk.f32.gmra.mxu0 %vm474_vm0, %v11181_v10  ;;  %v13300_v12 = vadd.f32 %v4283_v37, %v16126_v1  ;;  %v16128_v58 = vld [vmem:[#allocation47_spill] sm:$0xff]  ;;  %v16132_v7 = vld [vmem:[#allocation49_spill] sm:$0xff]  ;;  %11016 = vmatmul.mubr.msk.f32.gmra.mxu1 %vm474_vm0, %v11181_v10  ;;  %v13326_v10 = vpop.f32.mrf.mxu1 }
 0x143   : > { %16123 = vst [vmem:[#allocation127_spill] sm:$0xff] %v13283_v53  ;;  %16124 = vst [vmem:[#allocation128_spill] sm:$0xff] %v13286_v50  ;;  %v13303_v16 = vadd.f32 %v4284_v34, %v16128_v58  ;;  %v13306_v21 = vadd.f32 %v4285_v33, %v16130_v17  ;;  %v13309_v43 = vadd.f32 %v4286_v14, %v16132_v7  ;;  %v11182_v33 = vld [vmem:[%s15954_s0 + $0x160] sm:$0xff]  ;;  %v13324_v14 = vpop.f32.mrf.mxu0  ;;  %v11183_v7 = vld [vmem:[%s15954_s0 + $0x168] sm:$0xff] }
 0x144   : > { %16125 = vst [vmem:[#allocation129_spill] sm:$0xff] %v13289_v57  ;;  %16127 = vst [vmem:[#allocation51_spill] sm:$0xff] %v13300_v12  ;;  %v16134_v57 = vld [vmem:[#allocation50_spill] sm:$0xff]  ;;  %v9409_v37 = vpack.c.bf16 %v13092_v48, %v13122_v19  ;;  %v9569_v34 = vpack.c.bf16 %v13094_v52, %v13124_v23  ;;  %v4160_v1 = vsub.f32 %v4013_v47, %v12467_v63  ;;  %10918 = vmatprep.mubr.msk.f32.mxu0 %vm474_vm0, %v11182_v33  ;;  %v11184_v12 = vld [vmem:[%s15954_s0 + $0x170] sm:$0xff] }
 0x145   : > { %16129 = vst [vmem:[#allocation47_spill] sm:$0xff] %v13303_v16  ;;  %16131 = vst [vmem:[#allocation48_spill] sm:$0xff] %v13306_v21  ;;  %v13313_v50 = vadd.f32 %v4287_v44, %v16134_v57  ;;  %v4161_v57 = vsub.f32 %v4013_v47, %v12470_v49  ;;  %v4162_v44 = vsub.f32 %v4013_v47, %v12477_v56  ;;  %11018 = vmatprep.mubr.msk.f32.mxu1 %vm474_vm0, %v11182_v33 }
 0x146   : > { %16133 = vst [vmem:[#allocation49_spill] sm:$0xff] %v13309_v43  ;;  %v4163_v48 = vsub.f32 %v4013_v47, %v12480_v62  ;;  %v4164_v52 = vsub.f32 %v4017_v6, %v12467_v63  ;;  %10037 = vst [vmem:[#allocation2 + $0x10] sm:$0xff] %v9409_v37   ;;  %v4288_v19 = vmul.f32 %v4160_v1, %v4160_v1  ;;  %10919 = vmatmul.mubr.msk.f32.gmra.mxu0 %vm474_vm0, %v11183_v7  ;;  %v13340_v47 = vpop.f32.mrf.mxu0 }
 0x147   : > { %16135 = vst [vmem:[#allocation50_spill] sm:$0xff] %v13313_v50  ;;  %10068 = vst [vmem:[#allocation2 + $0x110] sm:$0xff] %v9569_v34   ;;  %v4165_v23 = vsub.f32 %v4017_v6, %v12470_v49  ;;  %v4166_v58 = vsub.f32 %v4017_v6, %v12477_v56  ;;  %v4167_v17 = vsub.f32 %v4017_v6, %v12480_v62  ;;  %v13342_v50 = vpop.f32.mrf.mxu1  ;;  %11019 = vmatmul.mubr.msk.f32.gmra.mxu1 %vm474_vm0, %v11183_v7  ;;  %v16144_v7 = vld [vmem:[#allocation53_spill] sm:$0xff] }
 0x148   : > { %v4289_v33 = vmul.f32 %v4161_v57, %v4161_v57  ;;  %v4290_v37 = vmul.f32 %v4162_v44, %v4162_v44  ;;  %v4291_v34 = vmul.f32 %v4163_v48, %v4163_v48  ;;  %v4292_v1 = vmul.f32 %v4164_v52, %v4164_v52  ;;  %10921 = vmatprep.mubr.msk.f32.mxu0 %vm474_vm0, %v11184_v12  ;;  %v13352_v53 = vpop.f32.mrf.mxu0  ;;  %v16138_v48 = vld [vmem:[#allocation56_spill] sm:$0xff] }
 0x149   : > { %v13346_v43 = vadd.f32 %v4288_v19, %v12655_v20  ;;  %v4293_v6 = vmul.f32 %v4165_v23, %v4165_v23  ;;  %v4294_v21 = vmul.f32 %v4166_v58, %v4166_v58  ;;  %v4295_v16 = vmul.f32 %v4167_v17, %v4167_v17  ;;  %v13354_v57 = vpop.f32.mrf.mxu1  ;;  %v16140_v20 = vld [vmem:[#allocation57_spill] sm:$0xff]  ;;  %v16142_v23 = vld [vmem:[#allocation52_spill] sm:$0xff]  ;;  %v4021_v17 = vpop.permute.xlu1 %4020  ;;  %11021 = vmatprep.mubr.msk.f32.mxu1 %vm474_vm0, %v11184_v12 }
 0x14a   : > { %v13357_v44 = vadd.f32 %v4289_v33, %v12657_v2  ;;  %v13360_v52 = vadd.f32 %v4290_v37, %v16138_v48  ;;  %v13363_v19 = vadd.f32 %v4291_v34, %v16140_v20  ;;  %v13366_v58 = vadd.f32 %v4292_v1, %v16142_v23  ;;  %v16148_v2 = vld [vmem:[#allocation55_spill] sm:$0xff]  ;;  %v11185_v34 = vld [vmem:[%s15954_s0 + $0x178] sm:$0xff]  ;;  %v13384_v1 = vpop.f32.mrf.mxu0 }
 0x14b   : > { %16136 = vst [vmem:[#allocation130_spill] sm:$0xff] %v13346_v43  ;;  %v13370_v43 = vadd.f32 %v4293_v6, %v16144_v7  ;;  %v13373_v51 = vadd.f32 %v4294_v21, %v16146_v4  ;;  %v13376_v33 = vadd.f32 %v4295_v16, %v16148_v2  ;;  %v9414_v37 = vpack.c.bf16 %v13141_v38, %v13151_v32  ;;  %v13386_v12 = vpop.f32.mrf.mxu1  ;;  %v4025_v32 = vpop.permute.xlu0 %4024 }
 0x14c   : > { %16137 = vst [vmem:[#allocation131_spill] sm:$0xff] %v13357_v44  ;;  %16139 = vst [vmem:[#allocation56_spill] sm:$0xff] %v13360_v52  ;;  %10922 = vmatmul.mubr.msk.f32.gmra.mxu0 %vm474_vm0, %v11185_v34  ;;  %v9574_v4 = vpack.c.bf16 %v13143_v30, %v13153_v55  ;;  %v4168_v21 = vsub.f32 %v4021_v17, %v12467_v63  ;;  %v4169_v16 = vsub.f32 %v4021_v17, %v12470_v49  ;;  %v11186_v55 = vld [vmem:[%s15954_s0 + $0x180] sm:$0xff]  ;;  %v13402_v30 = vpop.f32.mrf.mxu0 }
 0x14d   : > { %16141 = vst [vmem:[#allocation57_spill] sm:$0xff] %v13363_v19  ;;  %16143 = vst [vmem:[#allocation52_spill] sm:$0xff] %v13366_v58  ;;  %v4170_v6 = vsub.f32 %v4021_v17, %v12477_v56  ;;  %11022 = vmatmul.mubr.msk.f32.gmra.mxu1 %vm474_vm0, %v11185_v34  ;;  %v4171_v38 = vsub.f32 %v4021_v17, %v12480_v62  ;;  %v4172_v48 = vsub.f32 %v4025_v32, %v12467_v63  ;;  %v13404_v7 = vpop.f32.mrf.mxu1  ;;  %v11187_v19 = vld [vmem:[%s15954_s0 + $0x188] sm:$0xff] }
 0x14e   : > { %16145 = vst [vmem:[#allocation53_spill] sm:$0xff] %v13370_v43  ;;  %16147 = vst [vmem:[#allocation54_spill] sm:$0xff] %v13373_v51  ;;  %v4173_v20 = vsub.f32 %v4025_v32, %v12470_v49  ;;  %v4174_v23 = vsub.f32 %v4025_v32, %v12477_v56  ;;  %10924 = vmatprep.mubr.msk.f32.mxu0 %vm474_vm0, %v11186_v55  ;;  %v4296_v2 = vmul.f32 %v4168_v21, %v4168_v21  ;;  %v13412_v52 = vpop.f32.mrf.mxu0 }
 0x14f   : > { %16149 = vst [vmem:[#allocation55_spill] sm:$0xff] %v13376_v33  ;;  %10038 = vst [vmem:[#allocation2 + $0x18] sm:$0xff] %v9414_v37   ;;  %v4297_v37 = vmul.f32 %v4169_v16, %v4169_v16  ;;  %v4298_v17 = vmul.f32 %v4170_v6, %v4170_v6  ;;  %v4175_v34 = vsub.f32 %v4025_v32, %v12480_v62  ;;  %11024 = vmatprep.mubr.msk.f32.mxu1 %vm474_vm0, %v11186_v55 }
 0x150   : > { %10069 = vst [vmem:[#allocation2 + $0x118] sm:$0xff] %v9574_v4   ;;  %v4299_v33 = vmul.f32 %v4171_v38, %v4171_v38  ;;  %v4300_v51 = vmul.f32 %v4172_v48, %v4172_v48  ;;  %v4301_v43 = vmul.f32 %v4173_v20, %v4173_v20  ;;  %v4302_v58 = vmul.f32 %v4174_v23, %v4174_v23  ;;  %v13414_v4 = vpop.f32.mrf.mxu1  ;;  %v4029_v38 = vpop.permute.xlu1 %4028  ;;  %v16155_v23 = vld [vmem:[#allocation58_spill] sm:$0xff] }
 0x151   : > { %10925 = vmatmul.mubr.msk.f32.gmra.mxu0 %vm474_vm0, %v11187_v19  ;;  %v13417_v21 = vadd.f32 %v4296_v2, %v12687_v42  ;;  %v13420_v16 = vadd.f32 %v4297_v37, %v12689_v29  ;;  %v13423_v6 = vadd.f32 %v4298_v17, %v12691_v13  ;;  %v4303_v32 = vmul.f32 %v4175_v34, %v4175_v34  ;;  %v16157_v42 = vld [vmem:[#allocation59_spill] sm:$0xff]  ;;  %v11188_v13 = vld [vmem:[%s15954_s0 + $0x190] sm:$0xff]  ;;  %v13442_v29 = vpop.f32.mrf.mxu0 }
 0x152   : > { %11025 = vmatmul.mubr.msk.f32.gmra.mxu1 %vm474_vm0, %v11187_v19  ;;  %v13427_v48 = vadd.f32 %v4299_v33, %v12695_v24  ;;  %v13430_v20 = vadd.f32 %v4300_v51, %v12677_v9  ;;  %v13433_v55 = vadd.f32 %v4301_v43, %v16155_v23  ;;  %v13436_v2 = vadd.f32 %v4302_v58, %v16157_v42  ;;  %v13444_v19 = vpop.f32.mrf.mxu1  ;;  %v16159_v24 = vld [vmem:[#allocation60_spill] sm:$0xff]  ;;  %v4033_v58 = vpop.permute.xlu0 %4032 }
 0x153   : > { %16150 = vst [vmem:[#allocation132_spill] sm:$0xff] %v13417_v21  ;;  %16151 = vst [vmem:[#allocation133_spill] sm:$0xff] %v13420_v16  ;;  %10927 = vmatprep.mubr.msk.f32.mxu0 %vm474_vm0, %v11188_v13  ;;  %v13447_v33 = vadd.f32 %v4303_v32, %v16159_v24  ;;  %v9419_v9 = vpack.c.bf16 %v13181_v0, %v13202_v41  ;;  %v9579_v51 = vpack.c.bf16 %v13183_v31, %v13204_v25  ;;  %v11189_v0 = vld [vmem:[%s15954_s0 + $0x198] sm:$0xff]  ;;  %v13463_v31 = vpop.f32.mrf.mxu0  ;;  %v16211_v21 = vld [vmem:[#allocation15_spill] sm:$0xff] }
 0x154   : > { %16152 = vst [vmem:[#allocation134_spill] sm:$0xff] %v13423_v6  ;;  %16153 = vst [vmem:[#allocation135_spill] sm:$0xff] %v13427_v48  ;;  %v4176_v43 = vsub.f32 %v4029_v38, %v12467_v63  ;;  %11027 = vmatprep.mubr.msk.f32.mxu1 %vm474_vm0, %v11188_v13  ;;  %v4177_v37 = vsub.f32 %v4029_v38, %v12470_v49  ;;  %v4178_v17 = vsub.f32 %v4029_v38, %v12477_v56  ;;  %v13465_v41 = vpop.f32.mrf.mxu1  ;;  %v16209_v6 = vld [vmem:[#allocation77_spill] sm:$0xff] }
 0x155   : > { %16154 = vst [vmem:[#allocation136_spill] sm:$0xff] %v13430_v20  ;;  %16156 = vst [vmem:[#allocation58_spill] sm:$0xff] %v13433_v55  ;;  %v4179_v34 = vsub.f32 %v4029_v38, %v12480_v62  ;;  %v4180_v32 = vsub.f32 %v4033_v58, %v12467_v63  ;;  %10928 = vmatmul.mubr.msk.f32.gmra.mxu0 %vm474_vm0, %v11189_v0  ;;  %v4181_v23 = vsub.f32 %v4033_v58, %v12470_v49  ;;  %v11190_v55 = vld [vmem:[%s15954_s0 + $0x1a0] sm:$0xff] }
 0x156   : > { %16158 = vst [vmem:[#allocation59_spill] sm:$0xff] %v13436_v2  ;;  %16160 = vst [vmem:[#allocation60_spill] sm:$0xff] %v13447_v33  ;;  %v4304_v25 = vmul.f32 %v4176_v43, %v4176_v43  ;;  %v4182_v42 = vsub.f32 %v4033_v58, %v12477_v56  ;;  %v4183_v38 = vsub.f32 %v4033_v58, %v12480_v62  ;;  %11028 = vmatmul.mubr.msk.f32.gmra.mxu1 %vm474_vm0, %v11189_v0 }
 0x157   : > { %10039 = vst [vmem:[#allocation2 + $0x20] sm:$0xff] %v9419_v9   ;;  %10070 = vst [vmem:[#allocation2 + $0x120] sm:$0xff] %v9579_v51   ;;  %v4305_v13 = vmul.f32 %v4177_v37, %v4177_v37  ;;  %v4306_v24 = vmul.f32 %v4178_v17, %v4178_v17  ;;  %v4307_v33 = vmul.f32 %v4179_v34, %v4179_v34  ;;  %10930 = vmatprep.mubr.msk.f32.mxu0 %vm474_vm0, %v11190_v55  ;;  %v13475_v9 = vpop.f32.mrf.mxu0  ;;  %v13477_v51 = vpop.f32.mrf.mxu1 }
 0x158   : > { %v4308_v2 = vmul.f32 %v4180_v32, %v4180_v32  ;;  %v13480_v43 = vadd.f32 %v4304_v25, %v12720_v15  ;;  %v4309_v58 = vmul.f32 %v4181_v23, %v4181_v23  ;;  %v4310_v20 = vmul.f32 %v4182_v42, %v4182_v42  ;;  %11030 = vmatprep.mubr.msk.f32.mxu1 %vm474_vm0, %v11190_v55  ;;  %v11191_v15 = vld [vmem:[%s15954_s0 + $0x1a8] sm:$0xff] }
 0x159   : > { %v4311_v0 = vmul.f32 %v4183_v38, %v4183_v38  ;;  %v13484_v37 = vadd.f32 %v4305_v13, %v12722_v27  ;;  %v13487_v17 = vadd.f32 %v4306_v24, %v12725_v35  ;;  %v13490_v34 = vadd.f32 %v4307_v33, %v12727_v5  ;;  %10931 = vmatmul.mubr.msk.f32.gmra.mxu0 %vm474_vm0, %v11191_v15  ;;  %v13499_v25 = vpop.f32.mrf.mxu0  ;;  %v13501_v55 = vpop.f32.mrf.mxu1  ;;  %v16166_v27 = vld [vmem:[#allocation61_spill] sm:$0xff]  ;;  %v16168_v35 = vld [vmem:[#allocation62_spill] sm:$0xff]  ;;  %v16170_v5 = vld [vmem:[#allocation63_spill] sm:$0xff] }
 0x15a   : > { %16161 = vst [vmem:[#allocation137_spill] sm:$0xff] %v13480_v43  ;;  %v13493_v32 = vadd.f32 %v4308_v2, %v12709_v59  ;;  %v13504_v23 = vadd.f32 %v4309_v58, %v16166_v27  ;;  %v13507_v42 = vadd.f32 %v4310_v20, %v16168_v35  ;;  %v9424_v59 = vpack.c.bf16 %v13214_v46, %v13238_v8  ;;  %v4037_v2 = vpop.permute.xlu1 %4036  ;;  %v4041_v38 = vpop.permute.xlu0 %4040  ;;  %v16197_v43 = vld [vmem:[#allocation71_spill] sm:$0xff] }
 0x15b   : > { %16162 = vst [vmem:[#allocation138_spill] sm:$0xff] %v13484_v37  ;;  %16163 = vst [vmem:[#allocation139_spill] sm:$0xff] %v13487_v17  ;;  %v13510_v33 = vadd.f32 %v4311_v0, %v16170_v5  ;;  %11031 = vmatmul.mubr.msk.f32.gmra.mxu1 %vm474_vm0, %v11191_v15  ;;  %v9584_v13 = vpack.c.bf16 %v13216_v45, %v13240_v26  ;;  %v4184_v24 = vsub.f32 %v4037_v2, %v12467_v63  ;;  %v11192_v0 = vld [vmem:[%s15954_s0 + $0x1b0] sm:$0xff]  ;;  %v13524_v46 = vpop.f32.mrf.mxu0  ;;  %v13526_v8 = vpop.f32.mrf.mxu1  ;;  %v16191_v37 = vld [vmem:[#allocation76_spill] sm:$0xff] }
 0x15c   : > { %16164 = vst [vmem:[#allocation140_spill] sm:$0xff] %v13490_v34  ;;  %16165 = vst [vmem:[#allocation141_spill] sm:$0xff] %v13493_v32  ;;  %v4185_v58 = vsub.f32 %v4037_v2, %v12470_v49  ;;  %v4186_v20 = vsub.f32 %v4037_v2, %v12477_v56  ;;  %10933 = vmatprep.mubr.msk.f32.mxu0 %vm474_vm0, %v11192_v0  ;;  %v4187_v15 = vsub.f32 %v4037_v2, %v12480_v62 }
 0x15d   : > { %16167 = vst [vmem:[#allocation61_spill] sm:$0xff] %v13504_v23  ;;  %16169 = vst [vmem:[#allocation62_spill] sm:$0xff] %v13507_v42  ;;  %v4188_v45 = vsub.f32 %v4041_v38, %v12467_v63  ;;  %v4189_v26 = vsub.f32 %v4041_v38, %v12470_v49  ;;  %v4190_v27 = vsub.f32 %v4041_v38, %v12477_v56  ;;  %11033 = vmatprep.mubr.msk.f32.mxu1 %vm474_vm0, %v11192_v0  ;;  %v13538_v2 = vpop.f32.mrf.mxu0  ;;  %v13540_v23 = vpop.f32.mrf.mxu1 }
 0x15e   : > { %16171 = vst [vmem:[#allocation63_spill] sm:$0xff] %v13510_v33  ;;  %10040 = vst [vmem:[#allocation2 + $0x28] sm:$0xff] %v9424_v59   ;;  %v4312_v35 = vmul.f32 %v4184_v24, %v4184_v24  ;;  %v4313_v5 = vmul.f32 %v4185_v58, %v4185_v58  ;;  %v4314_v33 = vmul.f32 %v4186_v20, %v4186_v20  ;;  %v11193_v59 = vld [vmem:[%s15954_s0 + $0x1b8] sm:$0xff]  ;;  %v11194_v20 = vld [vmem:[%s15954_s0 + $0x1c0] sm:$0xff] }
 0x15f   : > { %10071 = vst [vmem:[#allocation2 + $0x128] sm:$0xff] %v9584_v13   ;;  %v4191_v42 = vsub.f32 %v4041_v38, %v12480_v62  ;;  %10934 = vmatmul.mubr.msk.f32.gmra.mxu0 %vm474_vm0, %v11193_v59  ;;  %v4315_v32 = vmul.f32 %v4187_v15, %v4187_v15  ;;  %v4316_v34 = vmul.f32 %v4188_v45, %v4188_v45  ;;  %v13556_v15 = vpop.f32.mrf.mxu0  ;;  %v13558_v45 = vpop.f32.mrf.mxu1 }
 0x160   : > { %v4317_v17 = vmul.f32 %v4189_v26, %v4189_v26  ;;  %v4318_v0 = vmul.f32 %v4190_v27, %v4190_v27  ;;  %11034 = vmatmul.mubr.msk.f32.gmra.mxu1 %vm474_vm0, %v11193_v59  ;;  %v13544_v13 = vadd.f32 %v4312_v35, %v12755_v28  ;;  %v13547_v38 = vadd.f32 %v4313_v5, %v12757_v3  ;;  %v16175_v26 = vld [vmem:[#allocation68_spill] sm:$0xff]  ;;  %v16179_v35 = vld [vmem:[#allocation65_spill] sm:$0xff]  ;;  %v4045_v5 = vpop.permute.xlu1 %4044  ;;  %v4049_v59 = vpop.permute.xlu0 %4048 }
 0x161   : > { %v13550_v24 = vadd.f32 %v4314_v33, %v12759_v18  ;;  %v4319_v58 = vmul.f32 %v4191_v42, %v4191_v42  ;;  %10936 = vmatprep.mubr.msk.f32.mxu0 %vm474_vm0, %v11194_v20  ;;  %v13561_v28 = vadd.f32 %v4315_v32, %v16175_v26  ;;  %v16177_v27 = vld [vmem:[#allocation64_spill] sm:$0xff]  ;;  %v16181_v42 = vld [vmem:[#allocation66_spill] sm:$0xff]  ;;  %11036 = vmatprep.mubr.msk.f32.mxu1 %vm474_vm0, %v11194_v20  ;;  %v13587_v20 = vpop.f32.mrf.mxu1 }
 0x162   : > { %16172 = vst [vmem:[#allocation142_spill] sm:$0xff] %v13544_v13  ;;  %16173 = vst [vmem:[#allocation143_spill] sm:$0xff] %v13547_v38  ;;  %v13564_v3 = vadd.f32 %v4316_v34, %v16177_v27  ;;  %v13567_v18 = vadd.f32 %v4317_v17, %v16179_v35  ;;  %v13570_v33 = vadd.f32 %v4318_v0, %v16181_v42  ;;  %v11195_v17 = vld [vmem:[%s15954_s0 + $0x1c8] sm:$0xff]  ;;  %v13585_v0 = vpop.f32.mrf.mxu0  ;;  %v11196_v42 = vld [vmem:[%s15954_s0 + $0x1d0] sm:$0xff] }
 0x163   : > { %16174 = vst [vmem:[#allocation144_spill] sm:$0xff] %v13550_v24  ;;  %16176 = vst [vmem:[#allocation68_spill] sm:$0xff] %v13561_v28  ;;  %v16183_v24 = vld [vmem:[#allocation67_spill] sm:$0xff]  ;;  %v9429_v32 = vpack.c.bf16 %v13263_v40, %v13277_v54  ;;  %v9589_v34 = vpack.c.bf16 %v13265_v22, %v13279_v11  ;;  %v4192_v26 = vsub.f32 %v4045_v5, %v12467_v63  ;;  %10937 = vmatmul.mubr.msk.f32.gmra.mxu0 %vm474_vm0, %v11195_v17  ;;  %v11197_v13 = vld [vmem:[%s15954_s0 + $0x1d8] sm:$0xff] }
 0x164   : > { %16178 = vst [vmem:[#allocation64_spill] sm:$0xff] %v13564_v3  ;;  %16180 = vst [vmem:[#allocation65_spill] sm:$0xff] %v13567_v18  ;;  %v13574_v38 = vadd.f32 %v4319_v58, %v16183_v24  ;;  %v4193_v24 = vsub.f32 %v4045_v5, %v12470_v49  ;;  %v4194_v58 = vsub.f32 %v4045_v5, %v12477_v56  ;;  %11037 = vmatmul.mubr.msk.f32.gmra.mxu1 %vm474_vm0, %v11195_v17 }
 0x165   : > { %16182 = vst [vmem:[#allocation66_spill] sm:$0xff] %v13570_v33  ;;  %v4195_v40 = vsub.f32 %v4045_v5, %v12480_v62  ;;  %v4196_v11 = vsub.f32 %v4049_v59, %v12467_v63  ;;  %10041 = vst [vmem:[#allocation2 + $0x30] sm:$0xff] %v9429_v32   ;;  %v4320_v22 = vmul.f32 %v4192_v26, %v4192_v26  ;;  %10939 = vmatprep.mubr.msk.f32.mxu0 %vm474_vm0, %v11196_v42  ;;  %v13601_v5 = vpop.f32.mrf.mxu0  ;;  %v16185_v26 = vld [vmem:[#allocation73_spill] sm:$0xff] }
 0x166   : > { %16184 = vst [vmem:[#allocation67_spill] sm:$0xff] %v13574_v38  ;;  %10072 = vst [vmem:[#allocation2 + $0x130] sm:$0xff] %v9589_v34   ;;  %v4197_v54 = vsub.f32 %v4049_v59, %v12470_v49  ;;  %v4198_v27 = vsub.f32 %v4049_v59, %v12477_v56  ;;  %v4199_v35 = vsub.f32 %v4049_v59, %v12480_v62  ;;  %11039 = vmatprep.mubr.msk.f32.mxu1 %vm474_vm0, %v11196_v42  ;;  %v13604_v34 = vpop.f32.mrf.mxu1 }
 0x167   : > { %v4321_v38 = vmul.f32 %v4193_v24, %v4193_v24  ;;  %v4322_v33 = vmul.f32 %v4194_v58, %v4194_v58  ;;  %v4323_v17 = vmul.f32 %v4195_v40, %v4195_v40  ;;  %v4324_v32 = vmul.f32 %v4196_v11, %v4196_v11  ;;  %10940 = vmatmul.mubr.msk.f32.gmra.mxu0 %vm474_vm0, %v11197_v13  ;;  %v13613_v24 = vpop.f32.mrf.mxu0  ;;  %v16187_v58 = vld [vmem:[#allocation74_spill] sm:$0xff]  ;;  %v16189_v11 = vld [vmem:[#allocation75_spill] sm:$0xff] }
 0x168   : > { %v13607_v18 = vadd.f32 %v4320_v22, %v16185_v26  ;;  %v4325_v59 = vmul.f32 %v4197_v54, %v4197_v54  ;;  %v4326_v3 = vmul.f32 %v4198_v27, %v4198_v27  ;;  %v4327_v28 = vmul.f32 %v4199_v35, %v4199_v35  ;;  %v16193_v54 = vld [vmem:[#allocation69_spill] sm:$0xff]  ;;  %11040 = vmatmul.mubr.msk.f32.gmra.mxu1 %vm474_vm0, %v11197_v13  ;;  %v13628_v35 = vpop.f32.mrf.mxu1  ;;  %v16195_v26 = vld [vmem:[#allocation70_spill] sm:$0xff] }
 0x169   : > { %v13616_v40 = vadd.f32 %v4321_v38, %v16187_v58  ;;  %v13619_v42 = vadd.f32 %v4322_v33, %v16189_v11  ;;  %v13622_v22 = vadd.f32 %v4323_v17, %v16191_v37  ;;  %v13625_v27 = vadd.f32 %v4324_v32, %v16193_v54  ;;  %v16199_v38 = vld [vmem:[#allocation72_spill] sm:$0xff]  ;;  %v4053_v33 = vpop.permute.xlu1 %4052  ;;  %v11198_v17 = vld [vmem:[%s15954_s0 + $0x1e0] sm:$0xff]  ;;  %v13645_v13 = vpop.f32.mrf.mxu0 }
 0x16a   : > { %16186 = vst [vmem:[#allocation73_spill] sm:$0xff] %v13607_v18  ;;  %v13631_v18 = vadd.f32 %v4325_v59, %v16195_v26  ;;  %v13634_v48 = vadd.f32 %v4326_v3, %v16197_v43  ;;  %v13637_v58 = vadd.f32 %v4327_v28, %v16199_v38  ;;  %v9434_v37 = vpack.c.bf16 %v13295_v61, %v13324_v14  ;;  %v4057_v59 = vpop.permute.xlu0 %4056  ;;  %v13653_v61 = vpop.f32.mrf.mxu1 }
 0x16b   : > { %16188 = vst [vmem:[#allocation74_spill] sm:$0xff] %v13616_v40  ;;  %16190 = vst [vmem:[#allocation75_spill] sm:$0xff] %v13619_v42  ;;  %10942 = vmatprep.mubr.msk.f32.mxu0 %vm474_vm0, %v11198_v17  ;;  %v9594_v32 = vpack.c.bf16 %v13297_v36, %v13326_v10  ;;  %v4200_v43 = vsub.f32 %v4053_v33, %v12467_v63  ;;  %v4201_v28 = vsub.f32 %v4053_v33, %v12470_v49  ;;  %v11199_v10 = vld [vmem:[%s15954_s0 + $0x1e8] sm:$0xff]  ;;  %v13663_v26 = vpop.f32.mrf.mxu0  ;;  %v11200_v42 = vld [vmem:[%s15954_s0 + $0x1f0] sm:$0xff] }
 0x16c   : > { %16192 = vst [vmem:[#allocation76_spill] sm:$0xff] %v13622_v22  ;;  %16194 = vst [vmem:[#allocation69_spill] sm:$0xff] %v13625_v27  ;;  %v4202_v3 = vsub.f32 %v4053_v33, %v12477_v56  ;;  %11042 = vmatprep.mubr.msk.f32.mxu1 %vm474_vm0, %v11198_v17  ;;  %v4203_v14 = vsub.f32 %v4053_v33, %v12480_v62  ;;  %v4204_v11 = vsub.f32 %v4057_v59, %v12467_v63 }
 0x16d   : > { %16196 = vst [vmem:[#allocation70_spill] sm:$0xff] %v13631_v18  ;;  %16198 = vst [vmem:[#allocation71_spill] sm:$0xff] %v13634_v48  ;;  %v4205_v54 = vsub.f32 %v4057_v59, %v12470_v49  ;;  %v4206_v36 = vsub.f32 %v4057_v59, %v12477_v56  ;;  %10943 = vmatmul.mubr.msk.f32.gmra.mxu0 %vm474_vm0, %v11199_v10  ;;  %v4328_v38 = vmul.f32 %v4200_v43, %v4200_v43  ;;  %v16201_v43 = vld [vmem:[#allocation80_spill] sm:$0xff] }
 0x16e   : > { %16200 = vst [vmem:[#allocation72_spill] sm:$0xff] %v13637_v58  ;;  %10042 = vst [vmem:[#allocation2 + $0x38] sm:$0xff] %v9434_v37   ;;  %v4329_v17 = vmul.f32 %v4201_v28, %v4201_v28  ;;  %v4330_v37 = vmul.f32 %v4202_v3, %v4202_v3  ;;  %v4207_v33 = vsub.f32 %v4057_v59, %v12480_v62  ;;  %11043 = vmatmul.mubr.msk.f32.gmra.mxu1 %vm474_vm0, %v11199_v10  ;;  %v13667_v58 = vpop.f32.mrf.mxu1  ;;  %v16203_v3 = vld [vmem:[#allocation20_spill] sm:$0xff]  ;;  %v16205_v10 = vld [vmem:[#allocation81_spill] sm:$0xff] }
 0x16f   : > { %10073 = vst [vmem:[#allocation2 + $0x138] sm:$0xff] %v9594_v32   ;;  %v4331_v48 = vmul.f32 %v4203_v14, %v4203_v14  ;;  %v4332_v18 = vmul.f32 %v4204_v11, %v4204_v11  ;;  %v4333_v27 = vmul.f32 %v4205_v54, %v4205_v54  ;;  %v4334_v22 = vmul.f32 %v4206_v36, %v4206_v36  ;;  %v13673_v32 = vpop.f32.mrf.mxu0  ;;  %v16207_v54 = vld [vmem:[#allocation82_spill] sm:$0xff] }
 0x170   : > { %10945 = vmatprep.mubr.msk.f32.mxu0 %vm474_vm0, %v11200_v42  ;;  %v13676_v28 = vadd.f32 %v4328_v38, %v16201_v43  ;;  %v13679_v59 = vadd.f32 %v4329_v17, %v16203_v3  ;;  %v13682_v40 = vadd.f32 %v4330_v37, %v16205_v10  ;;  %v4335_v14 = vmul.f32 %v4207_v33, %v4207_v33  ;;  %v13685_v11 = vpop.f32.mrf.mxu1  ;;  %v16213_v43 = vld [vmem:[#allocation78_spill] sm:$0xff]  ;;  %v4061_v3 = vpop.permute.xlu1 %4060 }
 0x171   : > { %11045 = vmatprep.mubr.msk.f32.mxu1 %vm474_vm0, %v11200_v42  ;;  %v13688_v36 = vadd.f32 %v4331_v48, %v16207_v54  ;;  %v13691_v16 = vadd.f32 %v4332_v18, %v16209_v6  ;;  %v13694_v38 = vadd.f32 %v4333_v27, %v16211_v21  ;;  %v13697_v17 = vadd.f32 %v4334_v22, %v16213_v43  ;;  %v11201_v37 = vld [vmem:[%s15954_s0 + $0x1f8] sm:$0xff]  ;;  %v13703_v42 = vpop.f32.mrf.mxu0  ;;  %v16215_v48 = vld [vmem:[#allocation79_spill] sm:$0xff]  ;;  %v4065_v22 = vpop.permute.xlu0 %4064 }
 0x172   : > { %16202 = vst [vmem:[#allocation80_spill] sm:$0xff] %v13676_v28  ;;  %16204 = vst [vmem:[#allocation20_spill] sm:$0xff] %v13679_v59  ;;  %10946 = vmatmul.mubr.msk.f32.gmra.mxu0 %vm474_vm0, %v11201_v37  ;;  %v13706_v33 = vadd.f32 %v4335_v14, %v16215_v48  ;;  %v9439_v6 = vpack.c.bf16 %v13340_v47, %v13352_v53  ;;  %v9599_v21 = vpack.c.bf16 %v13342_v50, %v13354_v57  ;;  %v13714_v27 = vpop.f32.mrf.mxu1  ;;  %v16221_v28 = vld [vmem:[#allocation84_spill] sm:$0xff] }
 0x173   : > { %16206 = vst [vmem:[#allocation81_spill] sm:$0xff] %v13682_v40  ;;  %16208 = vst [vmem:[#allocation82_spill] sm:$0xff] %v13688_v36  ;;  %v4208_v18 = vsub.f32 %v4061_v3, %v12467_v63  ;;  %11046 = vmatmul.mubr.msk.f32.gmra.mxu1 %vm474_vm0, %v11201_v37  ;;  %v4209_v10 = vsub.f32 %v4061_v3, %v12470_v49  ;;  %v4210_v54 = vsub.f32 %v4061_v3, %v12477_v56  ;;  %v13720_v48 = vpop.f32.mrf.mxu0  ;;  %v16219_v36 = vld [vmem:[#allocation83_spill] sm:$0xff] }
 0x174   : > { %16210 = vst [vmem:[#allocation77_spill] sm:$0xff] %v13691_v16  ;;  %16212 = vst [vmem:[#allocation15_spill] sm:$0xff] %v13694_v38  ;;  %v4211_v14 = vsub.f32 %v4061_v3, %v12480_v62  ;;  %v4212_v43 = vsub.f32 %v4065_v22, %v12467_v63  ;;  %v4213_v50 = vsub.f32 %v4065_v22, %v12470_v49  ;;  %v13725_v37 = vpop.f32.mrf.mxu1 }
 0x175   : > { %16214 = vst [vmem:[#allocation78_spill] sm:$0xff] %v13697_v17  ;;  %16216 = vst [vmem:[#allocation79_spill] sm:$0xff] %v13706_v33  ;;  %v4336_v53 = vmul.f32 %v4208_v18, %v4208_v18  ;;  %v4214_v47 = vsub.f32 %v4065_v22, %v12477_v56  ;;  %v4215_v57 = vsub.f32 %v4065_v22, %v12480_v62  ;;  %v13727_v3 = vpop.f32.mrf.mxu0  ;;  %v16223_v22 = vld [vmem:[#allocation85_spill] sm:$0xff] }
 0x176   : > { %16217 = vst [vmem:[#allocation145_spill] sm:$0xff] %v13714_v27  ;;  %10043 = vst [vmem:[#allocation2 + $0x40] sm:$0xff] %v9439_v6   ;;  %v4337_v33 = vmul.f32 %v4209_v10, %v4209_v10  ;;  %v4338_v17 = vmul.f32 %v4210_v54, %v4210_v54  ;;  %v4339_v38 = vmul.f32 %v4211_v14, %v4211_v14  ;;  %v13732_v59 = vpop.f32.mrf.mxu1  ;;  %v16225_v10 = vld [vmem:[#allocation21_spill] sm:$0xff] }
 0x177   : > { %10074 = vst [vmem:[#allocation2 + $0x140] sm:$0xff] %v9599_v21   ;;  %v4340_v16 = vmul.f32 %v4212_v43, %v4212_v43  ;;  %16218 = vst [vmem:[#allocation146_spill] sm:$0xff] %v13727_v3  ;;  %v13730_v40 = vadd.f32 %v4336_v53, %v16219_v36  ;;  %v4341_v6 = vmul.f32 %v4213_v50, %v4213_v50  ;;  %v16227_v14 = vld [vmem:[#allocation17_spill] sm:$0xff]  ;;  %v13746_v3 = vpop.f32.mrf.mxu0  ;;  %v16229_v36 = vld [vmem:[#allocation18_spill] sm:$0xff] }
 0x178   : > { %v4342_v21 = vmul.f32 %v4214_v47, %v4214_v47  ;;  %v4343_v18 = vmul.f32 %v4215_v57, %v4215_v57  ;;  %v13735_v44 = vadd.f32 %v4337_v33, %v16221_v28  ;;  %v13738_v27 = vadd.f32 %v4338_v17, %v16223_v22  ;;  %v16231_v50 = vld [vmem:[#allocation16_spill] sm:$0xff]  ;;  %v16233_v57 = vld [vmem:[#allocation23_spill] sm:$0xff]  ;;  %v4069_v33 = vpop.permute.xlu1 %4068 }
 0x179   : > { %16220 = vst [vmem:[#allocation83_spill] sm:$0xff] %v13730_v40  ;;  %v13741_v54 = vadd.f32 %v4339_v38, %v16225_v10  ;;  %v13744_v43 = vadd.f32 %v4340_v16, %v16227_v14  ;;  %v13749_v53 = vadd.f32 %v4341_v6, %v16229_v36  ;;  %v9444_v17 = vpack.c.bf16 %v13384_v1, %v13402_v30  ;;  %v13759_v38 = vpop.f32.mrf.mxu1  ;;  %v13766_v14 = vpop.f32.mrf.mxu0  ;;  %v16239_v40 = vld [vmem:[#allocation89_spill] sm:$0xff] }
 0x17a   : > { %16222 = vst [vmem:[#allocation84_spill] sm:$0xff] %v13735_v44  ;;  %16224 = vst [vmem:[#allocation85_spill] sm:$0xff] %v13738_v27  ;;  %v13752_v47 = vadd.f32 %v4342_v21, %v16231_v50  ;;  %v13755_v28 = vadd.f32 %v4343_v18, %v16233_v57  ;;  %v9604_v16 = vpack.c.bf16 %v13386_v12, %v13404_v7  ;;  %v4073_v21 = vpop.permute.xlu0 %4072  ;;  %v16237_v27 = vld [vmem:[#allocation88_spill] sm:$0xff] }
 0x17b   : > { %16226 = vst [vmem:[#allocation21_spill] sm:$0xff] %v13741_v54  ;;  %16228 = vst [vmem:[#allocation17_spill] sm:$0xff] %v13744_v43  ;;  %v4216_v22 = vsub.f32 %v4069_v33, %v12467_v63  ;;  %v4217_v6 = vsub.f32 %v4069_v33, %v12470_v49  ;;  %v4218_v10 = vsub.f32 %v4069_v33, %v12477_v56  ;;  %v13772_v50 = vpop.f32.mrf.mxu1 }
 0x17c   : > { %16230 = vst [vmem:[#allocation18_spill] sm:$0xff] %v13749_v53  ;;  %16232 = vst [vmem:[#allocation16_spill] sm:$0xff] %v13752_v47  ;;  %v4219_v18 = vsub.f32 %v4069_v33, %v12480_v62  ;;  %v4220_v1 = vsub.f32 %v4073_v21, %v12467_v63  ;;  %v4221_v30 = vsub.f32 %v4073_v21, %v12470_v49  ;;  %v13775_v47 = vpop.f32.mrf.mxu0 }
 0x17d   : > { %16234 = vst [vmem:[#allocation23_spill] sm:$0xff] %v13755_v28  ;;  %16235 = vst [vmem:[#allocation147_spill] sm:$0xff] %v13766_v14  ;;  %v4222_v36 = vsub.f32 %v4073_v21, %v12477_v56  ;;  %v4344_v12 = vmul.f32 %v4216_v22, %v4216_v22  ;;  %v4345_v7 = vmul.f32 %v4217_v6, %v4217_v6  ;;  %v13777_v54 = vpop.f32.mrf.mxu1 }
 0x17e   : > { %10044 = vst [vmem:[#allocation2 + $0x48] sm:$0xff] %v9444_v17   ;;  %16236 = vst [vmem:[#allocation148_spill] sm:$0xff] %v13772_v50  ;;  %v4346_v57 = vmul.f32 %v4218_v10, %v4218_v10  ;;  %v4223_v28 = vsub.f32 %v4073_v21, %v12480_v62  ;;  %v4347_v53 = vmul.f32 %v4219_v18, %v4219_v18  ;;  %v13788_v10 = vpop.f32.mrf.mxu0  ;;  %v16243_v21 = vld [vmem:[#allocation90_spill] sm:$0xff] }
 0x17f   : > { %10075 = vst [vmem:[#allocation2 + $0x148] sm:$0xff] %v9604_v16   ;;  %v4348_v17 = vmul.f32 %v4220_v1, %v4220_v1  ;;  %v4349_v43 = vmul.f32 %v4221_v30, %v4221_v30  ;;  %v4350_v33 = vmul.f32 %v4222_v36, %v4222_v36  ;;  %v13780_v44 = vadd.f32 %v4344_v12, %v16237_v27  ;;  %v16241_v16 = vld [vmem:[#allocation26_spill] sm:$0xff]  ;;  %v16249_v27 = vld [vmem:[#allocation19_spill] sm:$0xff] }
 0x180   : > { %v13783_v14 = vadd.f32 %v4345_v7, %v16239_v40  ;;  %v13786_v22 = vadd.f32 %v4346_v57, %v16241_v16  ;;  %v4351_v6 = vmul.f32 %v4223_v28, %v4223_v28  ;;  %v13791_v50 = vadd.f32 %v4347_v53, %v16243_v21  ;;  %v16245_v18 = vld [vmem:[#allocation22_spill] sm:$0xff]  ;;  %v4077_v40 = vpop.permute.xlu1 %4076  ;;  %v13802_v7 = vpop.f32.mrf.mxu1  ;;  %v16252_v57 = vld [vmem:[#allocation87_spill] sm:$0xff] }
 0x181   : > { %16238 = vst [vmem:[#allocation88_spill] sm:$0xff] %v13780_v44  ;;  %v13794_v1 = vadd.f32 %v4348_v17, %v16245_v18  ;;  %v16247_v30 = vld [vmem:[#allocation86_spill] sm:$0xff]  ;;  %v13800_v12 = vadd.f32 %v4350_v33, %v16249_v27  ;;  %16251 = vst [vmem:[#allocation149_spill] sm:$0xff] %v13802_v7  ;;  %v9449_v28 = vpack.c.bf16 %v13412_v52, %v13442_v29  ;;  %v4081_v21 = vpop.permute.xlu0 %4080  ;;  %v16258_v44 = vld [vmem:[#allocation93_spill] sm:$0xff] }
 0x182   : > { %16240 = vst [vmem:[#allocation89_spill] sm:$0xff] %v13783_v14  ;;  %16242 = vst [vmem:[#allocation26_spill] sm:$0xff] %v13786_v22  ;;  %v13797_v36 = vadd.f32 %v4349_v43, %v16247_v30  ;;  %v13805_v16 = vadd.f32 %v4351_v6, %v16252_v57  ;;  %v9609_v53 = vpack.c.bf16 %v13414_v4, %v13444_v19  ;;  %v13812_v43 = vpop.f32.mrf.mxu0  ;;  %v13818_v27 = vpop.f32.mrf.mxu1 }
 0x183   : > { %16244 = vst [vmem:[#allocation90_spill] sm:$0xff] %v13791_v50  ;;  %16246 = vst [vmem:[#allocation22_spill] sm:$0xff] %v13794_v1  ;;  %v4224_v17 = vsub.f32 %v4077_v40, %v12467_v63  ;;  %v4225_v33 = vsub.f32 %v4077_v40, %v12470_v49  ;;  %v4226_v18 = vsub.f32 %v4077_v40, %v12477_v56  ;;  %v16256_v50 = vld [vmem:[#allocation27_spill] sm:$0xff] }
 0x184   : > { %16248 = vst [vmem:[#allocation86_spill] sm:$0xff] %v13797_v36  ;;  %16250 = vst [vmem:[#allocation19_spill] sm:$0xff] %v13800_v12  ;;  %v4227_v30 = vsub.f32 %v4077_v40, %v12480_v62  ;;  %v4228_v6 = vsub.f32 %v4081_v21, %v12467_v63  ;;  %v4229_v4 = vsub.f32 %v4081_v21, %v12470_v49  ;;  %v13823_v57 = vpop.f32.mrf.mxu0  ;;  %v13825_v40 = vpop.f32.mrf.mxu1 }
 0x185   : > { %16253 = vst [vmem:[#allocation87_spill] sm:$0xff] %v13805_v16  ;;  %16254 = vst [vmem:[#allocation150_spill] sm:$0xff] %v13818_v27  ;;  %v4352_v52 = vmul.f32 %v4224_v17, %v4224_v17  ;;  %v4230_v29 = vsub.f32 %v4081_v21, %v12477_v56  ;;  %v4231_v19 = vsub.f32 %v4081_v21, %v12480_v62  ;;  %v16260_v21 = vld [vmem:[#allocation94_spill] sm:$0xff] }
 0x186   : > { %10045 = vst [vmem:[#allocation2 + $0x50] sm:$0xff] %v9449_v28   ;;  %10076 = vst [vmem:[#allocation2 + $0x150] sm:$0xff] %v9609_v53   ;;  %v4353_v16 = vmul.f32 %v4225_v33, %v4225_v33  ;;  %v4354_v12 = vmul.f32 %v4226_v18, %v4226_v18  ;;  %v4355_v36 = vmul.f32 %v4227_v30, %v4227_v30  ;;  %v13830_v14 = vpop.f32.mrf.mxu0  ;;  %v16262_v33 = vld [vmem:[#allocation95_spill] sm:$0xff]  ;;  %v16264_v30 = vld [vmem:[#allocation24_spill] sm:$0xff] }
 0x187   : > { %v4356_v1 = vmul.f32 %v4228_v6, %v4228_v6  ;;  %16255 = vst [vmem:[#allocation151_spill] sm:$0xff] %v13825_v40  ;;  %v13828_v22 = vadd.f32 %v4352_v52, %v16256_v50  ;;  %v4357_v28 = vmul.f32 %v4229_v4, %v4229_v4  ;;  %v4358_v53 = vmul.f32 %v4230_v29, %v4230_v29  ;;  %v4085_v40 = vpop.permute.xlu1 %4084  ;;  %v13844_v50 = vpop.f32.mrf.mxu1  ;;  %v16266_v52 = vld [vmem:[#allocation25_spill] sm:$0xff]  ;;  %v16268_v29 = vld [vmem:[#allocation91_spill] sm:$0xff] }
 0x188   : > { %v4359_v17 = vmul.f32 %v4231_v19, %v4231_v19  ;;  %v13833_v7 = vadd.f32 %v4353_v16, %v16258_v44  ;;  %v13836_v27 = vadd.f32 %v4354_v12, %v16260_v21  ;;  %v13839_v18 = vadd.f32 %v4355_v36, %v16262_v33  ;;  %v16270_v44 = vld [vmem:[#allocation92_spill] sm:$0xff]  ;;  %v4089_v36 = vpop.permute.xlu0 %4088  ;;  %v13857_v21 = vpop.f32.mrf.mxu0 }
 0x189   : > { %16257 = vst [vmem:[#allocation27_spill] sm:$0xff] %v13828_v22  ;;  %v13842_v6 = vadd.f32 %v4356_v1, %v16264_v30  ;;  %v13847_v4 = vadd.f32 %v4357_v28, %v16266_v52  ;;  %v13850_v19 = vadd.f32 %v4358_v53, %v16268_v29  ;;  %v9454_v12 = vpack.c.bf16 %v13463_v31, %v13475_v9  ;;  %v13864_v53 = vpop.f32.mrf.mxu1  ;;  %v16277_v22 = vld [vmem:[#allocation101_spill] sm:$0xff] }
 0x18a   : > { %16259 = vst [vmem:[#allocation93_spill] sm:$0xff] %v13833_v7  ;;  %16261 = vst [vmem:[#allocation94_spill] sm:$0xff] %v13836_v27  ;;  %v13853_v16 = vadd.f32 %v4359_v17, %v16270_v44  ;;  %v9614_v1 = vpack.c.bf16 %v13465_v41, %v13477_v51  ;;  %v4232_v33 = vsub.f32 %v4085_v40, %v12467_v63  ;;  %v13870_v29 = vpop.f32.mrf.mxu0  ;;  %v16275_v27 = vld [vmem:[#allocation100_spill] sm:$0xff] }
 0x18b   : > { %16263 = vst [vmem:[#allocation95_spill] sm:$0xff] %v13839_v18  ;;  %16265 = vst [vmem:[#allocation24_spill] sm:$0xff] %v13842_v6  ;;  %v4233_v28 = vsub.f32 %v4085_v40, %v12470_v49  ;;  %v4234_v30 = vsub.f32 %v4085_v40, %v12477_v56  ;;  %v4235_v17 = vsub.f32 %v4085_v40, %v12480_v62 }
 0x18c   : > { %16267 = vst [vmem:[#allocation25_spill] sm:$0xff] %v13847_v4  ;;  %16269 = vst [vmem:[#allocation91_spill] sm:$0xff] %v13850_v19  ;;  %v4236_v52 = vsub.f32 %v4089_v36, %v12467_v63  ;;  %v4237_v31 = vsub.f32 %v4089_v36, %v12470_v49  ;;  %v4238_v9 = vsub.f32 %v4089_v36, %v12477_v56  ;;  %v13873_v19 = vpop.f32.mrf.mxu1  ;;  %v13875_v18 = vpop.f32.mrf.mxu0 }
 0x18d   : > { %16271 = vst [vmem:[#allocation92_spill] sm:$0xff] %v13853_v16  ;;  %16272 = vst [vmem:[#allocation152_spill] sm:$0xff] %v13864_v53  ;;  %v4360_v41 = vmul.f32 %v4232_v33, %v4232_v33  ;;  %v4361_v51 = vmul.f32 %v4233_v28, %v4233_v28  ;;  %v4362_v44 = vmul.f32 %v4234_v30, %v4234_v30  ;;  %v4093_v30 = vpop.permute.xlu1 %4092 }
 0x18e   : > { %10046 = vst [vmem:[#allocation2 + $0x58] sm:$0xff] %v9454_v12   ;;  %10077 = vst [vmem:[#allocation2 + $0x158] sm:$0xff] %v9614_v1   ;;  %v4239_v16 = vsub.f32 %v4089_v36, %v12480_v62  ;;  %v4363_v4 = vmul.f32 %v4235_v17, %v4235_v17  ;;  %v4364_v12 = vmul.f32 %v4236_v52, %v4236_v52  ;;  %v16279_v1 = vld [vmem:[#allocation102_spill] sm:$0xff]  ;;  %v13886_v36 = vpop.f32.mrf.mxu1  ;;  %v16283_v52 = vld [vmem:[#allocation96_spill] sm:$0xff] }
 0x18f   : > { %16273 = vst [vmem:[#allocation153_spill] sm:$0xff] %v13873_v19  ;;  %v4365_v6 = vmul.f32 %v4237_v31, %v4237_v31  ;;  %v4366_v40 = vmul.f32 %v4238_v9, %v4238_v9  ;;  %16274 = vst [vmem:[#allocation154_spill] sm:$0xff] %v13875_v18  ;;  %v13878_v7 = vadd.f32 %v4360_v41, %v16275_v27  ;;  %v16281_v19 = vld [vmem:[#allocation103_spill] sm:$0xff]  ;;  %v16285_v9 = vld [vmem:[#allocation97_spill] sm:$0xff] }
 0x190   : > { %v13881_v53 = vadd.f32 %v4361_v51, %v16277_v22  ;;  %v13884_v33 = vadd.f32 %v4362_v44, %v16279_v1  ;;  %v4367_v28 = vmul.f32 %v4239_v16, %v4239_v16  ;;  %v13889_v17 = vadd.f32 %v4363_v4, %v16281_v19  ;;  %v16287_v27 = vld [vmem:[#allocation98_spill] sm:$0xff]  ;;  %v4097_v22 = vpop.permute.xlu0 %4096  ;;  %v13900_v51 = vpop.f32.mrf.mxu0  ;;  %v16289_v44 = vld [vmem:[#allocation99_spill] sm:$0xff] }
 0x191   : > { %16276 = vst [vmem:[#allocation100_spill] sm:$0xff] %v13878_v7  ;;  %v13892_v31 = vadd.f32 %v4364_v12, %v16283_v52  ;;  %v13895_v18 = vadd.f32 %v4365_v6, %v16285_v9  ;;  %v13898_v41 = vadd.f32 %v4366_v40, %v16287_v27  ;;  %v9459_v1 = vpack.c.bf16 %v13499_v25, %v13524_v46  ;;  %v13910_v12 = vpop.f32.mrf.mxu1  ;;  %v8900_v27 = vld [vmem:[%s15904_s2 + $0x2] ss:$4 sm:$0xf] }
 0x192   : > { %16278 = vst [vmem:[#allocation101_spill] sm:$0xff] %v13881_v53  ;;  %16280 = vst [vmem:[#allocation102_spill] sm:$0xff] %v13884_v33  ;;  %v13903_v16 = vadd.f32 %v4367_v28, %v16289_v44  ;;  %v9619_v4 = vpack.c.bf16 %v13501_v55, %v13526_v8  ;;  %v4240_v19 = vsub.f32 %v4093_v30, %v12467_v63  ;;  %v13916_v28 = vpop.f32.mrf.mxu0  ;;  %v16307_v33 = vld [vmem:[#allocation116_spill] sm:$0xff] }
 0x193   : > { %16282 = vst [vmem:[#allocation103_spill] sm:$0xff] %v13889_v17  ;;  %16284 = vst [vmem:[#allocation96_spill] sm:$0xff] %v13892_v31  ;;  %v4241_v6 = vsub.f32 %v4093_v30, %v12470_v49  ;;  %v4242_v40 = vsub.f32 %v4093_v30, %v12477_v56  ;;  %v4243_v52 = vsub.f32 %v4093_v30, %v12480_v62  ;;  %v13926_v44 = vpop.f32.mrf.mxu1  ;;  %v16310_v7 = vld [vmem:[#allocation112_spill] sm:$0xff] }
 0x194   : > { %16286 = vst [vmem:[#allocation97_spill] sm:$0xff] %v13895_v18  ;;  %16288 = vst [vmem:[#allocation98_spill] sm:$0xff] %v13898_v41  ;;  %v4244_v9 = vsub.f32 %v4097_v22, %v12467_v63  ;;  %v13918_v25 = vmul.f32 %v4240_v19, %v4240_v19  ;;  %v4245_v55 = vsub.f32 %v4097_v22, %v12470_v49  ;;  %v13936_v19 = vpop.f32.mrf.mxu0  ;;  %v16300_v41 = vld [vmem:[#allocation29_spill] sm:$0xff] }
 0x195   : > { %16290 = vst [vmem:[#allocation99_spill] sm:$0xff] %v13903_v16  ;;  %10047 = vst [vmem:[#allocation2 + $0x60] sm:$0xff] %v9459_v1   ;;  %v4246_v46 = vsub.f32 %v4097_v22, %v12477_v56  ;;  %v4247_v8 = vsub.f32 %v4097_v22, %v12480_v62  ;;  %v13928_v30 = vmul.f32 %v4241_v6, %v4241_v6  ;;  %v4508_v16 = vpop.permute.xlu1 %4507  ;;  %v13946_v6 = vpop.f32.mrf.mxu1 }
 0x196   : > { %10078 = vst [vmem:[#allocation2 + $0x160] sm:$0xff] %v9619_v4   ;;  %16291 = vst [vmem:[#allocation155_spill] sm:$0xff] %v13918_v25  ;;  %v13930_v63 = vmul.f32 %v4242_v40, %v4242_v40  ;;  %v13932_v1 = vmul.f32 %v4243_v52, %v4243_v52  ;;  %v13934_v4 = vmul.f32 %v4244_v9, %v4244_v9  ;;  %v16299_v52 = vld [vmem:[#allocation28_spill] sm:$0xff] }
 0x197   : > { %16292 = vst [vmem:[#allocation156_spill] sm:$0xff] %v13928_v30  ;;  %v13938_v49 = vmul.f32 %v4245_v55, %v4245_v55  ;;  %v13940_v56 = vmul.f32 %v4246_v46, %v4246_v46  ;;  %v13942_v62 = vmul.f32 %v4247_v8, %v4247_v8  ;;  %v9464_v22 = vpack.c.bf16 %v13538_v2, %v13556_v15  ;;  %v16301_v55 = vld [vmem:[#allocation30_spill] sm:$0xff]  ;;  %v4512_v8 = vpop.permute.xlu0 %4511  ;;  %v16302_v2 = vld [vmem:[#allocation31_spill] sm:$0xff] }
 0x198   : > { %16293 = vst [vmem:[#allocation157_spill] sm:$0xff] %v13930_v63  ;;  %16294 = vst [vmem:[#allocation158_spill] sm:$0xff] %v13932_v1  ;;  %v9624_v40 = vpack.c.bf16 %v13540_v23, %v13558_v45  ;;  %v13951_v9 = vrot.slane %v8900_v27, %v16299_v52  ;;  %v13954_v18 = vrot.slane %v8900_v27, %v16300_v41  ;;  %v13970_v41 = vpop.f32.mrf.mxu1 }
 0x199   : > { %16295 = vst [vmem:[#allocation159_spill] sm:$0xff] %v13934_v4  ;;  %16296 = vst [vmem:[#allocation160_spill] sm:$0xff] %v13938_v49  ;;  %v13957_v46 = vrot.slane %v8900_v27, %v16301_v55  ;;  %v13962_v15 = vrot.slane %v8900_v27, %v16302_v2  ;;  %v9629_v23 = vpack.c.bf16 %v13587_v20, %v13604_v34  ;;  %v4516_v25 = vpop.permute.xlu1 %4515 }
 0x19a   : > { %16297 = vst [vmem:[#allocation161_spill] sm:$0xff] %v13940_v56  ;;  %16298 = vst [vmem:[#allocation162_spill] sm:$0xff] %v13942_v62  ;;  %v13959_v62 = vpop.f32.mrf.mxu0  ;;  %v9469_v56 = vpack.c.bf16 %v13585_v0, %v13601_v5  ;;  %v9474_v45 = vpack.c.bf16 %v13613_v24, %v13645_v13  ;;  %v4655_v52 = vsub.f32 %v4508_v16, %v13951_v9  ;;  %v13982_v24 = vpop.f32.mrf.mxu1 }
 0x19b   : > { %10048 = vst [vmem:[#allocation2 + $0x68] sm:$0xff] %v9464_v22   ;;  %16303 = vst [vmem:[#allocation28_spill] sm:$0xff] %v13970_v41  ;;  %v4656_v55 = vsub.f32 %v4508_v16, %v13954_v18  ;;  %v4657_v22 = vsub.f32 %v4508_v16, %v13957_v46  ;;  %v4659_v27 = vsub.f32 %v4512_v8, %v13951_v9  ;;  %v16314_v41 = vld [vmem:[#allocation115_spill] sm:$0xff] }
 0x19c   : > { %10079 = vst [vmem:[#allocation2 + $0x168] sm:$0xff] %v9624_v40   ;;  %v13976_v2 = vpop.f32.mrf.mxu0  ;;  %v4658_v0 = vsub.f32 %v4508_v16, %v13962_v15  ;;  %v4660_v20 = vsub.f32 %v4512_v8, %v13954_v18  ;;  %v4661_v5 = vsub.f32 %v4512_v8, %v13957_v46  ;;  %v4662_v34 = vsub.f32 %v4512_v8, %v13962_v15  ;;  %v13986_v17 = vpop.f32.mrf.mxu1 }
 0x19d   : > { %10049 = vst [vmem:[#allocation2 + $0x70] sm:$0xff] %v9469_v56   ;;  %10080 = vst [vmem:[#allocation2 + $0x170] sm:$0xff] %v9629_v23   ;;  %v4783_v13 = vmul.f32 %v4655_v52, %v4655_v52  ;;  %v4784_v40 = vmul.f32 %v4656_v55, %v4656_v55  ;;  %v4785_v49 = vmul.f32 %v4657_v22, %v4657_v22  ;;  %v16308_v56 = vld [vmem:[#allocation117_spill] sm:$0xff]  ;;  %v4524_v55 = vpop.permute.xlu0 %4523 }
 0x19e   : > { %10050 = vst [vmem:[#allocation2 + $0x78] sm:$0xff] %v9474_v45   ;;  %16304 = vst [vmem:[#allocation29_spill] sm:$0xff] %v13982_v24  ;;  %v4787_v31 = vmul.f32 %v4659_v27, %v4659_v27  ;;  %v13984_v4 = vpop.f32.mrf.mxu0  ;;  %v4786_v1 = vmul.f32 %v4658_v0, %v4658_v0  ;;  %v4788_v63 = vmul.f32 %v4660_v20, %v4660_v20  ;;  %v16309_v45 = vld [vmem:[#allocation118_spill] sm:$0xff]  ;;  %v16311_v27 = vld [vmem:[#allocation119_spill] sm:$0xff] }
 0x19f   : > { %16305 = vst [vmem:[#allocation30_spill] sm:$0xff] %v13984_v4  ;;  %v4789_v16 = vmul.f32 %v4661_v5, %v4661_v5  ;;  %v4790_v30 = vmul.f32 %v4662_v34, %v4662_v34  ;;  %16306 = vst [vmem:[#allocation31_spill] sm:$0xff] %v13986_v17  ;;  %v4911_v8 = vadd.f32 %v4783_v13, %v16307_v33  ;;  %v16312_v0 = vld [vmem:[#allocation113_spill] sm:$0xff]  ;;  %v16313_v5 = vld [vmem:[#allocation114_spill] sm:$0xff]  ;;  %v13998_v17 = vpop.f32.mrf.mxu1 }
 0x1a0   : > { %v4912_v23 = vadd.f32 %v4784_v40, %v16308_v56  ;;  %v4913_v53 = vadd.f32 %v4785_v49, %v16309_v45  ;;  %v4915_v52 = vadd.f32 %v4787_v31, %v16310_v7  ;;  %v13992_v22 = vpop.f32.mrf.mxu0  ;;  %v4914_v4 = vadd.f32 %v4786_v1, %v16311_v27 }
 0x1a1   : > { %v4916_v20 = vadd.f32 %v4788_v63, %v16312_v0  ;;  %v4917_v34 = vadd.f32 %v4789_v16, %v16313_v5  ;;  %v4918_v24 = vadd.f32 %v4790_v30, %v16314_v41  ;;  %5039 = vst [vmem:[#allocation3 + $0x2b0] sm:$0xff] %v4911_v8  ;;  %v4663_v33 = vsub.f32 %v4516_v25, %v13951_v9  ;;  %v14010_v13 = vpop.f32.mrf.mxu1  ;;  %v16319_v0 = vld [vmem:[#allocation32_spill] sm:$0xff]  ;;  %v16320_v5 = vld [vmem:[#allocation33_spill] sm:$0xff] }
 0x1a2   : > { %5040 = vst [vmem:[#allocation3 + $0x3b0] sm:$0xff] %v4912_v23  ;;  %5041 = vst [vmem:[#allocation3 + $0xd8] sm:$0xff] %v4913_v53  ;;  %v4664_v7 = vsub.f32 %v4516_v25, %v13954_v18  ;;  %v4665_v31 = vsub.f32 %v4516_v25, %v13957_v46  ;;  %v4666_v1 = vsub.f32 %v4516_v25, %v13962_v15  ;;  %v14004_v49 = vpop.f32.mrf.mxu0 }
 0x1a3   : > { %5043 = vst [vmem:[#allocation3 + $0x50] sm:$0xff] %v4915_v52  ;;  %16315 = vst [vmem:[#allocation116_spill] sm:$0xff] %v14004_v49  ;;  %v4671_v30 = vsub.f32 %v4524_v55, %v13951_v9  ;;  %v4672_v63 = vsub.f32 %v4524_v55, %v13954_v18  ;;  %v4673_v53 = vsub.f32 %v4524_v55, %v13957_v46  ;;  %v4520_v52 = vpop.permute.xlu1 %4519  ;;  %v14014_v27 = vpop.f32.mrf.mxu1 }
 0x1a4   : > { %5042 = vst [vmem:[#allocation3 + $0x18] sm:$0xff] %v4914_v4  ;;  %5044 = vst [vmem:[#allocation3 + $0x368] sm:$0xff] %v4916_v20  ;;  %v4674_v41 = vsub.f32 %v4524_v55, %v13962_v15  ;;  %v4791_v40 = vmul.f32 %v4663_v33, %v4663_v33  ;;  %v4792_v16 = vmul.f32 %v4664_v7, %v4664_v7  ;;  %v14012_v56 = vpop.f32.mrf.mxu0  ;;  %v16321_v55 = vld [vmem:[#allocation34_spill] sm:$0xff]  ;;  %v4532_v7 = vpop.permute.xlu0 %4531 }
 0x1a5   : > { %5045 = vst [vmem:[#allocation3 + $0x330] sm:$0xff] %v4917_v34  ;;  %5046 = vst [vmem:[#allocation3 + $0x48] sm:$0xff] %v4918_v24  ;;  %v4793_v8 = vmul.f32 %v4665_v31, %v4665_v31  ;;  %v4794_v25 = vmul.f32 %v4666_v1, %v4666_v1  ;;  %v4799_v4 = vmul.f32 %v4671_v30, %v4671_v30 }
 0x1a6   : > { %16316 = vst [vmem:[#allocation117_spill] sm:$0xff] %v14010_v13  ;;  %16317 = vst [vmem:[#allocation118_spill] sm:$0xff] %v14012_v56  ;;  %v4800_v23 = vmul.f32 %v4672_v63, %v4672_v63  ;;  %v4801_v45 = vmul.f32 %v4673_v53, %v4673_v53  ;;  %v4802_v24 = vmul.f32 %v4674_v41, %v4674_v41  ;;  %v16322_v13 = vld [vmem:[#allocation35_spill] sm:$0xff]  ;;  %v14020_v31 = vpop.f32.mrf.mxu0  ;;  %v16323_v63 = vld [vmem:[#allocation121_spill] sm:$0xff] }
 0x1a7   : > { %16318 = vst [vmem:[#allocation112_spill] sm:$0xff] %v14014_v27  ;;  %v4919_v20 = vadd.f32 %v4791_v40, %v16319_v0  ;;  %v4920_v34 = vadd.f32 %v4792_v16, %v16320_v5  ;;  %v4921_v49 = vadd.f32 %v4793_v8, %v16321_v55  ;;  %v4922_v33 = vadd.f32 %v4794_v25, %v16322_v13  ;;  %v16324_v41 = vld [vmem:[#allocation122_spill] sm:$0xff]  ;;  %v14026_v27 = vpop.f32.mrf.mxu1 }
 0x1a8   : > { %v4927_v1 = vadd.f32 %v4799_v4, %v13156_v39  ;;  %v4928_v30 = vadd.f32 %v4800_v23, %v13159_v60  ;;  %v4929_v53 = vadd.f32 %v4801_v45, %v16323_v63  ;;  %v4930_v56 = vadd.f32 %v4802_v24, %v16324_v41  ;;  %16325 = vst [vmem:[#allocation119_spill] sm:$0xff] %v14026_v27  ;;  %v14033_v60 = vpop.f32.mrf.mxu0 }
 0x1a9   : > { %5047 = vst [vmem:[#allocation3 + $0x380] sm:$0xff] %v4919_v20  ;;  %5048 = vst [vmem:[#allocation3 + $0x110] sm:$0xff] %v4920_v34  ;;  %v9634_v13 = vpack.c.bf16 %v13628_v35, %v13653_v61  ;;  %v4667_v40 = vsub.f32 %v4520_v52, %v13951_v9  ;;  %v4668_v16 = vsub.f32 %v4520_v52, %v13954_v18  ;;  %v14039_v61 = vpop.f32.mrf.mxu1  ;;  %v4528_v34 = vpop.permute.xlu1 %4527 }
 0x1aa   : > { %5049 = vst [vmem:[#allocation3 + $0x118] sm:$0xff] %v4921_v49  ;;  %5050 = vst [vmem:[#allocation3 + $0x98] sm:$0xff] %v4922_v33  ;;  %v4669_v39 = vsub.f32 %v4520_v52, %v13957_v46  ;;  %v4670_v8 = vsub.f32 %v4520_v52, %v13962_v15  ;;  %v4679_v49 = vsub.f32 %v4532_v7, %v13951_v9  ;;  %v14042_v0 = vpop.f32.mrf.mxu0  ;;  %v16328_v33 = vld [vmem:[#allocation36_spill] sm:$0xff] }
 0x1ab   : > { %5055 = vst [vmem:[#allocation3 + $0x2e0] sm:$0xff] %v4927_v1  ;;  %5056 = vst [vmem:[#allocation3 + $0x388] sm:$0xff] %v4928_v30  ;;  %v4680_v25 = vsub.f32 %v4532_v7, %v13954_v18  ;;  %v4681_v35 = vsub.f32 %v4532_v7, %v13957_v46  ;;  %v4795_v4 = vmul.f32 %v4667_v40, %v4667_v40  ;;  %v14044_v55 = vpop.f32.mrf.mxu1  ;;  %v16329_v30 = vld [vmem:[#allocation120_spill] sm:$0xff]  ;;  %v4540_v40 = vpop.permute.xlu0 %4539 }
 0x1ac   : > { %5057 = vst [vmem:[#allocation3 + $0x338] sm:$0xff] %v4929_v53  ;;  %5058 = vst [vmem:[#allocation3 + $0x340] sm:$0xff] %v4930_v56  ;;  %v4796_v23 = vmul.f32 %v4668_v16, %v4668_v16  ;;  %v4797_v45 = vmul.f32 %v4669_v39, %v4669_v39  ;;  %v4682_v24 = vsub.f32 %v4532_v7, %v13962_v15  ;;  %v16330_v53 = vld [vmem:[#allocation37_spill] sm:$0xff]  ;;  %v14049_v16 = vpop.f32.mrf.mxu0  ;;  %v16331_v7 = vld [vmem:[#allocation38_spill] sm:$0xff] }
 0x1ad   : > { %16326 = vst [vmem:[#allocation113_spill] sm:$0xff] %v14039_v61  ;;  %10081 = vst [vmem:[#allocation2 + $0x178] sm:$0xff] %v9634_v13   ;;  %v4798_v20 = vmul.f32 %v4670_v8, %v4670_v8  ;;  %v4807_v56 = vmul.f32 %v4679_v49, %v4679_v49  ;;  %v4808_v5 = vmul.f32 %v4680_v25, %v4680_v25  ;;  %v16333_v49 = vld [vmem:[#allocation125_spill] sm:$0xff]  ;;  %v14055_v61 = vpop.f32.mrf.mxu1 }
 0x1ae   : > { %16327 = vst [vmem:[#allocation114_spill] sm:$0xff] %v14042_v0  ;;  %v4809_v52 = vmul.f32 %v4681_v35, %v4681_v35  ;;  %v4923_v1 = vadd.f32 %v4795_v4, %v16328_v33  ;;  %v4924_v63 = vadd.f32 %v4796_v23, %v16329_v30  ;;  %v4925_v41 = vadd.f32 %v4797_v45, %v16330_v53  ;;  %v16332_v0 = vld [vmem:[#allocation124_spill] sm:$0xff]  ;;  %v16334_v35 = vld [vmem:[#allocation126_spill] sm:$0xff] }
 0x1af   : > { %v4810_v13 = vmul.f32 %v4682_v24, %v4682_v24  ;;  %v4926_v39 = vadd.f32 %v4798_v20, %v16331_v7  ;;  %v4935_v8 = vadd.f32 %v4807_v56, %v16332_v0  ;;  %v4936_v25 = vadd.f32 %v4808_v5, %v16333_v49  ;;  %v16335_v4 = vld [vmem:[#allocation46_spill] sm:$0xff]  ;;  %v14063_v0 = vpop.f32.mrf.mxu0  ;;  %v16338_v7 = vld [vmem:[#allocation39_spill] sm:$0xff] }
 0x1b0   : > { %v4937_v27 = vadd.f32 %v4809_v52, %v16334_v35  ;;  %5051 = vst [vmem:[#allocation3 + $0x320] sm:$0xff] %v4923_v1  ;;  %5052 = vst [vmem:[#allocation3 + $0x150] sm:$0xff] %v4924_v63  ;;  %v9479_v45 = vpack.c.bf16 %v13663_v26, %v13673_v32  ;;  %v9639_v24 = vpack.c.bf16 %v13667_v58, %v13685_v11  ;;  %v14069_v26 = vpop.f32.mrf.mxu1 }
 0x1b1   : > { %5053 = vst [vmem:[#allocation3 + $0x108] sm:$0xff] %v4925_v41  ;;  %v4938_v23 = vadd.f32 %v4810_v13, %v16335_v4  ;;  %v4675_v20 = vsub.f32 %v4528_v34, %v13951_v9  ;;  %5054 = vst [vmem:[#allocation3 + $0x60] sm:$0xff] %v4926_v39  ;;  %v4676_v56 = vsub.f32 %v4528_v34, %v13954_v18  ;;  %v14074_v1 = vpop.f32.mrf.mxu0  ;;  %v4536_v41 = vpop.permute.xlu1 %4535  ;;  %v16339_v4 = vld [vmem:[#allocation123_spill] sm:$0xff] }
 0x1b2   : > { %5063 = vst [vmem:[#allocation3 + $0x3e8] sm:$0xff] %v4935_v8  ;;  %5064 = vst [vmem:[#allocation3 + $0x2f8] sm:$0xff] %v4936_v25  ;;  %v4677_v5 = vsub.f32 %v4528_v34, %v13957_v46  ;;  %v4678_v52 = vsub.f32 %v4528_v34, %v13962_v15  ;;  %v4687_v33 = vsub.f32 %v4540_v40, %v13951_v9  ;;  %v14076_v13 = vpop.f32.mrf.mxu1 }
 0x1b3   : > { %5065 = vst [vmem:[#allocation3 + $0x290] sm:$0xff] %v4937_v27  ;;  %16336 = vst [vmem:[#allocation115_spill] sm:$0xff] %v14069_v26  ;;  %v4803_v58 = vmul.f32 %v4675_v20, %v4675_v20  ;;  %v4688_v32 = vsub.f32 %v4540_v40, %v13954_v18  ;;  %v4689_v11 = vsub.f32 %v4540_v40, %v13957_v46  ;;  %v14079_v35 = vpop.f32.mrf.mxu0  ;;  %v16344_v26 = vld [vmem:[#allocation128_spill] sm:$0xff] }
 0x1b4   : > { %5066 = vst [vmem:[#allocation3 + $0x28] sm:$0xff] %v4938_v23  ;;  %10051 = vst [vmem:[#allocation2 + $0x80] sm:$0xff] %v9479_v45   ;;  %v4690_v27 = vsub.f32 %v4540_v40, %v13962_v15  ;;  %v4804_v30 = vmul.f32 %v4676_v56, %v4676_v56  ;;  %v4805_v63 = vmul.f32 %v4677_v5, %v4677_v5  ;;  %v16340_v45 = vld [vmem:[#allocation40_spill] sm:$0xff]  ;;  %v16342_v56 = vld [vmem:[#allocation127_spill] sm:$0xff] }
 0x1b5   : > { %10082 = vst [vmem:[#allocation2 + $0x180] sm:$0xff] %v9639_v24   ;;  %v4806_v53 = vmul.f32 %v4678_v52, %v4678_v52  ;;  %v4815_v34 = vmul.f32 %v4687_v33, %v4687_v33  ;;  %16337 = vst [vmem:[#allocation32_spill] sm:$0xff] %v14076_v13  ;;  %v4931_v39 = vadd.f32 %v4803_v58, %v16338_v7  ;;  %v16341_v24 = vld [vmem:[#allocation41_spill] sm:$0xff]  ;;  %v4548_v52 = vpop.permute.xlu0 %4547  ;;  %v14085_v33 = vpop.f32.mrf.mxu1 }
 0x1b6   : > { %v4816_v8 = vmul.f32 %v4688_v32, %v4688_v32  ;;  %v4817_v49 = vmul.f32 %v4689_v11, %v4689_v11  ;;  %v4818_v25 = vmul.f32 %v4690_v27, %v4690_v27  ;;  %v4932_v23 = vadd.f32 %v4804_v30, %v16339_v4  ;;  %16343 = vst [vmem:[#allocation33_spill] sm:$0xff] %v14085_v33  ;;  %v16345_v58 = vld [vmem:[#allocation129_spill] sm:$0xff]  ;;  %v16346_v11 = vld [vmem:[#allocation51_spill] sm:$0xff]  ;;  %v14092_v30 = vpop.f32.mrf.mxu0  ;;  %v16354_v33 = vld [vmem:[#allocation130_spill] sm:$0xff] }
 0x1b7   : > { %v4933_v40 = vadd.f32 %v4805_v63, %v16340_v45  ;;  %v4934_v20 = vadd.f32 %v4806_v53, %v16341_v24  ;;  %v4943_v5 = vadd.f32 %v4815_v34, %v16342_v56  ;;  %5059 = vst [vmem:[#allocation3 + $0x80] sm:$0xff] %v4931_v39  ;;  %v9484_v7 = vpack.c.bf16 %v13703_v42, %v13720_v48  ;;  %v16347_v63 = vld [vmem:[#allocation145_spill] sm:$0xff] }
 0x1b8   : > { %v4944_v13 = vadd.f32 %v4816_v8, %v16344_v26  ;;  %v4945_v32 = vadd.f32 %v4817_v49, %v16345_v58  ;;  %v4946_v27 = vadd.f32 %v4818_v25, %v16346_v11  ;;  %5060 = vst [vmem:[#allocation3 + $0x1a8] sm:$0xff] %v4932_v23  ;;  %v9644_v53 = vpack.c.bf16 %v16347_v63, %v13725_v37  ;;  %v14099_v8 = vpop.f32.mrf.mxu1  ;;  %v14106_v24 = vpop.f32.mrf.mxu0  ;;  %v16350_v58 = vld [vmem:[#allocation42_spill] sm:$0xff]  ;;  %v16351_v11 = vld [vmem:[#allocation43_spill] sm:$0xff] }
 0x1b9   : > { %5061 = vst [vmem:[#allocation3 + $0x1b8] sm:$0xff] %v4933_v40  ;;  %5062 = vst [vmem:[#allocation3 + $0x168] sm:$0xff] %v4934_v20  ;;  %v4683_v34 = vsub.f32 %v4536_v41, %v13951_v9  ;;  %v4684_v26 = vsub.f32 %v4536_v41, %v13954_v18  ;;  %v4685_v39 = vsub.f32 %v4536_v41, %v13957_v46  ;;  %v4544_v40 = vpop.permute.xlu1 %4543 }
 0x1ba   : > { %5071 = vst [vmem:[#allocation3 + $0x100] sm:$0xff] %v4943_v5  ;;  %16348 = vst [vmem:[#allocation34_spill] sm:$0xff] %v14099_v8  ;;  %v4686_v42 = vsub.f32 %v4536_v41, %v13962_v15  ;;  %v4695_v48 = vsub.f32 %v4548_v52, %v13951_v9  ;;  %v4696_v49 = vsub.f32 %v4548_v52, %v13954_v18  ;;  %v14108_v41 = vpop.f32.mrf.mxu1 }
 0x1bb   : > { %5072 = vst [vmem:[#allocation3 + $0x3c0] sm:$0xff] %v4944_v13  ;;  %5073 = vst [vmem:[#allocation3 + $0x158] sm:$0xff] %v4945_v32  ;;  %v4697_v37 = vsub.f32 %v4548_v52, %v13957_v46  ;;  %v4811_v25 = vmul.f32 %v4683_v34, %v4683_v34  ;;  %v4812_v4 = vmul.f32 %v4684_v26, %v4684_v26  ;;  %v4556_v34 = vpop.permute.xlu0 %4555  ;;  %v14113_v26 = vpop.f32.mrf.mxu0 }
 0x1bc   : > { %5074 = vst [vmem:[#allocation3 + $0x3e0] sm:$0xff] %v4946_v27  ;;  %10052 = vst [vmem:[#allocation2 + $0x88] sm:$0xff] %v9484_v7   ;;  %v4813_v23 = vmul.f32 %v4685_v39, %v4685_v39  ;;  %v4698_v45 = vsub.f32 %v4548_v52, %v13962_v15  ;;  %v4814_v13 = vmul.f32 %v4686_v42, %v4686_v42  ;;  %v16352_v7 = vld [vmem:[#allocation44_spill] sm:$0xff]  ;;  %v16353_v52 = vld [vmem:[#allocation45_spill] sm:$0xff]  ;;  %v14119_v8 = vpop.f32.mrf.mxu1 }
 0x1bd   : > { %10083 = vst [vmem:[#allocation2 + $0x188] sm:$0xff] %v9644_v53   ;;  %16349 = vst [vmem:[#allocation35_spill] sm:$0xff] %v14106_v24  ;;  %v4823_v20 = vmul.f32 %v4695_v48, %v4695_v48  ;;  %v4824_v56 = vmul.f32 %v4696_v49, %v4696_v49  ;;  %v4825_v5 = vmul.f32 %v4697_v37, %v4697_v37  ;;  %v16355_v42 = vld [vmem:[#allocation131_spill] sm:$0xff]  ;;  %v16356_v49 = vld [vmem:[#allocation56_spill] sm:$0xff] }
 0x1be   : > { %v4939_v32 = vadd.f32 %v4811_v25, %v16350_v58  ;;  %v4940_v27 = vadd.f32 %v4812_v4, %v16351_v11  ;;  %v4941_v63 = vadd.f32 %v4813_v23, %v16352_v7  ;;  %v4826_v53 = vmul.f32 %v4698_v45, %v4698_v45  ;;  %v16357_v25 = vld [vmem:[#allocation57_spill] sm:$0xff]  ;;  %v16358_v23 = vld [vmem:[#allocation146_spill] sm:$0xff] }
 0x1bf   : > { %v4942_v39 = vadd.f32 %v4814_v13, %v16353_v52  ;;  %v4951_v24 = vadd.f32 %v4823_v20, %v16354_v33  ;;  %v4952_v48 = vadd.f32 %v4824_v56, %v16355_v42  ;;  %v4953_v37 = vadd.f32 %v4825_v5, %v16356_v49  ;;  %v16362_v42 = vld [vmem:[#allocation47_spill] sm:$0xff] }
 0x1c0   : > { %5067 = vst [vmem:[#allocation3 + $0x138] sm:$0xff] %v4939_v32  ;;  %5068 = vst [vmem:[#allocation3 + $0xc0] sm:$0xff] %v4940_v27  ;;  %v4954_v4 = vadd.f32 %v4826_v53, %v16357_v25  ;;  %v9489_v45 = vpack.c.bf16 %v16358_v23, %v13746_v3  ;;  %v9649_v58 = vpack.c.bf16 %v13732_v59, %v13759_v38  ;;  %v14131_v32 = vpop.f32.mrf.mxu0  ;;  %v14133_v3 = vpop.f32.mrf.mxu1  ;;  %v16363_v23 = vld [vmem:[#allocation48_spill] sm:$0xff] }
 0x1c1   : > { %5069 = vst [vmem:[#allocation3 + $0x1c0] sm:$0xff] %v4941_v63  ;;  %v4691_v13 = vsub.f32 %v4544_v40, %v13951_v9  ;;  %5070 = vst [vmem:[#allocation3 + $0x280] sm:$0xff] %v4942_v39  ;;  %v4692_v33 = vsub.f32 %v4544_v40, %v13954_v18  ;;  %v4693_v20 = vsub.f32 %v4544_v40, %v13957_v46  ;;  %v4552_v27 = vpop.permute.xlu1 %4551 }
 0x1c2   : > { %5079 = vst [vmem:[#allocation3 + $0x2a0] sm:$0xff] %v4951_v24  ;;  %5080 = vst [vmem:[#allocation3 + $0x3f0] sm:$0xff] %v4952_v48  ;;  %v4694_v56 = vsub.f32 %v4544_v40, %v13962_v15  ;;  %v4703_v5 = vsub.f32 %v4556_v34, %v13951_v9  ;;  %v4704_v38 = vsub.f32 %v4556_v34, %v13954_v18  ;;  %v14138_v52 = vpop.f32.mrf.mxu0  ;;  %v14140_v39 = vpop.f32.mrf.mxu1 }
 0x1c3   : > { %5081 = vst [vmem:[#allocation3 + $0xa0] sm:$0xff] %v4953_v37  ;;  %16359 = vst [vmem:[#allocation121_spill] sm:$0xff] %v14131_v32  ;;  %v4819_v59 = vmul.f32 %v4691_v13, %v4691_v13  ;;  %v4705_v24 = vsub.f32 %v4556_v34, %v13957_v46  ;;  %v4706_v11 = vsub.f32 %v4556_v34, %v13962_v15  ;;  %v16365_v34 = vld [vmem:[#allocation50_spill] sm:$0xff] }
 0x1c4   : > { %16360 = vst [vmem:[#allocation122_spill] sm:$0xff] %v14133_v3  ;;  %5082 = vst [vmem:[#allocation3 + $0x2c0] sm:$0xff] %v4954_v4  ;;  %v4820_v7 = vmul.f32 %v4692_v33, %v4692_v33  ;;  %v4821_v63 = vmul.f32 %v4693_v20, %v4693_v20  ;;  %v4822_v40 = vmul.f32 %v4694_v56, %v4694_v56  ;;  %v4564_v4 = vpop.permute.xlu0 %4563  ;;  %v16366_v33 = vld [vmem:[#allocation132_spill] sm:$0xff]  ;;  %v14147_v56 = vpop.f32.mrf.mxu0 }
 0x1c5   : > { %10053 = vst [vmem:[#allocation2 + $0x90] sm:$0xff] %v9489_v45   ;;  %10084 = vst [vmem:[#allocation2 + $0x190] sm:$0xff] %v9649_v58   ;;  %v4831_v53 = vmul.f32 %v4703_v5, %v4703_v5  ;;  %v4947_v48 = vadd.f32 %v4819_v59, %v16362_v42  ;;  %v4832_v49 = vmul.f32 %v4704_v38, %v4704_v38  ;;  %v16364_v58 = vld [vmem:[#allocation49_spill] sm:$0xff]  ;;  %v14149_v5 = vpop.f32.mrf.mxu1  ;;  %v16369_v59 = vld [vmem:[#allocation134_spill] sm:$0xff] }
 0x1c6   : > { %16361 = vst [vmem:[#allocation36_spill] sm:$0xff] %v14140_v39  ;;  %v4833_v37 = vmul.f32 %v4705_v24, %v4705_v24  ;;  %v4834_v25 = vmul.f32 %v4706_v11, %v4706_v11  ;;  %v4948_v45 = vadd.f32 %v4820_v7, %v16363_v23  ;;  %v4949_v13 = vadd.f32 %v4821_v63, %v16364_v58  ;;  %v16368_v39 = vld [vmem:[#allocation133_spill] sm:$0xff]  ;;  %v16370_v24 = vld [vmem:[#allocation135_spill] sm:$0xff]  ;;  %v16372_v63 = vld [vmem:[#allocation148_spill] sm:$0xff]  ;;  %v4560_v23 = vpop.permute.xlu1 %4559 }
 0x1c7   : > { %v4950_v3 = vadd.f32 %v4822_v40, %v16365_v34  ;;  %v4959_v20 = vadd.f32 %v4831_v53, %v16366_v33  ;;  %16367 = vst [vmem:[#allocation120_spill] sm:$0xff] %v14149_v5  ;;  %5075 = vst [vmem:[#allocation3 + $0x218] sm:$0xff] %v4947_v48  ;;  %v4960_v32 = vadd.f32 %v4832_v49, %v16368_v39  ;;  %v16371_v42 = vld [vmem:[#allocation147_spill] sm:$0xff]  ;;  %v14161_v49 = vpop.f32.mrf.mxu0  ;;  %v16378_v5 = vld [vmem:[#allocation54_spill] sm:$0xff] }
 0x1c8   : > { %v4961_v38 = vadd.f32 %v4833_v37, %v16369_v59  ;;  %v4962_v11 = vadd.f32 %v4834_v25, %v16370_v24  ;;  %v9494_v7 = vpack.c.bf16 %v16371_v42, %v13775_v47  ;;  %5076 = vst [vmem:[#allocation3 + $0x3f8] sm:$0xff] %v4948_v45  ;;  %5077 = vst [vmem:[#allocation3 + $0x8] sm:$0xff] %v4949_v13  ;;  %v14163_v37 = vpop.f32.mrf.mxu1  ;;  %v4572_v24 = vpop.permute.xlu0 %4571 }
 0x1c9   : > { %5078 = vst [vmem:[#allocation3 + $0x128] sm:$0xff] %v4950_v3  ;;  %5087 = vst [vmem:[#allocation3 + $0x230] sm:$0xff] %v4959_v20  ;;  %v9654_v40 = vpack.c.bf16 %v16372_v63, %v13777_v54  ;;  %v4699_v53 = vsub.f32 %v4552_v27, %v13951_v9  ;;  %v4700_v48 = vsub.f32 %v4552_v27, %v13954_v18  ;;  %v14170_v33 = vpop.f32.mrf.mxu0 }
 0x1ca   : > { %v4701_v39 = vsub.f32 %v4552_v27, %v13957_v46  ;;  %16373 = vst [vmem:[#allocation37_spill] sm:$0xff] %v14163_v37  ;;  %5088 = vst [vmem:[#allocation3 + $0x240] sm:$0xff] %v4960_v32  ;;  %v4702_v47 = vsub.f32 %v4552_v27, %v13962_v15  ;;  %v4711_v3 = vsub.f32 %v4564_v4, %v13951_v9  ;;  %v14172_v32 = vpop.f32.mrf.mxu1  ;;  %v16381_v37 = vld [vmem:[#allocation137_spill] sm:$0xff] }
 0x1cb   : > { %5089 = vst [vmem:[#allocation3 + $0x90] sm:$0xff] %v4961_v38  ;;  %5090 = vst [vmem:[#allocation3 + $0x3a0] sm:$0xff] %v4962_v11  ;;  %v4712_v54 = vsub.f32 %v4564_v4, %v13954_v18  ;;  %v4713_v25 = vsub.f32 %v4564_v4, %v13957_v46  ;;  %v4827_v45 = vmul.f32 %v4699_v53, %v4699_v53  ;;  %v16376_v11 = vld [vmem:[#allocation52_spill] sm:$0xff] }
 0x1cc   : > { %10054 = vst [vmem:[#allocation2 + $0x98] sm:$0xff] %v9494_v7   ;;  %10085 = vst [vmem:[#allocation2 + $0x198] sm:$0xff] %v9654_v40   ;;  %v4828_v58 = vmul.f32 %v4700_v48, %v4700_v48  ;;  %v4829_v13 = vmul.f32 %v4701_v39, %v4701_v39  ;;  %v4714_v34 = vsub.f32 %v4564_v4, %v13962_v15  ;;  %v16377_v7 = vld [vmem:[#allocation53_spill] sm:$0xff]  ;;  %v14177_v48 = vpop.f32.mrf.mxu0  ;;  %v14179_v39 = vpop.f32.mrf.mxu1  ;;  %v16380_v4 = vld [vmem:[#allocation55_spill] sm:$0xff] }
 0x1cd   : > { %16374 = vst [vmem:[#allocation38_spill] sm:$0xff] %v14170_v33  ;;  %16375 = vst [vmem:[#allocation124_spill] sm:$0xff] %v14172_v32  ;;  %v4830_v20 = vmul.f32 %v4702_v47, %v4702_v47  ;;  %v4839_v59 = vmul.f32 %v4711_v3, %v4711_v3  ;;  %v4840_v27 = vmul.f32 %v4712_v54, %v4712_v54  ;;  %v16382_v47 = vld [vmem:[#allocation138_spill] sm:$0xff]  ;;  %v16383_v54 = vld [vmem:[#allocation139_spill] sm:$0xff] }
 0x1ce   : > { %v4841_v38 = vmul.f32 %v4713_v25, %v4713_v25  ;;  %v4955_v42 = vadd.f32 %v4827_v45, %v16376_v11  ;;  %v4956_v63 = vadd.f32 %v4828_v58, %v16377_v7  ;;  %v4957_v40 = vadd.f32 %v4829_v13, %v16378_v5  ;;  %16379 = vst [vmem:[#allocation125_spill] sm:$0xff] %v14179_v39  ;;  %v16384_v45 = vld [vmem:[#allocation140_spill] sm:$0xff]  ;;  %v16385_v13 = vld [vmem:[#allocation150_spill] sm:$0xff] }
 0x1cf   : > { %v4842_v53 = vmul.f32 %v4714_v34, %v4714_v34  ;;  %v4958_v33 = vadd.f32 %v4830_v20, %v16380_v4  ;;  %v4967_v32 = vadd.f32 %v4839_v59, %v16381_v37  ;;  %v4968_v3 = vadd.f32 %v4840_v27, %v16382_v47  ;;  %v16386_v34 = vld [vmem:[#allocation149_spill] sm:$0xff] }
 0x1d0   : > { %v4969_v25 = vadd.f32 %v4841_v38, %v16383_v54  ;;  %5083 = vst [vmem:[#allocation3 + $0xb0] sm:$0xff] %v4955_v42  ;;  %5084 = vst [vmem:[#allocation3 + $0x1e0] sm:$0xff] %v4956_v63  ;;  %v9499_v5 = vpack.c.bf16 %v13788_v10, %v13812_v43  ;;  %v9659_v11 = vpack.c.bf16 %v16386_v34, %v16385_v13  ;;  %v14195_v38 = vpop.f32.mrf.mxu0  ;;  %v14197_v10 = vpop.f32.mrf.mxu1  ;;  %v16391_v54 = vld [vmem:[#allocation136_spill] sm:$0xff]  ;;  %v16392_v13 = vld [vmem:[#allocation58_spill] sm:$0xff] }
 0x1d1   : > { %5085 = vst [vmem:[#allocation3 + $0x1f0] sm:$0xff] %v4957_v40  ;;  %v4970_v58 = vadd.f32 %v4842_v53, %v16384_v45  ;;  %v4707_v7 = vsub.f32 %v4560_v23, %v13951_v9  ;;  %5086 = vst [vmem:[#allocation3 + $0x10] sm:$0xff] %v4958_v33  ;;  %v4708_v37 = vsub.f32 %v4560_v23, %v13954_v18  ;;  %v4568_v63 = vpop.permute.xlu1 %4567 }
 0x1d2   : > { %5095 = vst [vmem:[#allocation3 + $0x358] sm:$0xff] %v4967_v32  ;;  %5096 = vst [vmem:[#allocation3 + $0x268] sm:$0xff] %v4968_v3  ;;  %v4709_v20 = vsub.f32 %v4560_v23, %v13957_v46  ;;  %v4710_v59 = vsub.f32 %v4560_v23, %v13962_v15  ;;  %v4719_v27 = vsub.f32 %v4572_v24, %v13951_v9  ;;  %v14202_v47 = vpop.f32.mrf.mxu0  ;;  %v14204_v3 = vpop.f32.mrf.mxu1 }
 0x1d3   : > { %5097 = vst [vmem:[#allocation3 + $0x350] sm:$0xff] %v4969_v25  ;;  %16387 = vst [vmem:[#allocation126_spill] sm:$0xff] %v14195_v38  ;;  %v4835_v43 = vmul.f32 %v4707_v7, %v4707_v7  ;;  %v4720_v33 = vsub.f32 %v4572_v24, %v13954_v18  ;;  %v4721_v32 = vsub.f32 %v4572_v24, %v13957_v46  ;;  %v16395_v38 = vld [vmem:[#allocation142_spill] sm:$0xff] }
 0x1d4   : > { %16388 = vst [vmem:[#allocation46_spill] sm:$0xff] %v14197_v10  ;;  %5098 = vst [vmem:[#allocation3 + $0x188] sm:$0xff] %v4970_v58  ;;  %v4722_v42 = vsub.f32 %v4572_v24, %v13962_v15  ;;  %v4836_v40 = vmul.f32 %v4708_v37, %v4708_v37  ;;  %v4837_v53 = vmul.f32 %v4709_v20, %v4709_v20  ;;  %v16394_v10 = vld [vmem:[#allocation60_spill] sm:$0xff]  ;;  %v4580_v20 = vpop.permute.xlu0 %4579 }
 0x1d5   : > { %10055 = vst [vmem:[#allocation2 + $0xa0] sm:$0xff] %v9499_v5   ;;  %10086 = vst [vmem:[#allocation2 + $0x1a0] sm:$0xff] %v9659_v11   ;;  %v4838_v23 = vmul.f32 %v4710_v59, %v4710_v59  ;;  %v4847_v4 = vmul.f32 %v4719_v27, %v4719_v27  ;;  %v4963_v25 = vadd.f32 %v4835_v43, %v16391_v54  ;;  %v16393_v11 = vld [vmem:[#allocation59_spill] sm:$0xff]  ;;  %v14211_v59 = vpop.f32.mrf.mxu0  ;;  %v16398_v43 = vld [vmem:[#allocation68_spill] sm:$0xff] }
 0x1d6   : > { %16389 = vst [vmem:[#allocation39_spill] sm:$0xff] %v14202_v47  ;;  %16390 = vst [vmem:[#allocation123_spill] sm:$0xff] %v14204_v3  ;;  %v4848_v45 = vmul.f32 %v4720_v33, %v4720_v33  ;;  %v4849_v58 = vmul.f32 %v4721_v32, %v4721_v32  ;;  %v4850_v5 = vmul.f32 %v4722_v42, %v4722_v42  ;;  %v16396_v27 = vld [vmem:[#allocation143_spill] sm:$0xff]  ;;  %v16397_v3 = vld [vmem:[#allocation144_spill] sm:$0xff]  ;;  %v14218_v42 = vpop.f32.mrf.mxu1 }
 0x1d7   : > { %v4964_v34 = vadd.f32 %v4836_v40, %v16392_v13  ;;  %v4965_v7 = vadd.f32 %v4837_v53, %v16393_v11  ;;  %v4966_v24 = vadd.f32 %v4838_v23, %v16394_v10  ;;  %v4975_v37 = vadd.f32 %v4847_v4, %v16395_v38  ;;  %5091 = vst [vmem:[#allocation3 + $0x208] sm:$0xff] %v4963_v25  ;;  %v16400_v38 = vld [vmem:[#allocation151_spill] sm:$0xff]  ;;  %v14225_v4 = vpop.f32.mrf.mxu0 }
 0x1d8   : > { %v4976_v47 = vadd.f32 %v4848_v45, %v16396_v27  ;;  %v4977_v39 = vadd.f32 %v4849_v58, %v16397_v3  ;;  %v4978_v33 = vadd.f32 %v4850_v5, %v16398_v43  ;;  %v9504_v32 = vpack.c.bf16 %v13823_v57, %v13830_v14  ;;  %16399 = vst [vmem:[#allocation40_spill] sm:$0xff] %v14218_v42  ;;  %v14231_v54 = vpop.f32.mrf.mxu1  ;;  %v16404_v27 = vld [vmem:[#allocation61_spill] sm:$0xff] }
 0x1d9   : > { %5092 = vst [vmem:[#allocation3 + $0xd0] sm:$0xff] %v4964_v34  ;;  %5093 = vst [vmem:[#allocation3 + $0x88] sm:$0xff] %v4965_v7  ;;  %v9664_v10 = vpack.c.bf16 %v16400_v38, %v13844_v50  ;;  %v4715_v40 = vsub.f32 %v4568_v63, %v13951_v9  ;;  %v4716_v53 = vsub.f32 %v4568_v63, %v13954_v18 }
 0x1da   : > { %5094 = vst [vmem:[#allocation3 + $0x2f0] sm:$0xff] %v4966_v24  ;;  %5103 = vst [vmem:[#allocation3 + $0x130] sm:$0xff] %v4975_v37  ;;  %v4717_v23 = vsub.f32 %v4568_v63, %v13957_v46  ;;  %v4718_v14 = vsub.f32 %v4568_v63, %v13962_v15  ;;  %v4727_v57 = vsub.f32 %v4580_v20, %v13951_v9  ;;  %v14234_v63 = vpop.f32.mrf.mxu0  ;;  %v14236_v7 = vpop.f32.mrf.mxu1  ;;  %v16403_v24 = vld [vmem:[#allocation141_spill] sm:$0xff] }
 0x1db   : > { %5104 = vst [vmem:[#allocation3 + $0x200] sm:$0xff] %v4976_v47  ;;  %5105 = vst [vmem:[#allocation3 + $0x318] sm:$0xff] %v4977_v39  ;;  %v4728_v3 = vsub.f32 %v4580_v20, %v13954_v18  ;;  %v4729_v50 = vsub.f32 %v4580_v20, %v13957_v46  ;;  %v4843_v25 = vmul.f32 %v4715_v40, %v4715_v40  ;;  %v4576_v47 = vpop.permute.xlu1 %4575  ;;  %v16406_v40 = vld [vmem:[#allocation63_spill] sm:$0xff] }
 0x1dc   : > { %5106 = vst [vmem:[#allocation3 + $0x220] sm:$0xff] %v4978_v33  ;;  %10056 = vst [vmem:[#allocation2 + $0xa8] sm:$0xff] %v9504_v32   ;;  %v4844_v45 = vmul.f32 %v4716_v53, %v4716_v53  ;;  %v4845_v58 = vmul.f32 %v4717_v23, %v4717_v23  ;;  %v4730_v5 = vsub.f32 %v4580_v20, %v13962_v15  ;;  %v16405_v33 = vld [vmem:[#allocation62_spill] sm:$0xff]  ;;  %v16407_v20 = vld [vmem:[#allocation73_spill] sm:$0xff]  ;;  %v14245_v42 = vpop.f32.mrf.mxu0 }
 0x1dd   : > { %10087 = vst [vmem:[#allocation2 + $0x1a8] sm:$0xff] %v9664_v10   ;;  %v4846_v39 = vmul.f32 %v4718_v14, %v4718_v14  ;;  %v4855_v13 = vmul.f32 %v4727_v57, %v4727_v57  ;;  %v4856_v34 = vmul.f32 %v4728_v3, %v4728_v3  ;;  %v4857_v11 = vmul.f32 %v4729_v50, %v4729_v50  ;;  %v4588_v10 = vpop.permute.xlu0 %4587  ;;  %v16408_v14 = vld [vmem:[#allocation74_spill] sm:$0xff]  ;;  %v16409_v3 = vld [vmem:[#allocation75_spill] sm:$0xff] }
 0x1de   : > { %16401 = vst [vmem:[#allocation41_spill] sm:$0xff] %v14234_v63  ;;  %16402 = vst [vmem:[#allocation127_spill] sm:$0xff] %v14236_v7  ;;  %v4971_v37 = vadd.f32 %v4843_v25, %v16403_v24  ;;  %v4972_v43 = vadd.f32 %v4844_v45, %v16404_v27  ;;  %v4973_v32 = vadd.f32 %v4845_v58, %v16405_v33  ;;  %v14247_v63 = vpop.f32.mrf.mxu1  ;;  %v16410_v25 = vld [vmem:[#allocation76_spill] sm:$0xff] }
 0x1df   : > { %v4858_v38 = vmul.f32 %v4730_v5, %v4730_v5  ;;  %v4974_v53 = vadd.f32 %v4846_v39, %v16406_v40  ;;  %v4983_v23 = vadd.f32 %v4855_v13, %v16407_v20  ;;  %v4984_v57 = vadd.f32 %v4856_v34, %v16408_v14  ;;  %v16411_v5 = vld [vmem:[#allocation153_spill] sm:$0xff]  ;;  %v16412_v39 = vld [vmem:[#allocation152_spill] sm:$0xff]  ;;  %v4584_v40 = vpop.permute.xlu1 %4583 }
 0x1e0   : > { %v4985_v50 = vadd.f32 %v4857_v11, %v16409_v3  ;;  %5099 = vst [vmem:[#allocation3 + $0x1d8] sm:$0xff] %v4971_v37  ;;  %5100 = vst [vmem:[#allocation3 + $0x30] sm:$0xff] %v4972_v43  ;;  %v9509_v58 = vpack.c.bf16 %v13857_v21, %v13870_v29  ;;  %v9669_v24 = vpack.c.bf16 %v16412_v39, %v16411_v5  ;;  %v14259_v43 = vpop.f32.mrf.mxu0  ;;  %v14261_v21 = vpop.f32.mrf.mxu1  ;;  %v16417_v3 = vld [vmem:[#allocation64_spill] sm:$0xff]  ;;  %v16418_v5 = vld [vmem:[#allocation65_spill] sm:$0xff] }
 0x1e1   : > { %5101 = vst [vmem:[#allocation3 + $0x140] sm:$0xff] %v4973_v32  ;;  %v4986_v45 = vadd.f32 %v4858_v38, %v16410_v25  ;;  %v4723_v13 = vsub.f32 %v4576_v47, %v13951_v9  ;;  %5102 = vst [vmem:[#allocation3 + $0x2a8] sm:$0xff] %v4974_v53  ;;  %v4724_v34 = vsub.f32 %v4576_v47, %v13954_v18 }
 0x1e2   : > { %5111 = vst [vmem:[#allocation3 + $0x328] sm:$0xff] %v4983_v23  ;;  %5112 = vst [vmem:[#allocation3 + $0x260] sm:$0xff] %v4984_v57  ;;  %v4725_v11 = vsub.f32 %v4576_v47, %v13957_v46  ;;  %v4726_v37 = vsub.f32 %v4576_v47, %v13962_v15  ;;  %v4735_v27 = vsub.f32 %v4588_v10, %v13951_v9  ;;  %v14266_v14 = vpop.f32.mrf.mxu0  ;;  %v14268_v57 = vpop.f32.mrf.mxu1 }
 0x1e3   : > { %5113 = vst [vmem:[#allocation3 + $0x3b8] sm:$0xff] %v4985_v50  ;;  %16413 = vst [vmem:[#allocation128_spill] sm:$0xff] %v14259_v43  ;;  %v4851_v29 = vmul.f32 %v4723_v13, %v4723_v13  ;;  %v4736_v33 = vsub.f32 %v4588_v10, %v13954_v18  ;;  %v4737_v32 = vsub.f32 %v4588_v10, %v13957_v46  ;;  %v16421_v43 = vld [vmem:[#allocation80_spill] sm:$0xff] }
 0x1e4   : > { %16414 = vst [vmem:[#allocation129_spill] sm:$0xff] %v14261_v21  ;;  %5114 = vst [vmem:[#allocation3 + $0x2b8] sm:$0xff] %v4986_v45  ;;  %v4738_v38 = vsub.f32 %v4588_v10, %v13962_v15  ;;  %v4852_v53 = vmul.f32 %v4724_v34, %v4724_v34  ;;  %v4853_v20 = vmul.f32 %v4725_v11, %v4725_v11  ;;  %v16420_v21 = vld [vmem:[#allocation67_spill] sm:$0xff]  ;;  %v4596_v11 = vpop.permute.xlu0 %4595 }
 0x1e5   : > { %10057 = vst [vmem:[#allocation2 + $0xb0] sm:$0xff] %v9509_v58   ;;  %10088 = vst [vmem:[#allocation2 + $0x1b0] sm:$0xff] %v9669_v24   ;;  %v4854_v47 = vmul.f32 %v4726_v37, %v4726_v37  ;;  %v4863_v23 = vmul.f32 %v4735_v27, %v4735_v27  ;;  %v4979_v50 = vadd.f32 %v4851_v29, %v16417_v3  ;;  %v16419_v24 = vld [vmem:[#allocation66_spill] sm:$0xff]  ;;  %v14275_v37 = vpop.f32.mrf.mxu0  ;;  %v16422_v27 = vld [vmem:[#allocation20_spill] sm:$0xff] }
 0x1e6   : > { %16415 = vst [vmem:[#allocation51_spill] sm:$0xff] %v14266_v14  ;;  %16416 = vst [vmem:[#allocation145_spill] sm:$0xff] %v14268_v57  ;;  %v4864_v25 = vmul.f32 %v4736_v33, %v4736_v33  ;;  %v4865_v45 = vmul.f32 %v4737_v32, %v4737_v32  ;;  %v4866_v58 = vmul.f32 %v4738_v38, %v4738_v38  ;;  %v16423_v57 = vld [vmem:[#allocation81_spill] sm:$0xff]  ;;  %v16424_v29 = vld [vmem:[#allocation82_spill] sm:$0xff] }
 0x1e7   : > { %v4980_v39 = vadd.f32 %v4852_v53, %v16418_v5  ;;  %v4981_v13 = vadd.f32 %v4853_v20, %v16419_v24  ;;  %v4982_v10 = vadd.f32 %v4854_v47, %v16420_v21  ;;  %v4991_v34 = vadd.f32 %v4863_v23, %v16421_v43  ;;  %5107 = vst [vmem:[#allocation3 + $0x70] sm:$0xff] %v4979_v50  ;;  %v16425_v32 = vld [vmem:[#allocation154_spill] sm:$0xff]  ;;  %v14282_v53 = vpop.f32.mrf.mxu1  ;;  %v14289_v23 = vpop.f32.mrf.mxu0 }
 0x1e8   : > { %v4992_v14 = vadd.f32 %v4864_v25, %v16422_v27  ;;  %v4993_v7 = vadd.f32 %v4865_v45, %v16423_v57  ;;  %v4994_v33 = vadd.f32 %v4866_v58, %v16424_v29  ;;  %v9514_v38 = vpack.c.bf16 %v16425_v32, %v13900_v51  ;;  %16426 = vst [vmem:[#allocation42_spill] sm:$0xff] %v14282_v53  ;;  %v16429_v27 = vld [vmem:[#allocation70_spill] sm:$0xff] }
 0x1e9   : > { %5108 = vst [vmem:[#allocation3 + $0x300] sm:$0xff] %v4980_v39  ;;  %5109 = vst [vmem:[#allocation3 + $0xe0] sm:$0xff] %v4981_v13  ;;  %v9674_v43 = vpack.c.bf16 %v13886_v36, %v13910_v12  ;;  %v4731_v21 = vsub.f32 %v4584_v40, %v13951_v9  ;;  %v4732_v20 = vsub.f32 %v4584_v40, %v13954_v18  ;;  %v14295_v12 = vpop.f32.mrf.mxu1 }
 0x1ea   : > { %5110 = vst [vmem:[#allocation3 + $0x178] sm:$0xff] %v4982_v10  ;;  %5119 = vst [vmem:[#allocation3 + $0x288] sm:$0xff] %v4991_v34  ;;  %v4733_v47 = vsub.f32 %v4584_v40, %v13957_v46  ;;  %v4734_v51 = vsub.f32 %v4584_v40, %v13962_v15  ;;  %v4743_v57 = vsub.f32 %v4596_v11, %v13951_v9  ;;  %v14298_v40 = vpop.f32.mrf.mxu0  ;;  %v16428_v10 = vld [vmem:[#allocation69_spill] sm:$0xff] }
 0x1eb   : > { %5120 = vst [vmem:[#allocation3 + $0x3a8] sm:$0xff] %v4992_v14  ;;  %5121 = vst [vmem:[#allocation3 + $0x3c8] sm:$0xff] %v4993_v7  ;;  %v4744_v3 = vsub.f32 %v4596_v11, %v13954_v18  ;;  %v4745_v36 = vsub.f32 %v4596_v11, %v13957_v46  ;;  %v4859_v50 = vmul.f32 %v4731_v21, %v4731_v21  ;;  %v4592_v14 = vpop.permute.xlu1 %4591  ;;  %v14300_v13 = vpop.f32.mrf.mxu1  ;;  %v16431_v21 = vld [vmem:[#allocation72_spill] sm:$0xff] }
 0x1ec   : > { %5122 = vst [vmem:[#allocation3 + $0x160] sm:$0xff] %v4994_v33  ;;  %10058 = vst [vmem:[#allocation2 + $0xb8] sm:$0xff] %v9514_v38   ;;  %v4860_v25 = vmul.f32 %v4732_v20, %v4732_v20  ;;  %v4861_v45 = vmul.f32 %v4733_v47, %v4733_v47  ;;  %v4746_v58 = vsub.f32 %v4596_v11, %v13962_v15  ;;  %v16430_v33 = vld [vmem:[#allocation71_spill] sm:$0xff]  ;;  %v14309_v53 = vpop.f32.mrf.mxu0 }
 0x1ed   : > { %10089 = vst [vmem:[#allocation2 + $0x1b8] sm:$0xff] %v9674_v43   ;;  %v4862_v7 = vmul.f32 %v4734_v51, %v4734_v51  ;;  %v4871_v5 = vmul.f32 %v4743_v57, %v4743_v57  ;;  %v4872_v39 = vmul.f32 %v4744_v3, %v4744_v3  ;;  %v4873_v24 = vmul.f32 %v4745_v36, %v4745_v36  ;;  %v4604_v43 = vpop.permute.xlu0 %4603  ;;  %v16432_v11 = vld [vmem:[#allocation83_spill] sm:$0xff]  ;;  %v16433_v51 = vld [vmem:[#allocation84_spill] sm:$0xff]  ;;  %v16434_v3 = vld [vmem:[#allocation85_spill] sm:$0xff] }
 0x1ee   : > { %16427 = vst [vmem:[#allocation43_spill] sm:$0xff] %v14298_v40  ;;  %v4987_v34 = vadd.f32 %v4859_v50, %v16428_v10  ;;  %v4988_v29 = vadd.f32 %v4860_v25, %v16429_v27  ;;  %v4989_v32 = vadd.f32 %v4861_v45, %v16430_v33  ;;  %v4874_v38 = vmul.f32 %v4746_v58, %v4746_v58  ;;  %v14311_v40 = vpop.f32.mrf.mxu1  ;;  %v16435_v50 = vld [vmem:[#allocation21_spill] sm:$0xff] }
 0x1ef   : > { %v4990_v20 = vadd.f32 %v4862_v7, %v16431_v21  ;;  %v4999_v47 = vadd.f32 %v4871_v5, %v16432_v11  ;;  %v5000_v57 = vadd.f32 %v4872_v39, %v16433_v51  ;;  %v5001_v36 = vadd.f32 %v4873_v24, %v16434_v3 }
 0x1f0   : > { %5115 = vst [vmem:[#allocation3 + $0x248] sm:$0xff] %v4987_v34  ;;  %5116 = vst [vmem:[#allocation3 + $0x40] sm:$0xff] %v4988_v29  ;;  %v5002_v25 = vadd.f32 %v4874_v38, %v16435_v50  ;;  %v9519_v45 = vpack.c.bf16 %v13916_v28, %v13936_v19  ;;  %v9679_v58 = vpack.c.bf16 %v13926_v44, %v13946_v6  ;;  %v14323_v34 = vpop.f32.mrf.mxu0  ;;  %v14328_v27 = vpop.f32.mrf.mxu1 }
 0x1f1   : > { %5117 = vst [vmem:[#allocation3 + $0x20] sm:$0xff] %v4989_v32  ;;  %v4739_v7 = vsub.f32 %v4592_v14, %v13951_v9  ;;  %5118 = vst [vmem:[#allocation3 + $0xe8] sm:$0xff] %v4990_v20  ;;  %v4740_v5 = vsub.f32 %v4592_v14, %v13954_v18  ;;  %v4741_v39 = vsub.f32 %v4592_v14, %v13957_v46  ;;  %v4600_v38 = vpop.permute.xlu1 %4599  ;;  %v16438_v20 = vld [vmem:[#allocation77_spill] sm:$0xff] }
 0x1f2   : > { %5127 = vst [vmem:[#allocation3 + $0x1b0] sm:$0xff] %v4999_v47  ;;  %5128 = vst [vmem:[#allocation3 + $0x1c8] sm:$0xff] %v5000_v57  ;;  %v4742_v24 = vsub.f32 %v4592_v14, %v13962_v15  ;;  %v4751_v10 = vsub.f32 %v4604_v43, %v13951_v9  ;;  %v4752_v44 = vsub.f32 %v4604_v43, %v13954_v18  ;;  %v14330_v21 = vpop.f32.mrf.mxu0  ;;  %v14333_v3 = vpop.f32.mrf.mxu1 }
 0x1f3   : > { %5129 = vst [vmem:[#allocation3 + $0x2d0] sm:$0xff] %v5001_v36  ;;  %16436 = vst [vmem:[#allocation44_spill] sm:$0xff] %v14323_v34  ;;  %v4867_v28 = vmul.f32 %v4739_v7, %v4739_v7  ;;  %v4753_v19 = vsub.f32 %v4604_v43, %v13957_v46  ;;  %v4754_v6 = vsub.f32 %v4604_v43, %v13962_v15  ;;  %v16439_v36 = vld [vmem:[#allocation15_spill] sm:$0xff]  ;;  %v16442_v7 = vld [vmem:[#allocation88_spill] sm:$0xff] }
 0x1f4   : > { %5130 = vst [vmem:[#allocation3 + $0x1d0] sm:$0xff] %v5002_v25  ;;  %10059 = vst [vmem:[#allocation2 + $0xc0] sm:$0xff] %v9519_v45   ;;  %v4868_v29 = vmul.f32 %v4740_v5, %v4740_v5  ;;  %v4869_v33 = vmul.f32 %v4741_v39, %v4741_v39  ;;  %v4870_v32 = vmul.f32 %v4742_v24, %v4742_v24  ;;  %v16440_v25 = vld [vmem:[#allocation78_spill] sm:$0xff]  ;;  %v16441_v45 = vld [vmem:[#allocation79_spill] sm:$0xff]  ;;  %v4612_v39 = vpop.permute.xlu0 %4611 }
 0x1f5   : > { %10090 = vst [vmem:[#allocation2 + $0x1c0] sm:$0xff] %v9679_v58   ;;  %16437 = vst [vmem:[#allocation45_spill] sm:$0xff] %v14328_v27  ;;  %v4879_v14 = vmul.f32 %v4751_v10, %v4751_v10  ;;  %v4995_v11 = vadd.f32 %v4867_v28, %v16438_v20  ;;  %v4880_v47 = vmul.f32 %v4752_v44, %v4752_v44  ;;  %v16443_v24 = vld [vmem:[#allocation89_spill] sm:$0xff]  ;;  %v16444_v27 = vld [vmem:[#allocation26_spill] sm:$0xff] }
 0x1f6   : > { %v4881_v51 = vmul.f32 %v4753_v19, %v4753_v19  ;;  %v4882_v57 = vmul.f32 %v4754_v6, %v4754_v6  ;;  %v4996_v50 = vadd.f32 %v4868_v29, %v16439_v36  ;;  %v4997_v43 = vadd.f32 %v4869_v33, %v16440_v25  ;;  %v16445_v28 = vld [vmem:[#allocation90_spill] sm:$0xff]  ;;  %v14344_v6 = vpop.f32.mrf.mxu0  ;;  %v14346_v29 = vpop.f32.mrf.mxu1  ;;  %v16448_v33 = vld [vmem:[#allocation29_spill] sm:$0xff] }
 0x1f7   : > { %v4998_v58 = vadd.f32 %v4870_v32, %v16441_v45  ;;  %v5007_v5 = vadd.f32 %v4879_v14, %v16442_v7  ;;  %5123 = vst [vmem:[#allocation3 + $0x2c8] sm:$0xff] %v4995_v11  ;;  %v5008_v10 = vadd.f32 %v4880_v47, %v16443_v24  ;;  %v9524_v19 = vpack.c.bf16 %v13959_v62, %v13976_v2  ;;  %v16449_v32 = vld [vmem:[#allocation28_spill] sm:$0xff]  ;;  %v4608_v45 = vpop.permute.xlu1 %4607 }
 0x1f8   : > { %v5009_v34 = vadd.f32 %v4881_v51, %v16444_v27  ;;  %v5010_v44 = vadd.f32 %v4882_v57, %v16445_v28  ;;  %16446 = vst [vmem:[#allocation130_spill] sm:$0xff] %v14344_v6  ;;  %16447 = vst [vmem:[#allocation131_spill] sm:$0xff] %v14346_v29  ;;  %v9684_v14 = vpack.c.bf16 %v16449_v32, %v16448_v33  ;;  %v14357_v57 = vpop.f32.mrf.mxu0  ;;  %v14359_v36 = vpop.f32.mrf.mxu1  ;;  %v16453_v28 = vld [vmem:[#allocation17_spill] sm:$0xff]  ;;  %v16455_v32 = vld [vmem:[#allocation16_spill] sm:$0xff] }
 0x1f9   : > { %5124 = vst [vmem:[#allocation3 + $0x210] sm:$0xff] %v4996_v50  ;;  %5125 = vst [vmem:[#allocation3 + $0x3d8] sm:$0xff] %v4997_v43  ;;  %v4747_v20 = vsub.f32 %v4600_v38, %v13951_v9  ;;  %v4748_v27 = vsub.f32 %v4600_v38, %v13954_v18  ;;  %v4749_v11 = vsub.f32 %v4600_v38, %v13957_v46 }
 0x1fa   : > { %5126 = vst [vmem:[#allocation3 + $0x1e8] sm:$0xff] %v4998_v58  ;;  %5135 = vst [vmem:[#allocation3 + $0x1f8] sm:$0xff] %v5007_v5  ;;  %v4750_v62 = vsub.f32 %v4600_v38, %v13962_v15  ;;  %v4759_v2 = vsub.f32 %v4612_v39, %v13951_v9  ;;  %v4760_v47 = vsub.f32 %v4612_v39, %v13954_v18  ;;  %v14362_v24 = vpop.f32.mrf.mxu0 }
 0x1fb   : > { %5136 = vst [vmem:[#allocation3 + $0x238] sm:$0xff] %v5008_v10  ;;  %5137 = vst [vmem:[#allocation3 + $0x398] sm:$0xff] %v5009_v34  ;;  %v4761_v51 = vsub.f32 %v4612_v39, %v13957_v46  ;;  %v4875_v50 = vmul.f32 %v4747_v20, %v4747_v20  ;;  %v4876_v25 = vmul.f32 %v4748_v27, %v4748_v27  ;;  %v14364_v10 = vpop.f32.mrf.mxu1  ;;  %v4620_v27 = vpop.permute.xlu0 %4619 }
 0x1fc   : > { %5138 = vst [vmem:[#allocation3 + $0x390] sm:$0xff] %v5010_v44  ;;  %10060 = vst [vmem:[#allocation2 + $0xc8] sm:$0xff] %v9524_v19   ;;  %v4877_v43 = vmul.f32 %v4749_v11, %v4749_v11  ;;  %v4762_v34 = vsub.f32 %v4612_v39, %v13962_v15  ;;  %v4878_v58 = vmul.f32 %v4750_v62, %v4750_v62  ;;  %v16454_v19 = vld [vmem:[#allocation18_spill] sm:$0xff]  ;;  %v16456_v11 = vld [vmem:[#allocation23_spill] sm:$0xff]  ;;  %v14373_v6 = vpop.f32.mrf.mxu0 }
 0x1fd   : > { %16450 = vst [vmem:[#allocation56_spill] sm:$0xff] %v14359_v36  ;;  %10091 = vst [vmem:[#allocation2 + $0x1c8] sm:$0xff] %v9684_v14   ;;  %v4887_v7 = vmul.f32 %v4759_v2, %v4759_v2  ;;  %v4888_v38 = vmul.f32 %v4760_v47, %v4760_v47  ;;  %v4889_v5 = vmul.f32 %v4761_v51, %v4761_v51  ;;  %v16457_v39 = vld [vmem:[#allocation27_spill] sm:$0xff]  ;;  %v16458_v62 = vld [vmem:[#allocation93_spill] sm:$0xff] }
 0x1fe   : > { %16451 = vst [vmem:[#allocation57_spill] sm:$0xff] %v14362_v24  ;;  %16452 = vst [vmem:[#allocation146_spill] sm:$0xff] %v14364_v10  ;;  %v5003_v44 = vadd.f32 %v4875_v50, %v16453_v28  ;;  %v5004_v33 = vadd.f32 %v4876_v25, %v16454_v19  ;;  %v5005_v14 = vadd.f32 %v4877_v43, %v16455_v32  ;;  %v16459_v47 = vld [vmem:[#allocation94_spill] sm:$0xff]  ;;  %v14375_v24 = vpop.f32.mrf.mxu1  ;;  %v16460_v50 = vld [vmem:[#allocation95_spill] sm:$0xff] }
 0x1ff   : > { %v4890_v20 = vmul.f32 %v4762_v34, %v4762_v34  ;;  %v5006_v29 = vadd.f32 %v4878_v58, %v16456_v11  ;;  %v5015_v36 = vadd.f32 %v4887_v7, %v16457_v39  ;;  %v5016_v2 = vadd.f32 %v4888_v38, %v16458_v62  ;;  %v16461_v43 = vld [vmem:[#allocation30_spill] sm:$0xff]  ;;  %v16462_v58 = vld [vmem:[#allocation31_spill] sm:$0xff]  ;;  %v4616_v39 = vpop.permute.xlu1 %4615 }
 0x200   : > { %v5017_v51 = vadd.f32 %v4889_v5, %v16459_v47  ;;  %5131 = vst [vmem:[#allocation3 + $0x58] sm:$0xff] %v5003_v44  ;;  %5132 = vst [vmem:[#allocation3 + $0x120] sm:$0xff] %v5004_v33  ;;  %v9529_v34 = vpack.c.bf16 %v16461_v43, %v13992_v22  ;;  %v9689_v28 = vpack.c.bf16 %v16462_v58, %v13998_v17  ;;  %v14387_v33 = vpop.f32.mrf.mxu0  ;;  %v14392_v32 = vpop.f32.mrf.mxu1  ;;  %v16474_v10 = vld [vmem:[#allocation103_spill] sm:$0xff] }
 0x201   : > { %5133 = vst [vmem:[#allocation3 + $0x198] sm:$0xff] %v5005_v14  ;;  %v5018_v25 = vadd.f32 %v4890_v20, %v16460_v50  ;;  %v4755_v7 = vsub.f32 %v4608_v45, %v13951_v9  ;;  %5134 = vst [vmem:[#allocation3 + $0x2e8] sm:$0xff] %v5006_v29  ;;  %v4756_v38 = vsub.f32 %v4608_v45, %v13954_v18 }
 0x202   : > { %5143 = vst [vmem:[#allocation3 + $0xf0] sm:$0xff] %v5015_v36  ;;  %5144 = vst [vmem:[#allocation3 + $0x180] sm:$0xff] %v5016_v2  ;;  %v4757_v5 = vsub.f32 %v4608_v45, %v13957_v46  ;;  %v4758_v44 = vsub.f32 %v4608_v45, %v13962_v15  ;;  %v4767_v19 = vsub.f32 %v4620_v27, %v13951_v9  ;;  %v14394_v62 = vpop.f32.mrf.mxu0  ;;  %v16466_v2 = vld [vmem:[#allocation22_spill] sm:$0xff]  ;;  %v14397_v43 = vpop.f32.mrf.mxu1 }
 0x203   : > { %5145 = vst [vmem:[#allocation3 + $0x170] sm:$0xff] %v5017_v51  ;;  %16463 = vst [vmem:[#allocation47_spill] sm:$0xff] %v14387_v33  ;;  %v4883_v17 = vmul.f32 %v4755_v7, %v4755_v7  ;;  %v4768_v22 = vsub.f32 %v4620_v27, %v13954_v18  ;;  %v4769_v29 = vsub.f32 %v4620_v27, %v13957_v46  ;;  %v16470_v7 = vld [vmem:[#allocation87_spill] sm:$0xff]  ;;  %v16473_v33 = vld [vmem:[#allocation102_spill] sm:$0xff] }
 0x204   : > { %5146 = vst [vmem:[#allocation3 + $0x3d0] sm:$0xff] %v5018_v25  ;;  %10061 = vst [vmem:[#allocation2 + $0xd0] sm:$0xff] %v9529_v34   ;;  %v4770_v36 = vsub.f32 %v4620_v27, %v13962_v15  ;;  %v4884_v14 = vmul.f32 %v4756_v38, %v4756_v38  ;;  %v4885_v20 = vmul.f32 %v4757_v5, %v4757_v5  ;;  %v16468_v34 = vld [vmem:[#allocation86_spill] sm:$0xff]  ;;  %v16471_v38 = vld [vmem:[#allocation100_spill] sm:$0xff] }
 0x205   : > { %10092 = vst [vmem:[#allocation2 + $0x1d0] sm:$0xff] %v9689_v28   ;;  %16464 = vst [vmem:[#allocation48_spill] sm:$0xff] %v14392_v32  ;;  %v4886_v11 = vmul.f32 %v4758_v44, %v4758_v44  ;;  %v4895_v45 = vmul.f32 %v4767_v19, %v4767_v19  ;;  %v5011_v47 = vadd.f32 %v4883_v17, %v16466_v2  ;;  %v16469_v28 = vld [vmem:[#allocation19_spill] sm:$0xff]  ;;  %v16472_v44 = vld [vmem:[#allocation101_spill] sm:$0xff]  ;;  %v14408_v2 = vpop.f32.mrf.mxu0 }
 0x206   : > { %16465 = vst [vmem:[#allocation49_spill] sm:$0xff] %v14394_v62  ;;  %v4896_v51 = vmul.f32 %v4768_v22, %v4768_v22  ;;  %v4897_v50 = vmul.f32 %v4769_v29, %v4769_v29  ;;  %v4898_v25 = vmul.f32 %v4770_v36, %v4770_v36  ;;  %16467 = vst [vmem:[#allocation50_spill] sm:$0xff] %v14397_v43  ;;  %v16475_v22 = vld [vmem:[#allocation118_spill] sm:$0xff]  ;;  %v16476_v29 = vld [vmem:[#allocation116_spill] sm:$0xff]  ;;  %v14410_v43 = vpop.f32.mrf.mxu1 }
 0x207   : > { %v5012_v58 = vadd.f32 %v4884_v14, %v16468_v34  ;;  %v5013_v27 = vadd.f32 %v4885_v20, %v16469_v28  ;;  %v5014_v32 = vadd.f32 %v4886_v11, %v16470_v7  ;;  %v5023_v5 = vadd.f32 %v4895_v45, %v16471_v38  ;;  %5139 = vst [vmem:[#allocation3 + $0x1a0] sm:$0xff] %v5011_v47  ;;  %v16479_v14 = vld [vmem:[#allocation112_spill] sm:$0xff]  ;;  %v16480_v20 = vld [vmem:[#allocation117_spill] sm:$0xff]  ;;  %v4628_v47 = vpop.permute.xlu0 %4627 }
 0x208   : > { %v5024_v19 = vadd.f32 %v4896_v51, %v16472_v44  ;;  %v5025_v62 = vadd.f32 %v4897_v50, %v16473_v33  ;;  %v5026_v17 = vadd.f32 %v4898_v25, %v16474_v10  ;;  %v9534_v36 = vpack.c.bf16 %v16476_v29, %v16475_v22  ;;  %16477 = vst [vmem:[#allocation132_spill] sm:$0xff] %v14408_v2  ;;  %v16481_v50 = vld [vmem:[#allocation108_spill] sm:$0xff]  ;;  %v16482_v25 = vld [vmem:[#allocation155_spill] sm:$0xff]  ;;  %v16483_v34 = vld [vmem:[#allocation109_spill] sm:$0xff]  ;;  %v14426_v44 = vpop.f32.mrf.mxu1 }
 0x209   : > { %16478 = vst [vmem:[#allocation133_spill] sm:$0xff] %v14410_v43  ;;  %5140 = vst [vmem:[#allocation3 + $0xa8] sm:$0xff] %v5012_v58  ;;  %v9694_v11 = vpack.c.bf16 %v16480_v20, %v16479_v14  ;;  %v4763_v45 = vsub.f32 %v4616_v39, %v13951_v9  ;;  %v4764_v33 = vsub.f32 %v4616_v39, %v13954_v18  ;;  %v16484_v58 = vld [vmem:[#allocation156_spill] sm:$0xff]  ;;  %v16486_v7 = vld [vmem:[#allocation157_spill] sm:$0xff] }
 0x20a   : > { %5141 = vst [vmem:[#allocation3 + $0x258] sm:$0xff] %v5013_v27  ;;  %5142 = vst [vmem:[#allocation3 + $0x2d8] sm:$0xff] %v5014_v32  ;;  %v4765_v10 = vsub.f32 %v4616_v39, %v13957_v46  ;;  %v4766_v51 = vsub.f32 %v4616_v39, %v13962_v15  ;;  %v4496_v32 = vadd.f32 %v16482_v25, %v16481_v50  ;;  %v16485_v27 = vld [vmem:[#allocation110_spill] sm:$0xff]  ;;  %v16489_v22 = vld [vmem:[#allocation111_spill] sm:$0xff]  ;;  %v14439_v43 = vpop.f32.mrf.mxu1 }
 0x20b   : > { %5151 = vst [vmem:[#allocation3 + $0x78] sm:$0xff] %v5023_v5  ;;  %5152 = vst [vmem:[#allocation3 + $0x308] sm:$0xff] %v5024_v19  ;;  %v4497_v28 = vadd.f32 %v16484_v58, %v16483_v34  ;;  %v4498_v38 = vadd.f32 %v16486_v7, %v16485_v27  ;;  %v14424_v5 = vpop.f32.mrf.mxu0  ;;  %v4891_v19 = vmul.f32 %v4763_v45, %v4763_v45  ;;  %v16490_v29 = vld [vmem:[#allocation158_spill] sm:$0xff]  ;;  %v16492_v58 = vld [vmem:[#allocation24_spill] sm:$0xff] }
 0x20c   : > { %5153 = vst [vmem:[#allocation3 + $0x370] sm:$0xff] %v5025_v62  ;;  %5154 = vst [vmem:[#allocation3 + $0xc8] sm:$0xff] %v5026_v17  ;;  %v4892_v62 = vmul.f32 %v4764_v33, %v4764_v33  ;;  %v4893_v17 = vmul.f32 %v4765_v10, %v4765_v10  ;;  %v4499_v39 = vadd.f32 %v16490_v29, %v16489_v22  ;;  %v16493_v7 = vld [vmem:[#allocation25_spill] sm:$0xff]  ;;  %v16494_v45 = vld [vmem:[#allocation91_spill] sm:$0xff] }
 0x20d   : > { %10062 = vst [vmem:[#allocation2 + $0xd8] sm:$0xff] %v9534_v36   ;;  %16487 = vst [vmem:[#allocation134_spill] sm:$0xff] %v14424_v5  ;;  %v4624_v36 = vpop.permute.xlu1 %4623  ;;  %v4894_v14 = vmul.f32 %v4766_v51, %v4766_v51  ;;  %v4775_v20 = vsub.f32 %v4628_v47, %v13951_v9  ;;  %v4776_v50 = vsub.f32 %v4628_v47, %v13954_v18  ;;  %v14433_v34 = vpop.f32.mrf.mxu0  ;;  %v16495_v22 = vld [vmem:[#allocation92_spill] sm:$0xff] }
 0x20e   : > { %16488 = vst [vmem:[#allocation135_spill] sm:$0xff] %v14426_v44  ;;  %10093 = vst [vmem:[#allocation2 + $0x1d8] sm:$0xff] %v9694_v11   ;;  %v4777_v25 = vsub.f32 %v4628_v47, %v13957_v46  ;;  %v5019_v27 = vadd.f32 %v4891_v19, %v16492_v58  ;;  %v5020_v11 = vadd.f32 %v4892_v62, %v16493_v7  ;;  %v16496_v62 = vld [vmem:[#allocation113_spill] sm:$0xff]  ;;  %v14449_v7 = vpop.f32.mrf.mxu1 }
 0x20f   : > { %16491 = vst [vmem:[#allocation147_spill] sm:$0xff] %v14433_v34  ;;  %v5021_v33 = vadd.f32 %v4893_v17, %v16494_v45  ;;  %v4778_v10 = vsub.f32 %v4628_v47, %v13962_v15  ;;  %v5022_v51 = vadd.f32 %v4894_v14, %v16495_v22  ;;  %v4903_v29 = vmul.f32 %v4775_v20, %v4775_v20  ;;  %v14442_v5 = vpop.f32.mrf.mxu0  ;;  %v16497_v17 = vld [vmem:[#allocation119_spill] sm:$0xff] }
 0x210   : > { %v4904_v44 = vmul.f32 %v4776_v50, %v4776_v50  ;;  %v4905_v2 = vmul.f32 %v4777_v25, %v4777_v25  ;;  %5147 = vst [vmem:[#allocation3 + $0x250] sm:$0xff] %v5019_v27  ;;  %5148 = vst [vmem:[#allocation3 + $0x378] sm:$0xff] %v5020_v11  ;;  %v9539_v19 = vpack.c.bf16 %v14020_v31, %v14033_v60 }
 0x211   : > { %5149 = vst [vmem:[#allocation3 + $0xb8] sm:$0xff] %v5021_v33  ;;  %v4906_v34 = vmul.f32 %v4778_v10, %v4778_v10  ;;  %v9699_v58 = vpack.c.bf16 %v16497_v17, %v16496_v62  ;;  %v4771_v47 = vsub.f32 %v4624_v36, %v13951_v9  ;;  %5150 = vst [vmem:[#allocation3 + $0x38] sm:$0xff] %v5022_v51  ;;  %v4632_v45 = vpop.permute.xlu1 %4631  ;;  %v14454_v33 = vpop.f32.mrf.mxu0  ;;  %v16501_v51 = vld [vmem:[#allocation96_spill] sm:$0xff] }
 0x212   : > { %v5031_v14 = vadd.f32 %v4903_v29, %v4496_v32  ;;  %v5032_v20 = vadd.f32 %v4904_v44, %v4497_v28  ;;  %v5033_v50 = vadd.f32 %v4905_v2, %v4498_v38  ;;  %v4772_v25 = vsub.f32 %v4624_v36, %v13954_v18  ;;  %10063 = vst [vmem:[#allocation2 + $0xe0] sm:$0xff] %v9539_v19   ;;  %v16498_v32 = vld [vmem:[#allocation114_spill] sm:$0xff]  ;;  %v16499_v38 = vld [vmem:[#allocation104_spill] sm:$0xff]  ;;  %v16500_v44 = vld [vmem:[#allocation159_spill] sm:$0xff] }
 0x213   : > { %v5034_v27 = vadd.f32 %v4906_v34, %v4499_v39  ;;  %10094 = vst [vmem:[#allocation2 + $0x1e0] sm:$0xff] %v9699_v58   ;;  %v4773_v11 = vsub.f32 %v4624_v36, %v13957_v46  ;;  %v4774_v31 = vsub.f32 %v4624_v36, %v13962_v15  ;;  %v4899_v60 = vmul.f32 %v4771_v47, %v4771_v47  ;;  %v14462_v34 = vpop.f32.mrf.mxu1  ;;  %v16502_v19 = vld [vmem:[#allocation105_spill] sm:$0xff]  ;;  %v16503_v62 = vld [vmem:[#allocation160_spill] sm:$0xff]  ;;  %v14467_v58 = vpop.f32.mrf.mxu0 }
 0x214   : > { %5159 = vst [vmem:[#allocation3 + $0x148] sm:$0xff] %v5031_v14  ;;  %5160 = vst [vmem:[#allocation3 + $0xf8] sm:$0xff] %v5032_v20  ;;  %v4900_v10 = vmul.f32 %v4772_v25, %v4772_v25  ;;  %v9544_v2 = vpack.c.bf16 %v16498_v32, %v14049_v16  ;;  %v9704_v28 = vpack.c.bf16 %v14044_v55, %v14055_v61  ;;  %v16504_v47 = vld [vmem:[#allocation97_spill] sm:$0xff]  ;;  %v16505_v61 = vld [vmem:[#allocation106_spill] sm:$0xff] }
 0x215   : > { %5161 = vst [vmem:[#allocation3 + $0x68] sm:$0xff] %v5033_v50  ;;  %v4500_v39 = vadd.f32 %v16500_v44, %v16499_v38  ;;  %5162 = vst [vmem:[#allocation3] sm:$0xff] %v5034_v27  ;;  %v4901_v36 = vmul.f32 %v4773_v11, %v4773_v11  ;;  %v4902_v22 = vmul.f32 %v4774_v31, %v4774_v31  ;;  %v16506_v55 = vld [vmem:[#allocation161_spill] sm:$0xff]  ;;  %v16507_v20 = vld [vmem:[#allocation107_spill] sm:$0xff]  ;;  %v14475_v11 = vpop.f32.mrf.mxu1 }
 0x216   : > { %v5027_v29 = vadd.f32 %v4899_v60, %v16501_v51  ;;  %v4501_v17 = vadd.f32 %v16503_v62, %v16502_v19  ;;  %v5028_v16 = vadd.f32 %v4900_v10, %v16504_v47  ;;  %10064 = vst [vmem:[#allocation2 + $0xe8] sm:$0xff] %v9544_v2   ;;  %10095 = vst [vmem:[#allocation2 + $0x1e8] sm:$0xff] %v9704_v28   ;;  %v16508_v50 = vld [vmem:[#allocation162_spill] sm:$0xff]  ;;  %v16510_v32 = vld [vmem:[#allocation99_spill] sm:$0xff]  ;;  %v14481_v2 = vpop.f32.mrf.mxu0 }
 0x217   : > { %v4502_v14 = vadd.f32 %v16506_v55, %v16505_v61  ;;  %v4503_v25 = vadd.f32 %v16508_v50, %v16507_v20  ;;  %v4779_v27 = vsub.f32 %v4632_v45, %v13951_v9  ;;  %v16509_v31 = vld [vmem:[#allocation98_spill] sm:$0xff]  ;;  %v5030_v38 = vadd.f32 %v4902_v22, %v16510_v32  ;;  %v16511_v19 = vld [vmem:[#allocation32_spill] sm:$0xff]  ;;  %v16512_v62 = vld [vmem:[#allocation115_spill] sm:$0xff] }
 0x218   : > { %v5029_v60 = vadd.f32 %v4901_v36, %v16509_v31  ;;  %5155 = vst [vmem:[#allocation3 + $0x278] sm:$0xff] %v5027_v29  ;;  %v4780_v44 = vsub.f32 %v4632_v45, %v13954_v18  ;;  %v4781_v10 = vsub.f32 %v4632_v45, %v13957_v46  ;;  %5156 = vst [vmem:[#allocation3 + $0x360] sm:$0xff] %v5028_v16  ;;  %v14488_v36 = vpop.f32.mrf.mxu1  ;;  %v16513_v29 = vld [vmem:[#allocation34_spill] sm:$0xff]  ;;  %v16514_v16 = vld [vmem:[#allocation33_spill] sm:$0xff] }
 0x219   : > { %v4782_v28 = vsub.f32 %v4632_v45, %v13962_v15  ;;  %v4907_v51 = vmul.f32 %v4779_v27, %v4779_v27  ;;  %v9549_v9 = vpack.c.bf16 %v14063_v0, %v14074_v1  ;;  %v9709_v47 = vpack.c.bf16 %v16512_v62, %v16511_v19  ;;  %5158 = vst [vmem:[#allocation3 + $0x348] sm:$0xff] %v5030_v38  ;;  %v14494_v15 = vpop.f32.mrf.mxu0  ;;  %v16515_v0 = vld [vmem:[#allocation35_spill] sm:$0xff]  ;;  %v16518_v32 = vld [vmem:[#allocation122_spill] sm:$0xff] }
 0x21a   : > { %5157 = vst [vmem:[#allocation3 + $0x228] sm:$0xff] %v5029_v60  ;;  %v4908_v22 = vmul.f32 %v4780_v44, %v4780_v44  ;;  %v4909_v18 = vmul.f32 %v4781_v10, %v4781_v10  ;;  %v9554_v46 = vpack.c.bf16 %v14079_v35, %v14092_v30  ;;  %v9714_v61 = vpack.c.bf16 %v16514_v16, %v16513_v29  ;;  %v14500_v50 = vpop.f32.mrf.mxu1  ;;  %v16516_v35 = vld [vmem:[#allocation121_spill] sm:$0xff]  ;;  %v16517_v60 = vld [vmem:[#allocation36_spill] sm:$0xff]  ;;  %v16525_v19 = vld [vmem:[#allocation126_spill] sm:$0xff] }
 0x21b   : > { %v4910_v45 = vmul.f32 %v4782_v28, %v4782_v28  ;;  %v5035_v55 = vadd.f32 %v4907_v51, %v4500_v39  ;;  %10065 = vst [vmem:[#allocation2 + $0xf0] sm:$0xff] %v9549_v9   ;;  %10096 = vst [vmem:[#allocation2 + $0x1f0] sm:$0xff] %v9709_v47   ;;  %v9719_v1 = vpack.c.bf16 %v16515_v0, %v14113_v26  ;;  %v14506_v38 = vpop.f32.mrf.mxu0  ;;  %v16520_v26 = vld [vmem:[#allocation120_spill] sm:$0xff]  ;;  %v16524_v9 = vld [vmem:[#allocation39_spill] sm:$0xff] }
 0x21c   : > { %v9879_v20 = vpack.c.bf16 %v14108_v41, %v14119_v8  ;;  %v5036_v27 = vadd.f32 %v4908_v22, %v4501_v17  ;;  %v5037_v31 = vadd.f32 %v4909_v18, %v4502_v14  ;;  %10066 = vst [vmem:[#allocation2 + $0xf8] sm:$0xff] %v9554_v46   ;;  %10097 = vst [vmem:[#allocation2 + $0x1f8] sm:$0xff] %v9714_v61   ;;  %v16519_v41 = vld [vmem:[#allocation37_spill] sm:$0xff]  ;;  %v16521_v14 = vld [vmem:[#allocation38_spill] sm:$0xff]  ;;  %v14514_v28 = vpop.f32.mrf.mxu1 }
 0x21d   : > { %v9724_v30 = vpack.c.bf16 %v16516_v35, %v14138_v52  ;;  %v9884_v39 = vpack.c.bf16 %v16518_v32, %v16517_v60  ;;  %v5038_v44 = vadd.f32 %v4910_v45, %v4503_v25  ;;  %5163 = vst [vmem:[#allocation3 + $0x298] sm:$0xff] %v5035_v55  ;;  %9720 = vst [vmem:[#allocation2 + $0x200] sm:$0xff] %v9719_v1   ;;  %v16522_v52 = vld [vmem:[#allocation125_spill] sm:$0xff]  ;;  %v16523_v25 = vld [vmem:[#allocation124_spill] sm:$0xff]  ;;  %v14524_v18 = vpop.f32.mrf.mxu0 }
 0x21e   : > { %9880 = vst [vmem:[#allocation2 + $0x300] sm:$0xff] %v9879_v20   ;;  %v9729_v8 = vpack.c.bf16 %v14147_v56, %v14161_v49  ;;  %v9889_v17 = vpack.c.bf16 %v16520_v26, %v16519_v41  ;;  %v9734_v10 = vpack.c.bf16 %v16521_v14, %v14177_v48  ;;  %5164 = vst [vmem:[#allocation3 + $0x270] sm:$0xff] %v5036_v27  ;;  %v16526_v47 = vld [vmem:[#allocation123_spill] sm:$0xff]  ;;  %v16527_v56 = vld [vmem:[#allocation46_spill] sm:$0xff]  ;;  %v14534_v20 = vpop.f32.mrf.mxu1 }
 0x21f   : > { %5165 = vst [vmem:[#allocation3 + $0x310] sm:$0xff] %v5037_v31  ;;  %10098 = vst [vmem:[#allocation2 + $0x208] sm:$0xff] %v9724_v30   ;;  %v9894_v51 = vpack.c.bf16 %v16523_v25, %v16522_v52  ;;  %v9739_v62 = vpack.c.bf16 %v16525_v19, %v16524_v9  ;;  %v9899_v49 = vpack.c.bf16 %v16527_v56, %v16526_v47  ;;  %v16528_v48 = vld [vmem:[#allocation40_spill] sm:$0xff]  ;;  %v16529_v29 = vld [vmem:[#allocation41_spill] sm:$0xff]  ;;  %v10911_v30 = vpop.f32.mrf.mxu0 }
 0x220   : > { %10129 = vst [vmem:[#allocation2 + $0x308] sm:$0xff] %v9884_v39   ;;  %v9744_v22 = vpack.c.bf16 %v14211_v59, %v14225_v4  ;;  %5166 = vst [vmem:[#allocation3 + $0x190] sm:$0xff] %v5038_v44  ;;  %v9904_v46 = vpack.c.bf16 %v16528_v48, %v14231_v54  ;;  %v9749_v16 = vpack.c.bf16 %v16529_v29, %v14245_v42  ;;  %v16530_v61 = vld [vmem:[#allocation127_spill] sm:$0xff]  ;;  %v16532_v0 = vld [vmem:[#allocation128_spill] sm:$0xff] }
 0x221   : > { %10099 = vst [vmem:[#allocation2 + $0x210] sm:$0xff] %v9729_v8   ;;  %10130 = vst [vmem:[#allocation2 + $0x310] sm:$0xff] %v9889_v17   ;;  %v9909_v45 = vpack.c.bf16 %v16530_v61, %v14247_v63  ;;  %v16531_v55 = vld [vmem:[#allocation51_spill] sm:$0xff]  ;;  %v16533_v59 = vld [vmem:[#allocation145_spill] sm:$0xff]  ;;  %v9759_v54 = vpack.c.bf16 %v14275_v37, %v14289_v23  ;;  %v9924_v60 = vpack.c.bf16 %v14300_v13, %v14311_v40  ;;  %v11011_v8 = vpop.f32.mrf.mxu1  ;;  %v2340_v52 = vpop.f32.mrf.mxu0 }
 0x222   : > { %10100 = vst [vmem:[#allocation2 + $0x218] sm:$0xff] %v9734_v10   ;;  %v9754_v1 = vpack.c.bf16 %v16532_v0, %v16531_v55  ;;  %10131 = vst [vmem:[#allocation2 + $0x318] sm:$0xff] %v9894_v51   ;;  %v16534_v4 = vld [vmem:[#allocation129_spill] sm:$0xff]  ;;  %v16535_v42 = vld [vmem:[#allocation42_spill] sm:$0xff]  ;;  %v9954_v48 = vpack.c.bf16 %v14439_v43, %v14449_v7  ;;  %v9959_v29 = vpack.c.bf16 %v14462_v34, %v14475_v11 }
 0x223   : > { %10101 = vst [vmem:[#allocation2 + $0x220] sm:$0xff] %v9739_v62   ;;  %10132 = vst [vmem:[#allocation2 + $0x320] sm:$0xff] %v9899_v49   ;;  %v9914_v27 = vpack.c.bf16 %v16534_v4, %v16533_v59  ;;  %v9919_v31 = vpack.c.bf16 %v16535_v42, %v14295_v12  ;;  %v16536_v63 = vld [vmem:[#allocation43_spill] sm:$0xff]  ;;  %v16537_v32 = vld [vmem:[#allocation44_spill] sm:$0xff]  ;;  %v10914_v61 = vpop.f32.mrf.mxu0  ;;  %v9809_v43 = vpack.c.bf16 %v14506_v38, %v14524_v18 }
 0x224   : > { %10102 = vst [vmem:[#allocation2 + $0x228] sm:$0xff] %v9744_v22   ;;  %v9764_v35 = vpack.c.bf16 %v16536_v63, %v14309_v53  ;;  %10133 = vst [vmem:[#allocation2 + $0x328] sm:$0xff] %v9904_v46   ;;  %v9769_v39 = vpack.c.bf16 %v16537_v32, %v14330_v21  ;;  %v16538_v44 = vld [vmem:[#allocation45_spill] sm:$0xff]  ;;  %v16539_v23 = vld [vmem:[#allocation130_spill] sm:$0xff]  ;;  %v3049_v22 = vpop.f32.mrf.mxu1  ;;  %v9799_v46 = vpack.c.bf16 %v14454_v33, %v14467_v58 }
 0x225   : > { %10103 = vst [vmem:[#allocation2 + $0x230] sm:$0xff] %v9749_v16   ;;  %10134 = vst [vmem:[#allocation2 + $0x330] sm:$0xff] %v9909_v45   ;;  %v9929_v37 = vpack.c.bf16 %v16538_v44, %v14333_v3  ;;  %v9774_v12 = vpack.c.bf16 %v16539_v23, %v14357_v57  ;;  %v16540_v53 = vld [vmem:[#allocation56_spill] sm:$0xff]  ;;  %v16541_v41 = vld [vmem:[#allocation131_spill] sm:$0xff]  ;;  %v9804_v16 = vpack.c.bf16 %v14481_v2, %v14494_v15  ;;  %v2350_v11 = vpop.f32.mrf.mxu0 }
 0x226   : > { %10104 = vst [vmem:[#allocation2 + $0x238] sm:$0xff] %v9754_v1   ;;  %10135 = vst [vmem:[#allocation2 + $0x338] sm:$0xff] %v9914_v27   ;;  %v9934_v26 = vpack.c.bf16 %v16541_v41, %v16540_v53  ;;  %v16542_v17 = vld [vmem:[#allocation57_spill] sm:$0xff]  ;;  %v16543_v13 = vld [vmem:[#allocation146_spill] sm:$0xff]  ;;  %v9969_v7 = vpack.c.bf16 %v14514_v28, %v14534_v20  ;;  %v9814_v33 = vpack.c.bf16 %v10911_v30, %v2340_v52  ;;  %v11014_v58 = vpop.f32.mrf.mxu1 }
 0x227   : > { %10105 = vst [vmem:[#allocation2 + $0x240] sm:$0xff] %v9759_v54   ;;  %10136 = vst [vmem:[#allocation2 + $0x340] sm:$0xff] %v9919_v31   ;;  %v9779_v40 = vpack.c.bf16 %v16542_v17, %v14373_v6  ;;  %v9939_v21 = vpack.c.bf16 %v16543_v13, %v14375_v24  ;;  %v16544_v14 = vld [vmem:[#allocation49_spill] sm:$0xff]  ;;  %v16545_v10 = vld [vmem:[#allocation47_spill] sm:$0xff]  ;;  %v9974_v34 = vpack.c.bf16 %v11011_v8, %v3049_v22 }
 0x228   : > { %10106 = vst [vmem:[#allocation2 + $0x248] sm:$0xff] %v9764_v35   ;;  %v9784_v3 = vpack.c.bf16 %v16545_v10, %v16544_v14  ;;  %10137 = vst [vmem:[#allocation2 + $0x348] sm:$0xff] %v9924_v60   ;;  %v16546_v57 = vld [vmem:[#allocation50_spill] sm:$0xff]  ;;  %v16547_v25 = vld [vmem:[#allocation48_spill] sm:$0xff]  ;;  %v9819_v2 = vpack.c.bf16 %v10914_v61, %v2350_v11 }
 0x229   : > { %10107 = vst [vmem:[#allocation2 + $0x250] sm:$0xff] %v9769_v39   ;;  %10138 = vst [vmem:[#allocation2 + $0x350] sm:$0xff] %v9929_v37   ;;  %v9944_v51 = vpack.c.bf16 %v16547_v25, %v16546_v57  ;;  %v16548_v9 = vld [vmem:[#allocation134_spill] sm:$0xff]  ;;  %v16549_v19 = vld [vmem:[#allocation132_spill] sm:$0xff] }
 0x22a   : > { %10108 = vst [vmem:[#allocation2 + $0x258] sm:$0xff] %v9774_v12   ;;  %v9789_v62 = vpack.c.bf16 %v16549_v19, %v16548_v9  ;;  %v16550_v47 = vld [vmem:[#allocation135_spill] sm:$0xff]  ;;  %v16551_v56 = vld [vmem:[#allocation133_spill] sm:$0xff]  ;;  %10139 = vst [vmem:[#allocation2 + $0x358] sm:$0xff] %v9934_v26  }
 0x22b   : > { %v9949_v6 = vpack.c.bf16 %v16551_v56, %v16550_v47  ;;  %v16552_v49 = vld [vmem:[#allocation147_spill] sm:$0xff]  ;;  %10109 = vst [vmem:[#allocation2 + $0x260] sm:$0xff] %v9779_v40   ;;  %10140 = vst [vmem:[#allocation2 + $0x360] sm:$0xff] %v9939_v21  }
 0x22c   : > { %v9794_v24 = vpack.c.bf16 %v16552_v49, %v14442_v5  ;;  %10110 = vst [vmem:[#allocation2 + $0x268] sm:$0xff] %v9784_v3   ;;  %10141 = vst [vmem:[#allocation2 + $0x368] sm:$0xff] %v9944_v51   ;;  %v9964_v5 = vpack.c.bf16 %v14488_v36, %v14500_v50  ;;  %v3059_v36 = vpop.f32.mrf.mxu1  ;;  %v10917_v50 = vpop.f32.mrf.mxu0 }
 0x22d   : > { %10111 = vst [vmem:[#allocation2 + $0x270] sm:$0xff] %v9789_v62   ;;  %10142 = vst [vmem:[#allocation2 + $0x370] sm:$0xff] %v9949_v6   ;;  %v9979_v15 = vpack.c.bf16 %v11014_v58, %v3059_v36 }
 0x22e   : > { %10112 = vst [vmem:[#allocation2 + $0x278] sm:$0xff] %v9794_v24   ;;  %10143 = vst [vmem:[#allocation2 + $0x378] sm:$0xff] %v9954_v48   ;;  %v11017_v38 = vpop.f32.mrf.mxu1  ;;  %v2360_v28 = vpop.f32.mrf.mxu0 }
 0x22f   : > { %10113 = vst [vmem:[#allocation2 + $0x280] sm:$0xff] %v9799_v46   ;;  %10144 = vst [vmem:[#allocation2 + $0x380] sm:$0xff] %v9959_v29   ;;  %v9824_v18 = vpack.c.bf16 %v10917_v50, %v2360_v28 }
 0x230   : > { %10114 = vst [vmem:[#allocation2 + $0x288] sm:$0xff] %v9804_v16   ;;  %10145 = vst [vmem:[#allocation2 + $0x388] sm:$0xff] %v9964_v5   ;;  %v3069_v45 = vpop.f32.mrf.mxu1  ;;  %v10920_v0 = vpop.f32.mrf.mxu0 }
 0x231   : > { %10115 = vst [vmem:[#allocation2 + $0x290] sm:$0xff] %v9809_v43   ;;  %10146 = vst [vmem:[#allocation2 + $0x390] sm:$0xff] %v9969_v7   ;;  %v9984_v55 = vpack.c.bf16 %v11017_v38, %v3069_v45 }
 0x232   : > { %10116 = vst [vmem:[#allocation2 + $0x298] sm:$0xff] %v9814_v33   ;;  %10147 = vst [vmem:[#allocation2 + $0x398] sm:$0xff] %v9974_v34   ;;  %v11020_v1 = vpop.f32.mrf.mxu1  ;;  %v2370_v20 = vpop.f32.mrf.mxu0 }
 0x233   : > { %10117 = vst [vmem:[#allocation2 + $0x2a0] sm:$0xff] %v9819_v2   ;;  %10148 = vst [vmem:[#allocation2 + $0x3a0] sm:$0xff] %v9979_v15   ;;  %v9829_v59 = vpack.c.bf16 %v10920_v0, %v2370_v20 }
 0x234   : > { %10118 = vst [vmem:[#allocation2 + $0x2a8] sm:$0xff] %v9824_v18   ;;  %10149 = vst [vmem:[#allocation2 + $0x3a8] sm:$0xff] %v9984_v55   ;;  %v3079_v4 = vpop.f32.mrf.mxu1  ;;  %v10923_v54 = vpop.f32.mrf.mxu0 }
 0x235   : > { %v9989_v27 = vpack.c.bf16 %v11020_v1, %v3079_v4  ;;  %10119 = vst [vmem:[#allocation2 + $0x2b0] sm:$0xff] %v9829_v59  }
 0x236   : > { %v11023_v42 = vpop.f32.mrf.mxu1  ;;  %v2380_v31 = vpop.f32.mrf.mxu0 }
 0x237   : > { %10150 = vst [vmem:[#allocation2 + $0x3b0] sm:$0xff] %v9989_v27   ;;  %v9834_v63 = vpack.c.bf16 %v10923_v54, %v2380_v31 }
 0x238   : > { %v3089_v35 = vpop.f32.mrf.mxu1  ;;  %v10926_v60 = vpop.f32.mrf.mxu0 }
 0x239   : > { %v9994_v30 = vpack.c.bf16 %v11023_v42, %v3089_v35  ;;  %10120 = vst [vmem:[#allocation2 + $0x2b8] sm:$0xff] %v9834_v63  }
 0x23a   : > { %v11026_v32 = vpop.f32.mrf.mxu1  ;;  %v2390_v39 = vpop.f32.mrf.mxu0 }
 0x23b   : > { %10151 = vst [vmem:[#allocation2 + $0x3b8] sm:$0xff] %v9994_v30   ;;  %v9839_v44 = vpack.c.bf16 %v10926_v60, %v2390_v39 }
 0x23c   : > { %v3099_v37 = vpop.f32.mrf.mxu1  ;;  %v10929_v12 = vpop.f32.mrf.mxu0 }
 0x23d   : > { %v9999_v23 = vpack.c.bf16 %v11026_v32, %v3099_v37  ;;  %10121 = vst [vmem:[#allocation2 + $0x2c0] sm:$0xff] %v9839_v44  }
 0x23e   : > { %v11029_v8 = vpop.f32.mrf.mxu1  ;;  %v2400_v53 = vpop.f32.mrf.mxu0 }
 0x23f   : > { %10152 = vst [vmem:[#allocation2 + $0x3c0] sm:$0xff] %v9999_v23   ;;  %v9844_v41 = vpack.c.bf16 %v10929_v12, %v2400_v53 }
 0x240   : > { %v3109_v26 = vpop.f32.mrf.mxu1  ;;  %v10932_v40 = vpop.f32.mrf.mxu0 }
 0x241   : > { %v10004_v17 = vpack.c.bf16 %v11029_v8, %v3109_v26  ;;  %10122 = vst [vmem:[#allocation2 + $0x2c8] sm:$0xff] %v9844_v41  }
 0x242   : > { %v11032_v13 = vpop.f32.mrf.mxu1  ;;  %v2410_v21 = vpop.f32.mrf.mxu0 }
 0x243   : > { %10153 = vst [vmem:[#allocation2 + $0x3c8] sm:$0xff] %v10004_v17   ;;  %v9849_v14 = vpack.c.bf16 %v10932_v40, %v2410_v21 }
 0x244   : > { %v3119_v10 = vpop.f32.mrf.mxu1  ;;  %v10935_v52 = vpop.f32.mrf.mxu0 }
 0x245   : > { %v10009_v3 = vpack.c.bf16 %v11032_v13, %v3119_v10  ;;  %10123 = vst [vmem:[#allocation2 + $0x2d0] sm:$0xff] %v9849_v14  }
 0x246   : > { %v11035_v57 = vpop.f32.mrf.mxu1  ;;  %v2420_v25 = vpop.f32.mrf.mxu0 }
 0x247   : > { %10154 = vst [vmem:[#allocation2 + $0x3d0] sm:$0xff] %v10009_v3   ;;  %v9854_v51 = vpack.c.bf16 %v10935_v52, %v2420_v25 }
 0x248   : > { %v3129_v9 = vpop.f32.mrf.mxu1  ;;  %v10938_v62 = vpop.f32.mrf.mxu0 }
 0x249   : > { %v10014_v19 = vpack.c.bf16 %v11035_v57, %v3129_v9  ;;  %10124 = vst [vmem:[#allocation2 + $0x2d8] sm:$0xff] %v9854_v51  }
 0x24a   : > { %v11038_v47 = vpop.f32.mrf.mxu1  ;;  %v2430_v56 = vpop.f32.mrf.mxu0 }
 0x24b   : > { %10155 = vst [vmem:[#allocation2 + $0x3d8] sm:$0xff] %v10014_v19   ;;  %v9859_v6 = vpack.c.bf16 %v10938_v62, %v2430_v56 }
 0x24c   : > { %v3139_v49 = vpop.f32.mrf.mxu1  ;;  %v10941_v22 = vpop.f32.mrf.mxu0 }
 0x24d   : > { %v10019_v24 = vpack.c.bf16 %v11038_v47, %v3139_v49  ;;  %10125 = vst [vmem:[#allocation2 + $0x2e0] sm:$0xff] %v9859_v6  }
 0x24e   : > { %v11041_v48 = vpop.f32.mrf.mxu1  ;;  %v2440_v46 = vpop.f32.mrf.mxu0 }
 0x24f   : > { %10156 = vst [vmem:[#allocation2 + $0x3e0] sm:$0xff] %v10019_v24   ;;  %v9864_v29 = vpack.c.bf16 %v10941_v22, %v2440_v46 }
 0x250   : > { %v3149_v16 = vpop.f32.mrf.mxu1  ;;  %v10944_v5 = vpop.f32.mrf.mxu0 }
 0x251   : > { %v10024_v61 = vpack.c.bf16 %v11041_v48, %v3149_v16  ;;  %10126 = vst [vmem:[#allocation2 + $0x2e8] sm:$0xff] %v9864_v29  }
 0x252   : > { %v11044_v43 = vpop.f32.mrf.mxu1  ;;  %v2450_v7 = vpop.f32.mrf.mxu0 }
 0x253   : > { %10157 = vst [vmem:[#allocation2 + $0x3e8] sm:$0xff] %v10024_v61   ;;  %v9869_v33 = vpack.c.bf16 %v10944_v5, %v2450_v7 }
 0x254   : > { %v3159_v58 = vpop.f32.mrf.mxu1  ;;  %v10947_v11 = vpop.f32.mrf.mxu0 }
 0x255   : > { %v10029_v34 = vpack.c.bf16 %v11044_v43, %v3159_v58  ;;  %10127 = vst [vmem:[#allocation2 + $0x2f0] sm:$0xff] %v9869_v33  }
 0x256   : > { %v11047_v2 = vpop.f32.mrf.mxu1  ;;  %v2460_v36 = vpop.f32.mrf.mxu0 }
 0x257   : > { %10158 = vst [vmem:[#allocation2 + $0x3f0] sm:$0xff] %v10029_v34   ;;  %v9874_v15 = vpack.c.bf16 %v10947_v11, %v2460_v36 }
 0x258   : > { %v3169_v50 = vpop.f32.mrf.mxu1 }
 0x259   : > { %v10034_v38 = vpack.c.bf16 %v11047_v2, %v3169_v50  ;;  %10128 = vst [vmem:[#allocation2 + $0x2f8] sm:$0xff] %v9874_v15  }
 0x25b   : > { %10159 = vst [vmem:[#allocation2 + $0x3f8] sm:$0xff] %v10034_v38  }
 0x25c PF: > { %s8901_s23 = sshll.u32 %s11606_s30, 7  ;;  %v11630_v28 = vmov 0   ;;  %v5234_v18 = vld [vmem:[%s15904_s2] ss:$4 sm:$0xf]  ;;  %s11632_s25 = smov 127  }
 0x25d   : > { %s5438_s22 = sadd.s32 2, %s8901_s23  ;;  %s5168_s24 = sld [smem:[#allocation4 + %s8901_s23]]  ;;  %11202 = vset.pattern.permute.xlu0 %v11630_v28  ;;  %11203 = vset.pattern.permute.xlu1 %v11630_v28  ;;  %v14589_v45 = vld [vmem:[%s11795_s17] sm:$0xff]  ;;  %v14606_v4 = vld [vmem:[%s11795_s17 + $0x8] sm:$0xff]  ;;  %v14623_v32 = vld [vmem:[%s11795_s17 + $0x18] sm:$0xff] }
 0x25e   : > { %s14583_s20 = sld [smem:[#allocation4 + %s5438_s22]]  ;;  %s5237_s7 = sadd.s32 1, %s8901_s23  ;;  %v8902_v55 = vld [vmem:[%s15904_s2 + $0x1] ss:$4 sm:$0xf]  ;;  %v14626_v39 = vld [vmem:[%s11795_s17 + $0x10] sm:$0xff] }
 0x25f   : > { %s5238_s15 = sld [smem:[#allocation4 + %s5237_s7]]  ;;  %v8903_v0 = vld [vmem:[%s15904_s2 + $0x2] ss:$4 sm:$0xf]  ;;  %v14661_v3 = vld [vmem:[%s11795_s17 + $0x38] sm:$0xff]  ;;  %v14664_v52 = vld [vmem:[%s11795_s17 + $0x30] sm:$0xff] }
 0x260   : > { %v14643_v17 = vld [vmem:[%s11795_s17 + $0x28] sm:$0xff]  ;;  %v14646_v40 = vld [vmem:[%s11795_s17 + $0x20] sm:$0xff]  ;;  %v14697_v24 = vld [vmem:[%s11795_s17 + $0x58] sm:$0xff]  ;;  %s9394_s14 = sshll.u32 %s11606_s30, 8  ;;  %p9066_p10 = scmp.ne.s32.totalorder %s11606_s30, 3 }
 0x261   : > { %v14679_v19 = vld [vmem:[%s11795_s17 + $0x48] sm:$0xff]  ;;  %v14682_v62 = vld [vmem:[%s11795_s17 + $0x40] sm:$0xff]  ;;  %v14700_v22 = vld [vmem:[%s11795_s17 + $0x50] sm:$0xff]  ;;  %s14834_s21 = scalar_lea.vmem [#allocation2], %s9394_s14 }
 0x262   : > { %v14715_v61 = vld [vmem:[%s11795_s17 + $0x68] sm:$0xff]  ;;  %v14718_v5 = vld [vmem:[%s11795_s17 + $0x60] sm:$0xff]  ;;  %v14733_v34 = vld [vmem:[%s11795_s17 + $0x78] sm:$0xff] }
 0x263   : > { %v14597_v1 = vstv %s5168_s24  ;;  %s5236_s23 = smul.f32 %s5168_s24, %s5168_s24  ;;  %s11631_s24 = smov 126   ;;  %v14736_v11 = vld [vmem:[%s11795_s17 + $0x70] sm:$0xff]  ;;  %v14751_v38 = vld [vmem:[%s11795_s17 + $0x88] sm:$0xff]  ;;  %v14754_v28 = vld [vmem:[%s11795_s17 + $0x80] sm:$0xff] }
 0x264   : > { %v14600_v20 = vstv %s14583_s20  ;;  %s5637_s7 = smul.f32 %s14583_s20, %s14583_s20  ;;  %v5235_v59 = vmul.f32 %v5234_v18, %v14597_v1 }
 0x265   : > { %v5441_v27 = vmul.f32 %v14600_v20, %v14589_v45  ;;  %v14610_v54 = vstv %s5238_s15  ;;  %s5436_s0 = smul.f32 %s5238_s15, %s5238_s15  ;;  %v5635_v63 = vmul.f32 %v8903_v0, %v14600_v20  ;;  %v5442_v35 = vmul.f32 %v14600_v20, %v14606_v4 }
 0x266   : > { %v5240_v42 = vmul.f32 %v14610_v54, %v14589_v45  ;;  %v5434_v31 = vmul.f32 %v8902_v55, %v14610_v54  ;;  %v5241_v60 = vmul.f32 %v14610_v54, %v14606_v4  ;;  %v5243_v23 = vmul.f32 %v14610_v54, %v14623_v32 }
 0x267   : > { %5505 = vrot.lane.b32.xlu1 %v5441_v27, %s11631_s24  ;;  %s5437_s20 = sadd.f32 %s5436_s0, %s5236_s23  ;;  %v5242_v8 = vmul.f32 %v14610_v54, %v14626_v39  ;;  %v5444_v41 = vmul.f32 %v14600_v20, %v14623_v32  ;;  %v5443_v26 = vmul.f32 %v14600_v20, %v14626_v39  ;;  %v5245_v13 = vmul.f32 %v14610_v54, %v14643_v17  ;;  %v14769_v27 = vld [vmem:[%s11795_s17 + $0x90] sm:$0xff] }
 0x268   : > { %5304 = vrot.lane.b32.xlu0 %v5240_v42, %s11632_s25  ;;  %v5435_v30 = vadd.f32 %v5434_v31, %v5235_v59  ;;  %v5244_v21 = vmul.f32 %v14610_v54, %v14646_v40  ;;  %v5446_v14 = vmul.f32 %v14600_v20, %v14643_v17  ;;  %v5445_v10 = vmul.f32 %v14600_v20, %v14646_v40  ;;  %v14772_v42 = vld [vmem:[%s11795_s17 + $0x98] sm:$0xff] }
 0x269   : > { %s5638_s15 = sadd.f32 %s5637_s7, %s5437_s20  ;;  %v5247_v57 = vmul.f32 %v14610_v54, %v14661_v3  ;;  %v5246_v25 = vmul.f32 %v14610_v54, %v14664_v52  ;;  %v5448_v51 = vmul.f32 %v14600_v20, %v14661_v3  ;;  %v5447_v9 = vmul.f32 %v14600_v20, %v14664_v52 }
 0x26a   : > { %v5636_v44 = vadd.f32 %v5635_v63, %v5435_v30  ;;  %v5249_v47 = vmul.f32 %v14610_v54, %v14679_v19  ;;  %v5248_v56 = vmul.f32 %v14610_v54, %v14682_v62  ;;  %v5450_v6 = vmul.f32 %v14600_v20, %v14679_v19 }
 0x26b   : > { %v5640_v37 = vstv %s5638_s15  ;;  %5507 = vrot.lane.b32.xlu1 %v5442_v35, %s11631_s24  ;;  %v5449_v49 = vmul.f32 %v14600_v20, %v14682_v62  ;;  %v5251_v48 = vmul.f32 %v14610_v54, %v14697_v24  ;;  %v5250_v46 = vmul.f32 %v14610_v54, %v14700_v22 }
 0x26c   : > { %v5639_v12 = vmul.f32 2.0, %v5636_v44  ;;  %5306 = vrot.lane.b32.xlu0 %v5241_v60, %s11632_s25  ;;  %v5452_v29 = vmul.f32 %v14600_v20, %v14697_v24  ;;  %v5451_v16 = vmul.f32 %v14600_v20, %v14700_v22  ;;  %v5253_v43 = vmul.f32 %v14610_v54, %v14715_v61  ;;  %v14787_v60 = vld [vmem:[%s11795_s17 + $0xa0] sm:$0xff]  ;;  %v14790_v44 = vld [vmem:[%s11795_s17 + $0xa8] sm:$0xff] }
 0x26d   : > { %v5252_v7 = vmul.f32 %v14610_v54, %v14718_v5  ;;  %v5454_v33 = vmul.f32 %v14600_v20, %v14715_v61  ;;  %v5453_v58 = vmul.f32 %v14600_v20, %v14718_v5  ;;  %v5255_v2 = vmul.f32 %v14610_v54, %v14733_v34 }
 0x26e   : > { %v14634_v53 = vadd.f32 %v5640_v37, %v5639_v12  ;;  %v5254_v36 = vmul.f32 %v14610_v54, %v14736_v11  ;;  %v5456_v15 = vmul.f32 %v14600_v20, %v14733_v34  ;;  %v5455_v50 = vmul.f32 %v14600_v20, %v14736_v11 }
 0x26f   : > { %5310 = vrot.lane.b32.xlu1 %v5243_v23, %s11632_s25  ;;  %v5257_v18 = vmul.f32 %v14610_v54, %v14751_v38  ;;  %v5256_v55 = vmul.f32 %v14610_v54, %v14754_v28  ;;  %v5457_v0 = vmul.f32 %v14600_v20, %v14754_v28  ;;  %v5458_v59 = vmul.f32 %v14600_v20, %v14751_v38 }
 0x270   : > { %5308 = vrot.lane.b32.xlu0 %v5242_v8, %s11632_s25  ;;  %v5258_v31 = vmul.f32 %v14610_v54, %v14769_v27  ;;  %v5259_v63 = vmul.f32 %v14610_v54, %v14772_v42  ;;  %v5459_v35 = vmul.f32 %v14600_v20, %v14769_v27  ;;  %v5460_v30 = vmul.f32 %v14600_v20, %v14772_v42 }
 0x271   : > { %v5260_v37 = vmul.f32 %v14610_v54, %v14787_v60  ;;  %v5261_v23 = vmul.f32 %v14610_v54, %v14790_v44  ;;  %v5461_v12 = vmul.f32 %v14600_v20, %v14787_v60  ;;  %v5462_v8 = vmul.f32 %v14600_v20, %v14790_v44 }
 0x273   : > { %5511 = vrot.lane.b32.xlu1 %v5444_v41, %s11631_s24  ;;  %v14805_v41 = vld [vmem:[%s11795_s17 + $0xb0] sm:$0xff] }
 0x274   : > { %5509 = vrot.lane.b32.xlu0 %v5443_v26, %s11631_s24  ;;  %v14808_v26 = vld [vmem:[%s11795_s17 + $0xb8] sm:$0xff] }
 0x277   : > { %5314 = vrot.lane.b32.xlu1 %v5245_v13, %s11632_s25  ;;  %v5262_v13 = vmul.f32 %v14610_v54, %v14805_v41 }
 0x278   : > { %5312 = vrot.lane.b32.xlu0 %v5244_v21, %s11632_s25  ;;  %v5263_v21 = vmul.f32 %v14610_v54, %v14808_v26 }
 0x27b   : > { %5515 = vrot.lane.b32.xlu1 %v5446_v14, %s11631_s24  ;;  %v5463_v14 = vmul.f32 %v14600_v20, %v14805_v41 }
 0x27c   : > { %5513 = vrot.lane.b32.xlu0 %v5445_v10, %s11631_s24  ;;  %v5464_v10 = vmul.f32 %v14600_v20, %v14808_v26 }
 0x27f   : > { %5318 = vrot.lane.b32.xlu1 %v5247_v57, %s11632_s25  ;;  %v5202_v57 = vmul.f32 %v14597_v1, %v14589_v45  ;;  %v11204_v45 = vld [vmem:[%s14834_s21 + $0x78] sm:$0xff]  }
 0x280   : > { %5316 = vrot.lane.b32.xlu0 %v5246_v25, %s11632_s25  ;;  %10424 = vmatprep.subr.bf16.mxu0 %v11204_v45  ;;  %v5208_v45 = vmul.f32 %v14597_v1, %v14664_v52 }
 0x283   : > { %5519 = vrot.lane.b32.xlu1 %v5448_v51, %s11631_s24 }
 0x284   : > { %5517 = vrot.lane.b32.xlu0 %v5447_v9, %s11631_s24 }
 0x287   : > { %5322 = vrot.lane.b32.xlu1 %v5249_v47, %s11632_s25  ;;  %v5203_v47 = vmul.f32 %v14597_v1, %v14606_v4  ;;  %v5205_v4 = vmul.f32 %v14597_v1, %v14623_v32 }
 0x288   : > { %5320 = vrot.lane.b32.xlu0 %v5248_v56, %s11632_s25 }
 0x28b   : > { %5523 = vrot.lane.b32.xlu1 %v5450_v6, %s11631_s24 }
 0x28c   : > { %5521 = vrot.lane.b32.xlu0 %v5449_v49, %s11631_s24 }
 0x28f   : > { %5326 = vrot.lane.b32.xlu1 %v5251_v48, %s11632_s25  ;;  %v14830_v48 = vld [vmem:[%s11795_s17 + $0xc8] sm:$0xff] }
 0x290   : > { %5324 = vrot.lane.b32.xlu0 %v5250_v46, %s11632_s25 }
 0x293   : > { %5527 = vrot.lane.b32.xlu1 %v5452_v29, %s11631_s24 }
 0x294   : > { %5525 = vrot.lane.b32.xlu0 %v5451_v16, %s11631_s24  ;;  %v5204_v16 = vmul.f32 %v14597_v1, %v14626_v39  ;;  %v5265_v39 = vmul.f32 %v14610_v54, %v14830_v48 }
 0x297   : > { %5330 = vrot.lane.b32.xlu1 %v5253_v43, %s11632_s25  ;;  %v14840_v43 = vld [vmem:[%s11795_s17 + $0xc0] sm:$0xff] }
 0x298   : > { %5328 = vrot.lane.b32.xlu0 %v5252_v7, %s11632_s25  ;;  %v11205_v7 = vld [vmem:[%s14834_s21 + $0xf8] sm:$0xff]  }
 0x299   : > { %10536 = vmatprep.subr.bf16.mxu1 %v11205_v7 }
 0x29b   : > { %5531 = vrot.lane.b32.xlu1 %v5454_v33, %s11631_s24 }
 0x29c   : > { %5529 = vrot.lane.b32.xlu0 %v5453_v58, %s11631_s24 }
 0x29f   : > { %5334 = vrot.lane.b32.xlu1 %v5255_v2, %s11632_s25  ;;  %v11206_v2 = vld [vmem:[%s14834_s21 + $0x38] sm:$0xff]  }
 0x2a0   : > { %5332 = vrot.lane.b32.xlu0 %v5254_v36, %s11632_s25  ;;  %10425 = vmatpush3.bf16.msra.mxu0 %v11206_v2 }
 0x2a3   : > { %5535 = vrot.lane.b32.xlu1 %v5456_v15, %s11631_s24  ;;  %v11207_v15 = vld [vmem:[%s14834_s21 + $0xb8] sm:$0xff]  }
 0x2a4   : > { %5533 = vrot.lane.b32.xlu0 %v5455_v50, %s11631_s24  ;;  %10537 = vmatpush3.bf16.msra.mxu1 %v11207_v15  ;;  %v11218_v15 = vld [vmem:[%s14834_s21 + $0x20] sm:$0xff]  }
 0x2a7   : > { %5338 = vrot.lane.b32.xlu1 %v5257_v18, %s11632_s25 }
 0x2a8   : > { %5336 = vrot.lane.b32.xlu0 %v5256_v55, %s11632_s25 }
 0x2ab   : > { %5537 = vrot.lane.b32.xlu1 %v5457_v0, %s11631_s24  ;;  %v5264_v0 = vmul.f32 %v14610_v54, %v14840_v43 }
 0x2ac   : > { %5539 = vrot.lane.b32.xlu0 %v5458_v59, %s11631_s24  ;;  %v11208_v59 = vld [vmem:[%s14834_s21 + $0x70] sm:$0xff]  }
 0x2ad   : > { %10426 = vmatprep.subr.bf16.mxu0 %v11208_v59 }
 0x2af   : > { %5340 = vrot.lane.b32.xlu1 %v5258_v31, %s11632_s25 }
 0x2b0   : > { %5342 = vrot.lane.b32.xlu0 %v5259_v63, %s11632_s25 }
 0x2b3   : > { %5541 = vrot.lane.b32.xlu1 %v5459_v35, %s11631_s24  ;;  %v11209_v35 = vld [vmem:[%s14834_s21 + $0xf0] sm:$0xff]  }
 0x2b4   : > { %5543 = vrot.lane.b32.xlu0 %v5460_v30, %s11631_s24  ;;  %10538 = vmatprep.subr.bf16.mxu1 %v11209_v35 }
 0x2b7   : > { %5344 = vrot.lane.b32.xlu1 %v5260_v37, %s11632_s25  ;;  %v5206_v37 = vmul.f32 %v14597_v1, %v14646_v40  ;;  %v5466_v40 = vmul.f32 %v14600_v20, %v14830_v48 }
 0x2b8   : > { %5346 = vrot.lane.b32.xlu0 %v5261_v23, %s11632_s25  ;;  %v11210_v23 = vld [vmem:[%s14834_s21 + $0x30] sm:$0xff]  }
 0x2b9   : > { %10427 = vmatpush3.bf16.msra.mxu0 %v11210_v23  ;;  %v11222_v23 = vld [vmem:[%s14834_s21 + $0x18] sm:$0xff]  }
 0x2bb   : > { %5545 = vrot.lane.b32.xlu1 %v5461_v12, %s11631_s24 }
 0x2bc   : > { %5547 = vrot.lane.b32.xlu0 %v5462_v8, %s11631_s24  ;;  %v5207_v8 = vmul.f32 %v14597_v1, %v14643_v17 }
 0x2bf   : > { %5348 = vrot.lane.b32.xlu1 %v5262_v13, %s11632_s25  ;;  %v11211_v13 = vld [vmem:[%s14834_s21 + $0xb0] sm:$0xff]  }
 0x2c0   : > { %5350 = vrot.lane.b32.xlu0 %v5263_v21, %s11632_s25  ;;  %10539 = vmatpush3.bf16.msra.mxu1 %v11211_v13  ;;  %v11223_v13 = vld [vmem:[%s14834_s21 + $0x98] sm:$0xff]  }
 0x2c3   : > { %5549 = vrot.lane.b32.xlu1 %v5463_v14, %s11631_s24 }
 0x2c4   : > { %5551 = vrot.lane.b32.xlu0 %v5464_v10, %s11631_s24  ;;  %v11212_v10 = vld [vmem:[%s14834_s21 + $0x68] sm:$0xff]  }
 0x2c5   : > { %10428 = vmatprep.subr.bf16.mxu0 %v11212_v10 }
 0x2d9   : > { %v5506_v25 = vpop.permute.xlu1 %5505 }
 0x2da   : > { %v5305_v51 = vpop.permute.xlu0 %5304 }
 0x2db   : > { %v5400_v9 = vadd.f32 %v5305_v51, %v5202_v57 }
 0x2dd   : > { %v5601_v56 = vadd.f32 %v5506_v25, %v5400_v9  ;;  %v5508_v6 = vpop.permute.xlu1 %5507  ;;  %v11213_v25 = vld [vmem:[%s14834_s21 + $0xe8] sm:$0xff]  }
 0x2de   : > { %v5307_v49 = vpop.permute.xlu0 %5306  ;;  %10540 = vmatprep.subr.bf16.mxu1 %v11213_v25  ;;  %v11214_v9 = vld [vmem:[%s14834_s21 + $0x28] sm:$0xff]  }
 0x2df   : > { %v5642_v46 = vmul.f32 2.0, %v5601_v56  ;;  %v5401_v29 = vadd.f32 %v5307_v49, %v5203_v47  ;;  %v5465_v56 = vmul.f32 %v14600_v20, %v14840_v43  ;;  %10429 = vmatpush3.bf16.msra.mxu0 %v11214_v9  ;;  %v11227_v9 = vld [vmem:[%s14834_s21 + $0x90] sm:$0xff]  }
 0x2e1   : > { %v5602_v33 = vadd.f32 %v5508_v6, %v5401_v29  ;;  %5804 = vperm.xlu0 %11202, %v5642_v46   ;;  %v5311_v58 = vpop.permute.xlu1 %5310  ;;  %v11215_v6 = vld [vmem:[%s14834_s21 + $0xa8] sm:$0xff]   ;;  %v14869_v29 = vld [vmem:[%s11795_s17 + $0xd8] sm:$0xff] }
 0x2e2   : > { %v5309_v36 = vpop.permute.xlu0 %5308  ;;  %v5403_v32 = vadd.f32 %v5311_v58, %v5205_v4  ;;  %10541 = vmatpush3.bf16.msra.mxu1 %v11215_v6  ;;  %v11216_v4 = vld [vmem:[%s14834_s21 + $0x60] sm:$0xff]   ;;  %v14877_v58 = vld [vmem:[%s11795_s17 + $0xd0] sm:$0xff]  ;;  %v5267_v52 = vmul.f32 %v14610_v54, %v14869_v29  ;;  %v11228_v6 = vld [vmem:[%s14834_s21 + $0x48] sm:$0xff]  }
 0x2e3   : > { %v5643_v50 = vmul.f32 2.0, %v5602_v33  ;;  %v5402_v18 = vadd.f32 %v5309_v36, %v5204_v16  ;;  %v5209_v33 = vmul.f32 %v14597_v1, %v14661_v3  ;;  %10430 = vmatprep.subr.bf16.mxu0 %v11216_v4  ;;  %v11220_v3 = vld [vmem:[%s14834_s21 + $0x58] sm:$0xff]   ;;  %v5213_v4 = vmul.f32 %v14597_v1, %v14697_v24 }
 0x2e4   : > { %10431 = vmatpush3.bf16.msra.mxu0 %v11218_v15 }
 0x2e5   : > { %5809 = vperm.xlu1 %11203, %v5643_v50   ;;  %v5512_v55 = vpop.permute.xlu1 %5511  ;;  %5354 = vrot.lane.b32.xlu0 %v5265_v39, %s11632_s25  ;;  %v11217_v39 = vld [vmem:[%s14834_s21 + $0xe0] sm:$0xff]  }
 0x2e6   : > { %v5604_v31 = vadd.f32 %v5512_v55, %v5403_v32  ;;  %v5510_v63 = vpop.permute.xlu0 %5509  ;;  %10542 = vmatprep.subr.bf16.mxu1 %v11217_v39  ;;  %10432 = vmatprep.subr.bf16.mxu0 %v11220_v3  ;;  %v11230_v39 = vld [vmem:[%s14834_s21 + $0x8] sm:$0xff]  }
 0x2e7   : > { %v5603_v30 = vadd.f32 %v5510_v63, %v5402_v18  ;;  %v11219_v18 = vld [vmem:[%s14834_s21 + $0xa0] sm:$0xff]  }
 0x2e8   : > { %v5645_v12 = vmul.f32 2.0, %v5604_v31  ;;  %10543 = vmatpush3.bf16.msra.mxu1 %v11219_v18  ;;  %v5266_v31 = vmul.f32 %v14610_v54, %v14877_v58  ;;  %10433 = vmatpush3.bf16.msra.mxu0 %v11222_v23 }
 0x2e9   : > { %v5644_v21 = vmul.f32 2.0, %v5603_v30  ;;  %5352 = vrot.lane.b32.xlu1 %v5264_v0, %s11632_s25  ;;  %v5315_v14 = vpop.permute.xlu1 %5314  ;;  %v11221_v0 = vld [vmem:[%s14834_s21 + $0xd8] sm:$0xff]  }
 0x2ea   : > { %v5313_v57 = vpop.permute.xlu0 %5312  ;;  %5819 = vperm.xlu0 %11202, %v5645_v12   ;;  %v5405_v17 = vadd.f32 %v5315_v14, %v5207_v8  ;;  %10544 = vmatprep.subr.bf16.mxu1 %v11221_v0  ;;  %v5211_v8 = vmul.f32 %v14597_v1, %v14679_v19  ;;  %v11234_v0 = vld [vmem:[%s14834_s21] sm:$0xff]  }
 0x2eb   : > { %v5404_v51 = vadd.f32 %v5313_v57, %v5206_v37  ;;  %v5210_v37 = vmul.f32 %v14597_v1, %v14682_v62  ;;  %v11224_v57 = vld [vmem:[%s14834_s21 + $0x50] sm:$0xff]  }
 0x2ec   : > { %10545 = vmatpush3.bf16.msra.mxu1 %v11223_v13  ;;  %v11225_v62 = vld [vmem:[%s14834_s21 + $0xd0] sm:$0xff]   ;;  %10434 = vmatprep.subr.bf16.mxu0 %v11224_v57  ;;  %v14928_v13 = vld [vmem:[%s11795_s17 + $0xe8] sm:$0xff] }
 0x2ed   : > { %5814 = vperm.xlu1 %11203, %v5644_v21   ;;  %v5516_v47 = vpop.permute.xlu1 %5515  ;;  %10546 = vmatprep.subr.bf16.mxu1 %v11225_v62 }
 0x2ee   : > { %v5606_v49 = vadd.f32 %v5516_v47, %v5405_v17  ;;  %v5514_v46 = vpop.permute.xlu0 %5513  ;;  %5555 = vrot.lane.b32.xlu0 %v5466_v40, %s11631_s24  ;;  %v5467_v17 = vmul.f32 %v14600_v20, %v14877_v58 }
 0x2ef   : > { %v5605_v16 = vadd.f32 %v5514_v46, %v5404_v51  ;;  %v11226_v51 = vld [vmem:[%s14834_s21 + $0x10] sm:$0xff]   ;;  %v5212_v46 = vmul.f32 %v14597_v1, %v14700_v22 }
 0x2f0   : > { %v5647_v7 = vmul.f32 2.0, %v5606_v49  ;;  %10435 = vmatpush3.bf16.msra.mxu0 %v11226_v51  ;;  %10547 = vmatpush3.bf16.msra.mxu1 %v11227_v9 }
 0x2f1   : > { %v5646_v2 = vmul.f32 2.0, %v5605_v16  ;;  %5553 = vrot.lane.b32.xlu1 %v5465_v56, %s11631_s24  ;;  %v5319_v36 = vpop.permute.xlu1 %5318  ;;  %v11229_v16 = vld [vmem:[%s14834_s21 + $0xc8] sm:$0xff]   ;;  %10436 = vmatprep.subr.bf16.mxu0 %v11228_v6  ;;  %v14942_v6 = vld [vmem:[%s11795_s17 + $0xf0] sm:$0xff] }
 0x2f2   : > { %v5317_v50 = vpop.permute.xlu0 %5316  ;;  %5829 = vperm.xlu0 %11202, %v5647_v7   ;;  %v5407_v55 = vadd.f32 %v5319_v36, %v5209_v33  ;;  %10548 = vmatprep.subr.bf16.mxu1 %v11229_v16  ;;  %v11231_v36 = vld [vmem:[%s14834_s21 + $0x88] sm:$0xff]  }
 0x2f3   : > { %v5406_v32 = vadd.f32 %v5317_v50, %v5208_v45  ;;  %v11232_v50 = vld [vmem:[%s14834_s21 + $0x40] sm:$0xff]  }
 0x2f4   : > { %10437 = vmatpush3.bf16.msra.mxu0 %v11230_v39  ;;  %10549 = vmatpush3.bf16.msra.mxu1 %v11231_v36  ;;  %v5219_v39 = vmul.f32 %v14597_v1, %v14751_v38 }
 0x2f5   : > { %5824 = vperm.xlu1 %11203, %v5646_v2   ;;  %v5520_v59 = vpop.permute.xlu1 %5519  ;;  %10438 = vmatprep.subr.bf16.mxu0 %v11232_v50 }
 0x2f6   : > { %v5608_v63 = vadd.f32 %v5520_v59, %v5407_v55  ;;  %v5518_v35 = vpop.permute.xlu0 %5517  ;;  %5358 = vrot.lane.b32.xlu0 %v5267_v52, %s11632_s25  ;;  %v5214_v55 = vmul.f32 %v14597_v1, %v14718_v5 }
 0x2f7   : > { %v5607_v30 = vadd.f32 %v5518_v35, %v5406_v32  ;;  %v11233_v32 = vld [vmem:[%s14834_s21 + $0xc0] sm:$0xff]  }
 0x2f8   : > { %v5649_v12 = vmul.f32 2.0, %v5608_v63  ;;  %v14920_v63 = vld [vmem:[%s11795_s17 + $0xe0] sm:$0xff]  ;;  %10550 = vmatprep.subr.bf16.mxu1 %v11233_v32  ;;  %10439 = vmatpush3.bf16.msra.mxu0 %v11234_v0  ;;  %v5221_v32 = vmul.f32 %v14597_v1, %v14772_v42 }
 0x2f9   : > { %v5648_v21 = vmul.f32 2.0, %v5607_v30  ;;  %5356 = vrot.lane.b32.xlu1 %v5266_v31, %s11632_s25  ;;  %v5323_v14 = vpop.permute.xlu1 %5322  ;;  %v5215_v31 = vmul.f32 %v14597_v1, %v14715_v61  ;;  %v11235_v35 = vld [vmem:[%s14834_s21 + $0x80] sm:$0xff]   ;;  %v5469_v9 = vmul.f32 %v14600_v20, %v14920_v63 }
 0x2fa   : > { %v5321_v10 = vpop.permute.xlu0 %5320  ;;  %5839 = vperm.xlu0 %11202, %v5649_v12   ;;  %v5409_v25 = vadd.f32 %v5323_v14, %v5211_v8  ;;  %v5468_v12 = vmul.f32 %v14600_v20, %v14869_v29  ;;  %10551 = vmatpush3.bf16.msra.mxu1 %v11235_v35  ;;  %v5268_v8 = vmul.f32 %v14610_v54, %v14920_v63 }
 0x2fb   : > { %v5408_v40 = vadd.f32 %v5321_v10, %v5210_v37  ;;  %v5269_v10 = vmul.f32 %v14610_v54, %v14928_v13 }
 0x2fd   : > { %5834 = vperm.xlu1 %11203, %v5648_v21   ;;  %v5524_v19 = vpop.permute.xlu1 %5523 }
 0x2fe   : > { %v5610_v47 = vadd.f32 %v5524_v19, %v5409_v25  ;;  %v5522_v56 = vpop.permute.xlu0 %5521 }
 0x2ff   : > { %v5609_v49 = vadd.f32 %v5522_v56, %v5408_v40  ;;  %v5216_v40 = vmul.f32 %v14597_v1, %v14736_v11  ;;  %v5217_v56 = vmul.f32 %v14597_v1, %v14733_v34 }
 0x300   : > { %v5651_v45 = vmul.f32 2.0, %v5610_v47 }
 0x301   : > { %v5650_v7 = vmul.f32 2.0, %v5609_v49  ;;  %5557 = vrot.lane.b32.xlu1 %v5467_v17, %s11631_s24  ;;  %v5327_v33 = vpop.permute.xlu1 %5326 }
 0x302   : > { %v5325_v2 = vpop.permute.xlu0 %5324  ;;  %5849 = vperm.xlu0 %11202, %v5651_v45   ;;  %v5411_v15 = vadd.f32 %v5327_v33, %v5213_v4  ;;  %v5218_v45 = vmul.f32 %v14597_v1, %v14754_v28  ;;  %v5270_v4 = vmul.f32 %v14610_v54, %v14942_v6 }
 0x303   : > { %v5410_v22 = vadd.f32 %v5325_v2, %v5212_v46  ;;  %v5470_v46 = vmul.f32 %v14600_v20, %v14928_v13 }
 0x305   : > { %5844 = vperm.xlu1 %11203, %v5650_v7   ;;  %v5528_v24 = vpop.permute.xlu1 %5527  ;;  %v14952_v7 = vld [vmem:[%s11795_s17 + $0xf8] sm:$0xff]  ;;  %s6239_s17 = sld [smem:[#allocation7 + %s11606_s30]] }
 0x306   : > { %v5612_v52 = vadd.f32 %v5528_v24, %v5411_v15  ;;  %v5526_v18 = vpop.permute.xlu0 %5525  ;;  %v5271_v36 = vmul.f32 %v14610_v54, %v14952_v7  ;;  %v5471_v54 = vmul.f32 %v14600_v20, %v14942_v6  ;;  %v5472_v35 = vmul.f32 %v14600_v20, %v14952_v7 }
 0x307   : > { %v5611_v3 = vadd.f32 %v5526_v18, %v5410_v22  ;;  %v5220_v18 = vmul.f32 %v14597_v1, %v14769_v27 }
 0x308   : > { %v5653_v59 = vmul.f32 2.0, %v5612_v52 }
 0x309   : > { %v5652_v30 = vmul.f32 2.0, %v5611_v3  ;;  %v5331_v37 = vpop.permute.xlu1 %5330 }
 0x30a   : > { %v5329_v23 = vpop.permute.xlu0 %5328  ;;  %5859 = vperm.xlu0 %11202, %v5653_v59   ;;  %v5413_v61 = vadd.f32 %v5331_v37, %v5215_v31 }
 0x30b   : > { %v5412_v5 = vadd.f32 %v5329_v23, %v5214_v55  ;;  %5854 = vperm.xlu1 %11203, %v5652_v30   ;;  %s6240_s13 = smul.f32 -0.5, %s6239_s17 }
 0x30d   : > { %v5532_v21 = vpop.permute.xlu1 %5531 }
 0x30e   : > { %v5530_v14 = vpop.permute.xlu0 %5529  ;;  %5559 = vrot.lane.b32.xlu0 %v5468_v12, %s11631_s24  ;;  %v5614_v62 = vadd.f32 %v5532_v21, %v5413_v61  ;;  %v5223_v61 = vmul.f32 %v14597_v1, %v14790_v44 }
 0x30f   : > { %v5613_v57 = vadd.f32 %v5530_v14, %v5412_v5  ;;  %5360 = vrot.lane.b32.xlu1 %v5268_v8, %s11632_s25  ;;  %v5222_v5 = vmul.f32 %v14597_v1, %v14787_v60  ;;  %v5224_v60 = vmul.f32 %v14597_v1, %v14805_v41  ;;  %v6091_v41 = vlaneseq }
 0x310   : > { %v5655_v47 = vmul.f32 2.0, %v5614_v62 }
 0x311   : > { %v5654_v25 = vmul.f32 2.0, %v5613_v57  ;;  %v5335_v51 = vpop.permute.xlu1 %5334 }
 0x312   : > { %v5333_v19 = vpop.permute.xlu0 %5332  ;;  %5362 = vrot.lane.b32.xlu0 %v5269_v10, %s11632_s25  ;;  %v5415_v34 = vadd.f32 %v5335_v51, %v5217_v56 }
 0x313   : > { %v5414_v17 = vadd.f32 %v5333_v19, %v5216_v40  ;;  %5864 = vperm.xlu1 %11203, %v5654_v25  }
 0x315   : > { %v5536_v49 = vpop.permute.xlu1 %5535 }
 0x316   : > { %v5534_v11 = vpop.permute.xlu0 %5533  ;;  %5869 = vperm.xlu0 %11202, %v5655_v47   ;;  %v5616_v28 = vadd.f32 %v5536_v49, %v5415_v34 }
 0x317   : > { %v5615_v16 = vadd.f32 %v5534_v11, %v5414_v17  ;;  %5561 = vrot.lane.b32.xlu1 %v5469_v9, %s11631_s24  ;;  %v5225_v17 = vmul.f32 %v14597_v1, %v14808_v26  ;;  %v6092_v26 = vshrl.u32 %v6091_v41, 7  ;;  %v5688_v41 = vld [vmem:[#allocation3 + $0x108] sm:$0xff] }
 0x318   : > { %v5657_v3 = vmul.f32 2.0, %v5616_v28  ;;  %v5675_v28 = vld [vmem:[#allocation3 + $0x3b0] sm:$0xff] }
 0x319   : > { %v5339_v33 = vpop.permute.xlu1 %5338  ;;  %v5656_v22 = vmul.f32 2.0, %v5615_v16 }
 0x31a   : > { %v5337_v2 = vpop.permute.xlu0 %5336  ;;  %5563 = vrot.lane.b32.xlu0 %v5470_v46, %s11631_s24  ;;  %v5417_v50 = vadd.f32 %v5339_v33, %v5219_v39  ;;  %v6093_v39 = vsub.s32 0, %v6092_v26 }
 0x31b   : > { %v5416_v15 = vadd.f32 %v5337_v2, %v5218_v45  ;;  %5364 = vrot.lane.b32.xlu1 %v5270_v4, %s11632_s25  ;;  %v6097_v2 = vsub.s32 1, %v6092_v26 }
 0x31d   : > { %v5538_v24 = vpop.permute.xlu1 %5537 }
 0x31e   : > { %v5540_v52 = vpop.permute.xlu0 %5539  ;;  %5366 = vrot.lane.b32.xlu0 %v5271_v36, %s11632_s25  ;;  %v5617_v38 = vadd.f32 %v5538_v24, %v5416_v15  ;;  %v6101_v36 = vsub.s32 2, %v6092_v26  ;;  %v5674_v15 = vld [vmem:[#allocation3 + $0x2b0] sm:$0xff]  ;;  %v5676_v24 = vld [vmem:[#allocation3 + $0xd8] sm:$0xff] }
 0x31f   : > { %5874 = vperm.xlu1 %11203, %v5656_v22   ;;  %v5618_v0 = vadd.f32 %v5540_v52, %v5417_v50  ;;  %v6105_v22 = vsub.s32 3, %v6092_v26  ;;  %v5677_v50 = vld [vmem:[#allocation3 + $0x18] sm:$0xff]  ;;  %v14981_v52 = vrot.slane %v14634_v53, %v6093_v39  ;;  %v5689_v26 = vld [vmem:[#allocation3 + $0x60] sm:$0xff] }
 0x320   : > { %v5658_v30 = vmul.f32 2.0, %v5617_v38  ;;  %v14987_v38 = vrot.slane %v14634_v53, %v6101_v36 }
 0x321   : > { %v5341_v55 = vpop.permute.xlu1 %5340  ;;  %v5659_v23 = vmul.f32 2.0, %v5618_v0 }
 0x322   : > { %v5418_v59 = vadd.f32 %v5341_v55, %v5220_v18  ;;  %v5343_v31 = vpop.permute.xlu0 %5342  ;;  %5879 = vperm.xlu0 %11202, %v5657_v3   ;;  %v14984_v18 = vrot.slane %v14634_v53, %v6097_v2 }
 0x323   : > { %v5419_v37 = vadd.f32 %v5343_v31, %v5221_v32  ;;  %5565 = vrot.lane.b32.xlu1 %v5471_v54, %s11631_s24  ;;  %v14990_v32 = vrot.slane %v14634_v53, %v6105_v22  ;;  %v14992_v31 = vstv %s6240_s13  ;;  %v5681_v53 = vld [vmem:[#allocation3 + $0x48] sm:$0xff]  ;;  %v5682_v22 = vld [vmem:[#allocation3 + $0x380] sm:$0xff] }
 0x325   : > { %v5542_v27 = vpop.permute.xlu1 %5541 }
 0x326   : > { %v5619_v12 = vadd.f32 %v5542_v27, %v5418_v59  ;;  %v5544_v42 = vpop.permute.xlu0 %5543  ;;  %5567 = vrot.lane.b32.xlu0 %v5472_v35, %s11631_s24  ;;  %v5678_v35 = vld [vmem:[#allocation3 + $0x50] sm:$0xff] }
 0x327   : > { %v5620_v8 = vadd.f32 %v5544_v42, %v5419_v37  ;;  %5884 = vperm.xlu1 %11203, %v5658_v30   ;;  %v5680_v42 = vld [vmem:[#allocation3 + $0x330] sm:$0xff] }
 0x328   : > { %v5660_v21 = vmul.f32 2.0, %v5619_v12  ;;  %v5679_v12 = vld [vmem:[#allocation3 + $0x368] sm:$0xff] }
 0x329   : > { %v5345_v20 = vpop.permute.xlu1 %5344  ;;  %v5661_v14 = vmul.f32 2.0, %v5620_v8  ;;  %v5227_v8 = vmul.f32 %v14597_v1, %v14830_v48 }
 0x32a   : > { %v5420_v10 = vadd.f32 %v5345_v20, %v5222_v5  ;;  %v5347_v57 = vpop.permute.xlu0 %5346  ;;  %5889 = vperm.xlu0 %11202, %v5659_v23   ;;  %v15004_v20 = vmul.f32 %v14597_v1, %v14869_v29 }
 0x32b   : > { %v5421_v40 = vadd.f32 %v5347_v57, %v5223_v61  ;;  %5894 = vperm.xlu1 %11203, %v5660_v21   ;;  %v5226_v21 = vmul.f32 %v14597_v1, %v14840_v43 }
 0x32d   : > { %v5546_v62 = vpop.permute.xlu1 %5545 }
 0x32e   : > { %v5621_v25 = vadd.f32 %v5546_v62, %v5420_v10  ;;  %v5548_v51 = vpop.permute.xlu0 %5547  ;;  %5899 = vperm.xlu0 %11202, %v5661_v14   ;;  %v15008_v14 = vmul.f32 %v14597_v1, %v14877_v58 }
 0x32f   : > { %v5622_v19 = vadd.f32 %v5548_v51, %v5421_v40 }
 0x330   : > { %v5662_v44 = vmul.f32 2.0, %v5621_v25 }
 0x331   : > { %v5663_v9 = vmul.f32 2.0, %v5622_v19  ;;  %v5349_v47 = vpop.permute.xlu1 %5348 }
 0x332   : > { %v5422_v56 = vadd.f32 %v5349_v47, %v5224_v60  ;;  %v5351_v49 = vpop.permute.xlu0 %5350  ;;  %5904 = vperm.xlu1 %11203, %v5662_v44  }
 0x333   : > { %v5423_v11 = vadd.f32 %v5351_v49, %v5225_v17  ;;  %5909 = vperm.xlu0 %11202, %v5663_v9   ;;  %v15016_v17 = vmul.f32 %v14597_v1, %v14920_v63  ;;  %v5686_v49 = vld [vmem:[#allocation3 + $0x320] sm:$0xff] }
 0x335   : > { %v5550_v46 = vpop.permute.xlu1 %5549 }
 0x336   : > { %v5623_v16 = vadd.f32 %v5550_v46, %v5422_v56  ;;  %v5552_v45 = vpop.permute.xlu0 %5551 }
 0x337   : > { %v5624_v4 = vadd.f32 %v5552_v45, %v5423_v11  ;;  %v5687_v11 = vld [vmem:[#allocation3 + $0x150] sm:$0xff] }
 0x338   : > { %v5664_v34 = vmul.f32 2.0, %v5623_v16 }
 0x339   : > { %v5665_v33 = vmul.f32 2.0, %v5624_v4 }
 0x33a   : > { %5914 = vperm.xlu1 %11203, %v5664_v34  }
 0x33b   : > { %5919 = vperm.xlu0 %11202, %v5665_v33  }
 0x35c   : > { %v5805_v54 = vpop.permute.xlu0 %5804 }
 0x35d   : > { %v5962_v3 = vsub.f32 %v5674_v15, %v5805_v54  ;;  %v5963_v55 = vsub.f32 %v5675_v28, %v5805_v54  ;;  %v5964_v0 = vsub.f32 %v5676_v24, %v5805_v54  ;;  %v5965_v59 = vsub.f32 %v5677_v50, %v5805_v54  ;;  %v5683_v15 = vld [vmem:[#allocation3 + $0x110] sm:$0xff] }
 0x35f   : > { %v6111_v30 = vadd.f32 %v14981_v52, %v5962_v3  ;;  %v6112_v37 = vadd.f32 %v14984_v18, %v5963_v55  ;;  %v6113_v27 = vadd.f32 %v14987_v38, %v5964_v0  ;;  %v6114_v23 = vadd.f32 %v14990_v32, %v5965_v59 }
 0x360   : > { %v5810_v5 = vpop.permute.xlu1 %5809  ;;  %v5355_v61 = vpop.permute.xlu0 %5354 }
 0x361   : > { %v6242_v10 = vmul.f32 %v14992_v31, %v6111_v30  ;;  %v6243_v57 = vmul.f32 %v14992_v31, %v6112_v37  ;;  %v6244_v40 = vmul.f32 %v14992_v31, %v6113_v27  ;;  %v6245_v48 = vmul.f32 %v14992_v31, %v6114_v23  ;;  %v5685_v30 = vld [vmem:[#allocation3 + $0x98] sm:$0xff] }
 0x362   : > { %v5966_v62 = vsub.f32 %v5678_v35, %v5810_v5  ;;  %v5967_v25 = vsub.f32 %v5679_v12, %v5810_v5  ;;  %v5968_v51 = vsub.f32 %v5680_v42, %v5810_v5  ;;  %v5969_v43 = vsub.f32 %v5681_v53, %v5810_v5  ;;  %v5684_v35 = vld [vmem:[#allocation3 + $0x118] sm:$0xff] }
 0x363   : > { %v6370_v60 = vmul.f32 1.442695, %v6242_v10  ;;  %v6372_v19 = vmul.f32 1.442695, %v6243_v57  ;;  %v6374_v29 = vmul.f32 1.442695, %v6244_v40  ;;  %v15022_v16 = vadd.f32 %v5355_v61, %v5227_v8 }
 0x364   : > { %v6376_v58 = vmul.f32 1.442695, %v6245_v48  ;;  %v6115_v44 = vadd.f32 %v14981_v52, %v5966_v62  ;;  %v6116_v9 = vadd.f32 %v14984_v18, %v5967_v25  ;;  %v6117_v47 = vadd.f32 %v14987_v38, %v5968_v51  ;;  %v5353_v56 = vpop.permute.xlu1 %5352 }
 0x365   : > { %11236 = vpow2.f32 %v6370_v60  ;;  %v6118_v46 = vadd.f32 %v14990_v32, %v5969_v43  ;;  %v15024_v45 = vadd.f32 %v5353_v56, %v5226_v21  ;;  %v5820_v4 = vpop.permute.xlu0 %5819  ;;  %v5694_v56 = vld [vmem:[#allocation3 + $0x80] sm:$0xff] }
 0x366   : > { %11238 = vpow2.f32 %v6372_v19  ;;  %v6246_v63 = vmul.f32 %v14992_v31, %v6115_v44  ;;  %v6247_v34 = vmul.f32 %v14992_v31, %v6116_v9  ;;  %v6248_v33 = vmul.f32 %v14992_v31, %v6117_v47 }
 0x367   : > { %11240 = vpow2.f32 %v6374_v29  ;;  %v6249_v39 = vmul.f32 %v14992_v31, %v6118_v46  ;;  %v5974_v2 = vsub.f32 %v5686_v49, %v5820_v4  ;;  %v5975_v36 = vsub.f32 %v5687_v11, %v5820_v4  ;;  %v5695_v49 = vld [vmem:[#allocation3 + $0x1a8] sm:$0xff]  ;;  %v5696_v11 = vld [vmem:[#allocation3 + $0x1b8] sm:$0xff] }
 0x368   : > { %11242 = vpow2.f32 %v6376_v58  ;;  %v6378_v28 = vmul.f32 1.442695, %v6246_v63  ;;  %v6380_v24 = vmul.f32 1.442695, %v6247_v34  ;;  %v6382_v50 = vmul.f32 1.442695, %v6248_v33  ;;  %v5815_v54 = vpop.permute.xlu1 %5814 }
 0x369   : > { %v6384_v3 = vmul.f32 1.442695, %v6249_v39  ;;  %v5976_v55 = vsub.f32 %v5688_v41, %v5820_v4  ;;  %v5977_v0 = vsub.f32 %v5689_v26, %v5820_v4  ;;  %v6123_v59 = vadd.f32 %v14981_v52, %v5974_v2  ;;  %v5556_v37 = vpop.permute.xlu0 %5555  ;;  %v5697_v33 = vld [vmem:[#allocation3 + $0x168] sm:$0xff]  ;;  %v5690_v41 = vld [vmem:[#allocation3 + $0x2e0] sm:$0xff] }
 0x36a   : > { %11244 = vpow2.f32 %v6378_v28  ;;  %v6124_v27 = vadd.f32 %v14984_v18, %v5975_v36  ;;  %v5970_v23 = vsub.f32 %v5682_v22, %v5815_v54  ;;  %v5971_v12 = vsub.f32 %v5683_v15, %v5815_v54  ;;  %v5691_v26 = vld [vmem:[#allocation3 + $0x388] sm:$0xff] }
 0x36b   : > { %11246 = vpow2.f32 %v6380_v24  ;;  %v6125_v42 = vadd.f32 %v14987_v38, %v5976_v55  ;;  %v6126_v53 = vadd.f32 %v14990_v32, %v5977_v0  ;;  %v6254_v5 = vmul.f32 %v14992_v31, %v6123_v59  ;;  %v5692_v0 = vld [vmem:[#allocation3 + $0x338] sm:$0xff]  ;;  %v5693_v59 = vld [vmem:[#allocation3 + $0x340] sm:$0xff] }
 0x36c   : > { %11248 = vpow2.f32 %v6382_v50  ;;  %v6255_v8 = vmul.f32 %v14992_v31, %v6124_v27  ;;  %v5972_v61 = vsub.f32 %v5684_v35, %v5815_v54  ;;  %v5973_v21 = vsub.f32 %v5685_v30, %v5815_v54  ;;  %v5554_v10 = vpop.permute.xlu1 %5553 }
 0x36d   : > { %11250 = vpow2.f32 %v6384_v3  ;;  %v6256_v57 = vmul.f32 %v14992_v31, %v6125_v42  ;;  %v6257_v40 = vmul.f32 %v14992_v31, %v6126_v53  ;;  %v6394_v48 = vmul.f32 1.442695, %v6254_v5  ;;  %v5830_v58 = vpop.permute.xlu0 %5829 }
 0x36e   : > { %v6396_v62 = vmul.f32 1.442695, %v6255_v8  ;;  %v6119_v25 = vadd.f32 %v14981_v52, %v5970_v23  ;;  %v6120_v51 = vadd.f32 %v14984_v18, %v5971_v12  ;;  %v6121_v43 = vadd.f32 %v14987_v38, %v5972_v61 }
 0x36f   : > { %11252 = vpow2.f32 %v6394_v48  ;;  %v6398_v60 = vmul.f32 1.442695, %v6256_v57  ;;  %v6400_v19 = vmul.f32 1.442695, %v6257_v40  ;;  %v6122_v29 = vadd.f32 %v14990_v32, %v5973_v21 }
 0x370   : > { %11254 = vpow2.f32 %v6396_v62  ;;  %v6250_v44 = vmul.f32 %v14992_v31, %v6119_v25  ;;  %v6251_v9 = vmul.f32 %v14992_v31, %v6120_v51  ;;  %v6252_v47 = vmul.f32 %v14992_v31, %v6121_v43  ;;  %v5825_v46 = vpop.permute.xlu1 %5824 }
 0x371   : > { %11256 = vpow2.f32 %v6398_v60  ;;  %v6253_v4 = vmul.f32 %v14992_v31, %v6122_v29  ;;  %v5626_v63 = vadd.f32 %v5556_v37, %v15022_v16  ;;  %v5625_v34 = vadd.f32 %v5554_v10, %v15024_v45  ;;  %v15057_v23 = vpop.permute.xlu0 %5358 }
 0x372   : > { %v15048_v39 = vpop.eup %11236  ;;  %11258 = vpow2.f32 %v6400_v19  ;;  %v6386_v2 = vmul.f32 1.442695, %v6250_v44  ;;  %v6388_v36 = vmul.f32 1.442695, %v6251_v9  ;;  %v6390_v22 = vmul.f32 1.442695, %v6252_v47 }
 0x373   : > { %v15050_v15 = vpop.eup %11238  ;;  %v6392_v28 = vmul.f32 1.442695, %v6253_v4  ;;  %v5667_v24 = vmul.f32 2.0, %v5626_v63  ;;  %v5666_v50 = vmul.f32 2.0, %v5625_v34  ;;  %v5982_v54 = vsub.f32 %v5694_v56, %v5830_v58  ;;  %v5702_v4 = vld [vmem:[#allocation3 + $0x138] sm:$0xff]  ;;  %v5703_v63 = vld [vmem:[#allocation3 + $0xc0] sm:$0xff] }
 0x374   : > { %v15052_v3 = vpop.eup %11240  ;;  %11260 = vpow2.f32 %v6386_v2  ;;  %v5983_v16 = vsub.f32 %v5695_v49, %v5830_v58  ;;  %v5984_v45 = vsub.f32 %v5696_v11, %v5830_v58  ;;  %v5985_v55 = vsub.f32 %v5697_v33, %v5830_v58  ;;  %v5357_v5 = vpop.permute.xlu1 %5356  ;;  %v5704_v34 = vld [vmem:[#allocation3 + $0x1c0] sm:$0xff] }
 0x375   : > { %v15054_v35 = vpop.eup %11242  ;;  %11262 = vpow2.f32 %v6388_v36  ;;  %v6131_v30 = vadd.f32 %v14981_v52, %v5982_v54  ;;  %5929 = vperm.xlu0 %11202, %v5667_v24   ;;  %v5978_v37 = vsub.f32 %v5690_v41, %v5825_v46  ;;  %v5979_v27 = vsub.f32 %v5691_v26, %v5825_v46  ;;  %5924 = vperm.xlu1 %11203, %v5666_v50   ;;  %v5840_v33 = vpop.permute.xlu0 %5839  ;;  %v5705_v36 = vld [vmem:[#allocation3 + $0x280] sm:$0xff] }
 0x376   : > { %11264 = vpow2.f32 %v6390_v22  ;;  %v6132_v12 = vadd.f32 %v14984_v18, %v5983_v16  ;;  %v6133_v42 = vadd.f32 %v14987_v38, %v5984_v45  ;;  %v6134_v53 = vadd.f32 %v14990_v32, %v5985_v55  ;;  %v5698_v22 = vld [vmem:[#allocation3 + $0x3e8] sm:$0xff] }
 0x377   : > { %v15062_v8 = vpop.eup %11244  ;;  %11266 = vpow2.f32 %v6392_v28  ;;  %v6262_v61 = vmul.f32 %v14992_v31, %v6131_v30  ;;  %v5980_v21 = vsub.f32 %v5692_v0, %v5825_v46  ;;  %v5981_v10 = vsub.f32 %v5693_v59, %v5825_v46  ;;  %v5699_v28 = vld [vmem:[#allocation3 + $0x2f8] sm:$0xff] }
 0x378   : > { %v15065_v57 = vpop.eup %11246  ;;  %v6263_v40 = vmul.f32 %v14992_v31, %v6132_v12  ;;  %v6264_v48 = vmul.f32 %v14992_v31, %v6133_v42  ;;  %v6265_v62 = vmul.f32 %v14992_v31, %v6134_v53  ;;  %v6127_v25 = vadd.f32 %v14981_v52, %v5978_v37  ;;  %v5835_v24 = vpop.permute.xlu1 %5834  ;;  %v5700_v37 = vld [vmem:[#allocation3 + $0x290] sm:$0xff] }
 0x379   : > { %v15071_v51 = vpop.eup %11248  ;;  %v6410_v43 = vmul.f32 1.442695, %v6262_v61  ;;  %v6128_v60 = vadd.f32 %v14984_v18, %v5979_v27  ;;  %v6129_v19 = vadd.f32 %v14987_v38, %v5980_v21  ;;  %v6130_v29 = vadd.f32 %v14990_v32, %v5981_v10  ;;  %v5701_v27 = vld [vmem:[#allocation3 + $0x28] sm:$0xff] }
 0x37a   : > { %v15076_v58 = vpop.eup %11250  ;;  %v6412_v44 = vmul.f32 1.442695, %v6263_v40  ;;  %v6414_v9 = vmul.f32 1.442695, %v6264_v48  ;;  %v6416_v47 = vmul.f32 1.442695, %v6265_v62  ;;  %v6258_v56 = vmul.f32 %v14992_v31, %v6127_v25 }
 0x37b   : > { %11268 = vpow2.f32 %v6410_v43  ;;  %v6259_v49 = vmul.f32 %v14992_v31, %v6128_v60  ;;  %v6260_v11 = vmul.f32 %v14992_v31, %v6129_v19  ;;  %v6261_v46 = vmul.f32 %v14992_v31, %v6130_v29 }
 0x37c   : > { %v15082_v41 = vpop.eup %11252  ;;  %11270 = vpow2.f32 %v6412_v44  ;;  %v6402_v26 = vmul.f32 1.442695, %v6258_v56  ;;  %v5426_v2 = vadd.f32 %v5357_v5, %v15008_v14  ;;  %v15087_v50 = vmul.f32 %v14597_v1, %v14928_v13 }
 0x37d   : > { %v15089_v54 = vpop.eup %11254  ;;  %11272 = vpow2.f32 %v6414_v9  ;;  %v6404_v16 = vmul.f32 1.442695, %v6259_v49  ;;  %v6406_v45 = vmul.f32 1.442695, %v6260_v11  ;;  %v6408_v55 = vmul.f32 1.442695, %v6261_v46  ;;  %v5558_v49 = vpop.permute.xlu1 %5557 }
 0x37e   : > { %v15091_v0 = vpop.eup %11256  ;;  %11274 = vpow2.f32 %v6416_v47  ;;  %v5990_v59 = vsub.f32 %v5702_v4, %v5840_v33  ;;  %v5991_v30 = vsub.f32 %v5703_v63, %v5840_v33  ;;  %v5992_v14 = vsub.f32 %v5704_v34, %v5840_v33 }
 0x37f   : > { %v15093_v12 = vpop.eup %11258  ;;  %11276 = vpow2.f32 %v6402_v26  ;;  %v5993_v42 = vsub.f32 %v5705_v36, %v5840_v33  ;;  %v5986_v13 = vsub.f32 %v5698_v22, %v5835_v24  ;;  %v5987_v53 = vsub.f32 %v5699_v28, %v5835_v24 }
 0x380   : > { %11278 = vpow2.f32 %v6404_v16  ;;  %v6139_v5 = vadd.f32 %v14981_v52, %v5990_v59  ;;  %v6140_v61 = vadd.f32 %v14984_v18, %v5991_v30  ;;  %v6141_v21 = vadd.f32 %v14987_v38, %v5992_v14  ;;  %v6626_v16 = vld [vmem:[%s11800_s16] sm:$0xff]  ;;  %v5710_v14 = vld [vmem:[#allocation3 + $0x218] sm:$0xff] }
 0x381   : > { %v15098_v10 = vpop.eup %11260  ;;  %11280 = vpow2.f32 %v6406_v45  ;;  %v6142_v40 = vadd.f32 %v14990_v32, %v5993_v42  ;;  %v5988_v48 = vsub.f32 %v5700_v37, %v5835_v24  ;;  %v5989_v62 = vsub.f32 %v5701_v27, %v5835_v24  ;;  %v6628_v45 = vld [vmem:[%s11800_s16 + $0x10] sm:$0xff]  ;;  %v5711_v37 = vld [vmem:[#allocation3 + $0x3f8] sm:$0xff]  ;;  %v5850_v27 = vpop.permute.xlu0 %5849 }
 0x382   : > { %v15101_v25 = vpop.eup %11262  ;;  %11282 = vpow2.f32 %v6408_v55  ;;  %v6270_v43 = vmul.f32 %v14992_v31, %v6139_v5  ;;  %v6271_v60 = vmul.f32 %v14992_v31, %v6140_v61  ;;  %v6272_v19 = vmul.f32 %v14992_v31, %v6141_v21  ;;  %v6627_v61 = vld [vmem:[%s11800_s16 + $0x8] sm:$0xff] }
 0x383   : > { %v15106_v29 = vpop.eup %11264  ;;  %v6273_v44 = vmul.f32 %v14992_v31, %v6142_v40  ;;  %v6135_v9 = vadd.f32 %v14981_v52, %v5986_v13  ;;  %v6136_v47 = vadd.f32 %v14984_v18, %v5987_v53  ;;  %v6137_v56 = vadd.f32 %v14987_v38, %v5988_v48 }
 0x384   : > { %v15112_v11 = vpop.eup %11266  ;;  %v6426_v46 = vmul.f32 1.442695, %v6270_v43  ;;  %v6428_v4 = vmul.f32 1.442695, %v6271_v60  ;;  %v6430_v63 = vmul.f32 1.442695, %v6272_v19  ;;  %v6138_v34 = vadd.f32 %v14990_v32, %v5989_v62 }
 0x385   : > { %v6432_v33 = vmul.f32 1.442695, %v6273_v44  ;;  %v6266_v26 = vmul.f32 %v14992_v31, %v6135_v9  ;;  %v6267_v36 = vmul.f32 %v14992_v31, %v6136_v47  ;;  %v6268_v22 = vmul.f32 %v14992_v31, %v6137_v56  ;;  %v5713_v62 = vld [vmem:[#allocation3 + $0x128] sm:$0xff] }
 0x386   : > { %11284 = vpow2.f32 %v6426_v46  ;;  %v6269_v28 = vmul.f32 %v14992_v31, %v6138_v34  ;;  %v5627_v24 = vadd.f32 %v5558_v49, %v5426_v2  ;;  %v9330_v55 = vpack.c.bf16 %v15050_v15, %v15048_v39  ;;  %v6629_v39 = vld [vmem:[%s11800_s16 + $0x18] sm:$0xff]  ;;  %v5712_v15 = vld [vmem:[#allocation3 + $0x8] sm:$0xff]  ;;  %v5706_v49 = vld [vmem:[#allocation3 + $0x100] sm:$0xff]  ;;  %v5845_v46 = vpop.permute.xlu1 %5844 }
 0x387   : > { %11286 = vpow2.f32 %v6428_v4  ;;  %v6418_v59 = vmul.f32 1.442695, %v6266_v26  ;;  %v6420_v30 = vmul.f32 1.442695, %v6267_v36  ;;  %v15125_v42 = vmul.f32 %v14597_v1, %v14942_v6  ;;  %v5707_v4 = vld [vmem:[#allocation3 + $0x3c0] sm:$0xff] }
 0x388   : > { %v15127_v13 = vpop.eup %11268  ;;  %11288 = vpow2.f32 %v6430_v63  ;;  %v6422_v2 = vmul.f32 1.442695, %v6268_v22  ;;  %v5668_v53 = vmul.f32 2.0, %v5627_v24  ;;  %v9332_v5 = vpack.c.bf16 %v15065_v57, %v15062_v8  ;;  %v5708_v63 = vld [vmem:[#allocation3 + $0x158] sm:$0xff]  ;;  %v5709_v22 = vld [vmem:[#allocation3 + $0x3e0] sm:$0xff] }
 0x389   : > { %v15133_v21 = vpop.eup %11270  ;;  %11290 = vpow2.f32 %v6432_v33  ;;  %v6424_v40 = vmul.f32 1.442695, %v6269_v28  ;;  %v9331_v48 = vpack.c.bf16 %v15054_v35, %v15052_v3  ;;  %v9333_v6 = vpack.c.bf16 %v15076_v58, %v15071_v51 }
 0x38a   : > { %v15139_v43 = vpop.eup %11272  ;;  %v7074_v60 = vmul.bf16 %v9330_v55, %v6626_v16  ;;  %v7076_v19 = vmul.bf16 %v9332_v5, %v6628_v45  ;;  %v5998_v44 = vsub.f32 %v5710_v14, %v5850_v27  ;;  %v5999_v8 = vsub.f32 %v5711_v37, %v5850_v27  ;;  %5934 = vperm.xlu1 %11203, %v5668_v53  }
 0x38b   : > { %v15141_v57 = vpop.eup %11274  ;;  %11292 = vpow2.f32 %v6418_v59  ;;  %v7075_v9 = vmul.bf16 %v9331_v48, %v6627_v61  ;;  %v7077_v47 = vmul.bf16 %v9333_v6, %v6629_v39  ;;  %v6000_v56 = vsub.f32 %v5712_v15, %v5850_v27 }
 0x38c   : > { %v15143_v3 = vpop.eup %11276  ;;  %11294 = vpow2.f32 %v6420_v30  ;;  %v8971_v35 = vcombine.high %v7074_v60, %v7076_v19  ;;  %v8970_v51 = vcombine.low %v7074_v60, %v7076_v19  ;;  %v6001_v58 = vsub.f32 %v5713_v62, %v5850_v27 }
 0x38d   : > { %v15145_v34 = vpop.eup %11278  ;;  %11296 = vpow2.f32 %v6422_v2  ;;  %v8973_v33 = vcombine.high %v7075_v9, %v7077_v47  ;;  %v8972_v26 = vcombine.low %v7075_v9, %v7077_v47  ;;  %v6147_v36 = vadd.f32 %v14981_v52, %v5998_v44  ;;  %v6630_v47 = vld [vmem:[%s11800_s16 + $0x20] sm:$0xff] }
 0x38e   : > { %v15148_v28 = vpop.eup %11280  ;;  %7781 = vmatprep.mubr.bf16.mxu0 %v8971_v35  ;;  %v6148_v24 = vadd.f32 %v14984_v18, %v5999_v8  ;;  %v6149_v16 = vadd.f32 %v14987_v38, %v6000_v56  ;;  %v6150_v45 = vadd.f32 %v14990_v32, %v6001_v58  ;;  %v5994_v55 = vsub.f32 %v5706_v49, %v5845_v46  ;;  %v6632_v56 = vld [vmem:[%s11800_s16 + $0x30] sm:$0xff]  ;;  %v5855_v49 = vpop.permute.xlu1 %5854 }
 0x38f   : > { %v15153_v59 = vpop.eup %11282  ;;  %11298 = vpow2.f32 %v6424_v40  ;;  %7942 = vmatprep.mubr.bf16.mxu1 %v8973_v33  ;;  %7782 = vmatmul.mubr.bf16.vlgmr.msra.gmra.mxu0 %v8970_v51  ;;  %v6278_v30 = vmul.f32 %v14992_v31, %v6147_v36  ;;  %v5995_v14 = vsub.f32 %v5707_v4, %v5845_v46  ;;  %v5996_v37 = vsub.f32 %v5708_v63, %v5845_v46  ;;  %v5714_v4 = vld [vmem:[#allocation3 + $0x2a0] sm:$0xff] }
 0x390   : > { %7943 = vmatmul.mubr.bf16.vlgmr.msra.gmra.mxu1 %v8972_v26  ;;  %v6279_v27 = vmul.f32 %v14992_v31, %v6148_v24  ;;  %v6280_v2 = vmul.f32 %v14992_v31, %v6149_v16  ;;  %v6281_v53 = vmul.f32 %v14992_v31, %v6150_v45  ;;  %v5997_v5 = vsub.f32 %v5709_v22, %v5845_v46  ;;  %v5715_v22 = vld [vmem:[#allocation3 + $0x3f0] sm:$0xff]  ;;  %v5716_v24 = vld [vmem:[#allocation3 + $0xa0] sm:$0xff] }
 0x391   : > { %v6442_v61 = vmul.f32 1.442695, %v6278_v30  ;;  %v6143_v39 = vadd.f32 %v14981_v52, %v5994_v55  ;;  %v6144_v15 = vadd.f32 %v14984_v18, %v5995_v14  ;;  %v6145_v40 = vadd.f32 %v14987_v38, %v5996_v37  ;;  %v6631_v55 = vld [vmem:[%s11800_s16 + $0x28] sm:$0xff]  ;;  %v5860_v30 = vpop.permute.xlu0 %5859 }
 0x392   : > { %v6444_v48 = vmul.f32 1.442695, %v6279_v27  ;;  %v6446_v6 = vmul.f32 1.442695, %v6280_v2  ;;  %v6448_v62 = vmul.f32 1.442695, %v6281_v53  ;;  %v6146_v60 = vadd.f32 %v14990_v32, %v5997_v5 }
 0x393   : > { %v15163_v19 = vpop.eup %11284  ;;  %11300 = vpow2.f32 %v6442_v61  ;;  %v6274_v44 = vmul.f32 %v14992_v31, %v6143_v39  ;;  %v6275_v8 = vmul.f32 %v14992_v31, %v6144_v15  ;;  %v6276_v9 = vmul.f32 %v14992_v31, %v6145_v40 }
 0x394   : > { %v15170_v46 = vpop.eup %11286  ;;  %11302 = vpow2.f32 %v6444_v48  ;;  %v6277_v35 = vmul.f32 %v14992_v31, %v6146_v60  ;;  %v9334_v51 = vpack.c.bf16 %v15101_v25, %v15098_v10  ;;  %v9336_v58 = vpack.c.bf16 %v15089_v54, %v15082_v41  ;;  %v6633_v41 = vld [vmem:[%s11800_s16 + $0x38] sm:$0xff]  ;;  %v5717_v54 = vld [vmem:[#allocation3 + $0x2c0] sm:$0xff]  ;;  %v5718_v48 = vld [vmem:[#allocation3 + $0xb0] sm:$0xff] }
 0x395   : > { %v15177_v63 = vpop.eup %11288  ;;  %v15181_v33 = vadd.f32 %v15057_v23, %v15004_v20  ;;  %11304 = vpow2.f32 %v6446_v6  ;;  %v6434_v26 = vmul.f32 1.442695, %v6274_v44  ;;  %v6436_v36 = vmul.f32 1.442695, %v6275_v8  ;;  %v5361_v6 = vpop.permute.xlu1 %5360  ;;  %v5720_v60 = vld [vmem:[#allocation3 + $0x1f0] sm:$0xff] }
 0x396   : > { %v15183_v16 = vpop.eup %11290  ;;  %11306 = vpow2.f32 %v6448_v62  ;;  %v6438_v10 = vmul.f32 1.442695, %v6276_v9  ;;  %v7078_v25 = vmul.bf16 %v9334_v51, %v6630_v47  ;;  %v7080_v45 = vmul.bf16 %v9336_v58, %v6632_v56  ;;  %v5721_v56 = vld [vmem:[#allocation3 + $0x10] sm:$0xff] }
 0x397   : > { %v6440_v14 = vmul.f32 1.442695, %v6277_v35  ;;  %v9335_v20 = vpack.c.bf16 %v15112_v11, %v15106_v29  ;;  %v9337_v23 = vpack.c.bf16 %v15093_v12, %v15091_v0  ;;  %v6002_v37 = vsub.f32 %v5714_v4, %v5855_v49  ;;  %v5719_v11 = vld [vmem:[#allocation3 + $0x1e0] sm:$0xff] }
 0x398   : > { %v15191_v27 = vpop.eup %11292  ;;  %11308 = vpow2.f32 %v6434_v26  ;;  %v8975_v2 = vcombine.high %v7078_v25, %v7080_v45  ;;  %v6003_v53 = vsub.f32 %v5715_v22, %v5855_v49  ;;  %v6004_v5 = vsub.f32 %v5716_v24, %v5855_v49  ;;  %v5560_v26 = vpop.permute.xlu0 %5559 }
 0x399   : > { %v15193_v61 = vpop.eup %11294  ;;  %11310 = vpow2.f32 %v6436_v36  ;;  %v7079_v39 = vmul.bf16 %v9335_v20, %v6631_v55  ;;  %v7081_v15 = vmul.bf16 %v9337_v23, %v6633_v41  ;;  %v6005_v40 = vsub.f32 %v5717_v54, %v5855_v49 }
 0x39a   : > { %v15195_v62 = vpop.eup %11296  ;;  %11312 = vpow2.f32 %v6438_v10  ;;  %7789 = vmatprep.mubr.bf16.mxu0 %v8975_v2  ;;  %v6151_v0 = vadd.f32 %v14981_v52, %v6002_v37  ;;  %v6152_v12 = vadd.f32 %v14984_v18, %v6003_v53  ;;  %v6153_v29 = vadd.f32 %v14987_v38, %v6004_v5 }
 0x39b   : > { %v8977_v44 = vcombine.high %v7079_v39, %v7081_v15  ;;  %v6154_v8 = vadd.f32 %v14990_v32, %v6005_v40  ;;  %v8974_v9 = vcombine.low %v7078_v25, %v7080_v45  ;;  %v8976_v47 = vcombine.low %v7079_v39, %v7081_v15 }
 0x39c   : > { %v15201_v49 = vpop.eup %11298  ;;  %v6282_v35 = vmul.f32 %v14992_v31, %v6151_v0  ;;  %v6283_v51 = vmul.f32 %v14992_v31, %v6152_v12  ;;  %v6284_v58 = vmul.f32 %v14992_v31, %v6153_v29  ;;  %v6006_v4 = vsub.f32 %v5718_v48, %v5860_v30  ;;  %v6634_v48 = vld [vmem:[%s11800_s16 + $0x40] sm:$0xff]  ;;  %v5722_v29 = vld [vmem:[#allocation3 + $0x230] sm:$0xff] }
 0x39d   : > { %11314 = vpow2.f32 %v6440_v14  ;;  %7950 = vmatprep.mubr.bf16.mxu1 %v8977_v44  ;;  %v6285_v36 = vmul.f32 %v14992_v31, %v6154_v8  ;;  %7790 = vmatmul.mubr.bf16.gmra.mxu0 %v8974_v9  ;;  %v6007_v22 = vsub.f32 %v5719_v11, %v5860_v30  ;;  %v6008_v24 = vsub.f32 %v5720_v60, %v5860_v30  ;;  %v5865_v14 = vpop.permute.xlu1 %5864  ;;  %v5723_v11 = vld [vmem:[#allocation3 + $0x240] sm:$0xff]  ;;  %v15230_v60 = vpop.permute.xlu0 %5362 }
 0x39e   : > { %v6450_v10 = vmul.f32 1.442695, %v6282_v35  ;;  %v6452_v25 = vmul.f32 1.442695, %v6283_v51  ;;  %v6454_v45 = vmul.f32 1.442695, %v6284_v58  ;;  %7951 = vmatmul.mubr.bf16.gmra.mxu1 %v8976_v47  ;;  %v6009_v55 = vsub.f32 %v5721_v56, %v5860_v30 }
 0x39f   : > { %v6456_v41 = vmul.f32 1.442695, %v6285_v36  ;;  %v6155_v54 = vadd.f32 %v14981_v52, %v6006_v4  ;;  %v6156_v20 = vadd.f32 %v14984_v18, %v6007_v22  ;;  %v6157_v23 = vadd.f32 %v14987_v38, %v6008_v24  ;;  %v6635_v56 = vld [vmem:[%s11800_s16 + $0x48] sm:$0xff]  ;;  %v5724_v35 = vld [vmem:[#allocation3 + $0x90] sm:$0xff] }
 0x3a0   : > { %v15210_v37 = vpop.eup %11300  ;;  %11316 = vpow2.f32 %v6450_v10  ;;  %v6158_v2 = vadd.f32 %v14990_v32, %v6009_v55  ;;  %v5628_v53 = vadd.f32 %v5560_v26, %v15181_v33  ;;  %v15216_v30 = vmul.f32 %v14597_v1, %v14952_v7  ;;  %v6636_v1 = vld [vmem:[%s11800_s16 + $0x50] sm:$0xff]  ;;  %v6637_v26 = vld [vmem:[%s11800_s16 + $0x58] sm:$0xff] }
 0x3a1   : > { %v15218_v5 = vpop.eup %11302  ;;  %11318 = vpow2.f32 %v6452_v25  ;;  %v6286_v39 = vmul.f32 %v14992_v31, %v6155_v54  ;;  %v6287_v15 = vmul.f32 %v14992_v31, %v6156_v20  ;;  %v6288_v40 = vmul.f32 %v14992_v31, %v6157_v23  ;;  %v5562_v10 = vpop.permute.xlu1 %5561  ;;  %v5726_v20 = vld [vmem:[#allocation3 + $0x208] sm:$0xff] }
 0x3a2   : > { %v15224_v0 = vpop.eup %11304  ;;  %11320 = vpow2.f32 %v6454_v45  ;;  %v6289_v33 = vmul.f32 %v14992_v31, %v6158_v2  ;;  %v5669_v12 = vmul.f32 2.0, %v5628_v53  ;;  %v9338_v7 = vpack.c.bf16 %v15145_v34, %v15143_v3  ;;  %v5725_v34 = vld [vmem:[#allocation3 + $0x3a0] sm:$0xff]  ;;  %v5870_v23 = vpop.permute.xlu0 %5869 }
 0x3a3   : > { %v15232_v44 = vpop.eup %11306  ;;  %11322 = vpow2.f32 %v6456_v41  ;;  %v6458_v8 = vmul.f32 1.442695, %v6286_v39  ;;  %v6460_v9 = vmul.f32 1.442695, %v6287_v15  ;;  %v5428_v47 = vadd.f32 %v5361_v6, %v15016_v17 }
 0x3a4   : > { %v6462_v51 = vmul.f32 1.442695, %v6288_v40  ;;  %v9340_v58 = vpack.c.bf16 %v15133_v21, %v15127_v13  ;;  %v7082_v4 = vmul.bf16 %v9338_v7, %v6634_v48  ;;  %v9339_v3 = vpack.c.bf16 %v15153_v59, %v15148_v28  ;;  %5939 = vperm.xlu0 %11202, %v5669_v12   ;;  %v5727_v40 = vld [vmem:[#allocation3 + $0xd0] sm:$0xff]  ;;  %v5728_v48 = vld [vmem:[#allocation3 + $0x88] sm:$0xff] }
 0x3a5   : > { %v15241_v36 = vpop.eup %11308  ;;  %v6464_v22 = vmul.f32 1.442695, %v6289_v33  ;;  %v9341_v24 = vpack.c.bf16 %v15141_v57, %v15139_v43  ;;  %v6010_v17 = vsub.f32 %v5722_v29, %v5865_v14  ;;  %v6011_v6 = vsub.f32 %v5723_v11, %v5865_v14  ;;  %v5729_v7 = vld [vmem:[#allocation3 + $0x2f0] sm:$0xff] }
 0x3a6   : > { %v15245_v25 = vpop.eup %11310  ;;  %11324 = vpow2.f32 %v6458_v8  ;;  %v7084_v13 = vmul.bf16 %v9340_v58, %v6636_v1  ;;  %v7083_v21 = vmul.bf16 %v9339_v3, %v6635_v56  ;;  %v6012_v45 = vsub.f32 %v5724_v35, %v5865_v14  ;;  %v5365_v56 = vpop.permute.xlu1 %5364 }
 0x3a7   : > { %v15247_v55 = vpop.eup %11312  ;;  %11326 = vpow2.f32 %v6460_v9  ;;  %v7085_v28 = vmul.bf16 %v9341_v24, %v6637_v26  ;;  %v6013_v59 = vsub.f32 %v5725_v34, %v5865_v14  ;;  %v6159_v41 = vadd.f32 %v14981_v52, %v6010_v17 }
 0x3a8   : > { %11328 = vpow2.f32 %v6462_v51  ;;  %v8979_v54 = vcombine.high %v7082_v4, %v7084_v13  ;;  %v6160_v43 = vadd.f32 %v14984_v18, %v6011_v6  ;;  %v6161_v57 = vadd.f32 %v14987_v38, %v6012_v45 }
 0x3a9   : > { %v8981_v2 = vcombine.high %v7083_v21, %v7085_v28  ;;  %v6162_v53 = vadd.f32 %v14990_v32, %v6013_v59  ;;  %v6290_v39 = vmul.f32 %v14992_v31, %v6159_v41  ;;  %v8978_v15 = vcombine.low %v7082_v4, %v7084_v13  ;;  %v6638_v13 = vld [vmem:[%s11800_s16 + $0x60] sm:$0xff]  ;;  %v5564_v59 = vpop.permute.xlu0 %5563 }
 0x3aa   : > { %v15254_v33 = vpop.eup %11314  ;;  %11330 = vpow2.f32 %v6464_v22  ;;  %7797 = vmatprep.mubr.bf16.mxu0 %v8979_v54  ;;  %v6291_v14 = vmul.f32 %v14992_v31, %v6160_v43  ;;  %v6292_v12 = vmul.f32 %v14992_v31, %v6161_v57  ;;  %v8980_v1 = vcombine.low %v7083_v21, %v7085_v28  ;;  %v6640_v21 = vld [vmem:[%s11800_s16 + $0x70] sm:$0xff] }
 0x3ab   : > { %7958 = vmatprep.mubr.bf16.mxu1 %v8981_v2  ;;  %v6293_v29 = vmul.f32 %v14992_v31, %v6162_v53  ;;  %v6466_v11 = vmul.f32 1.442695, %v6290_v39  ;;  %7798 = vmatmul.mubr.bf16.gmra.mxu0 %v8978_v15  ;;  %v5629_v8 = vadd.f32 %v5562_v10, %v5428_v47  ;;  %v6014_v9 = vsub.f32 %v5726_v20, %v5870_v23  ;;  %v6639_v20 = vld [vmem:[%s11800_s16 + $0x68] sm:$0xff] }
 0x3ac   : > { %v6468_v35 = vmul.f32 1.442695, %v6291_v14  ;;  %v6470_v51 = vmul.f32 1.442695, %v6292_v12  ;;  %7959 = vmatmul.mubr.bf16.gmra.mxu1 %v8980_v1  ;;  %v6015_v58 = vsub.f32 %v5727_v40, %v5870_v23  ;;  %v6016_v4 = vsub.f32 %v5728_v48, %v5870_v23  ;;  %v5731_v48 = vld [vmem:[#allocation3 + $0x268] sm:$0xff]  ;;  %v5732_v14 = vld [vmem:[#allocation3 + $0x350] sm:$0xff] }
 0x3ad   : > { %v15259_v26 = vpop.eup %11316  ;;  %11332 = vpow2.f32 %v6466_v11  ;;  %v5429_v3 = vadd.f32 %v15230_v60, %v15087_v50  ;;  %v5670_v34 = vmul.f32 2.0, %v5629_v8  ;;  %v6017_v22 = vsub.f32 %v5729_v7, %v5870_v23 }
 0x3ae   : > { %v15263_v24 = vpop.eup %11318  ;;  %v6472_v47 = vmul.f32 1.442695, %v6293_v29  ;;  %v6163_v17 = vadd.f32 %v14981_v52, %v6014_v9  ;;  %v6164_v6 = vadd.f32 %v14984_v18, %v6015_v58  ;;  %v6165_v10 = vadd.f32 %v14987_v38, %v6016_v4 }
 0x3af   : > { %v15270_v45 = vpop.eup %11320  ;;  %11334 = vpow2.f32 %v6468_v35  ;;  %v6166_v50 = vadd.f32 %v14990_v32, %v6017_v22  ;;  %v9342_v60 = vpack.c.bf16 %v15193_v61, %v15191_v27  ;;  %v9344_v28 = vpack.c.bf16 %v15170_v46, %v15163_v19  ;;  %5944 = vperm.xlu1 %11203, %v5670_v34   ;;  %v6641_v27 = vld [vmem:[%s11800_s16 + $0x78] sm:$0xff]  ;;  %v5875_v61 = vpop.permute.xlu1 %5874 }
 0x3b0   : > { %v15277_v41 = vpop.eup %11322  ;;  %11336 = vpow2.f32 %v6470_v51  ;;  %v6294_v54 = vmul.f32 %v14992_v31, %v6163_v17  ;;  %v6295_v43 = vmul.f32 %v14992_v31, %v6164_v6  ;;  %v6296_v57 = vmul.f32 %v14992_v31, %v6165_v10  ;;  %v5730_v46 = vld [vmem:[#allocation3 + $0x358] sm:$0xff]  ;;  %v5733_v51 = vld [vmem:[#allocation3 + $0x188] sm:$0xff]  ;;  %v5367_v34 = vpop.permute.xlu0 %5366  ;;  %v6642_v10 = vld [vmem:[%s11800_s16 + $0x80] sm:$0xff] }
 0x3b1   : > { %v6297_v23 = vmul.f32 %v14992_v31, %v6166_v50  ;;  %v7086_v2 = vmul.bf16 %v9342_v60, %v6638_v13  ;;  %v7088_v53 = vmul.bf16 %v9344_v28, %v6640_v21  ;;  %v9343_v19 = vpack.c.bf16 %v15201_v49, %v15195_v62  ;;  %v6644_v60 = vld [vmem:[%s11800_s16 + $0x90] sm:$0xff] }
 0x3b2   : > { %11338 = vpow2.f32 %v6472_v47  ;;  %v6474_v39 = vmul.f32 1.442695, %v6294_v54  ;;  %v6476_v15 = vmul.f32 1.442695, %v6295_v43  ;;  %v9345_v40 = vpack.c.bf16 %v15183_v16, %v15177_v63 }
 0x3b3   : > { %v15289_v12 = vpop.eup %11324  ;;  %v6478_v1 = vmul.f32 1.442695, %v6296_v57  ;;  %v6480_v7 = vmul.f32 1.442695, %v6297_v23  ;;  %v8983_v29 = vcombine.high %v7086_v2, %v7088_v53  ;;  %v7087_v11 = vmul.bf16 %v9343_v19, %v6639_v20  ;;  %v5566_v13 = vpop.permute.xlu1 %5565  ;;  %v6643_v20 = vld [vmem:[%s11800_s16 + $0x88] sm:$0xff]  ;;  %v6645_v23 = vld [vmem:[%s11800_s16 + $0x98] sm:$0xff] }
 0x3b4   : > { %v15291_v8 = vpop.eup %11326  ;;  %v7089_v9 = vmul.bf16 %v9345_v40, %v6641_v27  ;;  %v5430_v62 = vadd.f32 %v5365_v56, %v15125_v42  ;;  %v8982_v49 = vcombine.low %v7086_v2, %v7088_v53  ;;  %v5630_v35 = vadd.f32 %v5564_v59, %v5429_v3 }
 0x3b5   : > { %v15294_v58 = vpop.eup %11328  ;;  %11340 = vpow2.f32 %v6474_v39  ;;  %7805 = vmatprep.mubr.bf16.mxu0 %v8983_v29  ;;  %v6018_v63 = vsub.f32 %v5730_v46, %v5875_v61  ;;  %v6019_v16 = vsub.f32 %v5731_v48, %v5875_v61  ;;  %v6020_v4 = vsub.f32 %v5732_v14, %v5875_v61  ;;  %v5734_v48 = vld [vmem:[#allocation3 + $0x1d8] sm:$0xff]  ;;  %v5735_v14 = vld [vmem:[#allocation3 + $0x30] sm:$0xff] }
 0x3b6   : > { %11342 = vpow2.f32 %v6476_v15  ;;  %v8985_v22 = vcombine.high %v7087_v11, %v7089_v9  ;;  %7806 = vmatmul.mubr.bf16.gmra.mxu0 %v8982_v49  ;;  %v8984_v47 = vcombine.low %v7087_v11, %v7089_v9  ;;  %v5671_v17 = vmul.f32 2.0, %v5630_v35  ;;  %v5738_v11 = vld [vmem:[#allocation3 + $0x130] sm:$0xff]  ;;  %v5739_v9 = vld [vmem:[#allocation3 + $0x200] sm:$0xff] }
 0x3b7   : > { %v15296_v6 = vpop.eup %11330  ;;  %11344 = vpow2.f32 %v6478_v1  ;;  %v6021_v42 = vsub.f32 %v5733_v51, %v5875_v61  ;;  %v6167_v56 = vadd.f32 %v14981_v52, %v6018_v63  ;;  %v6168_v3 = vadd.f32 %v14984_v18, %v6019_v16  ;;  %v5736_v1 = vld [vmem:[#allocation3 + $0x140] sm:$0xff]  ;;  %v5885_v49 = vpop.permute.xlu1 %5884  ;;  %v5740_v16 = vld [vmem:[#allocation3 + $0x318] sm:$0xff] }
 0x3b8   : > { %11346 = vpow2.f32 %v6480_v7  ;;  %7966 = vmatprep.mubr.bf16.mxu1 %v8985_v22  ;;  %v6169_v21 = vadd.f32 %v14987_v38, %v6020_v4  ;;  %v15303_v50 = vadd.f32 %v5367_v34, %v15216_v30  ;;  %5949 = vperm.xlu0 %11202, %v5671_v17   ;;  %v9346_v28 = vpack.c.bf16 %v15245_v25, %v15241_v36  ;;  %v5880_v7 = vpop.permute.xlu0 %5879 }
 0x3b9   : > { %7967 = vmatmul.mubr.bf16.gmra.mxu1 %v8984_v47  ;;  %v6170_v59 = vadd.f32 %v14990_v32, %v6021_v42  ;;  %v6298_v54 = vmul.f32 %v14992_v31, %v6167_v56  ;;  %v6299_v43 = vmul.f32 %v14992_v31, %v6168_v3  ;;  %v9348_v57 = vpack.c.bf16 %v15218_v5, %v15210_v37  ;;  %v5741_v47 = vld [vmem:[#allocation3 + $0x220] sm:$0xff] }
 0x3ba   : > { %v15315_v2 = vpop.eup %11332  ;;  %v6300_v30 = vmul.f32 %v14992_v31, %v6169_v21  ;;  %v7090_v53 = vmul.bf16 %v9346_v28, %v6642_v10  ;;  %v9347_v36 = vpack.c.bf16 %v15254_v33, %v15247_v55  ;;  %v9349_v25 = vpack.c.bf16 %v15232_v44, %v15224_v0  ;;  %v5737_v33 = vld [vmem:[#allocation3 + $0x2a8] sm:$0xff] }
 0x3bb   : > { %v6301_v27 = vmul.f32 %v14992_v31, %v6170_v59  ;;  %v6482_v19 = vmul.f32 1.442695, %v6298_v54  ;;  %v6484_v46 = vmul.f32 1.442695, %v6299_v43  ;;  %v7092_v61 = vmul.bf16 %v9348_v57, %v6644_v60 }
 0x3bc   : > { %v15323_v39 = vpop.eup %11334  ;;  %v6486_v37 = vmul.f32 1.442695, %v6300_v30  ;;  %v7091_v5 = vmul.bf16 %v9347_v36, %v6643_v20  ;;  %v7093_v15 = vmul.bf16 %v9349_v25, %v6645_v23  ;;  %v5631_v40 = vadd.f32 %v5566_v13, %v5430_v62 }
 0x3bd   : > { %v15325_v29 = vpop.eup %11336  ;;  %11348 = vpow2.f32 %v6482_v19  ;;  %v6488_v55 = vmul.f32 1.442695, %v6301_v27  ;;  %v8987_v0 = vcombine.high %v7090_v53, %v7092_v61  ;;  %v8986_v44 = vcombine.low %v7090_v53, %v7092_v61  ;;  %v5568_v61 = vpop.permute.xlu0 %5567 }
 0x3be   : > { %11350 = vpow2.f32 %v6484_v46  ;;  %v8989_v35 = vcombine.high %v7091_v5, %v7093_v15  ;;  %v5672_v51 = vmul.f32 2.0, %v5631_v40  ;;  %v8988_v63 = vcombine.low %v7091_v5, %v7093_v15 }
 0x3bf   : > { %v15327_v62 = vpop.eup %11338  ;;  %11352 = vpow2.f32 %v6486_v37  ;;  %7813 = vmatprep.mubr.bf16.mxu0 %v8987_v0  ;;  %v6022_v4 = vsub.f32 %v5734_v48, %v5880_v7  ;;  %v6023_v34 = vsub.f32 %v5735_v14, %v5880_v7  ;;  %v6024_v22 = vsub.f32 %v5736_v1, %v5880_v7  ;;  %v6646_v37 = vld [vmem:[%s11800_s16 + $0xa0] sm:$0xff] }
 0x3c0   : > { %11354 = vpow2.f32 %v6488_v55  ;;  %7974 = vmatprep.mubr.bf16.mxu1 %v8989_v35  ;;  %7814 = vmatmul.mubr.bf16.gmra.mxu0 %v8986_v44  ;;  %v6025_v17 = vsub.f32 %v5737_v33, %v5880_v7  ;;  %v6026_v42 = vsub.f32 %v5738_v11, %v5885_v49  ;;  %v6027_v56 = vsub.f32 %v5739_v9, %v5885_v49  ;;  %v6648_v11 = vld [vmem:[%s11800_s16 + $0xb0] sm:$0xff]  ;;  %v5746_v35 = vld [vmem:[#allocation3 + $0x328] sm:$0xff] }
 0x3c1   : > { %7975 = vmatmul.mubr.bf16.gmra.mxu1 %v8988_v63  ;;  %v6171_v3 = vadd.f32 %v14981_v52, %v6022_v4  ;;  %v6172_v10 = vadd.f32 %v14984_v18, %v6023_v34  ;;  %v6173_v13 = vadd.f32 %v14987_v38, %v6024_v22  ;;  %v6028_v21 = vsub.f32 %v5740_v16, %v5885_v49  ;;  %v6649_v4 = vld [vmem:[%s11800_s16 + $0xb8] sm:$0xff]  ;;  %v5747_v22 = vld [vmem:[#allocation3 + $0x260] sm:$0xff] }
 0x3c2   : > { %v15332_v60 = vpop.eup %11340  ;;  %v6174_v28 = vadd.f32 %v14990_v32, %v6025_v17  ;;  %v6029_v59 = vsub.f32 %v5741_v47, %v5885_v49  ;;  %v6175_v54 = vadd.f32 %v14981_v52, %v6026_v42  ;;  %v6176_v43 = vadd.f32 %v14984_v18, %v6027_v56  ;;  %5954 = vperm.xlu1 %11203, %v5672_v51   ;;  %v6647_v49 = vld [vmem:[%s11800_s16 + $0xa8] sm:$0xff]  ;;  %v5895_v51 = vpop.permute.xlu1 %5894  ;;  %v5748_v47 = vld [vmem:[#allocation3 + $0x3b8] sm:$0xff] }
 0x3c3   : > { %v15337_v57 = vpop.eup %11342  ;;  %v6302_v20 = vmul.f32 %v14992_v31, %v6171_v3  ;;  %v6303_v23 = vmul.f32 %v14992_v31, %v6172_v10  ;;  %v6304_v30 = vmul.f32 %v14992_v31, %v6173_v13  ;;  %v6177_v53 = vadd.f32 %v14987_v38, %v6028_v21 }
 0x3c4   : > { %v15343_v36 = vpop.eup %11344  ;;  %v6305_v25 = vmul.f32 %v14992_v31, %v6174_v28  ;;  %v6178_v27 = vadd.f32 %v14990_v32, %v6029_v59  ;;  %v6306_v19 = vmul.f32 %v14992_v31, %v6175_v54  ;;  %v6307_v46 = vmul.f32 %v14992_v31, %v6176_v43  ;;  %v5742_v59 = vld [vmem:[#allocation3 + $0x70] sm:$0xff] }
 0x3c5   : > { %v15350_v5 = vpop.eup %11346  ;;  %v6490_v15 = vmul.f32 1.442695, %v6302_v20  ;;  %v6492_v40 = vmul.f32 1.442695, %v6303_v23  ;;  %v6494_v48 = vmul.f32 1.442695, %v6304_v30  ;;  %v6308_v14 = vmul.f32 %v14992_v31, %v6177_v53 }
 0x3c6   : > { %v6496_v1 = vmul.f32 1.442695, %v6305_v25  ;;  %v6309_v7 = vmul.f32 %v14992_v31, %v6178_v27  ;;  %v6498_v55 = vmul.f32 1.442695, %v6306_v19  ;;  %v6500_v0 = vmul.f32 1.442695, %v6307_v46 }
 0x3c7   : > { %11356 = vpow2.f32 %v6490_v15  ;;  %v6502_v44 = vmul.f32 1.442695, %v6308_v14  ;;  %v5632_v33 = vadd.f32 %v5568_v61, %v15303_v50  ;;  %v9350_v9 = vpack.c.bf16 %v15263_v24, %v15259_v26  ;;  %v5749_v24 = vld [vmem:[#allocation3 + $0x2b8] sm:$0xff]  ;;  %v5743_v30 = vld [vmem:[#allocation3 + $0x300] sm:$0xff] }
 0x3c8   : > { %11358 = vpow2.f32 %v6492_v40  ;;  %v6504_v63 = vmul.f32 1.442695, %v6309_v7  ;;  %v9352_v16 = vpack.c.bf16 %v15291_v8, %v15289_v12  ;;  %v9351_v34 = vpack.c.bf16 %v15277_v41, %v15270_v45  ;;  %v5890_v12 = vpop.permute.xlu0 %5889  ;;  %v5744_v53 = vld [vmem:[#allocation3 + $0xe0] sm:$0xff]  ;;  %v5745_v46 = vld [vmem:[#allocation3 + $0x178] sm:$0xff] }
 0x3c9   : > { %11360 = vpow2.f32 %v6494_v48  ;;  %v5673_v50 = vmul.f32 2.0, %v5632_v33  ;;  %v7094_v17 = vmul.bf16 %v9350_v9, %v6646_v37  ;;  %v9353_v26 = vpack.c.bf16 %v15296_v6, %v15294_v58 }
 0x3ca   : > { %v15366_v42 = vpop.eup %11348  ;;  %11362 = vpow2.f32 %v6496_v1  ;;  %v7096_v56 = vmul.bf16 %v9352_v16, %v6648_v11  ;;  %v7095_v3 = vmul.bf16 %v9351_v34, %v6647_v49  ;;  %v6034_v10 = vsub.f32 %v5746_v35, %v5895_v51  ;;  %v5751_v49 = vld [vmem:[#allocation3 + $0x40] sm:$0xff] }
 0x3cb   : > { %v15368_v8 = vpop.eup %11350  ;;  %11364 = vpow2.f32 %v6498_v55  ;;  %v7097_v45 = vmul.bf16 %v9353_v26, %v6649_v4  ;;  %v6035_v41 = vsub.f32 %v5747_v22, %v5895_v51  ;;  %v6036_v13 = vsub.f32 %v5748_v47, %v5895_v51  ;;  %5959 = vperm.xlu0 %11202, %v5673_v50   ;;  %v5750_v55 = vld [vmem:[#allocation3 + $0x248] sm:$0xff]  ;;  %v5752_v16 = vld [vmem:[#allocation3 + $0x20] sm:$0xff] }
 0x3cc   : > { %v15370_v21 = vpop.eup %11352  ;;  %11366 = vpow2.f32 %v6500_v0  ;;  %v8991_v28 = vcombine.high %v7094_v17, %v7096_v56  ;;  %v6037_v58 = vsub.f32 %v5749_v24, %v5895_v51  ;;  %v6183_v6 = vadd.f32 %v14981_v52, %v6034_v10  ;;  %v5900_v0 = vpop.permute.xlu0 %5899  ;;  %v5753_v22 = vld [vmem:[#allocation3 + $0xe8] sm:$0xff] }
 0x3cd   : > { %v15373_v54 = vpop.eup %11354  ;;  %11368 = vpow2.f32 %v6502_v44  ;;  %v8993_v43 = vcombine.high %v7095_v3, %v7097_v45  ;;  %v6184_v20 = vadd.f32 %v14984_v18, %v6035_v41  ;;  %v6185_v23 = vadd.f32 %v14987_v38, %v6036_v13  ;;  %v5905_v41 = vpop.permute.xlu1 %5904 }
 0x3ce   : > { %11370 = vpow2.f32 %v6504_v63  ;;  %7821 = vmatprep.mubr.bf16.mxu0 %v8991_v28  ;;  %v6186_v25 = vadd.f32 %v14990_v32, %v6037_v58  ;;  %v6314_v27 = vmul.f32 %v14992_v31, %v6183_v6  ;;  %v8990_v19 = vcombine.low %v7094_v17, %v7096_v56 }
 0x3cf   : > { %7982 = vmatprep.mubr.bf16.mxu1 %v8993_v43  ;;  %v6315_v61 = vmul.f32 %v14992_v31, %v6184_v20  ;;  %v6316_v37 = vmul.f32 %v14992_v31, %v6185_v23  ;;  %v8992_v15 = vcombine.low %v7095_v3, %v7097_v45  ;;  %v6030_v40 = vsub.f32 %v5742_v59, %v5890_v12  ;;  %v5754_v45 = vld [vmem:[#allocation3 + $0x288] sm:$0xff] }
 0x3d0   : > { %v6317_v48 = vmul.f32 %v14992_v31, %v6186_v25  ;;  %v6514_v14 = vmul.f32 1.442695, %v6314_v27  ;;  %7822 = vmatmul.mubr.bf16.gmra.mxu0 %v8990_v19  ;;  %v6031_v1 = vsub.f32 %v5743_v30, %v5890_v12  ;;  %v6032_v7 = vsub.f32 %v5744_v53, %v5890_v12  ;;  %v5755_v43 = vld [vmem:[#allocation3 + $0x3a8] sm:$0xff] }
 0x3d1   : > { %v6516_v44 = vmul.f32 1.442695, %v6315_v61  ;;  %v6518_v33 = vmul.f32 1.442695, %v6316_v37  ;;  %7983 = vmatmul.mubr.bf16.gmra.mxu1 %v8992_v15  ;;  %v6033_v11 = vsub.f32 %v5745_v46, %v5890_v12  ;;  %v6179_v9 = vadd.f32 %v14981_v52, %v6030_v40  ;;  %v5756_v25 = vld [vmem:[#allocation3 + $0x3c8] sm:$0xff]  ;;  %v5757_v61 = vld [vmem:[#allocation3 + $0x160] sm:$0xff] }
 0x3d2   : > { %11372 = vpow2.f32 %v6514_v14  ;;  %v6520_v35 = vmul.f32 1.442695, %v6317_v48  ;;  %v6180_v51 = vadd.f32 %v14984_v18, %v6031_v1  ;;  %v6181_v63 = vadd.f32 %v14987_v38, %v6032_v7 }
 0x3d3   : > { %11374 = vpow2.f32 %v6516_v44  ;;  %v6182_v4 = vadd.f32 %v14990_v32, %v6033_v11  ;;  %v6310_v34 = vmul.f32 %v14992_v31, %v6179_v9  ;;  %v6038_v47 = vsub.f32 %v5750_v55, %v5900_v0  ;;  %v5758_v44 = vld [vmem:[#allocation3 + $0x2c8] sm:$0xff] }
 0x3d4   : > { %v15387_v50 = vpop.eup %11356  ;;  %11376 = vpow2.f32 %v6518_v33  ;;  %v6311_v17 = vmul.f32 %v14992_v31, %v6180_v51  ;;  %v6312_v26 = vmul.f32 %v14992_v31, %v6181_v63  ;;  %v6039_v24 = vsub.f32 %v5751_v49, %v5900_v0  ;;  %v5910_v33 = vpop.permute.xlu0 %5909  ;;  %v5759_v63 = vld [vmem:[#allocation3 + $0x210] sm:$0xff] }
 0x3d5   : > { %v15391_v56 = vpop.eup %11358  ;;  %11378 = vpow2.f32 %v6520_v35  ;;  %v6313_v3 = vmul.f32 %v14992_v31, %v6182_v4  ;;  %v6506_v10 = vmul.f32 1.442695, %v6310_v34  ;;  %v6040_v12 = vsub.f32 %v5752_v16, %v5900_v0 }
 0x3d6   : > { %v15394_v13 = vpop.eup %11360  ;;  %v6508_v28 = vmul.f32 1.442695, %v6311_v17  ;;  %v6510_v58 = vmul.f32 1.442695, %v6312_v26  ;;  %v6041_v6 = vsub.f32 %v5753_v22, %v5900_v0  ;;  %v6187_v59 = vadd.f32 %v14981_v52, %v6038_v47  ;;  %v5760_v22 = vld [vmem:[#allocation3 + $0x3d8] sm:$0xff]  ;;  %v5761_v26 = vld [vmem:[#allocation3 + $0x1e8] sm:$0xff] }
 0x3d7   : > { %v15397_v20 = vpop.eup %11362  ;;  %11380 = vpow2.f32 %v6506_v10  ;;  %v6512_v23 = vmul.f32 1.442695, %v6313_v3  ;;  %v6188_v30 = vadd.f32 %v14984_v18, %v6039_v24  ;;  %v6189_v53 = vadd.f32 %v14987_v38, %v6040_v12 }
 0x3d8   : > { %v15401_v27 = vpop.eup %11364  ;;  %11382 = vpow2.f32 %v6508_v28  ;;  %v6190_v19 = vadd.f32 %v14990_v32, %v6041_v6  ;;  %v6318_v46 = vmul.f32 %v14992_v31, %v6187_v59  ;;  %v6042_v37 = vsub.f32 %v5754_v45, %v5905_v41 }
 0x3d9   : > { %v15405_v15 = vpop.eup %11366  ;;  %11384 = vpow2.f32 %v6510_v58  ;;  %v6319_v40 = vmul.f32 %v14992_v31, %v6188_v30  ;;  %v6320_v48 = vmul.f32 %v14992_v31, %v6189_v53  ;;  %v6043_v14 = vsub.f32 %v5755_v43, %v5905_v41 }
 0x3da   : > { %v15409_v1 = vpop.eup %11368  ;;  %11386 = vpow2.f32 %v6512_v23  ;;  %v6321_v7 = vmul.f32 %v14992_v31, %v6190_v19  ;;  %v6522_v55 = vmul.f32 1.442695, %v6318_v46  ;;  %v6044_v0 = vsub.f32 %v5756_v25, %v5905_v41 }
 0x3db   : > { %v15412_v11 = vpop.eup %11370  ;;  %v6524_v9 = vmul.f32 1.442695, %v6319_v40  ;;  %v6526_v49 = vmul.f32 1.442695, %v6320_v48  ;;  %v6045_v35 = vsub.f32 %v5757_v61, %v5905_v41  ;;  %v6191_v51 = vadd.f32 %v14981_v52, %v6042_v37  ;;  %v6650_v61 = vld [vmem:[%s11800_s16 + $0xc0] sm:$0xff] }
 0x3dc   : > { %11388 = vpow2.f32 %v6522_v55  ;;  %v6528_v16 = vmul.f32 1.442695, %v6321_v7  ;;  %v6192_v4 = vadd.f32 %v14984_v18, %v6043_v14  ;;  %v6193_v34 = vadd.f32 %v14987_v38, %v6044_v0  ;;  %v6652_v14 = vld [vmem:[%s11800_s16 + $0xd0] sm:$0xff] }
 0x3dd   : > { %11390 = vpow2.f32 %v6524_v9  ;;  %v6194_v47 = vadd.f32 %v14990_v32, %v6045_v35  ;;  %v6322_v17 = vmul.f32 %v14992_v31, %v6191_v51  ;;  %v6046_v24 = vsub.f32 %v5758_v44, %v5910_v33  ;;  %v5915_v9 = vpop.permute.xlu1 %5914 }
 0x3de   : > { %11392 = vpow2.f32 %v6526_v49  ;;  %v6323_v3 = vmul.f32 %v14992_v31, %v6192_v4  ;;  %v6324_v10 = vmul.f32 %v14992_v31, %v6193_v34  ;;  %v6047_v12 = vsub.f32 %v5759_v63, %v5910_v33  ;;  %v6653_v4 = vld [vmem:[%s11800_s16 + $0xd8] sm:$0xff] }
 0x3df   : > { %v15421_v45 = vpop.eup %11372  ;;  %11394 = vpow2.f32 %v6528_v16  ;;  %v6325_v41 = vmul.f32 %v14992_v31, %v6194_v47  ;;  %v6530_v28 = vmul.f32 1.442695, %v6322_v17  ;;  %v6048_v58 = vsub.f32 %v5760_v22, %v5910_v33  ;;  %v6651_v16 = vld [vmem:[%s11800_s16 + $0xc8] sm:$0xff] }
 0x3e0   : > { %v15424_v6 = vpop.eup %11374  ;;  %v6532_v59 = vmul.f32 1.442695, %v6323_v3  ;;  %v6534_v43 = vmul.f32 1.442695, %v6324_v10  ;;  %v6049_v23 = vsub.f32 %v5761_v26, %v5910_v33  ;;  %v6195_v30 = vadd.f32 %v14981_v52, %v6046_v24  ;;  %v5762_v33 = vld [vmem:[#allocation3 + $0x1b0] sm:$0xff] }
 0x3e1   : > { %v15427_v53 = vpop.eup %11376  ;;  %11396 = vpow2.f32 %v6530_v28  ;;  %v6536_v25 = vmul.f32 1.442695, %v6325_v41  ;;  %v6196_v19 = vadd.f32 %v14984_v18, %v6047_v12  ;;  %v6197_v46 = vadd.f32 %v14987_v38, %v6048_v58  ;;  %v5765_v3 = vld [vmem:[#allocation3 + $0x1d0] sm:$0xff]  ;;  %v5766_v12 = vld [vmem:[#allocation3 + $0x58] sm:$0xff]  ;;  %v5920_v41 = vpop.permute.xlu0 %5919 }
 0x3e2   : > { %v15432_v37 = vpop.eup %11378  ;;  %11398 = vpow2.f32 %v6532_v59  ;;  %v6198_v40 = vadd.f32 %v14990_v32, %v6049_v23  ;;  %v6326_v48 = vmul.f32 %v14992_v31, %v6195_v30  ;;  %v9354_v7 = vpack.c.bf16 %v15323_v39, %v15315_v2  ;;  %v5767_v30 = vld [vmem:[#allocation3 + $0x120] sm:$0xff] }
 0x3e3   : > { %11400 = vpow2.f32 %v6534_v43  ;;  %v6327_v55 = vmul.f32 %v14992_v31, %v6196_v19  ;;  %v6328_v0 = vmul.f32 %v14992_v31, %v6197_v46  ;;  %v9356_v44 = vpack.c.bf16 %v15337_v57, %v15332_v60  ;;  %v5763_v60 = vld [vmem:[#allocation3 + $0x1c8] sm:$0xff]  ;;  %v5764_v57 = vld [vmem:[#allocation3 + $0x2d0] sm:$0xff] }
 0x3e4   : > { %v15443_v49 = vpop.eup %11380  ;;  %11402 = vpow2.f32 %v6536_v25  ;;  %v6329_v35 = vmul.f32 %v14992_v31, %v6198_v40  ;;  %v6538_v51 = vmul.f32 1.442695, %v6326_v48  ;;  %v7098_v63 = vmul.bf16 %v9354_v7, %v6650_v61  ;;  %v5768_v25 = vld [vmem:[#allocation3 + $0x198] sm:$0xff]  ;;  %v5769_v46 = vld [vmem:[#allocation3 + $0x2e8] sm:$0xff] }
 0x3e5   : > { %v15448_v2 = vpop.eup %11382  ;;  %v6540_v39 = vmul.f32 1.442695, %v6327_v55  ;;  %v6542_v34 = vmul.f32 1.442695, %v6328_v0  ;;  %v7100_v22 = vmul.bf16 %v9356_v44, %v6652_v14  ;;  %v9355_v47 = vpack.c.bf16 %v15327_v62, %v15325_v29 }
 0x3e6   : > { %v15452_v17 = vpop.eup %11384  ;;  %11404 = vpow2.f32 %v6538_v51  ;;  %v6544_v26 = vmul.f32 1.442695, %v6329_v35  ;;  %v9357_v24 = vpack.c.bf16 %v15350_v5, %v15343_v36  ;;  %v6050_v10 = vsub.f32 %v5762_v33, %v5915_v9 }
 0x3e7   : > { %v15456_v28 = vpop.eup %11386  ;;  %11406 = vpow2.f32 %v6540_v39  ;;  %v8995_v58 = vcombine.high %v7098_v63, %v7100_v22  ;;  %v7099_v59 = vmul.bf16 %v9355_v47, %v6651_v16  ;;  %v8994_v43 = vcombine.low %v7098_v63, %v7100_v22 }
 0x3e8   : > { %11408 = vpow2.f32 %v6542_v34  ;;  %v7101_v29 = vmul.bf16 %v9357_v24, %v6653_v4  ;;  %v6051_v62 = vsub.f32 %v5763_v60, %v5915_v9  ;;  %v6052_v23 = vsub.f32 %v5764_v57, %v5915_v9 }
 0x3e9   : > { %v15458_v19 = vpop.eup %11388  ;;  %11410 = vpow2.f32 %v6544_v26  ;;  %7829 = vmatprep.mubr.bf16.mxu0 %v8995_v58  ;;  %v6053_v36 = vsub.f32 %v5765_v3, %v5915_v9  ;;  %v6199_v5 = vadd.f32 %v14981_v52, %v6050_v10  ;;  %v6054_v61 = vsub.f32 %v5766_v12, %v5920_v41 }
 0x3ea   : > { %v15461_v40 = vpop.eup %11390  ;;  %v8997_v48 = vcombine.high %v7099_v59, %v7101_v29  ;;  %7830 = vmatmul.mubr.bf16.gmra.mxu0 %v8994_v43  ;;  %v8996_v14 = vcombine.low %v7099_v59, %v7101_v29  ;;  %v6200_v7 = vadd.f32 %v14984_v18, %v6051_v62  ;;  %v6201_v55 = vadd.f32 %v14987_v38, %v6052_v23  ;;  %v6654_v43 = vld [vmem:[%s11800_s16 + $0xe0] sm:$0xff] }
 0x3eb   : > { %v15465_v0 = vpop.eup %11392  ;;  %v6202_v44 = vadd.f32 %v14990_v32, %v6053_v36  ;;  %v6330_v33 = vmul.f32 %v14992_v31, %v6199_v5  ;;  %v6055_v9 = vsub.f32 %v5767_v30, %v5920_v41  ;;  %v6056_v35 = vsub.f32 %v5768_v25, %v5920_v41  ;;  %v6656_v30 = vld [vmem:[%s11800_s16 + $0xf0] sm:$0xff] }
 0x3ec   : > { %v15469_v51 = vpop.eup %11394  ;;  %7990 = vmatprep.mubr.bf16.mxu1 %v8997_v48  ;;  %v6331_v63 = vmul.f32 %v14992_v31, %v6200_v7  ;;  %v6332_v16 = vmul.f32 %v14992_v31, %v6201_v55  ;;  %v6057_v4 = vsub.f32 %v5769_v46, %v5920_v41  ;;  %v6203_v39 = vadd.f32 %v14981_v52, %v6054_v61  ;;  %v6655_v7 = vld [vmem:[%s11800_s16 + $0xe8] sm:$0xff]  ;;  %v6657_v55 = vld [vmem:[%s11800_s16 + $0xf8] sm:$0xff] }
 0x3ed   : > { %7991 = vmatmul.mubr.bf16.gmra.mxu1 %v8996_v14  ;;  %v6333_v34 = vmul.f32 %v14992_v31, %v6202_v44  ;;  %v6546_v22 = vmul.f32 1.442695, %v6330_v33  ;;  %v6204_v47 = vadd.f32 %v14984_v18, %v6055_v9  ;;  %v6205_v60 = vadd.f32 %v14987_v38, %v6056_v35  ;;  %v6658_v9 = vld [vmem:[%s11800_s16 + $0x100] sm:$0xff]  ;;  %v6660_v35 = vld [vmem:[%s11800_s16 + $0x110] sm:$0xff] }
 0x3ee   : > { %v15477_v57 = vpop.eup %11396  ;;  %v6548_v26 = vmul.f32 1.442695, %v6331_v63  ;;  %v6550_v24 = vmul.f32 1.442695, %v6332_v16  ;;  %v6206_v3 = vadd.f32 %v14990_v32, %v6057_v4  ;;  %v6334_v10 = vmul.f32 %v14992_v31, %v6203_v39  ;;  %v6659_v39 = vld [vmem:[%s11800_s16 + $0x108] sm:$0xff] }
 0x3ef   : > { %v15481_v12 = vpop.eup %11398  ;;  %11412 = vpow2.f32 %v6546_v22  ;;  %v6552_v41 = vmul.f32 1.442695, %v6333_v34  ;;  %v6335_v58 = vmul.f32 %v14992_v31, %v6204_v47  ;;  %v6336_v59 = vmul.f32 %v14992_v31, %v6205_v60  ;;  %v6661_v34 = vld [vmem:[%s11800_s16 + $0x118] sm:$0xff] }
 0x3f0   : > { %v15486_v29 = vpop.eup %11400  ;;  %11414 = vpow2.f32 %v6548_v26  ;;  %v6337_v62 = vmul.f32 %v14992_v31, %v6206_v3  ;;  %v6554_v23 = vmul.f32 1.442695, %v6334_v10  ;;  %v9358_v25 = vpack.c.bf16 %v15368_v8, %v15366_v42  ;;  %v6662_v3 = vld [vmem:[%s11800_s16 + $0x120] sm:$0xff] }
 0x3f1   : > { %v15492_v36 = vpop.eup %11402  ;;  %11416 = vpow2.f32 %v6550_v24  ;;  %v6556_v5 = vmul.f32 1.442695, %v6335_v58  ;;  %v6558_v46 = vmul.f32 1.442695, %v6336_v59  ;;  %v9360_v61 = vpack.c.bf16 %v15391_v56, %v15387_v50  ;;  %v5774_v59 = vld [vmem:[#allocation3 + $0x1a0] sm:$0xff] }
 0x3f2   : > { %11418 = vpow2.f32 %v6552_v41  ;;  %v6560_v48 = vmul.f32 1.442695, %v6337_v62  ;;  %v7102_v14 = vmul.bf16 %v9358_v25, %v6654_v43  ;;  %v9359_v44 = vpack.c.bf16 %v15373_v54, %v15370_v21  ;;  %v6665_v41 = vld [vmem:[%s11800_s16 + $0x138] sm:$0xff]  ;;  %v5930_v43 = vpop.permute.xlu0 %5929 }
 0x3f3   : > { %v15500_v33 = vpop.eup %11404  ;;  %11420 = vpow2.f32 %v6554_v23  ;;  %v7104_v42 = vmul.bf16 %v9360_v61, %v6656_v30  ;;  %v9361_v8 = vpack.c.bf16 %v15397_v20, %v15394_v13  ;;  %v9362_v50 = vpack.c.bf16 %v15405_v15, %v15401_v27  ;;  %v5776_v23 = vld [vmem:[#allocation3 + $0x258] sm:$0xff]  ;;  %v6666_v61 = vld [vmem:[%s11800_s16 + $0x140] sm:$0xff] }
 0x3f4   : > { %v15508_v56 = vpop.eup %11406  ;;  %11422 = vpow2.f32 %v6556_v5  ;;  %v9364_v21 = vpack.c.bf16 %v15448_v2, %v15443_v49  ;;  %v9363_v54 = vpack.c.bf16 %v15412_v11, %v15409_v1  ;;  %v7103_v4 = vmul.bf16 %v9359_v44, %v6655_v7  ;;  %v6664_v2 = vld [vmem:[%s11800_s16 + $0x130] sm:$0xff]  ;;  %v5777_v30 = vld [vmem:[#allocation3 + $0x2d8] sm:$0xff] }
 0x3f5   : > { %v15514_v63 = vpop.eup %11408  ;;  %v8999_v16 = vcombine.high %v7102_v14, %v7104_v42  ;;  %v7105_v13 = vmul.bf16 %v9361_v8, %v6657_v55  ;;  %v8998_v20 = vcombine.low %v7102_v14, %v7104_v42  ;;  %11424 = vpow2.f32 %v6558_v46 }
 0x3f6   : > { %v15518_v27 = vpop.eup %11410  ;;  %v7106_v15 = vmul.bf16 %v9362_v50, %v6658_v9  ;;  %v7108_v22 = vmul.bf16 %v9364_v21, %v6660_v35  ;;  %v9365_v49 = vpack.c.bf16 %v15456_v28, %v15452_v17  ;;  %11426 = vpow2.f32 %v6560_v48  ;;  %v6668_v48 = vld [vmem:[%s11800_s16 + $0x150] sm:$0xff]  ;;  %v6669_v9 = vld [vmem:[%s11800_s16 + $0x158] sm:$0xff] }
 0x3f7   : > { %7837 = vmatprep.mubr.bf16.mxu0 %v8999_v16  ;;  %v9001_v1 = vcombine.high %v7103_v4, %v7105_v13  ;;  %v9000_v11 = vcombine.low %v7103_v4, %v7105_v13  ;;  %v9366_v47 = vpack.c.bf16 %v15424_v6, %v15421_v45  ;;  %v7107_v26 = vmul.bf16 %v9363_v54, %v6659_v39  ;;  %v6663_v6 = vld [vmem:[%s11800_s16 + $0x128] sm:$0xff]  ;;  %v5771_v21 = vld [vmem:[#allocation3 + $0x238] sm:$0xff]  ;;  %v5925_v54 = vpop.permute.xlu1 %5924 }
 0x3f8   : > { %7838 = vmatmul.mubr.bf16.gmra.mxu0 %v8998_v20  ;;  %v9003_v60 = vcombine.high %v7106_v15, %v7108_v22  ;;  %v7109_v24 = vmul.bf16 %v9365_v49, %v6661_v34  ;;  %v9368_v10 = vpack.c.bf16 %v15461_v40, %v15458_v19  ;;  %v9367_v17 = vpack.c.bf16 %v15432_v37, %v15427_v53  ;;  %v5775_v40 = vld [vmem:[#allocation3 + $0xa8] sm:$0xff]  ;;  %v5772_v34 = vld [vmem:[#allocation3 + $0x398] sm:$0xff] }
 0x3f9   : > { %7998 = vmatprep.mubr.bf16.mxu1 %v9001_v1  ;;  %v9369_v28 = vpack.c.bf16 %v15469_v51, %v15465_v0  ;;  %v15536_v62 = vmul.bf16 %v9366_v47, %v6662_v3  ;;  %v9002_v37 = vcombine.low %v7106_v15, %v7108_v22  ;;  %v9370_v0 = vpack.c.bf16 %v15481_v12, %v15477_v57  ;;  %v6667_v57 = vld [vmem:[%s11800_s16 + $0x148] sm:$0xff] }
 0x3fa   : > { %7999 = vmatmul.mubr.bf16.gmra.mxu1 %v9000_v11  ;;  %7845 = vmatprep.mubr.bf16.mxu0 %v9003_v60  ;;  %v9005_v58 = vcombine.high %v7107_v26, %v7109_v24  ;;  %v15533_v45 = vmul.bf16 %v9368_v10, %v6664_v2  ;;  %v9372_v51 = vpack.c.bf16 %v15508_v56, %v15500_v33  ;;  %v5770_v56 = vld [vmem:[#allocation3 + $0x1f8] sm:$0xff] }
 0x3fb   : > { %v15538_v19 = vmul.bf16 %v9369_v28, %v6665_v41  ;;  %v15550_v46 = vmul.bf16 %v9367_v17, %v6663_v6  ;;  %v6062_v14 = vsub.f32 %v5774_v59, %v5930_v43  ;;  %v9004_v55 = vcombine.low %v7107_v26, %v7109_v24 }
 0x3fc   : > { %v15540_v53 = vpop.eup %11412  ;;  %8006 = vmatprep.mubr.bf16.mxu1 %v9005_v58  ;;  %v9007_v5 = vcombine.high %v15536_v62, %v15533_v45  ;;  %v9371_v12 = vpack.c.bf16 %v15492_v36, %v15486_v29  ;;  %v9373_v44 = vpack.c.bf16 %v15518_v27, %v15514_v63  ;;  %v6063_v33 = vsub.f32 %v5775_v40, %v5930_v43  ;;  %v5773_v27 = vld [vmem:[#allocation3 + $0x390] sm:$0xff] }
 0x3fd   : > { %v15546_v25 = vpop.eup %11414  ;;  %v9009_v8 = vcombine.high %v15550_v46, %v15538_v19  ;;  %v6064_v35 = vsub.f32 %v5776_v23, %v5930_v43  ;;  %v6065_v50 = vsub.f32 %v5777_v30, %v5930_v43  ;;  %v15566_v4 = vmul.bf16 %v9370_v0, %v6666_v61 }
 0x3fe   : > { %v15554_v7 = vpop.eup %11416  ;;  %v15568_v29 = vmul.bf16 %v9372_v51, %v6668_v48  ;;  %v6211_v63 = vadd.f32 %v14981_v52, %v6062_v14  ;;  %v6212_v13 = vadd.f32 %v14984_v18, %v6063_v33  ;;  %v15574_v15 = vmul.bf16 %v9371_v12, %v6667_v57  ;;  %v6673_v12 = vld [vmem:[%s11800_s16 + $0x178] sm:$0xff]  ;;  %v5779_v33 = vld [vmem:[#allocation3 + $0x180] sm:$0xff] }
 0x3ff   : > { %v15561_v42 = vpop.eup %11418  ;;  %v6213_v20 = vadd.f32 %v14987_v38, %v6064_v35  ;;  %v6214_v39 = vadd.f32 %v14990_v32, %v6065_v50  ;;  %v15576_v22 = vmul.bf16 %v9373_v44, %v6669_v9  ;;  %v6058_v49 = vsub.f32 %v5770_v56, %v5925_v54 }
 0x400   : > { %v11421_v16 = vpop.eup %11420  ;;  %7846 = vmatmul.mubr.bf16.gmra.mxu0 %v9002_v37  ;;  %v6059_v1 = vsub.f32 %v5771_v21, %v5925_v54  ;;  %v6342_v2 = vmul.f32 %v14992_v31, %v6211_v63  ;;  %v6343_v47 = vmul.f32 %v14992_v31, %v6212_v13  ;;  %v9006_v3 = vcombine.low %v15536_v62, %v15533_v45  ;;  %v6670_v37 = vld [vmem:[%s11800_s16 + $0x160] sm:$0xff]  ;;  %v5780_v21 = vld [vmem:[#allocation3 + $0x170] sm:$0xff] }
 0x401   : > { %v11423_v36 = vpop.eup %11422  ;;  %7853 = vmatprep.mubr.bf16.mxu0 %v9007_v5  ;;  %v6344_v60 = vmul.f32 %v14992_v31, %v6213_v20  ;;  %v6345_v26 = vmul.f32 %v14992_v31, %v6214_v39  ;;  %v9008_v10 = vcombine.low %v15550_v46, %v15538_v19  ;;  %v6060_v41 = vsub.f32 %v5772_v34, %v5925_v54  ;;  %v6672_v19 = vld [vmem:[%s11800_s16 + $0x170] sm:$0xff]  ;;  %v6671_v46 = vld [vmem:[%s11800_s16 + $0x168] sm:$0xff] }
 0x402   : > { %8007 = vmatmul.mubr.bf16.gmra.mxu1 %v9004_v55  ;;  %v11425_v11 = vpop.eup %11424  ;;  %v6061_v17 = vsub.f32 %v5773_v27, %v5925_v54  ;;  %v9374_v28 = vpack.c.bf16 %v15546_v25, %v15540_v53  ;;  %v6570_v58 = vmul.f32 1.442695, %v6342_v2  ;;  %v6572_v6 = vmul.f32 1.442695, %v6343_v47  ;;  %v5781_v13 = vld [vmem:[#allocation3 + $0x3d0] sm:$0xff] }
 0x403   : > { %8014 = vmatprep.mubr.bf16.mxu1 %v9009_v8  ;;  %v11427_v24 = vpop.eup %11426  ;;  %v6207_v59 = vadd.f32 %v14981_v52, %v6058_v49  ;;  %v9011_v43 = vcombine.high %v15566_v4, %v15568_v29  ;;  %v9013_v40 = vcombine.high %v15574_v15, %v15576_v22  ;;  %v9376_v45 = vpack.c.bf16 %v11423_v36, %v11421_v16 }
 0x404   : > { %v6574_v62 = vmul.f32 1.442695, %v6344_v60  ;;  %v6576_v0 = vmul.f32 1.442695, %v6345_v26  ;;  %v6208_v51 = vadd.f32 %v14984_v18, %v6059_v1  ;;  %v6209_v53 = vadd.f32 %v14987_v38, %v6060_v41 }
 0x405   : > { %v6210_v23 = vadd.f32 %v14990_v32, %v6061_v17  ;;  %v9375_v30 = vpack.c.bf16 %v15561_v42, %v15554_v7  ;;  %v9377_v25 = vpack.c.bf16 %v11427_v24, %v11425_v11  ;;  %11428 = vpow2.f32 %v6570_v58  ;;  %v5778_v7 = vld [vmem:[#allocation3 + $0xf0] sm:$0xff]  ;;  %v5935_v42 = vpop.permute.xlu1 %5934 }
 0x406   : > { %v6338_v5 = vmul.f32 %v14992_v31, %v6207_v59  ;;  %11430 = vpow2.f32 %v6572_v6  ;;  %v6339_v61 = vmul.f32 %v14992_v31, %v6208_v51  ;;  %v6340_v48 = vmul.f32 %v14992_v31, %v6209_v53  ;;  %v6674_v59 = vld [vmem:[%s11800_s16 + $0x180] sm:$0xff]  ;;  %v6677_v51 = vld [vmem:[%s11800_s16 + $0x198] sm:$0xff]  ;;  %v5782_v53 = vld [vmem:[#allocation3 + $0x250] sm:$0xff] }
 0x407   : > { %v6341_v14 = vmul.f32 %v14992_v31, %v6210_v23  ;;  %v7118_v55 = vmul.bf16 %v9374_v28, %v6670_v37  ;;  %v7120_v57 = vmul.bf16 %v9376_v45, %v6672_v19  ;;  %11432 = vpow2.f32 %v6574_v62 }
 0x408   : > { %7854 = vmatmul.mubr.bf16.gmra.mxu0 %v9006_v3  ;;  %v6562_v44 = vmul.f32 1.442695, %v6338_v5  ;;  %11434 = vpow2.f32 %v6576_v0  ;;  %v6564_v8 = vmul.f32 1.442695, %v6339_v61  ;;  %v6566_v9 = vmul.f32 1.442695, %v6340_v48 }
 0x409   : > { %7861 = vmatprep.mubr.bf16.mxu0 %v9011_v43  ;;  %v6568_v35 = vmul.f32 1.442695, %v6341_v14  ;;  %v7119_v50 = vmul.bf16 %v9375_v30, %v6671_v46  ;;  %v7121_v56 = vmul.bf16 %v9377_v25, %v6673_v12  ;;  %v6066_v54 = vsub.f32 %v5778_v7, %v5935_v42  ;;  %v6676_v43 = vld [vmem:[%s11800_s16 + $0x190] sm:$0xff]  ;;  %v6675_v0 = vld [vmem:[%s11800_s16 + $0x188] sm:$0xff]  ;;  %v5783_v5 = vld [vmem:[#allocation3 + $0x378] sm:$0xff] }
 0x40a   : > { %8015 = vmatmul.mubr.bf16.gmra.mxu1 %v9008_v10  ;;  %11436 = vpow2.f32 %v6562_v44  ;;  %v9010_v16 = vcombine.low %v15566_v4, %v15568_v29  ;;  %v6067_v36 = vsub.f32 %v5779_v33, %v5935_v42  ;;  %v9015_v63 = vcombine.high %v7118_v55, %v7120_v57  ;;  %v5784_v46 = vld [vmem:[#allocation3 + $0xb8] sm:$0xff] }
 0x40b   : > { %8022 = vmatprep.mubr.bf16.mxu1 %v9013_v40  ;;  %11438 = vpow2.f32 %v6564_v8  ;;  %v9012_v20 = vcombine.low %v15574_v15, %v15576_v22  ;;  %v6068_v39 = vsub.f32 %v5780_v21, %v5935_v42  ;;  %v9017_v34 = vcombine.high %v7119_v50, %v7121_v56  ;;  %v5785_v61 = vld [vmem:[#allocation3 + $0x38] sm:$0xff] }
 0x40c   : > { %11440 = vpow2.f32 %v6566_v9  ;;  %v6215_v27 = vadd.f32 %v14981_v52, %v6066_v54  ;;  %v6069_v49 = vsub.f32 %v5781_v13, %v5935_v42  ;;  %v6216_v1 = vadd.f32 %v14984_v18, %v6067_v36 }
 0x40d   : > { %11442 = vpow2.f32 %v6568_v35  ;;  %v6217_v4 = vadd.f32 %v14987_v38, %v6068_v39  ;;  %v9014_v47 = vcombine.low %v7118_v55, %v7120_v57  ;;  %v9016_v24 = vcombine.low %v7119_v50, %v7121_v56 }
 0x40e   : > { %v6346_v11 = vmul.f32 %v14992_v31, %v6215_v27  ;;  %v6218_v15 = vadd.f32 %v14990_v32, %v6069_v49  ;;  %v6347_v22 = vmul.f32 %v14992_v31, %v6216_v1  ;;  %v5786_v49 = vld [vmem:[#allocation3 + $0x78] sm:$0xff]  ;;  %v5787_v1 = vld [vmem:[#allocation3 + $0x308] sm:$0xff] }
 0x40f   : > { %v6348_v3 = vmul.f32 %v14992_v31, %v6217_v4  ;;  %v5788_v4 = vld [vmem:[#allocation3 + $0x370] sm:$0xff] }
 0x410   : > { %7862 = vmatmul.mubr.bf16.gmra.mxu0 %v9010_v16  ;;  %v6578_v41 = vmul.f32 1.442695, %v6346_v11  ;;  %v6349_v58 = vmul.f32 %v14992_v31, %v6218_v15  ;;  %v6580_v6 = vmul.f32 1.442695, %v6347_v22 }
 0x411   : > { %7869 = vmatprep.mubr.bf16.mxu0 %v9015_v63  ;;  %v6582_v19 = vmul.f32 1.442695, %v6348_v3 }
 0x412   : > { %8023 = vmatmul.mubr.bf16.gmra.mxu1 %v9012_v20  ;;  %v11429_v29 = vpop.eup %11428  ;;  %11444 = vpow2.f32 %v6578_v41  ;;  %v6584_v48 = vmul.f32 1.442695, %v6349_v58 }
 0x413   : > { %8030 = vmatprep.mubr.bf16.mxu1 %v9017_v34  ;;  %v11431_v2 = vpop.eup %11430  ;;  %11446 = vpow2.f32 %v6580_v6 }
 0x414   : > { %v11433_v60 = vpop.eup %11432  ;;  %v9380_v17 = vpack.c.bf16 %v11431_v2, %v11429_v29  ;;  %11448 = vpow2.f32 %v6582_v19  ;;  %v5789_v29 = vld [vmem:[#allocation3 + $0xc8] sm:$0xff] }
 0x415   : > { %v11435_v26 = vpop.eup %11434  ;;  %11450 = vpow2.f32 %v6584_v48  ;;  %v5793_v19 = vld [vmem:[#allocation3 + $0x348] sm:$0xff] }
 0x416   : > { %v9381_v62 = vpack.c.bf16 %v11435_v26, %v11433_v60  ;;  %v7124_v30 = vmul.bf16 %v9380_v17, %v6676_v43  ;;  %v5790_v43 = vld [vmem:[#allocation3 + $0x278] sm:$0xff] }
 0x417   : > { %v11437_v10 = vpop.eup %11436 }
 0x418   : > { %7870 = vmatmul.mubr.bf16.gmra.mxu0 %v9014_v47  ;;  %v11439_v28 = vpop.eup %11438  ;;  %v7125_v57 = vmul.bf16 %v9381_v62, %v6677_v51 }
 0x419   : > { %v11441_v40 = vpop.eup %11440  ;;  %v9378_v45 = vpack.c.bf16 %v11439_v28, %v11437_v10 }
 0x41a   : > { %8031 = vmatmul.mubr.bf16.gmra.mxu1 %v9016_v24  ;;  %v11443_v37 = vpop.eup %11442 }
 0x41b   : > { %v7122_v23 = vmul.bf16 %v9378_v45, %v6674_v59  ;;  %v9379_v25 = vpack.c.bf16 %v11443_v37, %v11441_v40  ;;  %v5791_v40 = vld [vmem:[#allocation3 + $0x360] sm:$0xff]  ;;  %v5792_v45 = vld [vmem:[#allocation3 + $0x228] sm:$0xff] }
 0x41d   : > { %v9019_v14 = vcombine.high %v7122_v23, %v7124_v30  ;;  %v7123_v55 = vmul.bf16 %v9379_v25, %v6675_v0  ;;  %v9018_v12 = vcombine.low %v7122_v23, %v7124_v30  ;;  %v6678_v0 = vld [vmem:[%s11800_s16 + $0x1a0] sm:$0xff] }
 0x41f   : > { %v5940_v44 = vpop.permute.xlu0 %5939  ;;  %7877 = vmatprep.mubr.bf16.mxu0 %v9019_v14  ;;  %v9021_v9 = vcombine.high %v7123_v55, %v7125_v57  ;;  %v9020_v35 = vcombine.low %v7123_v55, %v7125_v57  ;;  %v11445_v11 = vpop.eup %11444 }
 0x420   : > { %v6070_v7 = vsub.f32 %v5782_v53, %v5940_v44  ;;  %v6071_v33 = vsub.f32 %v5783_v5, %v5940_v44  ;;  %v6072_v42 = vsub.f32 %v5784_v46, %v5940_v44  ;;  %v6073_v8 = vsub.f32 %v5785_v61, %v5940_v44  ;;  %7878 = vmatmul.mubr.bf16.gmra.mxu0 %v9018_v12  ;;  %v11447_v47 = vpop.eup %11446  ;;  %v6679_v61 = vld [vmem:[%s11800_s16 + $0x1a8] sm:$0xff] }
 0x421   : > { %8038 = vmatprep.mubr.bf16.mxu1 %v9021_v9  ;;  %v11449_v41 = vpop.eup %11448  ;;  %v9382_v62 = vpack.c.bf16 %v11447_v47, %v11445_v11  ;;  %v5796_v11 = vld [vmem:[#allocation3 + $0x68] sm:$0xff] }
 0x422   : > { %v6219_v50 = vadd.f32 %v14981_v52, %v6070_v7  ;;  %v6220_v56 = vadd.f32 %v14984_v18, %v6071_v33  ;;  %v6221_v21 = vadd.f32 %v14987_v38, %v6072_v42  ;;  %v6222_v54 = vadd.f32 %v14990_v32, %v6073_v8  ;;  %8039 = vmatmul.mubr.bf16.gmra.mxu1 %v9020_v35  ;;  %v11451_v58 = vpop.eup %11450  ;;  %v6680_v8 = vld [vmem:[%s11800_s16 + $0x1b0] sm:$0xff] }
 0x423   : > { %v9383_v23 = vpack.c.bf16 %v11451_v58, %v11449_v41  ;;  %v7126_v57 = vmul.bf16 %v9382_v62, %v6678_v0  ;;  %v5800_v0 = vld [vmem:[#allocation3 + $0x310] sm:$0xff] }
 0x424   : > { %v6350_v16 = vmul.f32 %v14992_v31, %v6219_v50  ;;  %v6351_v36 = vmul.f32 %v14992_v31, %v6220_v56  ;;  %v6352_v63 = vmul.f32 %v14992_v31, %v6221_v21  ;;  %v6353_v13 = vmul.f32 %v14992_v31, %v6222_v54 }
 0x425   : > { %v7127_v56 = vmul.bf16 %v9383_v23, %v6679_v61  ;;  %v5801_v23 = vld [vmem:[#allocation3 + $0x190] sm:$0xff] }
 0x426   : > { %v6586_v20 = vmul.f32 1.442695, %v6350_v16  ;;  %v6588_v39 = vmul.f32 1.442695, %v6351_v36  ;;  %v6590_v34 = vmul.f32 1.442695, %v6352_v63 }
 0x427   : > { %v6592_v27 = vmul.f32 1.442695, %v6353_v13  ;;  %v6681_v63 = vld [vmem:[%s11800_s16 + $0x1b8] sm:$0xff] }
 0x428   : > { %11452 = vpow2.f32 %v6586_v20 }
 0x429   : > { %11454 = vpow2.f32 %v6588_v39 }
 0x42a   : > { %11456 = vpow2.f32 %v6590_v34  ;;  %v5945_v2 = vpop.permute.xlu1 %5944 }
 0x42b   : > { %11458 = vpow2.f32 %v6592_v27  ;;  %v6074_v15 = vsub.f32 %v5786_v49, %v5945_v2  ;;  %v6075_v22 = vsub.f32 %v5787_v1, %v5945_v2  ;;  %v6076_v60 = vsub.f32 %v5788_v4, %v5945_v2  ;;  %v5794_v4 = vld [vmem:[#allocation3 + $0x148] sm:$0xff] }
 0x42c   : > { %v6077_v26 = vsub.f32 %v5789_v29, %v5945_v2  ;;  %v5795_v29 = vld [vmem:[#allocation3 + $0xf8] sm:$0xff] }
 0x42d   : > { %v6223_v24 = vadd.f32 %v14981_v52, %v6074_v15  ;;  %v6224_v3 = vadd.f32 %v14984_v18, %v6075_v22  ;;  %v6225_v10 = vadd.f32 %v14987_v38, %v6076_v60  ;;  %v5797_v22 = vld [vmem:[#allocation3] sm:$0xff] }
 0x42e   : > { %v6226_v17 = vadd.f32 %v14990_v32, %v6077_v26 }
 0x42f   : > { %v6354_v28 = vmul.f32 %v14992_v31, %v6223_v24  ;;  %v6355_v6 = vmul.f32 %v14992_v31, %v6224_v3  ;;  %v6356_v59 = vmul.f32 %v14992_v31, %v6225_v10 }
 0x430   : > { %v6357_v37 = vmul.f32 %v14992_v31, %v6226_v17 }
 0x431   : > { %v6594_v51 = vmul.f32 1.442695, %v6354_v28  ;;  %v6596_v30 = vmul.f32 1.442695, %v6355_v6  ;;  %v6598_v14 = vmul.f32 1.442695, %v6356_v59 }
 0x432   : > { %v6600_v44 = vmul.f32 1.442695, %v6357_v37  ;;  %v5798_v37 = vld [vmem:[#allocation3 + $0x298] sm:$0xff] }
 0x433   : > { %v5950_v53 = vpop.permute.xlu0 %5949  ;;  %11460 = vpow2.f32 %v6594_v51 }
 0x434   : > { %v6078_v25 = vsub.f32 %v5790_v43, %v5950_v53  ;;  %v6079_v5 = vsub.f32 %v5791_v40, %v5950_v53  ;;  %v6080_v46 = vsub.f32 %v5792_v45, %v5950_v53  ;;  %v6081_v55 = vsub.f32 %v5793_v19, %v5950_v53  ;;  %v5799_v19 = vld [vmem:[#allocation3 + $0x270] sm:$0xff] }
 0x435   : > { %v11453_v48 = vpop.eup %11452  ;;  %11462 = vpow2.f32 %v6596_v30 }
 0x436   : > { %v11455_v12 = vpop.eup %11454  ;;  %v6227_v7 = vadd.f32 %v14981_v52, %v6078_v25  ;;  %v6228_v33 = vadd.f32 %v14984_v18, %v6079_v5  ;;  %v6229_v42 = vadd.f32 %v14987_v38, %v6080_v46  ;;  %v6230_v35 = vadd.f32 %v14990_v32, %v6081_v55 }
 0x437   : > { %v11457_v9 = vpop.eup %11456  ;;  %v9384_v50 = vpack.c.bf16 %v11455_v12, %v11453_v48  ;;  %11464 = vpow2.f32 %v6598_v14 }
 0x438   : > { %v11459_v21 = vpop.eup %11458  ;;  %v6358_v54 = vmul.f32 %v14992_v31, %v6227_v7  ;;  %v6359_v16 = vmul.f32 %v14992_v31, %v6228_v33  ;;  %v6360_v36 = vmul.f32 %v14992_v31, %v6229_v42  ;;  %v6361_v13 = vmul.f32 %v14992_v31, %v6230_v35 }
 0x439   : > { %v7128_v20 = vmul.bf16 %v9384_v50, %v6680_v8  ;;  %v9385_v39 = vpack.c.bf16 %v11459_v21, %v11457_v9  ;;  %11466 = vpow2.f32 %v6600_v44  ;;  %v6682_v9 = vld [vmem:[%s11800_s16 + $0x1c0] sm:$0xff]  ;;  %v6684_v21 = vld [vmem:[%s11800_s16 + $0x1d0] sm:$0xff] }
 0x43a   : > { %v6602_v34 = vmul.f32 1.442695, %v6358_v54  ;;  %v6604_v27 = vmul.f32 1.442695, %v6359_v16  ;;  %v6606_v49 = vmul.f32 1.442695, %v6360_v36 }
 0x43b   : > { %v6608_v1 = vmul.f32 1.442695, %v6361_v13  ;;  %v9023_v2 = vcombine.high %v7126_v57, %v7128_v20  ;;  %v7129_v47 = vmul.bf16 %v9385_v39, %v6681_v63  ;;  %v9022_v15 = vcombine.low %v7126_v57, %v7128_v20  ;;  %v6683_v20 = vld [vmem:[%s11800_s16 + $0x1c8] sm:$0xff]  ;;  %v6685_v39 = vld [vmem:[%s11800_s16 + $0x1d8] sm:$0xff] }
 0x43c   : > { %11468 = vpow2.f32 %v6602_v34 }
 0x43d   : > { %11470 = vpow2.f32 %v6604_v27  ;;  %v5955_v60 = vpop.permute.xlu1 %5954  ;;  %7885 = vmatprep.mubr.bf16.mxu0 %v9023_v2  ;;  %v9025_v26 = vcombine.high %v7127_v56, %v7129_v47  ;;  %v9024_v24 = vcombine.low %v7127_v56, %v7129_v47 }
 0x43e   : > { %11472 = vpow2.f32 %v6606_v49  ;;  %v6082_v3 = vsub.f32 %v5794_v4, %v5955_v60  ;;  %v6083_v10 = vsub.f32 %v5795_v29, %v5955_v60  ;;  %v6084_v41 = vsub.f32 %v5796_v11, %v5955_v60  ;;  %7886 = vmatmul.mubr.bf16.gmra.mxu0 %v9022_v15 }
 0x43f   : > { %11474 = vpow2.f32 %v6608_v1  ;;  %v6085_v17 = vsub.f32 %v5797_v22, %v5955_v60  ;;  %8046 = vmatprep.mubr.bf16.mxu1 %v9025_v26 }
 0x440   : > { %v6231_v28 = vadd.f32 %v14981_v52, %v6082_v3  ;;  %v6232_v58 = vadd.f32 %v14984_v18, %v6083_v10  ;;  %v6233_v6 = vadd.f32 %v14987_v38, %v6084_v41  ;;  %8047 = vmatmul.mubr.bf16.gmra.mxu1 %v9024_v24  ;;  %v11461_v45 = vpop.eup %11460 }
 0x441   : > { %v6234_v59 = vadd.f32 %v14990_v32, %v6085_v17 }
 0x442   : > { %v6362_v43 = vmul.f32 %v14992_v31, %v6231_v28  ;;  %v6363_v40 = vmul.f32 %v14992_v31, %v6232_v58  ;;  %v6364_v62 = vmul.f32 %v14992_v31, %v6233_v6  ;;  %v11463_v51 = vpop.eup %11462  ;;  %v7138_v28 = vld [vmem:[%s11802_s6] sm:$0xff] }
 0x443   : > { %v6365_v25 = vmul.f32 %v14992_v31, %v6234_v59  ;;  %v9386_v44 = vpack.c.bf16 %v11463_v51, %v11461_v45 }
 0x444   : > { %v6610_v53 = vmul.f32 1.442695, %v6362_v43  ;;  %v11465_v30 = vpop.eup %11464  ;;  %v6612_v5 = vmul.f32 1.442695, %v6363_v40  ;;  %v6614_v57 = vmul.f32 1.442695, %v6364_v62 }
 0x445   : > { %v6616_v50 = vmul.f32 1.442695, %v6365_v25  ;;  %v7130_v13 = vmul.bf16 %v9386_v44, %v6682_v9 }
 0x446   : > { %v5960_v46 = vpop.permute.xlu0 %5959  ;;  %v11467_v61 = vpop.eup %11466  ;;  %11476 = vpow2.f32 %v6610_v53 }
 0x447   : > { %v6086_v48 = vsub.f32 %v5798_v37, %v5960_v46  ;;  %v6087_v14 = vsub.f32 %v5799_v19, %v5960_v46  ;;  %v6088_v55 = vsub.f32 %v5800_v0, %v5960_v46  ;;  %v6089_v12 = vsub.f32 %v5801_v23, %v5960_v46  ;;  %v7139_v0 = vld [vmem:[%s11802_s6 + $0x8] sm:$0xff] }
 0x448   : > { %11478 = vpow2.f32 %v6612_v5  ;;  %v9387_v34 = vpack.c.bf16 %v11467_v61, %v11465_v30  ;;  %v6686_v61 = vld [vmem:[%s11800_s16 + $0x1e0] sm:$0xff] }
 0x449   : > { %v11469_v7 = vpop.eup %11468  ;;  %v6235_v33 = vadd.f32 %v14981_v52, %v6086_v48  ;;  %v6236_v42 = vadd.f32 %v14984_v18, %v6087_v14  ;;  %v6237_v8 = vadd.f32 %v14987_v38, %v6088_v55  ;;  %v6238_v56 = vadd.f32 %v14990_v32, %v6089_v12  ;;  %v6688_v48 = vld [vmem:[%s11800_s16 + $0x1f0] sm:$0xff] }
 0x44a   : > { %v11471_v35 = vpop.eup %11470  ;;  %11480 = vpow2.f32 %v6614_v57  ;;  %v7131_v15 = vmul.bf16 %v9387_v34, %v6683_v20 }
 0x44b   : > { %v11473_v54 = vpop.eup %11472  ;;  %v6366_v16 = vmul.f32 %v14992_v31, %v6235_v33  ;;  %v6367_v36 = vmul.f32 %v14992_v31, %v6236_v42  ;;  %v6368_v52 = vmul.f32 %v14992_v31, %v6237_v8  ;;  %v9388_v63 = vpack.c.bf16 %v11471_v35, %v11469_v7  ;;  %v6687_v33 = vld [vmem:[%s11800_s16 + $0x1e8] sm:$0xff]  ;;  %v6689_v42 = vld [vmem:[%s11800_s16 + $0x1f8] sm:$0xff] }
 0x44c   : > { %v11475_v18 = vpop.eup %11474  ;;  %v6369_v38 = vmul.f32 %v14992_v31, %v6238_v56  ;;  %11482 = vpow2.f32 %v6616_v50 }
 0x44d   : > { %v6618_v27 = vmul.f32 1.442695, %v6366_v16  ;;  %v6620_v49 = vmul.f32 1.442695, %v6367_v36  ;;  %v6622_v32 = vmul.f32 1.442695, %v6368_v52  ;;  %v7132_v1 = vmul.bf16 %v9388_v63, %v6684_v21 }
 0x44e   : > { %v6624_v4 = vmul.f32 1.442695, %v6369_v38  ;;  %v9389_v29 = vpack.c.bf16 %v11475_v18, %v11473_v54  ;;  %v7140_v38 = vld [vmem:[%s11802_s6 + $0x10] sm:$0xff] }
 0x44f   : > { %11484 = vpow2.f32 %v6618_v27  ;;  %v9027_v11 = vcombine.high %v7130_v13, %v7132_v1  ;;  %v9026_v2 = vcombine.low %v7130_v13, %v7132_v1  ;;  %v10440_v47 = vpop.f32.mrf.mxu0 }
 0x450   : > { %11486 = vpow2.f32 %v6620_v49  ;;  %v7133_v22 = vmul.bf16 %v9389_v29, %v6685_v39  ;;  %v10552_v31 = vpop.f32.mrf.mxu1  ;;  %v7141_v29 = vld [vmem:[%s11802_s6 + $0x18] sm:$0xff] }
 0x451   : > { %11488 = vpow2.f32 %v6622_v32  ;;  %7893 = vmatprep.mubr.bf16.mxu0 %v9027_v11  ;;  %v10441_v60 = vpop.f32.mrf.mxu0 }
 0x452   : > { %11490 = vpow2.f32 %v6624_v4  ;;  %v9029_v26 = vcombine.high %v7131_v15, %v7133_v22  ;;  %7894 = vmatmul.mubr.bf16.gmra.mxu0 %v9026_v2  ;;  %v9028_v24 = vcombine.low %v7131_v15, %v7133_v22  ;;  %v10442_v3 = vadd.f32 %v10441_v60, %v10440_v47  ;;  %v10553_v10 = vpop.f32.mrf.mxu1 }
 0x453   : > { %v10554_v41 = vadd.f32 %v10553_v10, %v10552_v31  ;;  %v10443_v17 = vpop.f32.mrf.mxu0  ;;  %v11477_v43 = vpop.eup %11476 }
 0x454   : > { %8054 = vmatprep.mubr.bf16.mxu1 %v9029_v26  ;;  %v10555_v58 = vpop.f32.mrf.mxu1 }
 0x455   : > { %8055 = vmatmul.mubr.bf16.gmra.mxu1 %v9028_v24  ;;  %v7945_v6 = vadd.f32 %v10554_v41, %v10442_v3  ;;  %v10444_v59 = vpop.f32.mrf.mxu0  ;;  %v11479_v62 = vpop.eup %11478  ;;  %v7142_v3 = vld [vmem:[%s11802_s6 + $0x20] sm:$0xff] }
 0x456   : > { %v10445_v40 = vadd.f32 %v10444_v59, %v10443_v17  ;;  %v10556_v45 = vpop.f32.mrf.mxu1  ;;  %v9390_v5 = vpack.c.bf16 %v11479_v62, %v11477_v43  ;;  %v7143_v43 = vld [vmem:[%s11802_s6 + $0x28] sm:$0xff] }
 0x457   : > { %v8071_v37 = vadd.f32 %v7945_v6, %v7138_v28  ;;  %v10557_v19 = vadd.f32 %v10556_v45, %v10555_v58  ;;  %v11481_v51 = vpop.eup %11480 }
 0x458   : > { %v7134_v9 = vmul.bf16 %v9390_v5, %v6686_v61 }
 0x459   : > { %8103 = vst [vmem:[%s11802_s6] sm:$0xff] %v8071_v37  ;;  %v7948_v53 = vadd.f32 %v10557_v19, %v10445_v40  ;;  %v11483_v23 = vpop.eup %11482 }
 0x45a   : > { %v9391_v12 = vpack.c.bf16 %v11483_v23, %v11481_v51 }
 0x45b   : > { %v8072_v30 = vadd.f32 %v7948_v53, %v7139_v0 }
 0x45c   : > { %v11485_v25 = vpop.eup %11484  ;;  %v7135_v52 = vmul.bf16 %v9391_v12, %v6687_v33  ;;  %v7145_v12 = vld [vmem:[%s11802_s6 + $0x38] sm:$0xff] }
 0x45d   : > { %v11487_v46 = vpop.eup %11486  ;;  %8104 = vst [vmem:[%s11802_s6 + $0x8] sm:$0xff] %v8072_v30  ;;  %v10446_v14 = vpop.f32.mrf.mxu0 }
 0x45e   : > { %v11489_v55 = vpop.eup %11488  ;;  %v9392_v57 = vpack.c.bf16 %v11487_v46, %v11485_v25  ;;  %v10558_v44 = vpop.f32.mrf.mxu1  ;;  %v7144_v25 = vld [vmem:[%s11802_s6 + $0x30] sm:$0xff] }
 0x45f   : > { %v11491_v7 = vpop.eup %11490  ;;  %v10447_v8 = vpop.f32.mrf.mxu0 }
 0x460   : > { %v7136_v35 = vmul.bf16 %v9392_v57, %v6688_v48  ;;  %v9393_v50 = vpack.c.bf16 %v11491_v7, %v11489_v55  ;;  %v10448_v56 = vadd.f32 %v10447_v8, %v10446_v14  ;;  %v10559_v21 = vpop.f32.mrf.mxu1 }
 0x461   : > { %v10560_v54 = vadd.f32 %v10559_v21, %v10558_v44  ;;  %v10449_v16 = vpop.f32.mrf.mxu0 }
 0x462   : > { %v9031_v36 = vcombine.high %v7134_v9, %v7136_v35  ;;  %v7137_v63 = vmul.bf16 %v9393_v50, %v6689_v42  ;;  %v9030_v18 = vcombine.low %v7134_v9, %v7136_v35  ;;  %v10561_v13 = vpop.f32.mrf.mxu1 }
 0x463   : > { %v7953_v20 = vadd.f32 %v10560_v54, %v10448_v56  ;;  %v10450_v39 = vpop.f32.mrf.mxu0  ;;  %v7146_v56 = vld [vmem:[%s11802_s6 + $0x40] sm:$0xff] }
 0x464   : > { %7901 = vmatprep.mubr.bf16.mxu0 %v9031_v36  ;;  %v9033_v34 = vcombine.high %v7135_v52, %v7137_v63  ;;  %v9032_v27 = vcombine.low %v7135_v52, %v7137_v63  ;;  %v10451_v49 = vadd.f32 %v10450_v39, %v10449_v16  ;;  %v10562_v32 = vpop.f32.mrf.mxu1 }
 0x465   : > { %7902 = vmatmul.mubr.bf16.gmra.mxu0 %v9030_v18  ;;  %v8073_v1 = vadd.f32 %v7953_v20, %v7140_v38  ;;  %v10563_v4 = vadd.f32 %v10562_v32, %v10561_v13  ;;  %v7147_v38 = vld [vmem:[%s11802_s6 + $0x48] sm:$0xff] }
 0x466   : > { %8062 = vmatprep.mubr.bf16.mxu1 %v9033_v34 }
 0x467   : > { %8063 = vmatmul.mubr.bf16.gmra.mxu1 %v9032_v27  ;;  %8105 = vst [vmem:[%s11802_s6 + $0x10] sm:$0xff] %v8073_v1  ;;  %v7956_v11 = vadd.f32 %v10563_v4, %v10451_v49 }
 0x469   : > { %v8074_v2 = vadd.f32 %v7956_v11, %v7141_v29  ;;  %v7148_v29 = vld [vmem:[%s11802_s6 + $0x50] sm:$0xff] }
 0x46b   : > { %8106 = vst [vmem:[%s11802_s6 + $0x18] sm:$0xff] %v8074_v2  ;;  %v10452_v47 = vpop.f32.mrf.mxu0 }
 0x46c   : > { %v10564_v15 = vpop.f32.mrf.mxu1 }
 0x46d   : > { %v10453_v22 = vpop.f32.mrf.mxu0 }
 0x46e   : > { %v10454_v31 = vadd.f32 %v10453_v22, %v10452_v47  ;;  %v10565_v60 = vpop.f32.mrf.mxu1 }
 0x46f   : > { %v10566_v26 = vadd.f32 %v10565_v60, %v10564_v15  ;;  %v10455_v24 = vpop.f32.mrf.mxu0 }
 0x470   : > { %v10567_v10 = vpop.f32.mrf.mxu1 }
 0x471   : > { %v7961_v41 = vadd.f32 %v10566_v26, %v10454_v31  ;;  %v10456_v17 = vpop.f32.mrf.mxu0  ;;  %v7149_v26 = vld [vmem:[%s11802_s6 + $0x58] sm:$0xff] }
 0x472   : > { %v10457_v28 = vadd.f32 %v10456_v17, %v10455_v24  ;;  %v10568_v58 = vpop.f32.mrf.mxu1 }
 0x473   : > { %v8075_v6 = vadd.f32 %v7961_v41, %v7142_v3  ;;  %v10569_v59 = vadd.f32 %v10568_v58, %v10567_v10 }
 0x475   : > { %8107 = vst [vmem:[%s11802_s6 + $0x20] sm:$0xff] %v8075_v6  ;;  %v7964_v40 = vadd.f32 %v10569_v59, %v10457_v28 }
 0x476   : > { %v10458_v45 = vpop.f32.mrf.mxu0 }
 0x477   : > { %v8076_v62 = vadd.f32 %v7964_v40, %v7143_v43  ;;  %v7150_v40 = vld [vmem:[%s11802_s6 + $0x60] sm:$0xff] }
 0x478   : > { %v10459_v37 = vpop.f32.mrf.mxu0 }
 0x479   : > { %8108 = vst [vmem:[%s11802_s6 + $0x28] sm:$0xff] %v8076_v62  ;;  %v10570_v19 = vpop.f32.mrf.mxu1  ;;  %v10460_v0 = vadd.f32 %v10459_v37, %v10458_v45 }
 0x47a   : > { %v10461_v51 = vpop.f32.mrf.mxu0 }
 0x47b   : > { %v10571_v53 = vpop.f32.mrf.mxu1 }
 0x47c   : > { %v10572_v23 = vadd.f32 %v10571_v53, %v10570_v19  ;;  %v10462_v30 = vpop.f32.mrf.mxu0  ;;  %v7151_v53 = vld [vmem:[%s11802_s6 + $0x68] sm:$0xff] }
 0x47d   : > { %v10573_v5 = vpop.f32.mrf.mxu1  ;;  %v10463_v61 = vadd.f32 %v10462_v30, %v10461_v51 }
 0x47e   : > { %v7969_v46 = vadd.f32 %v10572_v23, %v10460_v0 }
 0x47f   : > { %v10574_v48 = vpop.f32.mrf.mxu1 }
 0x480   : > { %v8077_v14 = vadd.f32 %v7969_v46, %v7144_v25  ;;  %v10575_v55 = vadd.f32 %v10574_v48, %v10573_v5  ;;  %v10464_v57 = vpop.f32.mrf.mxu0 }
 0x481   : > { %v10576_v44 = vpop.f32.mrf.mxu1 }
 0x482   : > { %8109 = vst [vmem:[%s11802_s6 + $0x30] sm:$0xff] %v8077_v14  ;;  %v7972_v7 = vadd.f32 %v10575_v55, %v10463_v61  ;;  %v10465_v33 = vpop.f32.mrf.mxu0 }
 0x483   : > { %v10466_v42 = vadd.f32 %v10465_v33, %v10464_v57  ;;  %v10577_v8 = vpop.f32.mrf.mxu1  ;;  %v7152_v57 = vld [vmem:[%s11802_s6 + $0x70] sm:$0xff] }
 0x484   : > { %v8078_v9 = vadd.f32 %v7972_v7, %v7145_v12  ;;  %v10578_v35 = vadd.f32 %v10577_v8, %v10576_v44  ;;  %v10467_v50 = vpop.f32.mrf.mxu0 }
 0x485   : > { %v10579_v21 = vpop.f32.mrf.mxu1 }
 0x486   : > { %8110 = vst [vmem:[%s11802_s6 + $0x38] sm:$0xff] %v8078_v9  ;;  %v7977_v54 = vadd.f32 %v10578_v35, %v10466_v42  ;;  %v10468_v16 = vpop.f32.mrf.mxu0 }
 0x487   : > { %v10469_v36 = vadd.f32 %v10468_v16, %v10467_v50  ;;  %v10580_v52 = vpop.f32.mrf.mxu1  ;;  %v7153_v50 = vld [vmem:[%s11802_s6 + $0x78] sm:$0xff] }
 0x488   : > { %v8079_v63 = vadd.f32 %v7977_v54, %v7146_v56  ;;  %v10581_v18 = vadd.f32 %v10580_v52, %v10579_v21 }
 0x48a   : > { %8111 = vst [vmem:[%s11802_s6 + $0x40] sm:$0xff] %v8079_v63  ;;  %v7980_v13 = vadd.f32 %v10581_v18, %v10469_v36 }
 0x48c   : > { %v8080_v20 = vadd.f32 %v7980_v13, %v7147_v38  ;;  %v7154_v38 = vld [vmem:[%s11802_s6 + $0x80] sm:$0xff] }
 0x48e   : > { %8112 = vst [vmem:[%s11802_s6 + $0x48] sm:$0xff] %v8080_v20 }
 0x490   : > { %v10470_v39 = vpop.f32.mrf.mxu0 }
 0x491   : > { %v10582_v34 = vpop.f32.mrf.mxu1 }
 0x492   : > { %v10471_v27 = vpop.f32.mrf.mxu0 }
 0x493   : > { %v10472_v49 = vadd.f32 %v10471_v27, %v10470_v39  ;;  %v10583_v32 = vpop.f32.mrf.mxu1 }
 0x494   : > { %v10584_v1 = vadd.f32 %v10583_v32, %v10582_v34  ;;  %v10473_v4 = vpop.f32.mrf.mxu0 }
 0x495   : > { %v10585_v11 = vpop.f32.mrf.mxu1 }
 0x496   : > { %v7985_v2 = vadd.f32 %v10584_v1, %v10472_v49  ;;  %v10474_v47 = vpop.f32.mrf.mxu0 }
 0x497   : > { %v10475_v15 = vadd.f32 %v10474_v47, %v10473_v4  ;;  %v10586_v22 = vpop.f32.mrf.mxu1  ;;  %v7155_v4 = vld [vmem:[%s11802_s6 + $0x88] sm:$0xff] }
 0x498   : > { %v8081_v31 = vadd.f32 %v7985_v2, %v7148_v29  ;;  %v10587_v60 = vadd.f32 %v10586_v22, %v10585_v11 }
 0x49a   : > { %8113 = vst [vmem:[%s11802_s6 + $0x50] sm:$0xff] %v8081_v31  ;;  %v7988_v24 = vadd.f32 %v10587_v60, %v10475_v15 }
 0x49c   : > { %v8082_v3 = vadd.f32 %v7988_v24, %v7149_v26  ;;  %v7156_v26 = vld [vmem:[%s11802_s6 + $0x90] sm:$0xff] }
 0x49e   : > { %8114 = vst [vmem:[%s11802_s6 + $0x58] sm:$0xff] %v8082_v3 }
 0x4aa   : > { %v10476_v10 = vpop.f32.mrf.mxu0 }
 0x4ac   : > { %v10477_v41 = vpop.f32.mrf.mxu0 }
 0x4ad   : > { %v10588_v17 = vpop.f32.mrf.mxu1  ;;  %v10478_v28 = vadd.f32 %v10477_v41, %v10476_v10 }
 0x4ae   : > { %v10479_v58 = vpop.f32.mrf.mxu0 }
 0x4af   : > { %v10589_v6 = vpop.f32.mrf.mxu1 }
 0x4b0   : > { %v10590_v59 = vadd.f32 %v10589_v6, %v10588_v17  ;;  %v10480_v43 = vpop.f32.mrf.mxu0 }
 0x4b1   : > { %v10591_v45 = vpop.f32.mrf.mxu1  ;;  %v10481_v37 = vadd.f32 %v10480_v43, %v10479_v58 }
 0x4b2   : > { %v7993_v62 = vadd.f32 %v10590_v59, %v10478_v28  ;;  %v7157_v59 = vld [vmem:[%s11802_s6 + $0x98] sm:$0xff] }
 0x4b3   : > { %v10592_v19 = vpop.f32.mrf.mxu1 }
 0x4b4   : > { %v8083_v0 = vadd.f32 %v7993_v62, %v7150_v40  ;;  %v10593_v51 = vadd.f32 %v10592_v19, %v10591_v45 }
 0x4b6   : > { %8115 = vst [vmem:[%s11802_s6 + $0x60] sm:$0xff] %v8083_v0  ;;  %v7996_v23 = vadd.f32 %v10593_v51, %v10481_v37 }
 0x4b8   : > { %v8084_v30 = vadd.f32 %v7996_v23, %v7151_v53  ;;  %v10482_v25 = vpop.f32.mrf.mxu0  ;;  %v7158_v53 = vld [vmem:[%s11802_s6 + $0xa0] sm:$0xff] }
 0x4ba   : > { %8116 = vst [vmem:[%s11802_s6 + $0x68] sm:$0xff] %v8084_v30  ;;  %v10594_v5 = vpop.f32.mrf.mxu1  ;;  %v10483_v46 = vpop.f32.mrf.mxu0 }
 0x4bb   : > { %v10484_v61 = vadd.f32 %v10483_v46, %v10482_v25 }
 0x4bc   : > { %v10595_v48 = vpop.f32.mrf.mxu1  ;;  %v10485_v14 = vpop.f32.mrf.mxu0 }
 0x4bd   : > { %v10596_v55 = vadd.f32 %v10595_v48, %v10594_v5 }
 0x4be   : > { %v10597_v12 = vpop.f32.mrf.mxu1  ;;  %v10486_v44 = vpop.f32.mrf.mxu0 }
 0x4bf   : > { %v8001_v7 = vadd.f32 %v10596_v55, %v10484_v61  ;;  %v10487_v33 = vadd.f32 %v10486_v44, %v10485_v14  ;;  %v7159_v55 = vld [vmem:[%s11802_s6 + $0xa8] sm:$0xff] }
 0x4c0   : > { %v10598_v42 = vpop.f32.mrf.mxu1  ;;  %v10488_v8 = vpop.f32.mrf.mxu0 }
 0x4c1   : > { %v8085_v9 = vadd.f32 %v8001_v7, %v7152_v57  ;;  %v10599_v35 = vadd.f32 %v10598_v42, %v10597_v12 }
 0x4c2   : > { %v10600_v56 = vpop.f32.mrf.mxu1  ;;  %v10489_v21 = vpop.f32.mrf.mxu0 }
 0x4c3   : > { %8117 = vst [vmem:[%s11802_s6 + $0x70] sm:$0xff] %v8085_v9  ;;  %v8004_v54 = vadd.f32 %v10599_v35, %v10487_v33  ;;  %v10490_v16 = vadd.f32 %v10489_v21, %v10488_v8  ;;  %v7160_v35 = vld [vmem:[%s11802_s6 + $0xb0] sm:$0xff] }
 0x4c4   : > { %v10601_v36 = vpop.f32.mrf.mxu1  ;;  %v10491_v52 = vpop.f32.mrf.mxu0 }
 0x4c5   : > { %v8086_v63 = vadd.f32 %v8004_v54, %v7153_v50  ;;  %v10602_v18 = vadd.f32 %v10601_v36, %v10600_v56 }
 0x4c6   : > { %v10603_v13 = vpop.f32.mrf.mxu1  ;;  %v10492_v20 = vpop.f32.mrf.mxu0 }
 0x4c7   : > { %8118 = vst [vmem:[%s11802_s6 + $0x78] sm:$0xff] %v8086_v63  ;;  %v8009_v39 = vadd.f32 %v10602_v18, %v10490_v16  ;;  %v10493_v34 = vadd.f32 %v10492_v20, %v10491_v52  ;;  %v7161_v63 = vld [vmem:[%s11802_s6 + $0xb8] sm:$0xff] }
 0x4c8   : > { %v10604_v27 = vpop.f32.mrf.mxu1  ;;  %v10494_v49 = vpop.f32.mrf.mxu0 }
 0x4c9   : > { %v8087_v32 = vadd.f32 %v8009_v39, %v7154_v38  ;;  %v10605_v1 = vadd.f32 %v10604_v27, %v10603_v13 }
 0x4ca   : > { %v10606_v29 = vpop.f32.mrf.mxu1  ;;  %v10495_v11 = vpop.f32.mrf.mxu0 }
 0x4cb   : > { %8119 = vst [vmem:[%s11802_s6 + $0x80] sm:$0xff] %v8087_v32  ;;  %v8012_v2 = vadd.f32 %v10605_v1, %v10493_v34  ;;  %v10496_v47 = vadd.f32 %v10495_v11, %v10494_v49  ;;  %v7162_v1 = vld [vmem:[%s11802_s6 + $0xc0] sm:$0xff] }
 0x4cc   : > { %v10607_v15 = vpop.f32.mrf.mxu1  ;;  %v10497_v22 = vpop.f32.mrf.mxu0 }
 0x4cd   : > { %v8088_v31 = vadd.f32 %v8012_v2, %v7155_v4  ;;  %v10608_v60 = vadd.f32 %v10607_v15, %v10606_v29 }
 0x4ce   : > { %v10609_v24 = vpop.f32.mrf.mxu1  ;;  %v10498_v3 = vpop.f32.mrf.mxu0 }
 0x4cf   : > { %8120 = vst [vmem:[%s11802_s6 + $0x88] sm:$0xff] %v8088_v31  ;;  %v8017_v10 = vadd.f32 %v10608_v60, %v10496_v47  ;;  %v10499_v41 = vadd.f32 %v10498_v3, %v10497_v22  ;;  %v7163_v31 = vld [vmem:[%s11802_s6 + $0xc8] sm:$0xff] }
 0x4d0   : > { %v10610_v17 = vpop.f32.mrf.mxu1  ;;  %v10500_v28 = vpop.f32.mrf.mxu0 }
 0x4d1   : > { %v8089_v58 = vadd.f32 %v8017_v10, %v7156_v26  ;;  %v10611_v6 = vadd.f32 %v10610_v17, %v10609_v24 }
 0x4d2   : > { %v10612_v43 = vpop.f32.mrf.mxu1  ;;  %v10501_v40 = vpop.f32.mrf.mxu0 }
 0x4d3   : > { %8121 = vst [vmem:[%s11802_s6 + $0x90] sm:$0xff] %v8089_v58  ;;  %v8020_v45 = vadd.f32 %v10611_v6, %v10499_v41  ;;  %v10502_v62 = vadd.f32 %v10501_v40, %v10500_v28  ;;  %v7164_v6 = vld [vmem:[%s11802_s6 + $0xd0] sm:$0xff] }
 0x4d4   : > { %v10613_v37 = vpop.f32.mrf.mxu1  ;;  %v10503_v19 = vpop.f32.mrf.mxu0 }
 0x4d5   : > { %v8090_v0 = vadd.f32 %v8020_v45, %v7157_v59  ;;  %v10614_v51 = vadd.f32 %v10613_v37, %v10612_v43 }
 0x4d6   : > { %v10615_v23 = vpop.f32.mrf.mxu1  ;;  %v10504_v30 = vpop.f32.mrf.mxu0 }
 0x4d7   : > { %8122 = vst [vmem:[%s11802_s6 + $0x98] sm:$0xff] %v8090_v0  ;;  %v8025_v25 = vadd.f32 %v10614_v51, %v10502_v62  ;;  %v10505_v5 = vadd.f32 %v10504_v30, %v10503_v19  ;;  %v7165_v0 = vld [vmem:[%s11802_s6 + $0xd8] sm:$0xff] }
 0x4d8   : > { %v10616_v46 = vpop.f32.mrf.mxu1  ;;  %v10506_v61 = vpop.f32.mrf.mxu0 }
 0x4d9   : > { %v8091_v48 = vadd.f32 %v8025_v25, %v7158_v53  ;;  %v10617_v14 = vadd.f32 %v10616_v46, %v10615_v23 }
 0x4da   : > { %v10618_v57 = vpop.f32.mrf.mxu1  ;;  %v10507_v12 = vpop.f32.mrf.mxu0 }
 0x4db   : > { %8123 = vst [vmem:[%s11802_s6 + $0xa0] sm:$0xff] %v8091_v48  ;;  %v8028_v44 = vadd.f32 %v10617_v14, %v10505_v5  ;;  %v10508_v7 = vadd.f32 %v10507_v12, %v10506_v61 }
 0x4dc   : > { %v10619_v33 = vpop.f32.mrf.mxu1  ;;  %v10509_v42 = vpop.f32.mrf.mxu0 }
 0x4dd   : > { %v8092_v8 = vadd.f32 %v8028_v44, %v7159_v55  ;;  %v10620_v9 = vadd.f32 %v10619_v33, %v10618_v57  ;;  %v7166_v55 = vld [vmem:[%s11802_s6 + $0xe0] sm:$0xff] }
 0x4de   : > { %v10621_v50 = vpop.f32.mrf.mxu1  ;;  %v10510_v56 = vpop.f32.mrf.mxu0 }
 0x4df   : > { %8124 = vst [vmem:[%s11802_s6 + $0xa8] sm:$0xff] %v8092_v8  ;;  %v8033_v21 = vadd.f32 %v10620_v9, %v10508_v7  ;;  %v10511_v54 = vadd.f32 %v10510_v56, %v10509_v42  ;;  %v7167_v8 = vld [vmem:[%s11802_s6 + $0xe8] sm:$0xff] }
 0x4e0   : > { %v10622_v16 = vpop.f32.mrf.mxu1  ;;  %v10512_v18 = vpop.f32.mrf.mxu0 }
 0x4e1   : > { %v8093_v36 = vadd.f32 %v8033_v21, %v7160_v35  ;;  %v10623_v52 = vadd.f32 %v10622_v16, %v10621_v50 }
 0x4e2   : > { %v10624_v13 = vpop.f32.mrf.mxu1  ;;  %v10513_v20 = vpop.f32.mrf.mxu0 }
 0x4e3   : > { %8125 = vst [vmem:[%s11802_s6 + $0xb0] sm:$0xff] %v8093_v36  ;;  %v8036_v38 = vadd.f32 %v10623_v52, %v10511_v54  ;;  %v10514_v34 = vadd.f32 %v10513_v20, %v10512_v18 }
 0x4e4   : > { %v10625_v27 = vpop.f32.mrf.mxu1  ;;  %v10515_v49 = vpop.f32.mrf.mxu0 }
 0x4e5   : > { %v8094_v39 = vadd.f32 %v8036_v38, %v7161_v63  ;;  %v10626_v32 = vadd.f32 %v10625_v27, %v10624_v13  ;;  %v7168_v63 = vld [vmem:[%s11802_s6 + $0xf0] sm:$0xff] }
 0x4e6   : > { %v10627_v4 = vpop.f32.mrf.mxu1  ;;  %v10516_v29 = vpop.f32.mrf.mxu0 }
 0x4e7   : > { %8126 = vst [vmem:[%s11802_s6 + $0xb8] sm:$0xff] %v8094_v39  ;;  %v8041_v11 = vadd.f32 %v10626_v32, %v10514_v34  ;;  %v10517_v2 = vadd.f32 %v10516_v29, %v10515_v49  ;;  %v7169_v49 = vld [vmem:[%s11802_s6 + $0xf8] sm:$0xff] }
 0x4e8   : > { %v10628_v47 = vpop.f32.mrf.mxu1 }
 0x4e9   : > { %v8095_v15 = vadd.f32 %v8041_v11, %v7162_v1  ;;  %v10629_v22 = vadd.f32 %v10628_v47, %v10627_v4 }
 0x4eb   : > { %8127 = vst [vmem:[%s11802_s6 + $0xc0] sm:$0xff] %v8095_v15  ;;  %v8044_v60 = vadd.f32 %v10629_v22, %v10517_v2 }
 0x4ed   : > { %v8096_v26 = vadd.f32 %v8044_v60, %v7163_v31 }
 0x4ef   : > { %8128 = vst [vmem:[%s11802_s6 + $0xc8] sm:$0xff] %v8096_v26 }
 0x4fe   : > { %v10518_v24 = vpop.f32.mrf.mxu0 }
 0x500   : > { %v10630_v3 = vpop.f32.mrf.mxu1  ;;  %v10519_v10 = vpop.f32.mrf.mxu0 }
 0x501   : > { %v10520_v41 = vadd.f32 %v10519_v10, %v10518_v24 }
 0x502   : > { %v10631_v17 = vpop.f32.mrf.mxu1  ;;  %v10521_v28 = vpop.f32.mrf.mxu0 }
 0x503   : > { %v10632_v58 = vadd.f32 %v10631_v17, %v10630_v3 }
 0x504   : > { %v10633_v59 = vpop.f32.mrf.mxu1  ;;  %v10522_v43 = vpop.f32.mrf.mxu0 }
 0x505   : > { %v8049_v40 = vadd.f32 %v10632_v58, %v10520_v41  ;;  %v10523_v45 = vadd.f32 %v10522_v43, %v10521_v28 }
 0x506   : > { %v10634_v62 = vpop.f32.mrf.mxu1 }
 0x507   : > { %v8097_v37 = vadd.f32 %v8049_v40, %v7164_v6  ;;  %v10635_v19 = vadd.f32 %v10634_v62, %v10633_v59 }
 0x509   : > { %8129 = vst [vmem:[%s11802_s6 + $0xd0] sm:$0xff] %v8097_v37  ;;  %v8052_v51 = vadd.f32 %v10635_v19, %v10523_v45 }
 0x50b   : > { %v8098_v53 = vadd.f32 %v8052_v51, %v7165_v0 }
 0x50d   : > { %8130 = vst [vmem:[%s11802_s6 + $0xd8] sm:$0xff] %v8098_v53 }
 0x512   : > { %v10524_v23 = vpop.f32.mrf.mxu0 }
 0x514   : > { %v10525_v30 = vpop.f32.mrf.mxu0 }
 0x515   : > { %v10636_v25 = vpop.f32.mrf.mxu1  ;;  %v10526_v5 = vadd.f32 %v10525_v30, %v10524_v23 }
 0x516   : > { %v10527_v46 = vpop.f32.mrf.mxu0 }
 0x517   : > { %v10637_v61 = vpop.f32.mrf.mxu1 }
 0x518   : > { %v10638_v48 = vadd.f32 %v10637_v61, %v10636_v25  ;;  %v10528_v14 = vpop.f32.mrf.mxu0 }
 0x519   : > { %v10639_v57 = vpop.f32.mrf.mxu1  ;;  %v10529_v44 = vadd.f32 %v10528_v14, %v10527_v46 }
 0x51a   : > { %v8057_v12 = vadd.f32 %v10638_v48, %v10526_v5 }
 0x51b   : > { %v10640_v7 = vpop.f32.mrf.mxu1 }
 0x51c   : > { %v8099_v33 = vadd.f32 %v8057_v12, %v7166_v55  ;;  %v10641_v42 = vadd.f32 %v10640_v7, %v10639_v57 }
 0x51e   : > { %8131 = vst [vmem:[%s11802_s6 + $0xe0] sm:$0xff] %v8099_v33  ;;  %v8060_v9 = vadd.f32 %v10641_v42, %v10529_v44 }
 0x520   : > { %v8100_v35 = vadd.f32 %v8060_v9, %v7167_v8 }
 0x522   : > { %8132 = vst [vmem:[%s11802_s6 + $0xe8] sm:$0xff] %v8100_v35 }
 0x525   : > { %v10530_v50 = vpop.f32.mrf.mxu0 }
 0x527   : > { %v10642_v56 = vpop.f32.mrf.mxu1  ;;  %v10531_v21 = vpop.f32.mrf.mxu0 }
 0x528   : > { %v10532_v54 = vadd.f32 %v10531_v21, %v10530_v50 }
 0x529   : > { %v10643_v16 = vpop.f32.mrf.mxu1  ;;  %v10533_v36 = vpop.f32.mrf.mxu0 }
 0x52a   : > { %v10644_v52 = vadd.f32 %v10643_v16, %v10642_v56 }
 0x52b   : > { %v10645_v18 = vpop.f32.mrf.mxu1  ;;  %v10534_v38 = vpop.f32.mrf.mxu0 }
 0x52c   : > { %v8065_v13 = vadd.f32 %v10644_v52, %v10532_v54  ;;  %v10535_v20 = vadd.f32 %v10534_v38, %v10533_v36 }
 0x52d   : > { %v10646_v39 = vpop.f32.mrf.mxu1 }
 0x52e   : > { %v8101_v34 = vadd.f32 %v8065_v13, %v7168_v63  ;;  %v10647_v27 = vadd.f32 %v10646_v39, %v10645_v18 }
 0x530   : > { %8133 = vst [vmem:[%s11802_s6 + $0xf0] sm:$0xff] %v8101_v34  ;;  %v8068_v32 = vadd.f32 %v10647_v27, %v10535_v20  ;;  %8138 = sbr.rel (%p9066_p10) target bundleno = 1353 (0x549), region = 68 }
 0x532   : > { %v8102_v1 = vadd.f32 %v8068_v32, %v7169_v49 }
 0x534   : > { %8134 = vst [vmem:[%s11802_s6 + $0xf8] sm:$0xff] %v8102_v1 }
 0x535   : > { %v8139_v4 = vld [vmem:[%s11802_s6] sm:$0xff]  ;;  %v8140_v11 = vld [vmem:[%s11802_s6 + $0x8] sm:$0xff]  ;;  %v8141_v15 = vld [vmem:[%s11802_s6 + $0x10] sm:$0xff] }
 0x536   : > { %v15743_v29 = vld [vmem:[%s15907_s5] ss:$0 sm:$0xff]  ;;  %v8142_v22 = vld [vmem:[%s11802_s6 + $0x18] sm:$0xff]  ;;  %v8144_v3 = vld [vmem:[%s11802_s6 + $0x28] sm:$0xff] }
 0x537   : > { %v8178_v2 = vadd.f32 %v15743_v29, %v8139_v4  ;;  %v8179_v47 = vadd.f32 %v15743_v29, %v8140_v11  ;;  %v8143_v31 = vld [vmem:[%s11802_s6 + $0x20] sm:$0xff]  ;;  %v8180_v60 = vadd.f32 %v15743_v29, %v8141_v15  ;;  %v8181_v26 = vadd.f32 %v15743_v29, %v8142_v22  ;;  %v8145_v10 = vld [vmem:[%s11802_s6 + $0x30] sm:$0xff]  ;;  %v8146_v41 = vld [vmem:[%s11802_s6 + $0x38] sm:$0xff] }
 0x538   : > { %v8182_v24 = vadd.f32 %v15743_v29, %v8143_v31  ;;  %v8183_v17 = vadd.f32 %v15743_v29, %v8144_v3  ;;  %v8184_v28 = vadd.f32 %v15743_v29, %v8145_v10  ;;  %v8185_v58 = vadd.f32 %v15743_v29, %v8146_v41  ;;  %v8147_v6 = vld [vmem:[%s11802_s6 + $0x40] sm:$0xff]  ;;  %v8148_v59 = vld [vmem:[%s11802_s6 + $0x48] sm:$0xff]  ;;  %v8149_v43 = vld [vmem:[%s11802_s6 + $0x50] sm:$0xff] }
 0x539   : > { %8210 = vst [vmem:[%s11802_s6] sm:$0xff] %v8178_v2  ;;  %8211 = vst [vmem:[%s11802_s6 + $0x8] sm:$0xff] %v8179_v47  ;;  %v8186_v40 = vadd.f32 %v15743_v29, %v8147_v6  ;;  %v8187_v45 = vadd.f32 %v15743_v29, %v8148_v59  ;;  %v8188_v62 = vadd.f32 %v15743_v29, %v8149_v43  ;;  %v8150_v37 = vld [vmem:[%s11802_s6 + $0x58] sm:$0xff]  ;;  %v8151_v19 = vld [vmem:[%s11802_s6 + $0x60] sm:$0xff] }
 0x53a   : > { %8212 = vst [vmem:[%s11802_s6 + $0x10] sm:$0xff] %v8180_v60  ;;  %8213 = vst [vmem:[%s11802_s6 + $0x18] sm:$0xff] %v8181_v26  ;;  %v8152_v0 = vld [vmem:[%s11802_s6 + $0x68] sm:$0xff]  ;;  %v8189_v51 = vadd.f32 %v15743_v29, %v8150_v37  ;;  %v8190_v53 = vadd.f32 %v15743_v29, %v8151_v19  ;;  %v8153_v30 = vld [vmem:[%s11802_s6 + $0x70] sm:$0xff] }
 0x53b   : > { %8214 = vst [vmem:[%s11802_s6 + $0x20] sm:$0xff] %v8182_v24  ;;  %8215 = vst [vmem:[%s11802_s6 + $0x28] sm:$0xff] %v8183_v17  ;;  %v8191_v23 = vadd.f32 %v15743_v29, %v8152_v0  ;;  %v8154_v25 = vld [vmem:[%s11802_s6 + $0x78] sm:$0xff]  ;;  %v8155_v5 = vld [vmem:[%s11802_s6 + $0x80] sm:$0xff]  ;;  %v8192_v46 = vadd.f32 %v15743_v29, %v8153_v30 }
 0x53c   : > { %8216 = vst [vmem:[%s11802_s6 + $0x30] sm:$0xff] %v8184_v28  ;;  %8217 = vst [vmem:[%s11802_s6 + $0x38] sm:$0xff] %v8185_v58  ;;  %v8193_v61 = vadd.f32 %v15743_v29, %v8154_v25  ;;  %v8194_v48 = vadd.f32 %v15743_v29, %v8155_v5  ;;  %v8156_v14 = vld [vmem:[%s11802_s6 + $0x88] sm:$0xff]  ;;  %v8157_v55 = vld [vmem:[%s11802_s6 + $0x90] sm:$0xff] }
 0x53d   : > { %8218 = vst [vmem:[%s11802_s6 + $0x40] sm:$0xff] %v8186_v40  ;;  %8219 = vst [vmem:[%s11802_s6 + $0x48] sm:$0xff] %v8187_v45  ;;  %v8158_v57 = vld [vmem:[%s11802_s6 + $0x98] sm:$0xff]  ;;  %v8195_v12 = vadd.f32 %v15743_v29, %v8156_v14  ;;  %v8196_v44 = vadd.f32 %v15743_v29, %v8157_v55  ;;  %v8159_v33 = vld [vmem:[%s11802_s6 + $0xa0] sm:$0xff] }
 0x53e   : > { %8220 = vst [vmem:[%s11802_s6 + $0x50] sm:$0xff] %v8188_v62  ;;  %8221 = vst [vmem:[%s11802_s6 + $0x58] sm:$0xff] %v8189_v51  ;;  %v8197_v7 = vadd.f32 %v15743_v29, %v8158_v57  ;;  %v8160_v42 = vld [vmem:[%s11802_s6 + $0xa8] sm:$0xff]  ;;  %v8161_v8 = vld [vmem:[%s11802_s6 + $0xb0] sm:$0xff]  ;;  %v8198_v9 = vadd.f32 %v15743_v29, %v8159_v33 }
 0x53f   : > { %8222 = vst [vmem:[%s11802_s6 + $0x60] sm:$0xff] %v8190_v53  ;;  %8223 = vst [vmem:[%s11802_s6 + $0x68] sm:$0xff] %v8191_v23  ;;  %v8199_v35 = vadd.f32 %v15743_v29, %v8160_v42  ;;  %v8200_v50 = vadd.f32 %v15743_v29, %v8161_v8  ;;  %v8162_v56 = vld [vmem:[%s11802_s6 + $0xb8] sm:$0xff]  ;;  %v8163_v21 = vld [vmem:[%s11802_s6 + $0xc0] sm:$0xff] }
 0x540   : > { %8224 = vst [vmem:[%s11802_s6 + $0x70] sm:$0xff] %v8192_v46  ;;  %8225 = vst [vmem:[%s11802_s6 + $0x78] sm:$0xff] %v8193_v61  ;;  %v8164_v54 = vld [vmem:[%s11802_s6 + $0xc8] sm:$0xff]  ;;  %v8201_v16 = vadd.f32 %v15743_v29, %v8162_v56  ;;  %v8202_v36 = vadd.f32 %v15743_v29, %v8163_v21  ;;  %v8165_v63 = vld [vmem:[%s11802_s6 + $0xd0] sm:$0xff] }
 0x541   : > { %8226 = vst [vmem:[%s11802_s6 + $0x80] sm:$0xff] %v8194_v48  ;;  %8227 = vst [vmem:[%s11802_s6 + $0x88] sm:$0xff] %v8195_v12  ;;  %v8203_v52 = vadd.f32 %v15743_v29, %v8164_v54  ;;  %v8166_v18 = vld [vmem:[%s11802_s6 + $0xd8] sm:$0xff]  ;;  %v8167_v38 = vld [vmem:[%s11802_s6 + $0xe0] sm:$0xff]  ;;  %v8204_v13 = vadd.f32 %v15743_v29, %v8165_v63 }
 0x542   : > { %8228 = vst [vmem:[%s11802_s6 + $0x90] sm:$0xff] %v8196_v44  ;;  %8229 = vst [vmem:[%s11802_s6 + $0x98] sm:$0xff] %v8197_v7  ;;  %v8205_v20 = vadd.f32 %v15743_v29, %v8166_v18  ;;  %v8206_v39 = vadd.f32 %v15743_v29, %v8167_v38  ;;  %v8168_v34 = vld [vmem:[%s11802_s6 + $0xe8] sm:$0xff]  ;;  %v8169_v27 = vld [vmem:[%s11802_s6 + $0xf0] sm:$0xff] }
 0x543   : > { %8230 = vst [vmem:[%s11802_s6 + $0xa0] sm:$0xff] %v8198_v9  ;;  %8231 = vst [vmem:[%s11802_s6 + $0xa8] sm:$0xff] %v8199_v35  ;;  %v8170_v49 = vld [vmem:[%s11802_s6 + $0xf8] sm:$0xff]  ;;  %v8207_v32 = vadd.f32 %v15743_v29, %v8168_v34  ;;  %v8208_v1 = vadd.f32 %v15743_v29, %v8169_v27 }
 0x544   : > { %8232 = vst [vmem:[%s11802_s6 + $0xb0] sm:$0xff] %v8200_v50  ;;  %8233 = vst [vmem:[%s11802_s6 + $0xb8] sm:$0xff] %v8201_v16  ;;  %v8209_v4 = vadd.f32 %v15743_v29, %v8170_v49 }
 0x545   : > { %8234 = vst [vmem:[%s11802_s6 + $0xc0] sm:$0xff] %v8202_v36  ;;  %8235 = vst [vmem:[%s11802_s6 + $0xc8] sm:$0xff] %v8203_v52 }
 0x546   : > { %8236 = vst [vmem:[%s11802_s6 + $0xd0] sm:$0xff] %v8204_v13  ;;  %8237 = vst [vmem:[%s11802_s6 + $0xd8] sm:$0xff] %v8205_v20 }
 0x547   : > { %8238 = vst [vmem:[%s11802_s6 + $0xe0] sm:$0xff] %v8206_v39  ;;  %8239 = vst [vmem:[%s11802_s6 + $0xe8] sm:$0xff] %v8207_v32 }
 0x548   : > { %8240 = vst [vmem:[%s11802_s6 + $0xf0] sm:$0xff] %v8208_v1  ;;  %8241 = vst [vmem:[%s11802_s6 + $0xf8] sm:$0xff] %v8209_v4 }
 0x549 PF: > { %s9395_s30 = sshll.u32 %s11610_s9, 12  ;;  %s8256_s24 = sshll.u32 %s11802_s6, 4  ;;  %s15847_s24 = int_to_ptr.vmem [resolvable:$true] %s8256_s24 }
 0x54a   : > { %s15844_s0 = scalar_lea.hbm %s15910_s8, %s9395_s30  ;;  %s16553_s20 = sand.u32 1, %s11598_s28  }
 0x54b   : > { %s15851_s25 = scalar_lea.sflag [#allocation5], %s16553_s20  ;;  %s11522_s15 = scalar_lea.vmem %s15847_s24, 4096 }
 0x54c   : > { %p11523_p13 = scmp.ne.s32.totalorder %s15847_s24, %s11522_s15  ;;  %p16554_p0 = scmp.ne.s32.totalorder %s15944_s18, 0 }
 0x54d   : > { %s11633_s9 = smov [#allocation9]  }
 0x54e   : > { %p11524_p2 = pnand %p11523_p13, %p16554_p0  ;;  %s11526_s14 = sshll.u32 %s11633_s9, 4  ;;  %s11527_s14 = int_to_ptr.vmem [resolvable:$false] %s11526_s14 }
 0x54f   : > { %s11528_s21 = scalar_lea.vmem %s11527_s14, 8192  ;;  %p11529_p8 = scmp.lt.s32.totalorder %s15847_s24, %s11527_s14 }
 0x550   : > { %p11525_p7 = pneg %p11524_p2  ;;  %p11530_p11 = scmp.lt.s32.totalorder %s11528_s21, %s11522_s15 }
 0x552   : > { %p11531_p12 = por %p11530_p11, %p11529_p8 }
 0x554   : > { %p11532_p1 = pnand %p11531_p12, %p11525_p7 }
 0x556   : > { %11535 = shalt.err (!%p11532_p1)
}
 0x557   : > { %s11536_s6 = scalar_lea.hbm %s15844_s0, 4096  ;;  %s11540_s16 = scalar_lea.hbm %s15910_s8, 8192 }
 0x558   : > { %p11537_p4 = scmp.ne.s32.totalorder %s15844_s0, %s11536_s6  ;;  %p11541_p3 = scmp.lt.s32.totalorder %s15844_s0, %s15910_s8 }
 0x559   : > { %p11542_p9 = scmp.lt.s32.totalorder %s11540_s16, %s11536_s6 }
 0x55a   : > { %p11538_p5 = pnand %p11537_p4, %p16554_p0 }
 0x55b   : > { %p11543_p10 = por %p11542_p9, %p11541_p3 }
 0x55c   : > { %p11539_p6 = pneg %p11538_p5 }
 0x55e   : > { %p11544_p13 = pnand %p11543_p10, %p11539_p6 }
 0x560   : > { %11547 = shalt.err (!%p11544_p13)
}
 0x561   : > { %s11634_s23 = smov 128   ;;  %s11635_s7 = smov 8  }
 0x562   : > { %11056 = dma.vmem_to_hbm [thread:$0]  (%p16554_p0), %s15847_s24, 4096, %s15844_s0, %s15851_s25, %s11634_s23, %s11634_s23, %s11635_s7  }
 0x563 PF: > { %p11073_p2 = scmp.ge.s32.totalorder %s11622_s12, 2  ;;  %s8271_s20 = sand.u32 1, %s11594_s27  }
 0x564   : > { %p16555_p7 = scmp.ne.s32.totalorder %s15946_s19, 0  ;;  %s8272_s15 = scalar_lea.sflag [#allocation5], %s8271_s20 }
 0x566   : > { %p11066_p8 = pnand %p11073_p2, %p16555_p7 }
 0x568   : > { %p11067_p11 = pneg %p11066_p8 }
 0x56a   : > { %11589 = dma.done.wait (%p11067_p11), %s8272_s15, 4096  }
 0x56b   : > { %11591 = vsyncadd (%p11067_p11), %s8272_s15, 4294963200  ;;  %s23_s12 = sadd.s32 1, %s11622_s12   ;;  %s16556_s18 = sld [smem:[#allocation13_spill]] }
 0x56c   : > { %p20_p12 = scmp.ge.s32.totalorder %s23_s12, 10   ;;  %s16557_s0 = sld [smem:[#allocation14_spill]] }
 0x56d   : > { %s16558_s27 = smov %s11598_s28  ;;  %s16559_s28 = smov %s11602_s29 }
 0x56e   : > { %s16560_s29 = smov %s11761_s26  ;;  %s16561_s30 = smov %s11614_s10 }
 0x56f   : > { %s16562_s9 = smov %s11618_s11  ;;  %22 = sbr.rel (!%p20_p12) target bundleno = 11 (0xb), region = 118 }
 0x571   : > { %s16563_s10 = smov %s16556_s18 }
 0x572   : > { %s16564_s11 = smov %s16557_s0 }
 0x574   :  { %8277 = vsyncpa [#allocation5], 1 }
 0x575   :  { %8279 = vsyncpa [#allocation5 + $0x1], 1 }
 0x576   :  { %8280 = vsyncpa [#allocation6], 1 }
 0x577   :  { %8282 = vsyncpa [#allocation6 + $0x1], 1 }
 0x578   :  { %8283 = vsyncpa [#allocation8], 1 }

</bundles_post_ra>
